<compile_context>
chip_gen: v7x
topology: tpu7x:2x2x1
jax: 0.10.0
libtpu: 0.0.40
codegen_flags: <defaults>
</compile_context>

<pallas_src>
import functools

import jax
import jax.numpy as jnp
from jax import lax
from jax.experimental import pallas as pl
from jax.experimental.pallas import tpu as pltpu


def _round_up(x, m):
    return ((x + m - 1) // m) * m


# ----------------------------------------------------------------------------
# One-time parameter preparation (outside the hot path)
# ----------------------------------------------------------------------------
def prepare_params(params):
    """Pad/transpose/cast weights once: conv1 as an im2col matrix, conv2..5 as
    per-tap (kh*kw, Cin_pad, Cout_pad) matmul weights, fc transposed; all
    channel dims padded to multiples of 128 (lane-dense), matmul operands in
    bf16, biases in f32."""
    def cpad(c):
        return _round_up(c, 128)

    out = {}

    # conv1 -> single im2col matmul weight (kh*kw*Cin, Cout), padded
    w1 = params["conv1_w"]                                   # (O, C, kh, kw)
    O1, C1, kh1, kw1 = w1.shape
    k1 = kh1 * kw1 * C1
    w1m = jnp.transpose(w1, (2, 3, 1, 0)).reshape(k1, O1)
    out["w1"] = jnp.pad(
        w1m, ((0, _round_up(k1, 128) - k1), (0, cpad(O1) - O1))
    ).astype(jnp.bfloat16)
    out["b1"] = jnp.pad(params["conv1_b"], (0, cpad(O1) - O1)
                        ).reshape(1, cpad(O1)).astype(jnp.float32)

    # conv2..conv5 -> per-tap matmul weights (kh*kw, Cin_pad, Cout_pad)
    for idx in (2, 3, 4, 5):
        w = params[f"conv{idx}_w"]                           # (O, C, kh, kw)
        O, C, kh, kw = w.shape
        wt = jnp.transpose(w, (2, 3, 1, 0)).reshape(kh * kw, C, O)
        wt = jnp.pad(wt, ((0, 0), (0, cpad(C) - C), (0, cpad(O) - O)))
        out[f"w{idx}"] = wt.astype(jnp.bfloat16)
        out[f"b{idx}"] = jnp.pad(params[f"conv{idx}_b"], (0, cpad(O) - O)
                                 ).reshape(1, cpad(O)).astype(jnp.float32)

    # classifier (Linear): (Cin_pad, num_classes_pad), pre-transposed
    wf = params["fc_w"]                                      # (nc, Cin)
    nc, cf = wf.shape
    out["wf"] = jnp.pad(wf.T, ((0, cpad(cf) - cf), (0, cpad(nc) - nc))
                        ).astype(jnp.bfloat16)
    out["bf"] = jnp.pad(params["fc_b"], (0, cpad(nc) - nc)
                        ).reshape(1, cpad(nc)).astype(jnp.float32)
    return out


# ----------------------------------------------------------------------------
# Fused forward kernel
# ----------------------------------------------------------------------------
def _conv_geom(B, H, W, k, pad):
    """Static geometry of a stride-1 conv whose input is stored zero-padded and
    row-flattened as rows = b*S + ih*Wp + iw."""
    Hp, Wp = H + 2 * pad, W + 2 * pad
    OH, OW = Hp - k + 1, Wp - k + 1
    S = Hp * Wp
    M = (B - 1) * S + (OH - 1) * Wp + OW      # rows of the (over-complete) acc
    return dict(k=k, pad=pad, Hp=Hp, Wp=Wp, S=S, OH=OH, OW=OW, M=M, rows=B * S)


def _fused_kernel(x1_ref, w1_ref, b1_ref, w2_ref, b2_ref, w3_ref, b3_ref,
                  w4_ref, b4_ref, w5_ref, b5_ref, wf_ref, bf_ref,
                  out_ref,
                  x2_ref, x3_ref, x4_ref, x5_ref,
                  a1_ref, a2_ref, a3_ref, a4_ref, a5_ref, feat_ref,
                  *, cfg):
    B = cfg["B"]
    f32, bf16 = jnp.float32, jnp.bfloat16

    def conv(src_ref, w_ref, b_ref, g, acc_ref):
        """Stride-1 conv as a sum of kh*kw shifted MXU matmuls, + bias + ReLU.
        src_ref rows are laid out as b*S + ih*Wp + iw with a zero border that
        implements the conv padding; each tap is one contiguous row window."""
        k, Wp, M = g["k"], g["Wp"], g["M"]
        acc = jnp.zeros((M, w_ref.shape[2]), f32)
        for di in range(k):
            for dj in range(k):
                lhs = src_ref[pl.ds(di * Wp + dj, M), :].astype(bf16)
                acc = acc + jnp.dot(lhs, w_ref[di * k + dj],
                                    preferred_element_type=f32)
        acc_ref[...] = jnp.maximum(acc + b_ref[...], 0.0)

    def maxpool_to(acc_ref, src_Wp, src_S, src_OH, src_OW, dst_ref, g_dst):
        """Fused 2x2/2 max pool of the valid conv-output rows, scattered into
        the next conv's zero-padded input layout (VPU max of 4 rows)."""
        for b in range(B):
            for oh in range(src_OH // 2):
                for ow in range(src_OW // 2):
                    r = b * src_S + (2 * oh) * src_Wp + 2 * ow
                    m = jnp.maximum(
                        jnp.maximum(acc_ref[pl.ds(r, 1), :],
                                    acc_ref[pl.ds(r + 1, 1), :]),
                        jnp.maximum(acc_ref[pl.ds(r + src_Wp, 1), :],
                                    acc_ref[pl.ds(r + src_Wp + 1, 1), :]))
                    d = (b * g_dst["S"]
                         + (g_dst["pad"] + oh) * g_dst["Wp"]
                         + g_dst["pad"] + ow)
                    dst_ref[pl.ds(d, 1), :] = m

    def copy_to(acc_ref, g_src, dst_ref, g_dst):
        """Copy valid conv-output rows into the next conv's padded layout."""
        for b in range(B):
            for oh in range(g_src["OH"]):
                s = b * g_src["S"] + oh * g_src["Wp"]
                d = (b * g_dst["S"]
                     + (g_dst["pad"] + oh) * g_dst["Wp"] + g_dst["pad"])
                dst_ref[pl.ds(d, g_src["OW"]), :] = \
                    acc_ref[pl.ds(s, g_src["OW"]), :]

    # ---- conv1 (pre-im2col'd input): one MXU matmul + bias + ReLU ----------
    a1_ref[...] = jnp.maximum(
        jnp.dot(x1_ref[...], w1_ref[...], preferred_element_type=f32)
        + b1_ref[...], 0.0)

    # ---- pool1 -> conv2 input ----------------------------------------------
    x2_ref[...] = jnp.zeros_like(x2_ref)
    maxpool_to(a1_ref, cfg["OW1"], cfg["OH1"] * cfg["OW1"],
               cfg["OH1"], cfg["OW1"], x2_ref, cfg["g2"])

    # ---- conv2 + ReLU, pool2 -> conv3 input ---------------------------------
    conv(x2_ref, w2_ref, b2_ref, cfg["g2"], a2_ref)
    x3_ref[...] = jnp.zeros_like(x3_ref)
    maxpool_to(a2_ref, cfg["g2"]["Wp"], cfg["g2"]["S"],
               cfg["g2"]["OH"], cfg["g2"]["OW"], x3_ref, cfg["g3"])

    # ---- conv3 + ReLU -> conv4 input ----------------------------------------
    conv(x3_ref, w3_ref, b3_ref, cfg["g3"], a3_ref)
    x4_ref[...] = jnp.zeros_like(x4_ref)
    copy_to(a3_ref, cfg["g3"], x4_ref, cfg["g4"])

    # ---- conv4 + ReLU -> conv5 input ----------------------------------------
    conv(x4_ref, w4_ref, b4_ref, cfg["g4"], a4_ref)
    x5_ref[...] = jnp.zeros_like(x5_ref)
    copy_to(a4_ref, cfg["g4"], x5_ref, cfg["g5"])

    # ---- conv5 + ReLU, pool3 + global average pool -> features --------------
    conv(x5_ref, w5_ref, b5_ref, cfg["g5"], a5_ref)
    g5 = cfg["g5"]
    PH, PW = g5["OH"] // 2, g5["OW"] // 2
    inv = 1.0 / float(PH * PW)
    feat_ref[...] = jnp.zeros_like(feat_ref)
    for b in range(B):
        s = None
        for oh in range(PH):
            for ow in range(PW):
                r = b * g5["S"] + (2 * oh) * g5["Wp"] + 2 * ow
                m = jnp.maximum(
                    jnp.maximum(a5_ref[pl.ds(r, 1), :],
                                a5_ref[pl.ds(r + 1, 1), :]),
                    jnp.maximum(a5_ref[pl.ds(r + g5["Wp"], 1), :],
                                a5_ref[pl.ds(r + g5["Wp"] + 1, 1), :]))
                s = m if s is None else s + m
        feat_ref[pl.ds(b, 1), :] = s * inv

    # ---- classifier (Linear): MXU matmul + bias, lane-dense output ----------
    out_ref[...] = (jnp.dot(feat_ref[...].astype(bf16), wf_ref[...],
                            preferred_element_type=f32) + bf_ref[...])


# ----------------------------------------------------------------------------
# Forward wrapper (one pallas_call; only conv1 patch extraction stays in XLA)
# ----------------------------------------------------------------------------
def pruned_alexnet_forward(prep, x_nchw, *, num_classes):
    x = jnp.transpose(x_nchw, (0, 2, 3, 1)).astype(jnp.float32)   # NHWC
    B, H, W, Cin = x.shape

    # conv1 im2col in glue (tiny; XLA fuses the strided slices into one kernel)
    k1, s1, p1 = 11, 4, 5
    OH1 = (H + 2 * p1 - k1) // s1 + 1
    OW1 = (W + 2 * p1 - k1) // s1 + 1
    xp = jnp.pad(x, ((0, 0), (p1, p1), (p1, p1), (0, 0)))
    cols = []
    for i in range(k1):
        for j in range(k1):
            cols.append(lax.slice(
                xp, (0, i, j, 0),
                (B, i + (OH1 - 1) * s1 + 1, j + (OW1 - 1) * s1 + 1, Cin),
                (1, s1, s1, 1)))
    patches = jnp.stack(cols, axis=3).reshape(B * OH1 * OW1, k1 * k1 * Cin)
    M1 = B * OH1 * OW1
    M1p = _round_up(M1, 8)
    K1p = prep["w1"].shape[0]
    x1 = jnp.pad(patches, ((0, M1p - M1), (0, K1p - patches.shape[1]))
                 ).astype(jnp.bfloat16)

    # static geometry
    C1p = prep["w1"].shape[1]
    C2p = prep["w2"].shape[2]
    C3p = prep["w3"].shape[2]
    C4p = prep["w4"].shape[2]
    C5p = prep["w5"].shape[2]
    NCp = prep["wf"].shape[1]

    H2, W2 = OH1 // 2, OW1 // 2                   # conv2 input (post pool1)
    g2 = _conv_geom(B, H2, W2, 5, 2)
    H3, W3 = g2["OH"] // 2, g2["OW"] // 2         # conv3 input (post pool2)
    g3 = _conv_geom(B, H3, W3, 3, 1)
    g4 = _conv_geom(B, g3["OH"], g3["OW"], 3, 1)
    g5 = _conv_geom(B, g4["OH"], g4["OW"], 3, 1)
    assert g5["OH"] >= 2 and g5["OW"] >= 2, "input spatial size too small"
    Mb = _round_up(B, 8)

    cfg = dict(B=B, OH1=OH1, OW1=OW1, g2=g2, g3=g3, g4=g4, g5=g5)

    ins = [x1, prep["w1"], prep["b1"], prep["w2"], prep["b2"],
           prep["w3"], prep["b3"], prep["w4"], prep["b4"],
           prep["w5"], prep["b5"], prep["wf"], prep["bf"]]
    in_specs = [pl.BlockSpec(a.shape, (lambda i, nd=a.ndim: (0,) * nd))
                for a in ins]

    f32 = jnp.float32
    scratch = [
        pltpu.VMEM((g2["rows"], C1p), f32),   # x2: conv2 padded input
        pltpu.VMEM((g3["rows"], C2p), f32),   # x3
        pltpu.VMEM((g4["rows"], C3p), f32),   # x4
        pltpu.VMEM((g5["rows"], C4p), f32),   # x5
        pltpu.VMEM((M1p, C1p), f32),          # a1: conv1 output
        pltpu.VMEM((g2["M"], C2p), f32),      # a2
        pltpu.VMEM((g3["M"], C3p), f32),      # a3
        pltpu.VMEM((g4["M"], C4p), f32),      # a4
        pltpu.VMEM((g5["M"], C5p), f32),      # a5
        pltpu.VMEM((Mb, C5p), f32),           # pooled features
    ]

    out = pl.pallas_call(
        functools.partial(_fused_kernel, cfg=cfg),
        out_shape=jax.ShapeDtypeStruct((Mb, NCp), jnp.float32),
        grid=(1,),
        in_specs=in_specs,
        out_specs=pl.BlockSpec((Mb, NCp), lambda i: (0, 0)),
        scratch_shapes=scratch,
        compiler_params=pltpu.CompilerParams(
            dimension_semantics=("arbitrary",),
            vmem_limit_bytes=32 * 1024 * 1024),
    )(*ins)
    return out[:B, :num_classes]


# ----------------------------------------------------------------------------
# Parameter init (PyTorch layouts) + precision-matched reference
# ----------------------------------------------------------------------------
def init_params(key, num_classes=10, ratio=0.5):
    f = [int(64 * ratio), int(192 * ratio), int(384 * ratio),
         int(256 * ratio), int(256 * ratio)]  # [32, 96, 192, 128, 128]
    conv_specs = [
        ("conv1", (f[0], 3, 11, 11)),
        ("conv2", (f[1], f[0], 5, 5)),
        ("conv3", (f[2], f[1], 3, 3)),
        ("conv4", (f[3], f[2], 3, 3)),
        ("conv5", (f[4], f[3], 3, 3)),
    ]
    params = {}
    keys = jax.random.split(key, len(conv_specs) + 1)
    for k, (name, shape) in zip(keys[:-1], conv_specs):
        fan_in = shape[1] * shape[2] * shape[3]
        params[name + "_w"] = (
            jax.random.normal(k, shape, jnp.float32) * (2.0 / fan_in) ** 0.5)
        params[name + "_b"] = jnp.zeros((shape[0],), jnp.float32)
    params["fc_w"] = (
        jax.random.normal(keys[-1], (num_classes, f[4]), jnp.float32)
        * (1.0 / f[4]) ** 0.5)
    params["fc_b"] = jnp.zeros((num_classes,), jnp.float32)
    return params


def _reference_forward(params, x_nchw):
    """Pure-JAX reference using the same mixed precision as the kernel
    (bf16 matmul operands, f32 accumulation / bias / ReLU / pooling)."""
    x = jnp.transpose(x_nchw, (0, 2, 3, 1)).astype(jnp.float32)

    def conv(x, w, b, stride, pad):
        w_hwio = jnp.transpose(w, (2, 3, 1, 0))
        y = lax.conv_general_dilated(
            x.astype(jnp.bfloat16), w_hwio.astype(jnp.bfloat16),
            (stride, stride), ((pad, pad), (pad, pad)),
            dimension_numbers=("NHWC", "HWIO", "NHWC"),
            preferred_element_type=jnp.float32)
        return jax.nn.relu(y + b)

    def pool(x):
        return lax.reduce_window(x, -jnp.inf, lax.max,
                                 (1, 2, 2, 1), (1, 2, 2, 1), "VALID")

    x = pool(conv(x, params["conv1_w"], params["conv1_b"], 4, 5))
    x = pool(conv(x, params["conv2_w"], params["conv2_b"], 1, 2))
    x = conv(x, params["conv3_w"], params["conv3_b"], 1, 1)
    x = conv(x, params["conv4_w"], params["conv4_b"], 1, 1)
    x = pool(conv(x, params["conv5_w"], params["conv5_b"], 1, 1))
    feat = jnp.mean(x, axis=(1, 2))
    return (jnp.dot(feat.astype(jnp.bfloat16),
                    params["fc_w"].T.astype(jnp.bfloat16),
                    preferred_element_type=jnp.float32)
            + params["fc_b"])


if __name__ == "__main__":
    key = jax.random.PRNGKey(0)
    pkey, xkey = jax.random.split(key)
    params = init_params(pkey, num_classes=10, ratio=0.5)

    # Small input consistent with the module's forward (NCHW, 3 input channels).
    x = jax.random.normal(xkey, (2, 3, 32, 32), jnp.float32)

    prep = prepare_params(params)                      # one-time weight prep
    fwd = jax.jit(functools.partial(pruned_alexnet_forward, num_classes=10))

    logits = jax.block_until_ready(fwd(prep, x))
    assert logits.shape == (2, 10), logits.shape
    assert bool(jnp.all(jnp.isfinite(logits)))

    ref = jax.block_until_ready(_reference_forward(params, x))
    max_err = float(jnp.max(jnp.abs(logits - ref)))
    assert jnp.allclose(logits, ref, rtol=2e-2, atol=2e-2), max_err

    print("KERNEL_OK")
</pallas_src>

<mosaic_0001>
module attributes {stable_mosaic.version = 11 : i64} {
  func.func @_fused_kernel(%arg0: i32, %arg1: memref<128x384xbf16, #tpu.memory_space<vmem>>, %arg2: memref<384x128xbf16, #tpu.memory_space<vmem>>, %arg3: memref<1x128xf32, #tpu.memory_space<vmem>>, %arg4: memref<25x128x128xbf16, #tpu.memory_space<vmem>>, %arg5: memref<1x128xf32, #tpu.memory_space<vmem>>, %arg6: memref<9x128x256xbf16, #tpu.memory_space<vmem>>, %arg7: memref<1x256xf32, #tpu.memory_space<vmem>>, %arg8: memref<9x256x128xbf16, #tpu.memory_space<vmem>>, %arg9: memref<1x128xf32, #tpu.memory_space<vmem>>, %arg10: memref<9x128x128xbf16, #tpu.memory_space<vmem>>, %arg11: memref<1x128xf32, #tpu.memory_space<vmem>>, %arg12: memref<128x128xbf16, #tpu.memory_space<vmem>>, %arg13: memref<1x128xf32, #tpu.memory_space<vmem>>, %arg14: memref<8x128xf32, #tpu.memory_space<vmem>>, %arg15: memref<128x128xf32, #tpu.memory_space<vmem>>, %arg16: memref<32x128xf32, #tpu.memory_space<vmem>>, %arg17: memref<32x256xf32, #tpu.memory_space<vmem>>, %arg18: memref<32x128xf32, #tpu.memory_space<vmem>>, %arg19: memref<128x128xf32, #tpu.memory_space<vmem>>, %arg20: memref<92x128xf32, #tpu.memory_space<vmem>>, %arg21: memref<22x256xf32, #tpu.memory_space<vmem>>, %arg22: memref<22x128xf32, #tpu.memory_space<vmem>>, %arg23: memref<22x128xf32, #tpu.memory_space<vmem>>, %arg24: memref<8x128xf32, #tpu.memory_space<vmem>>) attributes {dimension_semantics = [#tpu.dimension_semantics<arbitrary>], iteration_bounds = array<i64: 1>, scalar_prefetch = 0 : i64, scratch_operands = 10 : i64, tpu.core_type = #tpu.core_type<tc>, window_params = [{pipeline_mode = #tpu.pipeline_mode<synchronous>, transform_indices = @transform_0, window_bounds = array<i64: 128, 384>}, {pipeline_mode = #tpu.pipeline_mode<synchronous>, transform_indices = @transform_1, window_bounds = array<i64: 384, 128>}, {pipeline_mode = #tpu.pipeline_mode<synchronous>, transform_indices = @transform_2, window_bounds = array<i64: 1, 128>}, {pipeline_mode = #tpu.pipeline_mode<synchronous>, transform_indices = @transform_3, window_bounds = array<i64: 25, 128, 128>}, {pipeline_mode = #tpu.pipeline_mode<synchronous>, transform_indices = @transform_4, window_bounds = array<i64: 1, 128>}, {pipeline_mode = #tpu.pipeline_mode<synchronous>, transform_indices = @transform_5, window_bounds = array<i64: 9, 128, 256>}, {pipeline_mode = #tpu.pipeline_mode<synchronous>, transform_indices = @transform_6, window_bounds = array<i64: 1, 256>}, {pipeline_mode = #tpu.pipeline_mode<synchronous>, transform_indices = @transform_7, window_bounds = array<i64: 9, 256, 128>}, {pipeline_mode = #tpu.pipeline_mode<synchronous>, transform_indices = @transform_8, window_bounds = array<i64: 1, 128>}, {pipeline_mode = #tpu.pipeline_mode<synchronous>, transform_indices = @transform_9, window_bounds = array<i64: 9, 128, 128>}, {pipeline_mode = #tpu.pipeline_mode<synchronous>, transform_indices = @transform_10, window_bounds = array<i64: 1, 128>}, {pipeline_mode = #tpu.pipeline_mode<synchronous>, transform_indices = @transform_11, window_bounds = array<i64: 128, 128>}, {pipeline_mode = #tpu.pipeline_mode<synchronous>, transform_indices = @transform_12, window_bounds = array<i64: 1, 128>}, {pipeline_mode = #tpu.pipeline_mode<synchronous>, transform_indices = @transform_13, window_bounds = array<i64: 8, 128>}]} {
    %c0 = arith.constant 0 : index
    %c0_0 = arith.constant 0 : index
    %0 = vector.load %arg1[%c0, %c0_0] : memref<128x384xbf16, #tpu.memory_space<vmem>>, vector<128x384xbf16>
    %c0_1 = arith.constant 0 : index
    %c0_2 = arith.constant 0 : index
    %1 = vector.load %arg2[%c0_1, %c0_2] : memref<384x128xbf16, #tpu.memory_space<vmem>>, vector<384x128xbf16>
    %cst = arith.constant dense<0.000000e+00> : vector<128x128xf32>
    %2 = tpu.matmul %0, %1, %cst {dimension_numbers = #tpu.dot_dimension_numbers<[1], [0], [0], [1], [0, 0, 1, 1], [], []>} : vector<128x384xbf16>, vector<384x128xbf16>, vector<128x128xf32> -> vector<128x128xf32>
    %c0_3 = arith.constant 0 : index
    %c0_4 = arith.constant 0 : index
    %3 = vector.load %arg3[%c0_3, %c0_4] : memref<1x128xf32, #tpu.memory_space<vmem>>, vector<1x128xf32>
    %4 = vector.broadcast %3 : vector<1x128xf32> to vector<128x128xf32>
    %5 = arith.addf %2, %4 : vector<128x128xf32>
    %cst_5 = arith.constant 0.000000e+00 : f32
    %6 = vector.broadcast %cst_5 : f32 to vector<128x128xf32>
    %7 = arith.maximumf %5, %6 : vector<128x128xf32>
    %c0_6 = arith.constant 0 : index
    %c0_7 = arith.constant 0 : index
    %8 = vector.load %arg19[%c0_6, %c0_7] : memref<128x128xf32, #tpu.memory_space<vmem>>, vector<128x128xf32>
    tpu.vector_store %arg19[%c0_6, %c0_7], %7 {strides = array<i32>} : memref<128x128xf32, #tpu.memory_space<vmem>>, vector<128x128xf32>,
    %cst_8 = arith.constant 0.000000e+00 : f32
    %9 = vector.broadcast %cst_8 : f32 to vector<128x128xf32>
    %c0_9 = arith.constant 0 : index
    %c0_10 = arith.constant 0 : index
    %10 = vector.load %arg15[%c0_9, %c0_10] : memref<128x128xf32, #tpu.memory_space<vmem>>, vector<128x128xf32>
    tpu.vector_store %arg15[%c0_9, %c0_10], %9 {strides = array<i32>} : memref<128x128xf32, #tpu.memory_space<vmem>>, vector<128x128xf32>,
    %c0_11 = arith.constant 0 : index
    %c0_12 = arith.constant 0 : index
    %11 = vector.load %arg19[%c0_11, %c0_12] : memref<128x128xf32, #tpu.memory_space<vmem>>, vector<1x128xf32>
    %c1 = arith.constant 1 : index
    %c0_13 = arith.constant 0 : index
    %12 = vector.load %arg19[%c1, %c0_13] : memref<128x128xf32, #tpu.memory_space<vmem>>, vector<1x128xf32>
    %13 = arith.maximumf %11, %12 : vector<1x128xf32>
    %c8 = arith.constant 8 : index
    %c0_14 = arith.constant 0 : index
    %14 = vector.load %arg19[%c8, %c0_14] : memref<128x128xf32, #tpu.memory_space<vmem>>, vector<1x128xf32>
    %c9 = arith.constant 9 : index
    %c0_15 = arith.constant 0 : index
    %15 = vector.load %arg19[%c9, %c0_15] : memref<128x128xf32, #tpu.memory_space<vmem>>, vector<1x128xf32>
    %16 = arith.maximumf %14, %15 : vector<1x128xf32>
    %17 = arith.maximumf %13, %16 : vector<1x128xf32>
    %c18 = arith.constant 18 : index
    %c0_16 = arith.constant 0 : index
    %18 = vector.load %arg15[%c18, %c0_16] : memref<128x128xf32, #tpu.memory_space<vmem>>, vector<1x128xf32>
    tpu.vector_store %arg15[%c18, %c0_16], %17 {strides = array<i32>} : memref<128x128xf32, #tpu.memory_space<vmem>>, vector<1x128xf32>,
    %c2 = arith.constant 2 : index
    %c0_17 = arith.constant 0 : index
    %19 = vector.load %arg19[%c2, %c0_17] : memref<128x128xf32, #tpu.memory_space<vmem>>, vector<1x128xf32>
    %c3 = arith.constant 3 : index
    %c0_18 = arith.constant 0 : index
    %20 = vector.load %arg19[%c3, %c0_18] : memref<128x128xf32, #tpu.memory_space<vmem>>, vector<1x128xf32>
    %21 = arith.maximumf %19, %20 : vector<1x128xf32>
    %c10 = arith.constant 10 : index
    %c0_19 = arith.constant 0 : index
    %22 = vector.load %arg19[%c10, %c0_19] : memref<128x128xf32, #tpu.memory_space<vmem>>, vector<1x128xf32>
    %c11 = arith.constant 11 : index
    %c0_20 = arith.constant 0 : index
    %23 = vector.load %arg19[%c11, %c0_20] : memref<128x128xf32, #tpu.memory_space<vmem>>, vector<1x128xf32>
    %24 = arith.maximumf %22, %23 : vector<1x128xf32>
    %25 = arith.maximumf %21, %24 : vector<1x128xf32>
    %c19 = arith.constant 19 : index
    %c0_21 = arith.constant 0 : index
    %26 = vector.load %arg15[%c19, %c0_21] : memref<128x128xf32, #tpu.memory_space<vmem>>, vector<1x128xf32>
    tpu.vector_store %arg15[%c19, %c0_21], %25 {strides = array<i32>} : memref<128x128xf32, #tpu.memory_space<vmem>>, vector<1x128xf32>,
    %c4 = arith.constant 4 : index
    %c0_22 = arith.constant 0 : index
    %27 = vector.load %arg19[%c4, %c0_22] : memref<128x128xf32, #tpu.memory_space<vmem>>, vector<1x128xf32>
    %c5 = arith.constant 5 : index
    %c0_23 = arith.constant 0 : index
    %28 = vector.load %arg19[%c5, %c0_23] : memref<128x128xf32, #tpu.memory_space<vmem>>, vector<1x128xf32>
    %29 = arith.maximumf %27, %28 : vector<1x128xf32>
    %c12 = arith.constant 12 : index
    %c0_24 = arith.constant 0 : index
    %30 = vector.load %arg19[%c12, %c0_24] : memref<128x128xf32, #tpu.memory_space<vmem>>, vector<1x128xf32>
    %c13 = arith.constant 13 : index
    %c0_25 = arith.constant 0 : index
    %31 = vector.load %arg19[%c13, %c0_25] : memref<128x128xf32, #tpu.memory_space<vmem>>, vector<1x128xf32>
    %32 = arith.maximumf %30, %31 : vector<1x128xf32>
    %33 = arith.maximumf %29, %32 : vector<1x128xf32>
    %c20 = arith.constant 20 : index
    %c0_26 = arith.constant 0 : index
    %34 = vector.load %arg15[%c20, %c0_26] : memref<128x128xf32, #tpu.memory_space<vmem>>, vector<1x128xf32>
    tpu.vector_store %arg15[%c20, %c0_26], %33 {strides = array<i32>} : memref<128x128xf32, #tpu.memory_space<vmem>>, vector<1x128xf32>,
    %c6 = arith.constant 6 : index
    %c0_27 = arith.constant 0 : index
    %35 = vector.load %arg19[%c6, %c0_27] : memref<128x128xf32, #tpu.memory_space<vmem>>, vector<1x128xf32>
    %c7 = arith.constant 7 : index
    %c0_28 = arith.constant 0 : index
    %36 = vector.load %arg19[%c7, %c0_28] : memref<128x128xf32, #tpu.memory_space<vmem>>, vector<1x128xf32>
    %37 = arith.maximumf %35, %36 : vector<1x128xf32>
    %c14 = arith.constant 14 : index
    %c0_29 = arith.constant 0 : index
    %38 = vector.load %arg19[%c14, %c0_29] : memref<128x128xf32, #tpu.memory_space<vmem>>, vector<1x128xf32>
    %c15 = arith.constant 15 : index
    %c0_30 = arith.constant 0 : index
    %39 = vector.load %arg19[%c15, %c0_30] : memref<128x128xf32, #tpu.memory_space<vmem>>, vector<1x128xf32>
    %40 = arith.maximumf %38, %39 : vector<1x128xf32>
    %41 = arith.maximumf %37, %40 : vector<1x128xf32>
    %c21 = arith.constant 21 : index
    %c0_31 = arith.constant 0 : index
    %42 = vector.load %arg15[%c21, %c0_31] : memref<128x128xf32, #tpu.memory_space<vmem>>, vector<1x128xf32>
    tpu.vector_store %arg15[%c21, %c0_31], %41 {strides = array<i32>} : memref<128x128xf32, #tpu.memory_space<vmem>>, vector<1x128xf32>,
    %c16 = arith.constant 16 : index
    %c0_32 = arith.constant 0 : index
    %43 = vector.load %arg19[%c16, %c0_32] : memref<128x128xf32, #tpu.memory_space<vmem>>, vector<1x128xf32>
    %c17 = arith.constant 17 : index
    %c0_33 = arith.constant 0 : index
    %44 = vector.load %arg19[%c17, %c0_33] : memref<128x128xf32, #tpu.memory_space<vmem>>, vector<1x128xf32>
    %45 = arith.maximumf %43, %44 : vector<1x128xf32>
    %c24 = arith.constant 24 : index
    %c0_34 = arith.constant 0 : index
    %46 = vector.load %arg19[%c24, %c0_34] : memref<128x128xf32, #tpu.memory_space<vmem>>, vector<1x128xf32>
    %c25 = arith.constant 25 : index
    %c0_35 = arith.constant 0 : index
    %47 = vector.load %arg19[%c25, %c0_35] : memref<128x128xf32, #tpu.memory_space<vmem>>, vector<1x128xf32>
    %48 = arith.maximumf %46, %47 : vector<1x128xf32>
    %49 = arith.maximumf %45, %48 : vector<1x128xf32>
    %c26 = arith.constant 26 : index
    %c0_36 = arith.constant 0 : index
    %50 = vector.load %arg15[%c26, %c0_36] : memref<128x128xf32, #tpu.memory_space<vmem>>, vector<1x128xf32>
    tpu.vector_store %arg15[%c26, %c0_36], %49 {strides = array<i32>} : memref<128x128xf32, #tpu.memory_space<vmem>>, vector<1x128xf32>,
    %c18_37 = arith.constant 18 : index
    %c0_38 = arith.constant 0 : index
    %51 = vector.load %arg19[%c18_37, %c0_38] : memref<128x128xf32, #tpu.memory_space<vmem>>, vector<1x128xf32>
    %c19_39 = arith.constant 19 : index
    %c0_40 = arith.constant 0 : index
    %52 = vector.load %arg19[%c19_39, %c0_40] : memref<128x128xf32, #tpu.memory_space<vmem>>, vector<1x128xf32>
    %53 = arith.maximumf %51, %52 : vector<1x128xf32>
    %c26_41 = arith.constant 26 : index
    %c0_42 = arith.constant 0 : index
    %54 = vector.load %arg19[%c26_41, %c0_42] : memref<128x128xf32, #tpu.memory_space<vmem>>, vector<1x128xf32>
    %c27 = arith.constant 27 : index
    %c0_43 = arith.constant 0 : index
    %55 = vector.load %arg19[%c27, %c0_43] : memref<128x128xf32, #tpu.memory_space<vmem>>, vector<1x128xf32>
    %56 = arith.maximumf %54, %55 : vector<1x128xf32>
    %57 = arith.maximumf %53, %56 : vector<1x128xf32>
    %c27_44 = arith.constant 27 : index
    %c0_45 = arith.constant 0 : index
    %58 = vector.load %arg15[%c27_44, %c0_45] : memref<128x128xf32, #tpu.memory_space<vmem>>, vector<1x128xf32>
    tpu.vector_store %arg15[%c27_44, %c0_45], %57 {strides = array<i32>} : memref<128x128xf32, #tpu.memory_space<vmem>>, vector<1x128xf32>,
    %c20_46 = arith.constant 20 : index
    %c0_47 = arith.constant 0 : index
    %59 = vector.load %arg19[%c20_46, %c0_47] : memref<128x128xf32, #tpu.memory_space<vmem>>, vector<1x128xf32>
    %c21_48 = arith.constant 21 : index
    %c0_49 = arith.constant 0 : index
    %60 = vector.load %arg19[%c21_48, %c0_49] : memref<128x128xf32, #tpu.memory_space<vmem>>, vector<1x128xf32>
    %61 = arith.maximumf %59, %60 : vector<1x128xf32>
    %c28 = arith.constant 28 : index
    %c0_50 = arith.constant 0 : index
    %62 = vector.load %arg19[%c28, %c0_50] : memref<128x128xf32, #tpu.memory_space<vmem>>, vector<1x128xf32>
    %c29 = arith.constant 29 : index
    %c0_51 = arith.constant 0 : index
    %63 = vector.load %arg19[%c29, %c0_51] : memref<128x128xf32, #tpu.memory_space<vmem>>, vector<1x128xf32>
    %64 = arith.maximumf %62, %63 : vector<1x128xf32>
    %65 = arith.maximumf %61, %64 : vector<1x128xf32>
    %c28_52 = arith.constant 28 : index
    %c0_53 = arith.constant 0 : index
    %66 = vector.load %arg15[%c28_52, %c0_53] : memref<128x128xf32, #tpu.memory_space<vmem>>, vector<1x128xf32>
    tpu.vector_store %arg15[%c28_52, %c0_53], %65 {strides = array<i32>} : memref<128x128xf32, #tpu.memory_space<vmem>>, vector<1x128xf32>,
    %c22 = arith.constant 22 : index
    %c0_54 = arith.constant 0 : index
    %67 = vector.load %arg19[%c22, %c0_54] : memref<128x128xf32, #tpu.memory_space<vmem>>, vector<1x128xf32>
    %c23 = arith.constant 23 : index
    %c0_55 = arith.constant 0 : index
    %68 = vector.load %arg19[%c23, %c0_55] : memref<128x128xf32, #tpu.memory_space<vmem>>, vector<1x128xf32>
    %69 = arith.maximumf %67, %68 : vector<1x128xf32>
    %c30 = arith.constant 30 : index
    %c0_56 = arith.constant 0 : index
    %70 = vector.load %arg19[%c30, %c0_56] : memref<128x128xf32, #tpu.memory_space<vmem>>, vector<1x128xf32>
    %c31 = arith.constant 31 : index
    %c0_57 = arith.constant 0 : index
    %71 = vector.load %arg19[%c31, %c0_57] : memref<128x128xf32, #tpu.memory_space<vmem>>, vector<1x128xf32>
    %72 = arith.maximumf %70, %71 : vector<1x128xf32>
    %73 = arith.maximumf %69, %72 : vector<1x128xf32>
    %c29_58 = arith.constant 29 : index
    %c0_59 = arith.constant 0 : index
    %74 = vector.load %arg15[%c29_58, %c0_59] : memref<128x128xf32, #tpu.memory_space<vmem>>, vector<1x128xf32>
    tpu.vector_store %arg15[%c29_58, %c0_59], %73 {strides = array<i32>} : memref<128x128xf32, #tpu.memory_space<vmem>>, vector<1x128xf32>,
    %c32 = arith.constant 32 : index
    %c0_60 = arith.constant 0 : index
    %75 = vector.load %arg19[%c32, %c0_60] : memref<128x128xf32, #tpu.memory_space<vmem>>, vector<1x128xf32>
    %c33 = arith.constant 33 : index
    %c0_61 = arith.constant 0 : index
    %76 = vector.load %arg19[%c33, %c0_61] : memref<128x128xf32, #tpu.memory_space<vmem>>, vector<1x128xf32>
    %77 = arith.maximumf %75, %76 : vector<1x128xf32>
    %c40 = arith.constant 40 : index
    %c0_62 = arith.constant 0 : index
    %78 = vector.load %arg19[%c40, %c0_62] : memref<128x128xf32, #tpu.memory_space<vmem>>, vector<1x128xf32>
    %c41 = arith.constant 41 : index
    %c0_63 = arith.constant 0 : index
    %79 = vector.load %arg19[%c41, %c0_63] : memref<128x128xf32, #tpu.memory_space<vmem>>, vector<1x128xf32>
    %80 = arith.maximumf %78, %79 : vector<1x128xf32>
    %81 = arith.maximumf %77, %80 : vector<1x128xf32>
    %c34 = arith.constant 34 : index
    %c0_64 = arith.constant 0 : index
    %82 = vector.load %arg15[%c34, %c0_64] : memref<128x128xf32, #tpu.memory_space<vmem>>, vector<1x128xf32>
    tpu.vector_store %arg15[%c34, %c0_64], %81 {strides = array<i32>} : memref<128x128xf32, #tpu.memory_space<vmem>>, vector<1x128xf32>,
    %c34_65 = arith.constant 34 : index
    %c0_66 = arith.constant 0 : index
    %83 = vector.load %arg19[%c34_65, %c0_66] : memref<128x128xf32, #tpu.memory_space<vmem>>, vector<1x128xf32>
    %c35 = arith.constant 35 : index
    %c0_67 = arith.constant 0 : index
    %84 = vector.load %arg19[%c35, %c0_67] : memref<128x128xf32, #tpu.memory_space<vmem>>, vector<1x128xf32>
    %85 = arith.maximumf %83, %84 : vector<1x128xf32>
    %c42 = arith.constant 42 : index
    %c0_68 = arith.constant 0 : index
    %86 = vector.load %arg19[%c42, %c0_68] : memref<128x128xf32, #tpu.memory_space<vmem>>, vector<1x128xf32>
    %c43 = arith.constant 43 : index
    %c0_69 = arith.constant 0 : index
    %87 = vector.load %arg19[%c43, %c0_69] : memref<128x128xf32, #tpu.memory_space<vmem>>, vector<1x128xf32>
    %88 = arith.maximumf %86, %87 : vector<1x128xf32>
    %89 = arith.maximumf %85, %88 : vector<1x128xf32>
    %c35_70 = arith.constant 35 : index
    %c0_71 = arith.constant 0 : index
    %90 = vector.load %arg15[%c35_70, %c0_71] : memref<128x128xf32, #tpu.memory_space<vmem>>, vector<1x128xf32>
    tpu.vector_store %arg15[%c35_70, %c0_71], %89 {strides = array<i32>} : memref<128x128xf32, #tpu.memory_space<vmem>>, vector<1x128xf32>,
    %c36 = arith.constant 36 : index
    %c0_72 = arith.constant 0 : index
    %91 = vector.load %arg19[%c36, %c0_72] : memref<128x128xf32, #tpu.memory_space<vmem>>, vector<1x128xf32>
    %c37 = arith.constant 37 : index
    %c0_73 = arith.constant 0 : index
    %92 = vector.load %arg19[%c37, %c0_73] : memref<128x128xf32, #tpu.memory_space<vmem>>, vector<1x128xf32>
    %93 = arith.maximumf %91, %92 : vector<1x128xf32>
    %c44 = arith.constant 44 : index
    %c0_74 = arith.constant 0 : index
    %94 = vector.load %arg19[%c44, %c0_74] : memref<128x128xf32, #tpu.memory_space<vmem>>, vector<1x128xf32>
    %c45 = arith.constant 45 : index
    %c0_75 = arith.constant 0 : index
    %95 = vector.load %arg19[%c45, %c0_75] : memref<128x128xf32, #tpu.memory_space<vmem>>, vector<1x128xf32>
    %96 = arith.maximumf %94, %95 : vector<1x128xf32>
    %97 = arith.maximumf %93, %96 : vector<1x128xf32>
    %c36_76 = arith.constant 36 : index
    %c0_77 = arith.constant 0 : index
    %98 = vector.load %arg15[%c36_76, %c0_77] : memref<128x128xf32, #tpu.memory_space<vmem>>, vector<1x128xf32>
    tpu.vector_store %arg15[%c36_76, %c0_77], %97 {strides = array<i32>} : memref<128x128xf32, #tpu.memory_space<vmem>>, vector<1x128xf32>,
    %c38 = arith.constant 38 : index
    %c0_78 = arith.constant 0 : index
    %99 = vector.load %arg19[%c38, %c0_78] : memref<128x128xf32, #tpu.memory_space<vmem>>, vector<1x128xf32>
    %c39 = arith.constant 39 : index
    %c0_79 = arith.constant 0 : index
    %100 = vector.load %arg19[%c39, %c0_79] : memref<128x128xf32, #tpu.memory_space<vmem>>, vector<1x128xf32>
    %101 = arith.maximumf %99, %100 : vector<1x128xf32>
    %c46 = arith.constant 46 : index
    %c0_80 = arith.constant 0 : index
    %102 = vector.load %arg19[%c46, %c0_80] : memref<128x128xf32, #tpu.memory_space<vmem>>, vector<1x128xf32>
    %c47 = arith.constant 47 : index
    %c0_81 = arith.constant 0 : index
    %103 = vector.load %arg19[%c47, %c0_81] : memref<128x128xf32, #tpu.memory_space<vmem>>, vector<1x128xf32>
    %104 = arith.maximumf %102, %103 : vector<1x128xf32>
    %105 = arith.maximumf %101, %104 : vector<1x128xf32>
    %c37_82 = arith.constant 37 : index
    %c0_83 = arith.constant 0 : index
    %106 = vector.load %arg15[%c37_82, %c0_83] : memref<128x128xf32, #tpu.memory_space<vmem>>, vector<1x128xf32>
    tpu.vector_store %arg15[%c37_82, %c0_83], %105 {strides = array<i32>} : memref<128x128xf32, #tpu.memory_space<vmem>>, vector<1x128xf32>,
    %c48 = arith.constant 48 : index
    %c0_84 = arith.constant 0 : index
    %107 = vector.load %arg19[%c48, %c0_84] : memref<128x128xf32, #tpu.memory_space<vmem>>, vector<1x128xf32>
    %c49 = arith.constant 49 : index
    %c0_85 = arith.constant 0 : index
    %108 = vector.load %arg19[%c49, %c0_85] : memref<128x128xf32, #tpu.memory_space<vmem>>, vector<1x128xf32>
    %109 = arith.maximumf %107, %108 : vector<1x128xf32>
    %c56 = arith.constant 56 : index
    %c0_86 = arith.constant 0 : index
    %110 = vector.load %arg19[%c56, %c0_86] : memref<128x128xf32, #tpu.memory_space<vmem>>, vector<1x128xf32>
    %c57 = arith.constant 57 : index
    %c0_87 = arith.constant 0 : index
    %111 = vector.load %arg19[%c57, %c0_87] : memref<128x128xf32, #tpu.memory_space<vmem>>, vector<1x128xf32>
    %112 = arith.maximumf %110, %111 : vector<1x128xf32>
    %113 = arith.maximumf %109, %112 : vector<1x128xf32>
    %c42_88 = arith.constant 42 : index
    %c0_89 = arith.constant 0 : index
    %114 = vector.load %arg15[%c42_88, %c0_89] : memref<128x128xf32, #tpu.memory_space<vmem>>, vector<1x128xf32>
    tpu.vector_store %arg15[%c42_88, %c0_89], %113 {strides = array<i32>} : memref<128x128xf32, #tpu.memory_space<vmem>>, vector<1x128xf32>,
    %c50 = arith.constant 50 : index
    %c0_90 = arith.constant 0 : index
    %115 = vector.load %arg19[%c50, %c0_90] : memref<128x128xf32, #tpu.memory_space<vmem>>, vector<1x128xf32>
    %c51 = arith.constant 51 : index
    %c0_91 = arith.constant 0 : index
    %116 = vector.load %arg19[%c51, %c0_91] : memref<128x128xf32, #tpu.memory_space<vmem>>, vector<1x128xf32>
    %117 = arith.maximumf %115, %116 : vector<1x128xf32>
    %c58 = arith.constant 58 : index
    %c0_92 = arith.constant 0 : index
    %118 = vector.load %arg19[%c58, %c0_92] : memref<128x128xf32, #tpu.memory_space<vmem>>, vector<1x128xf32>
    %c59 = arith.constant 59 : index
    %c0_93 = arith.constant 0 : index
    %119 = vector.load %arg19[%c59, %c0_93] : memref<128x128xf32, #tpu.memory_space<vmem>>, vector<1x128xf32>
    %120 = arith.maximumf %118, %119 : vector<1x128xf32>
    %121 = arith.maximumf %117, %120 : vector<1x128xf32>
    %c43_94 = arith.constant 43 : index
    %c0_95 = arith.constant 0 : index
    %122 = vector.load %arg15[%c43_94, %c0_95] : memref<128x128xf32, #tpu.memory_space<vmem>>, vector<1x128xf32>
    tpu.vector_store %arg15[%c43_94, %c0_95], %121 {strides = array<i32>} : memref<128x128xf32, #tpu.memory_space<vmem>>, vector<1x128xf32>,
    %c52 = arith.constant 52 : index
    %c0_96 = arith.constant 0 : index
    %123 = vector.load %arg19[%c52, %c0_96] : memref<128x128xf32, #tpu.memory_space<vmem>>, vector<1x128xf32>
    %c53 = arith.constant 53 : index
    %c0_97 = arith.constant 0 : index
    %124 = vector.load %arg19[%c53, %c0_97] : memref<128x128xf32, #tpu.memory_space<vmem>>, vector<1x128xf32>
    %125 = arith.maximumf %123, %124 : vector<1x128xf32>
    %c60 = arith.constant 60 : index
    %c0_98 = arith.constant 0 : index
    %126 = vector.load %arg19[%c60, %c0_98] : memref<128x128xf32, #tpu.memory_space<vmem>>, vector<1x128xf32>
    %c61 = arith.constant 61 : index
    %c0_99 = arith.constant 0 : index
    %127 = vector.load %arg19[%c61, %c0_99] : memref<128x128xf32, #tpu.memory_space<vmem>>, vector<1x128xf32>
    %128 = arith.maximumf %126, %127 : vector<1x128xf32>
    %129 = arith.maximumf %125, %128 : vector<1x128xf32>
    %c44_100 = arith.constant 44 : index
    %c0_101 = arith.constant 0 : index
    %130 = vector.load %arg15[%c44_100, %c0_101] : memref<128x128xf32, #tpu.memory_space<vmem>>, vector<1x128xf32>
    tpu.vector_store %arg15[%c44_100, %c0_101], %129 {strides = array<i32>} : memref<128x128xf32, #tpu.memory_space<vmem>>, vector<1x128xf32>,
    %c54 = arith.constant 54 : index
    %c0_102 = arith.constant 0 : index
    %131 = vector.load %arg19[%c54, %c0_102] : memref<128x128xf32, #tpu.memory_space<vmem>>, vector<1x128xf32>
    %c55 = arith.constant 55 : index
    %c0_103 = arith.constant 0 : index
    %132 = vector.load %arg19[%c55, %c0_103] : memref<128x128xf32, #tpu.memory_space<vmem>>, vector<1x128xf32>
    %133 = arith.maximumf %131, %132 : vector<1x128xf32>
    %c62 = arith.constant 62 : index
    %c0_104 = arith.constant 0 : index
    %134 = vector.load %arg19[%c62, %c0_104] : memref<128x128xf32, #tpu.memory_space<vmem>>, vector<1x128xf32>
    %c63 = arith.constant 63 : index
    %c0_105 = arith.constant 0 : index
    %135 = vector.load %arg19[%c63, %c0_105] : memref<128x128xf32, #tpu.memory_space<vmem>>, vector<1x128xf32>
    %136 = arith.maximumf %134, %135 : vector<1x128xf32>
    %137 = arith.maximumf %133, %136 : vector<1x128xf32>
    %c45_106 = arith.constant 45 : index
    %c0_107 = arith.constant 0 : index
    %138 = vector.load %arg15[%c45_106, %c0_107] : memref<128x128xf32, #tpu.memory_space<vmem>>, vector<1x128xf32>
    tpu.vector_store %arg15[%c45_106, %c0_107], %137 {strides = array<i32>} : memref<128x128xf32, #tpu.memory_space<vmem>>, vector<1x128xf32>,
    %c64 = arith.constant 64 : index
    %c0_108 = arith.constant 0 : index
    %139 = vector.load %arg19[%c64, %c0_108] : memref<128x128xf32, #tpu.memory_space<vmem>>, vector<1x128xf32>
    %c65 = arith.constant 65 : index
    %c0_109 = arith.constant 0 : index
    %140 = vector.load %arg19[%c65, %c0_109] : memref<128x128xf32, #tpu.memory_space<vmem>>, vector<1x128xf32>
    %141 = arith.maximumf %139, %140 : vector<1x128xf32>
    %c72 = arith.constant 72 : index
    %c0_110 = arith.constant 0 : index
    %142 = vector.load %arg19[%c72, %c0_110] : memref<128x128xf32, #tpu.memory_space<vmem>>, vector<1x128xf32>
    %c73 = arith.constant 73 : index
    %c0_111 = arith.constant 0 : index
    %143 = vector.load %arg19[%c73, %c0_111] : memref<128x128xf32, #tpu.memory_space<vmem>>, vector<1x128xf32>
    %144 = arith.maximumf %142, %143 : vector<1x128xf32>
    %145 = arith.maximumf %141, %144 : vector<1x128xf32>
    %c82 = arith.constant 82 : index
    %c0_112 = arith.constant 0 : index
    %146 = vector.load %arg15[%c82, %c0_112] : memref<128x128xf32, #tpu.memory_space<vmem>>, vector<1x128xf32>
    tpu.vector_store %arg15[%c82, %c0_112], %145 {strides = array<i32>} : memref<128x128xf32, #tpu.memory_space<vmem>>, vector<1x128xf32>,
    %c66 = arith.constant 66 : index
    %c0_113 = arith.constant 0 : index
    %147 = vector.load %arg19[%c66, %c0_113] : memref<128x128xf32, #tpu.memory_space<vmem>>, vector<1x128xf32>
    %c67 = arith.constant 67 : index
    %c0_114 = arith.constant 0 : index
    %148 = vector.load %arg19[%c67, %c0_114] : memref<128x128xf32, #tpu.memory_space<vmem>>, vector<1x128xf32>
    %149 = arith.maximumf %147, %148 : vector<1x128xf32>
    %c74 = arith.constant 74 : index
    %c0_115 = arith.constant 0 : index
    %150 = vector.load %arg19[%c74, %c0_115] : memref<128x128xf32, #tpu.memory_space<vmem>>, vector<1x128xf32>
    %c75 = arith.constant 75 : index
    %c0_116 = arith.constant 0 : index
    %151 = vector.load %arg19[%c75, %c0_116] : memref<128x128xf32, #tpu.memory_space<vmem>>, vector<1x128xf32>
    %152 = arith.maximumf %150, %151 : vector<1x128xf32>
    %153 = arith.maximumf %149, %152 : vector<1x128xf32>
    %c83 = arith.constant 83 : index
    %c0_117 = arith.constant 0 : index
    %154 = vector.load %arg15[%c83, %c0_117] : memref<128x128xf32, #tpu.memory_space<vmem>>, vector<1x128xf32>
    tpu.vector_store %arg15[%c83, %c0_117], %153 {strides = array<i32>} : memref<128x128xf32, #tpu.memory_space<vmem>>, vector<1x128xf32>,
    %c68 = arith.constant 68 : index
    %c0_118 = arith.constant 0 : index
    %155 = vector.load %arg19[%c68, %c0_118] : memref<128x128xf32, #tpu.memory_space<vmem>>, vector<1x128xf32>
    %c69 = arith.constant 69 : index
    %c0_119 = arith.constant 0 : index
    %156 = vector.load %arg19[%c69, %c0_119] : memref<128x128xf32, #tpu.memory_space<vmem>>, vector<1x128xf32>
    %157 = arith.maximumf %155, %156 : vector<1x128xf32>
    %c76 = arith.constant 76 : index
    %c0_120 = arith.constant 0 : index
    %158 = vector.load %arg19[%c76, %c0_120] : memref<128x128xf32, #tpu.memory_space<vmem>>, vector<1x128xf32>
    %c77 = arith.constant 77 : index
    %c0_121 = arith.constant 0 : index
    %159 = vector.load %arg19[%c77, %c0_121] : memref<128x128xf32, #tpu.memory_space<vmem>>, vector<1x128xf32>
    %160 = arith.maximumf %158, %159 : vector<1x128xf32>
    %161 = arith.maximumf %157, %160 : vector<1x128xf32>
    %c84 = arith.constant 84 : index
    %c0_122 = arith.constant 0 : index
    %162 = vector.load %arg15[%c84, %c0_122] : memref<128x128xf32, #tpu.memory_space<vmem>>, vector<1x128xf32>
    tpu.vector_store %arg15[%c84, %c0_122], %161 {strides = array<i32>} : memref<128x128xf32, #tpu.memory_space<vmem>>, vector<1x128xf32>,
    %c70 = arith.constant 70 : index
    %c0_123 = arith.constant 0 : index
    %163 = vector.load %arg19[%c70, %c0_123] : memref<128x128xf32, #tpu.memory_space<vmem>>, vector<1x128xf32>
    %c71 = arith.constant 71 : index
    %c0_124 = arith.constant 0 : index
    %164 = vector.load %arg19[%c71, %c0_124] : memref<128x128xf32, #tpu.memory_space<vmem>>, vector<1x128xf32>
    %165 = arith.maximumf %163, %164 : vector<1x128xf32>
    %c78 = arith.constant 78 : index
    %c0_125 = arith.constant 0 : index
    %166 = vector.load %arg19[%c78, %c0_125] : memref<128x128xf32, #tpu.memory_space<vmem>>, vector<1x128xf32>
    %c79 = arith.constant 79 : index
    %c0_126 = arith.constant 0 : index
    %167 = vector.load %arg19[%c79, %c0_126] : memref<128x128xf32, #tpu.memory_space<vmem>>, vector<1x128xf32>
    %168 = arith.maximumf %166, %167 : vector<1x128xf32>
    %169 = arith.maximumf %165, %168 : vector<1x128xf32>
    %c85 = arith.constant 85 : index
    %c0_127 = arith.constant 0 : index
    %170 = vector.load %arg15[%c85, %c0_127] : memref<128x128xf32, #tpu.memory_space<vmem>>, vector<1x128xf32>
    tpu.vector_store %arg15[%c85, %c0_127], %169 {strides = array<i32>} : memref<128x128xf32, #tpu.memory_space<vmem>>, vector<1x128xf32>,
    %c80 = arith.constant 80 : index
    %c0_128 = arith.constant 0 : index
    %171 = vector.load %arg19[%c80, %c0_128] : memref<128x128xf32, #tpu.memory_space<vmem>>, vector<1x128xf32>
    %c81 = arith.constant 81 : index
    %c0_129 = arith.constant 0 : index
    %172 = vector.load %arg19[%c81, %c0_129] : memref<128x128xf32, #tpu.memory_space<vmem>>, vector<1x128xf32>
    %173 = arith.maximumf %171, %172 : vector<1x128xf32>
    %c88 = arith.constant 88 : index
    %c0_130 = arith.constant 0 : index
    %174 = vector.load %arg19[%c88, %c0_130] : memref<128x128xf32, #tpu.memory_space<vmem>>, vector<1x128xf32>
    %c89 = arith.constant 89 : index
    %c0_131 = arith.constant 0 : index
    %175 = vector.load %arg19[%c89, %c0_131] : memref<128x128xf32, #tpu.memory_space<vmem>>, vector<1x128xf32>
    %176 = arith.maximumf %174, %175 : vector<1x128xf32>
    %177 = arith.maximumf %173, %176 : vector<1x128xf32>
    %c90 = arith.constant 90 : index
    %c0_132 = arith.constant 0 : index
    %178 = vector.load %arg15[%c90, %c0_132] : memref<128x128xf32, #tpu.memory_space<vmem>>, vector<1x128xf32>
    tpu.vector_store %arg15[%c90, %c0_132], %177 {strides = array<i32>} : memref<128x128xf32, #tpu.memory_space<vmem>>, vector<1x128xf32>,
    %c82_133 = arith.constant 82 : index
    %c0_134 = arith.constant 0 : index
    %179 = vector.load %arg19[%c82_133, %c0_134] : memref<128x128xf32, #tpu.memory_space<vmem>>, vector<1x128xf32>
    %c83_135 = arith.constant 83 : index
    %c0_136 = arith.constant 0 : index
    %180 = vector.load %arg19[%c83_135, %c0_136] : memref<128x128xf32, #tpu.memory_space<vmem>>, vector<1x128xf32>
    %181 = arith.maximumf %179, %180 : vector<1x128xf32>
    %c90_137 = arith.constant 90 : index
    %c0_138 = arith.constant 0 : index
    %182 = vector.load %arg19[%c90_137, %c0_138] : memref<128x128xf32, #tpu.memory_space<vmem>>, vector<1x128xf32>
    %c91 = arith.constant 91 : index
    %c0_139 = arith.constant 0 : index
    %183 = vector.load %arg19[%c91, %c0_139] : memref<128x128xf32, #tpu.memory_space<vmem>>, vector<1x128xf32>
    %184 = arith.maximumf %182, %183 : vector<1x128xf32>
    %185 = arith.maximumf %181, %184 : vector<1x128xf32>
    %c91_140 = arith.constant 91 : index
    %c0_141 = arith.constant 0 : index
    %186 = vector.load %arg15[%c91_140, %c0_141] : memref<128x128xf32, #tpu.memory_space<vmem>>, vector<1x128xf32>
    tpu.vector_store %arg15[%c91_140, %c0_141], %185 {strides = array<i32>} : memref<128x128xf32, #tpu.memory_space<vmem>>, vector<1x128xf32>,
    %c84_142 = arith.constant 84 : index
    %c0_143 = arith.constant 0 : index
    %187 = vector.load %arg19[%c84_142, %c0_143] : memref<128x128xf32, #tpu.memory_space<vmem>>, vector<1x128xf32>
    %c85_144 = arith.constant 85 : index
    %c0_145 = arith.constant 0 : index
    %188 = vector.load %arg19[%c85_144, %c0_145] : memref<128x128xf32, #tpu.memory_space<vmem>>, vector<1x128xf32>
    %189 = arith.maximumf %187, %188 : vector<1x128xf32>
    %c92 = arith.constant 92 : index
    %c0_146 = arith.constant 0 : index
    %190 = vector.load %arg19[%c92, %c0_146] : memref<128x128xf32, #tpu.memory_space<vmem>>, vector<1x128xf32>
    %c93 = arith.constant 93 : index
    %c0_147 = arith.constant 0 : index
    %191 = vector.load %arg19[%c93, %c0_147] : memref<128x128xf32, #tpu.memory_space<vmem>>, vector<1x128xf32>
    %192 = arith.maximumf %190, %191 : vector<1x128xf32>
    %193 = arith.maximumf %189, %192 : vector<1x128xf32>
    %c92_148 = arith.constant 92 : index
    %c0_149 = arith.constant 0 : index
    %194 = vector.load %arg15[%c92_148, %c0_149] : memref<128x128xf32, #tpu.memory_space<vmem>>, vector<1x128xf32>
    tpu.vector_store %arg15[%c92_148, %c0_149], %193 {strides = array<i32>} : memref<128x128xf32, #tpu.memory_space<vmem>>, vector<1x128xf32>,
    %c86 = arith.constant 86 : index
    %c0_150 = arith.constant 0 : index
    %195 = vector.load %arg19[%c86, %c0_150] : memref<128x128xf32, #tpu.memory_space<vmem>>, vector<1x128xf32>
    %c87 = arith.constant 87 : index
    %c0_151 = arith.constant 0 : index
    %196 = vector.load %arg19[%c87, %c0_151] : memref<128x128xf32, #tpu.memory_space<vmem>>, vector<1x128xf32>
    %197 = arith.maximumf %195, %196 : vector<1x128xf32>
    %c94 = arith.constant 94 : index
    %c0_152 = arith.constant 0 : index
    %198 = vector.load %arg19[%c94, %c0_152] : memref<128x128xf32, #tpu.memory_space<vmem>>, vector<1x128xf32>
    %c95 = arith.constant 95 : index
    %c0_153 = arith.constant 0 : index
    %199 = vector.load %arg19[%c95, %c0_153] : memref<128x128xf32, #tpu.memory_space<vmem>>, vector<1x128xf32>
    %200 = arith.maximumf %198, %199 : vector<1x128xf32>
    %201 = arith.maximumf %197, %200 : vector<1x128xf32>
    %c93_154 = arith.constant 93 : index
    %c0_155 = arith.constant 0 : index
    %202 = vector.load %arg15[%c93_154, %c0_155] : memref<128x128xf32, #tpu.memory_space<vmem>>, vector<1x128xf32>
    tpu.vector_store %arg15[%c93_154, %c0_155], %201 {strides = array<i32>} : memref<128x128xf32, #tpu.memory_space<vmem>>, vector<1x128xf32>,
    %c96 = arith.constant 96 : index
    %c0_156 = arith.constant 0 : index
    %203 = vector.load %arg19[%c96, %c0_156] : memref<128x128xf32, #tpu.memory_space<vmem>>, vector<1x128xf32>
    %c97 = arith.constant 97 : index
    %c0_157 = arith.constant 0 : index
    %204 = vector.load %arg19[%c97, %c0_157] : memref<128x128xf32, #tpu.memory_space<vmem>>, vector<1x128xf32>
    %205 = arith.maximumf %203, %204 : vector<1x128xf32>
    %c104 = arith.constant 104 : index
    %c0_158 = arith.constant 0 : index
    %206 = vector.load %arg19[%c104, %c0_158] : memref<128x128xf32, #tpu.memory_space<vmem>>, vector<1x128xf32>
    %c105 = arith.constant 105 : index
    %c0_159 = arith.constant 0 : index
    %207 = vector.load %arg19[%c105, %c0_159] : memref<128x128xf32, #tpu.memory_space<vmem>>, vector<1x128xf32>
    %208 = arith.maximumf %206, %207 : vector<1x128xf32>
    %209 = arith.maximumf %205, %208 : vector<1x128xf32>
    %c98 = arith.constant 98 : index
    %c0_160 = arith.constant 0 : index
    %210 = vector.load %arg15[%c98, %c0_160] : memref<128x128xf32, #tpu.memory_space<vmem>>, vector<1x128xf32>
    tpu.vector_store %arg15[%c98, %c0_160], %209 {strides = array<i32>} : memref<128x128xf32, #tpu.memory_space<vmem>>, vector<1x128xf32>,
    %c98_161 = arith.constant 98 : index
    %c0_162 = arith.constant 0 : index
    %211 = vector.load %arg19[%c98_161, %c0_162] : memref<128x128xf32, #tpu.memory_space<vmem>>, vector<1x128xf32>
    %c99 = arith.constant 99 : index
    %c0_163 = arith.constant 0 : index
    %212 = vector.load %arg19[%c99, %c0_163] : memref<128x128xf32, #tpu.memory_space<vmem>>, vector<1x128xf32>
    %213 = arith.maximumf %211, %212 : vector<1x128xf32>
    %c106 = arith.constant 106 : index
    %c0_164 = arith.constant 0 : index
    %214 = vector.load %arg19[%c106, %c0_164] : memref<128x128xf32, #tpu.memory_space<vmem>>, vector<1x128xf32>
    %c107 = arith.constant 107 : index
    %c0_165 = arith.constant 0 : index
    %215 = vector.load %arg19[%c107, %c0_165] : memref<128x128xf32, #tpu.memory_space<vmem>>, vector<1x128xf32>
    %216 = arith.maximumf %214, %215 : vector<1x128xf32>
    %217 = arith.maximumf %213, %216 : vector<1x128xf32>
    %c99_166 = arith.constant 99 : index
    %c0_167 = arith.constant 0 : index
    %218 = vector.load %arg15[%c99_166, %c0_167] : memref<128x128xf32, #tpu.memory_space<vmem>>, vector<1x128xf32>
    tpu.vector_store %arg15[%c99_166, %c0_167], %217 {strides = array<i32>} : memref<128x128xf32, #tpu.memory_space<vmem>>, vector<1x128xf32>,
    %c100 = arith.constant 100 : index
    %c0_168 = arith.constant 0 : index
    %219 = vector.load %arg19[%c100, %c0_168] : memref<128x128xf32, #tpu.memory_space<vmem>>, vector<1x128xf32>
    %c101 = arith.constant 101 : index
    %c0_169 = arith.constant 0 : index
    %220 = vector.load %arg19[%c101, %c0_169] : memref<128x128xf32, #tpu.memory_space<vmem>>, vector<1x128xf32>
    %221 = arith.maximumf %219, %220 : vector<1x128xf32>
    %c108 = arith.constant 108 : index
    %c0_170 = arith.constant 0 : index
    %222 = vector.load %arg19[%c108, %c0_170] : memref<128x128xf32, #tpu.memory_space<vmem>>, vector<1x128xf32>
    %c109 = arith.constant 109 : index
    %c0_171 = arith.constant 0 : index
    %223 = vector.load %arg19[%c109, %c0_171] : memref<128x128xf32, #tpu.memory_space<vmem>>, vector<1x128xf32>
    %224 = arith.maximumf %222, %223 : vector<1x128xf32>
    %225 = arith.maximumf %221, %224 : vector<1x128xf32>
    %c100_172 = arith.constant 100 : index
    %c0_173 = arith.constant 0 : index
    %226 = vector.load %arg15[%c100_172, %c0_173] : memref<128x128xf32, #tpu.memory_space<vmem>>, vector<1x128xf32>
    tpu.vector_store %arg15[%c100_172, %c0_173], %225 {strides = array<i32>} : memref<128x128xf32, #tpu.memory_space<vmem>>, vector<1x128xf32>,
    %c102 = arith.constant 102 : index
    %c0_174 = arith.constant 0 : index
    %227 = vector.load %arg19[%c102, %c0_174] : memref<128x128xf32, #tpu.memory_space<vmem>>, vector<1x128xf32>
    %c103 = arith.constant 103 : index
    %c0_175 = arith.constant 0 : index
    %228 = vector.load %arg19[%c103, %c0_175] : memref<128x128xf32, #tpu.memory_space<vmem>>, vector<1x128xf32>
    %229 = arith.maximumf %227, %228 : vector<1x128xf32>
    %c110 = arith.constant 110 : index
    %c0_176 = arith.constant 0 : index
    %230 = vector.load %arg19[%c110, %c0_176] : memref<128x128xf32, #tpu.memory_space<vmem>>, vector<1x128xf32>
    %c111 = arith.constant 111 : index
    %c0_177 = arith.constant 0 : index
    %231 = vector.load %arg19[%c111, %c0_177] : memref<128x128xf32, #tpu.memory_space<vmem>>, vector<1x128xf32>
    %232 = arith.maximumf %230, %231 : vector<1x128xf32>
    %233 = arith.maximumf %229, %232 : vector<1x128xf32>
    %c101_178 = arith.constant 101 : index
    %c0_179 = arith.constant 0 : index
    %234 = vector.load %arg15[%c101_178, %c0_179] : memref<128x128xf32, #tpu.memory_space<vmem>>, vector<1x128xf32>
    tpu.vector_store %arg15[%c101_178, %c0_179], %233 {strides = array<i32>} : memref<128x128xf32, #tpu.memory_space<vmem>>, vector<1x128xf32>,
    %c112 = arith.constant 112 : index
    %c0_180 = arith.constant 0 : index
    %235 = vector.load %arg19[%c112, %c0_180] : memref<128x128xf32, #tpu.memory_space<vmem>>, vector<1x128xf32>
    %c113 = arith.constant 113 : index
    %c0_181 = arith.constant 0 : index
    %236 = vector.load %arg19[%c113, %c0_181] : memref<128x128xf32, #tpu.memory_space<vmem>>, vector<1x128xf32>
    %237 = arith.maximumf %235, %236 : vector<1x128xf32>
    %c120 = arith.constant 120 : index
    %c0_182 = arith.constant 0 : index
    %238 = vector.load %arg19[%c120, %c0_182] : memref<128x128xf32, #tpu.memory_space<vmem>>, vector<1x128xf32>
    %c121 = arith.constant 121 : index
    %c0_183 = arith.constant 0 : index
    %239 = vector.load %arg19[%c121, %c0_183] : memref<128x128xf32, #tpu.memory_space<vmem>>, vector<1x128xf32>
    %240 = arith.maximumf %238, %239 : vector<1x128xf32>
    %241 = arith.maximumf %237, %240 : vector<1x128xf32>
    %c106_184 = arith.constant 106 : index
    %c0_185 = arith.constant 0 : index
    %242 = vector.load %arg15[%c106_184, %c0_185] : memref<128x128xf32, #tpu.memory_space<vmem>>, vector<1x128xf32>
    tpu.vector_store %arg15[%c106_184, %c0_185], %241 {strides = array<i32>} : memref<128x128xf32, #tpu.memory_space<vmem>>, vector<1x128xf32>,
    %c114 = arith.constant 114 : index
    %c0_186 = arith.constant 0 : index
    %243 = vector.load %arg19[%c114, %c0_186] : memref<128x128xf32, #tpu.memory_space<vmem>>, vector<1x128xf32>
    %c115 = arith.constant 115 : index
    %c0_187 = arith.constant 0 : index
    %244 = vector.load %arg19[%c115, %c0_187] : memref<128x128xf32, #tpu.memory_space<vmem>>, vector<1x128xf32>
    %245 = arith.maximumf %243, %244 : vector<1x128xf32>
    %c122 = arith.constant 122 : index
    %c0_188 = arith.constant 0 : index
    %246 = vector.load %arg19[%c122, %c0_188] : memref<128x128xf32, #tpu.memory_space<vmem>>, vector<1x128xf32>
    %c123 = arith.constant 123 : index
    %c0_189 = arith.constant 0 : index
    %247 = vector.load %arg19[%c123, %c0_189] : memref<128x128xf32, #tpu.memory_space<vmem>>, vector<1x128xf32>
    %248 = arith.maximumf %246, %247 : vector<1x128xf32>
    %249 = arith.maximumf %245, %248 : vector<1x128xf32>
    %c107_190 = arith.constant 107 : index
    %c0_191 = arith.constant 0 : index
    %250 = vector.load %arg15[%c107_190, %c0_191] : memref<128x128xf32, #tpu.memory_space<vmem>>, vector<1x128xf32>
    tpu.vector_store %arg15[%c107_190, %c0_191], %249 {strides = array<i32>} : memref<128x128xf32, #tpu.memory_space<vmem>>, vector<1x128xf32>,
    %c116 = arith.constant 116 : index
    %c0_192 = arith.constant 0 : index
    %251 = vector.load %arg19[%c116, %c0_192] : memref<128x128xf32, #tpu.memory_space<vmem>>, vector<1x128xf32>
    %c117 = arith.constant 117 : index
    %c0_193 = arith.constant 0 : index
    %252 = vector.load %arg19[%c117, %c0_193] : memref<128x128xf32, #tpu.memory_space<vmem>>, vector<1x128xf32>
    %253 = arith.maximumf %251, %252 : vector<1x128xf32>
    %c124 = arith.constant 124 : index
    %c0_194 = arith.constant 0 : index
    %254 = vector.load %arg19[%c124, %c0_194] : memref<128x128xf32, #tpu.memory_space<vmem>>, vector<1x128xf32>
    %c125 = arith.constant 125 : index
    %c0_195 = arith.constant 0 : index
    %255 = vector.load %arg19[%c125, %c0_195] : memref<128x128xf32, #tpu.memory_space<vmem>>, vector<1x128xf32>
    %256 = arith.maximumf %254, %255 : vector<1x128xf32>
    %257 = arith.maximumf %253, %256 : vector<1x128xf32>
    %c108_196 = arith.constant 108 : index
    %c0_197 = arith.constant 0 : index
    %258 = vector.load %arg15[%c108_196, %c0_197] : memref<128x128xf32, #tpu.memory_space<vmem>>, vector<1x128xf32>
    tpu.vector_store %arg15[%c108_196, %c0_197], %257 {strides = array<i32>} : memref<128x128xf32, #tpu.memory_space<vmem>>, vector<1x128xf32>,
    %c118 = arith.constant 118 : index
    %c0_198 = arith.constant 0 : index
    %259 = vector.load %arg19[%c118, %c0_198] : memref<128x128xf32, #tpu.memory_space<vmem>>, vector<1x128xf32>
    %c119 = arith.constant 119 : index
    %c0_199 = arith.constant 0 : index
    %260 = vector.load %arg19[%c119, %c0_199] : memref<128x128xf32, #tpu.memory_space<vmem>>, vector<1x128xf32>
    %261 = arith.maximumf %259, %260 : vector<1x128xf32>
    %c126 = arith.constant 126 : index
    %c0_200 = arith.constant 0 : index
    %262 = vector.load %arg19[%c126, %c0_200] : memref<128x128xf32, #tpu.memory_space<vmem>>, vector<1x128xf32>
    %c127 = arith.constant 127 : index
    %c0_201 = arith.constant 0 : index
    %263 = vector.load %arg19[%c127, %c0_201] : memref<128x128xf32, #tpu.memory_space<vmem>>, vector<1x128xf32>
    %264 = arith.maximumf %262, %263 : vector<1x128xf32>
    %265 = arith.maximumf %261, %264 : vector<1x128xf32>
    %c109_202 = arith.constant 109 : index
    %c0_203 = arith.constant 0 : index
    %266 = vector.load %arg15[%c109_202, %c0_203] : memref<128x128xf32, #tpu.memory_space<vmem>>, vector<1x128xf32>
    tpu.vector_store %arg15[%c109_202, %c0_203], %265 {strides = array<i32>} : memref<128x128xf32, #tpu.memory_space<vmem>>, vector<1x128xf32>,
    %cst_204 = arith.constant 0.000000e+00 : f32
    %267 = vector.broadcast %cst_204 : f32 to vector<92x128xf32>
    %c0_205 = arith.constant 0 : index
    %c0_206 = arith.constant 0 : index
    %268 = vector.load %arg15[%c0_205, %c0_206] : memref<128x128xf32, #tpu.memory_space<vmem>>, vector<92x128xf32>
    %269 = arith.truncf %268 : vector<92x128xf32> to vector<92x128xbf16>
    %c0_207 = arith.constant 0 : index
    %c0_208 = arith.constant 0 : index
    %c0_209 = arith.constant 0 : index
    %270 = vector.load %arg4[%c0_207, %c0_208, %c0_209] : memref<25x128x128xbf16, #tpu.memory_space<vmem>>, vector<1x128x128xbf16>
    %271 = vector.shape_cast %270 : vector<1x128x128xbf16> to vector<128x128xbf16>
    %cst_210 = arith.constant dense<0.000000e+00> : vector<92x128xf32>
    %272 = tpu.matmul %269, %271, %cst_210 {dimension_numbers = #tpu.dot_dimension_numbers<[1], [0], [0], [1], [0, 0, 1, 1], [], []>} : vector<92x128xbf16>, vector<128x128xbf16>, vector<92x128xf32> -> vector<92x128xf32>
    %273 = arith.addf %267, %272 : vector<92x128xf32>
    %c1_211 = arith.constant 1 : index
    %c0_212 = arith.constant 0 : index
    %274 = vector.load %arg15[%c1_211, %c0_212] : memref<128x128xf32, #tpu.memory_space<vmem>>, vector<92x128xf32>
    %275 = arith.truncf %274 : vector<92x128xf32> to vector<92x128xbf16>
    %c1_213 = arith.constant 1 : index
    %c0_214 = arith.constant 0 : index
    %c0_215 = arith.constant 0 : index
    %276 = vector.load %arg4[%c1_213, %c0_214, %c0_215] : memref<25x128x128xbf16, #tpu.memory_space<vmem>>, vector<1x128x128xbf16>
    %277 = vector.shape_cast %276 : vector<1x128x128xbf16> to vector<128x128xbf16>
    %cst_216 = arith.constant dense<0.000000e+00> : vector<92x128xf32>
    %278 = tpu.matmul %275, %277, %cst_216 {dimension_numbers = #tpu.dot_dimension_numbers<[1], [0], [0], [1], [0, 0, 1, 1], [], []>} : vector<92x128xbf16>, vector<128x128xbf16>, vector<92x128xf32> -> vector<92x128xf32>
    %279 = arith.addf %273, %278 : vector<92x128xf32>
    %c2_217 = arith.constant 2 : index
    %c0_218 = arith.constant 0 : index
    %280 = vector.load %arg15[%c2_217, %c0_218] : memref<128x128xf32, #tpu.memory_space<vmem>>, vector<92x128xf32>
    %281 = arith.truncf %280 : vector<92x128xf32> to vector<92x128xbf16>
    %c2_219 = arith.constant 2 : index
    %c0_220 = arith.constant 0 : index
    %c0_221 = arith.constant 0 : index
    %282 = vector.load %arg4[%c2_219, %c0_220, %c0_221] : memref<25x128x128xbf16, #tpu.memory_space<vmem>>, vector<1x128x128xbf16>
    %283 = vector.shape_cast %282 : vector<1x128x128xbf16> to vector<128x128xbf16>
    %cst_222 = arith.constant dense<0.000000e+00> : vector<92x128xf32>
    %284 = tpu.matmul %281, %283, %cst_222 {dimension_numbers = #tpu.dot_dimension_numbers<[1], [0], [0], [1], [0, 0, 1, 1], [], []>} : vector<92x128xbf16>, vector<128x128xbf16>, vector<92x128xf32> -> vector<92x128xf32>
    %285 = arith.addf %279, %284 : vector<92x128xf32>
    %c3_223 = arith.constant 3 : index
    %c0_224 = arith.constant 0 : index
    %286 = vector.load %arg15[%c3_223, %c0_224] : memref<128x128xf32, #tpu.memory_space<vmem>>, vector<92x128xf32>
    %287 = arith.truncf %286 : vector<92x128xf32> to vector<92x128xbf16>
    %c3_225 = arith.constant 3 : index
    %c0_226 = arith.constant 0 : index
    %c0_227 = arith.constant 0 : index
    %288 = vector.load %arg4[%c3_225, %c0_226, %c0_227] : memref<25x128x128xbf16, #tpu.memory_space<vmem>>, vector<1x128x128xbf16>
    %289 = vector.shape_cast %288 : vector<1x128x128xbf16> to vector<128x128xbf16>
    %cst_228 = arith.constant dense<0.000000e+00> : vector<92x128xf32>
    %290 = tpu.matmul %287, %289, %cst_228 {dimension_numbers = #tpu.dot_dimension_numbers<[1], [0], [0], [1], [0, 0, 1, 1], [], []>} : vector<92x128xbf16>, vector<128x128xbf16>, vector<92x128xf32> -> vector<92x128xf32>
    %291 = arith.addf %285, %290 : vector<92x128xf32>
    %c4_229 = arith.constant 4 : index
    %c0_230 = arith.constant 0 : index
    %292 = vector.load %arg15[%c4_229, %c0_230] : memref<128x128xf32, #tpu.memory_space<vmem>>, vector<92x128xf32>
    %293 = arith.truncf %292 : vector<92x128xf32> to vector<92x128xbf16>
    %c4_231 = arith.constant 4 : index
    %c0_232 = arith.constant 0 : index
    %c0_233 = arith.constant 0 : index
    %294 = vector.load %arg4[%c4_231, %c0_232, %c0_233] : memref<25x128x128xbf16, #tpu.memory_space<vmem>>, vector<1x128x128xbf16>
    %295 = vector.shape_cast %294 : vector<1x128x128xbf16> to vector<128x128xbf16>
    %cst_234 = arith.constant dense<0.000000e+00> : vector<92x128xf32>
    %296 = tpu.matmul %293, %295, %cst_234 {dimension_numbers = #tpu.dot_dimension_numbers<[1], [0], [0], [1], [0, 0, 1, 1], [], []>} : vector<92x128xbf16>, vector<128x128xbf16>, vector<92x128xf32> -> vector<92x128xf32>
    %297 = arith.addf %291, %296 : vector<92x128xf32>
    %c8_235 = arith.constant 8 : index
    %c0_236 = arith.constant 0 : index
    %298 = vector.load %arg15[%c8_235, %c0_236] : memref<128x128xf32, #tpu.memory_space<vmem>>, vector<92x128xf32>
    %299 = arith.truncf %298 : vector<92x128xf32> to vector<92x128xbf16>
    %c5_237 = arith.constant 5 : index
    %c0_238 = arith.constant 0 : index
    %c0_239 = arith.constant 0 : index
    %300 = vector.load %arg4[%c5_237, %c0_238, %c0_239] : memref<25x128x128xbf16, #tpu.memory_space<vmem>>, vector<1x128x128xbf16>
    %301 = vector.shape_cast %300 : vector<1x128x128xbf16> to vector<128x128xbf16>
    %cst_240 = arith.constant dense<0.000000e+00> : vector<92x128xf32>
    %302 = tpu.matmul %299, %301, %cst_240 {dimension_numbers = #tpu.dot_dimension_numbers<[1], [0], [0], [1], [0, 0, 1, 1], [], []>} : vector<92x128xbf16>, vector<128x128xbf16>, vector<92x128xf32> -> vector<92x128xf32>
    %303 = arith.addf %297, %302 : vector<92x128xf32>
    %c9_241 = arith.constant 9 : index
    %c0_242 = arith.constant 0 : index
    %304 = vector.load %arg15[%c9_241, %c0_242] : memref<128x128xf32, #tpu.memory_space<vmem>>, vector<92x128xf32>
    %305 = arith.truncf %304 : vector<92x128xf32> to vector<92x128xbf16>
    %c6_243 = arith.constant 6 : index
    %c0_244 = arith.constant 0 : index
    %c0_245 = arith.constant 0 : index
    %306 = vector.load %arg4[%c6_243, %c0_244, %c0_245] : memref<25x128x128xbf16, #tpu.memory_space<vmem>>, vector<1x128x128xbf16>
    %307 = vector.shape_cast %306 : vector<1x128x128xbf16> to vector<128x128xbf16>
    %cst_246 = arith.constant dense<0.000000e+00> : vector<92x128xf32>
    %308 = tpu.matmul %305, %307, %cst_246 {dimension_numbers = #tpu.dot_dimension_numbers<[1], [0], [0], [1], [0, 0, 1, 1], [], []>} : vector<92x128xbf16>, vector<128x128xbf16>, vector<92x128xf32> -> vector<92x128xf32>
    %309 = arith.addf %303, %308 : vector<92x128xf32>
    %c10_247 = arith.constant 10 : index
    %c0_248 = arith.constant 0 : index
    %310 = vector.load %arg15[%c10_247, %c0_248] : memref<128x128xf32, #tpu.memory_space<vmem>>, vector<92x128xf32>
    %311 = arith.truncf %310 : vector<92x128xf32> to vector<92x128xbf16>
    %c7_249 = arith.constant 7 : index
    %c0_250 = arith.constant 0 : index
    %c0_251 = arith.constant 0 : index
    %312 = vector.load %arg4[%c7_249, %c0_250, %c0_251] : memref<25x128x128xbf16, #tpu.memory_space<vmem>>, vector<1x128x128xbf16>
    %313 = vector.shape_cast %312 : vector<1x128x128xbf16> to vector<128x128xbf16>
    %cst_252 = arith.constant dense<0.000000e+00> : vector<92x128xf32>
    %314 = tpu.matmul %311, %313, %cst_252 {dimension_numbers = #tpu.dot_dimension_numbers<[1], [0], [0], [1], [0, 0, 1, 1], [], []>} : vector<92x128xbf16>, vector<128x128xbf16>, vector<92x128xf32> -> vector<92x128xf32>
    %315 = arith.addf %309, %314 : vector<92x128xf32>
    %c11_253 = arith.constant 11 : index
    %c0_254 = arith.constant 0 : index
    %316 = vector.load %arg15[%c11_253, %c0_254] : memref<128x128xf32, #tpu.memory_space<vmem>>, vector<92x128xf32>
    %317 = arith.truncf %316 : vector<92x128xf32> to vector<92x128xbf16>
    %c8_255 = arith.constant 8 : index
    %c0_256 = arith.constant 0 : index
    %c0_257 = arith.constant 0 : index
    %318 = vector.load %arg4[%c8_255, %c0_256, %c0_257] : memref<25x128x128xbf16, #tpu.memory_space<vmem>>, vector<1x128x128xbf16>
    %319 = vector.shape_cast %318 : vector<1x128x128xbf16> to vector<128x128xbf16>
    %cst_258 = arith.constant dense<0.000000e+00> : vector<92x128xf32>
    %320 = tpu.matmul %317, %319, %cst_258 {dimension_numbers = #tpu.dot_dimension_numbers<[1], [0], [0], [1], [0, 0, 1, 1], [], []>} : vector<92x128xbf16>, vector<128x128xbf16>, vector<92x128xf32> -> vector<92x128xf32>
    %321 = arith.addf %315, %320 : vector<92x128xf32>
    %c12_259 = arith.constant 12 : index
    %c0_260 = arith.constant 0 : index
    %322 = vector.load %arg15[%c12_259, %c0_260] : memref<128x128xf32, #tpu.memory_space<vmem>>, vector<92x128xf32>
    %323 = arith.truncf %322 : vector<92x128xf32> to vector<92x128xbf16>
    %c9_261 = arith.constant 9 : index
    %c0_262 = arith.constant 0 : index
    %c0_263 = arith.constant 0 : index
    %324 = vector.load %arg4[%c9_261, %c0_262, %c0_263] : memref<25x128x128xbf16, #tpu.memory_space<vmem>>, vector<1x128x128xbf16>
    %325 = vector.shape_cast %324 : vector<1x128x128xbf16> to vector<128x128xbf16>
    %cst_264 = arith.constant dense<0.000000e+00> : vector<92x128xf32>
    %326 = tpu.matmul %323, %325, %cst_264 {dimension_numbers = #tpu.dot_dimension_numbers<[1], [0], [0], [1], [0, 0, 1, 1], [], []>} : vector<92x128xbf16>, vector<128x128xbf16>, vector<92x128xf32> -> vector<92x128xf32>
    %327 = arith.addf %321, %326 : vector<92x128xf32>
    %c16_265 = arith.constant 16 : index
    %c0_266 = arith.constant 0 : index
    %328 = vector.load %arg15[%c16_265, %c0_266] : memref<128x128xf32, #tpu.memory_space<vmem>>, vector<92x128xf32>
    %329 = arith.truncf %328 : vector<92x128xf32> to vector<92x128xbf16>
    %c10_267 = arith.constant 10 : index
    %c0_268 = arith.constant 0 : index
    %c0_269 = arith.constant 0 : index
    %330 = vector.load %arg4[%c10_267, %c0_268, %c0_269] : memref<25x128x128xbf16, #tpu.memory_space<vmem>>, vector<1x128x128xbf16>
    %331 = vector.shape_cast %330 : vector<1x128x128xbf16> to vector<128x128xbf16>
    %cst_270 = arith.constant dense<0.000000e+00> : vector<92x128xf32>
    %332 = tpu.matmul %329, %331, %cst_270 {dimension_numbers = #tpu.dot_dimension_numbers<[1], [0], [0], [1], [0, 0, 1, 1], [], []>} : vector<92x128xbf16>, vector<128x128xbf16>, vector<92x128xf32> -> vector<92x128xf32>
    %333 = arith.addf %327, %332 : vector<92x128xf32>
    %c17_271 = arith.constant 17 : index
    %c0_272 = arith.constant 0 : index
    %334 = vector.load %arg15[%c17_271, %c0_272] : memref<128x128xf32, #tpu.memory_space<vmem>>, vector<92x128xf32>
    %335 = arith.truncf %334 : vector<92x128xf32> to vector<92x128xbf16>
    %c11_273 = arith.constant 11 : index
    %c0_274 = arith.constant 0 : index
    %c0_275 = arith.constant 0 : index
    %336 = vector.load %arg4[%c11_273, %c0_274, %c0_275] : memref<25x128x128xbf16, #tpu.memory_space<vmem>>, vector<1x128x128xbf16>
    %337 = vector.shape_cast %336 : vector<1x128x128xbf16> to vector<128x128xbf16>
    %cst_276 = arith.constant dense<0.000000e+00> : vector<92x128xf32>
    %338 = tpu.matmul %335, %337, %cst_276 {dimension_numbers = #tpu.dot_dimension_numbers<[1], [0], [0], [1], [0, 0, 1, 1], [], []>} : vector<92x128xbf16>, vector<128x128xbf16>, vector<92x128xf32> -> vector<92x128xf32>
    %339 = arith.addf %333, %338 : vector<92x128xf32>
    %c18_277 = arith.constant 18 : index
    %c0_278 = arith.constant 0 : index
    %340 = vector.load %arg15[%c18_277, %c0_278] : memref<128x128xf32, #tpu.memory_space<vmem>>, vector<92x128xf32>
    %341 = arith.truncf %340 : vector<92x128xf32> to vector<92x128xbf16>
    %c12_279 = arith.constant 12 : index
    %c0_280 = arith.constant 0 : index
    %c0_281 = arith.constant 0 : index
    %342 = vector.load %arg4[%c12_279, %c0_280, %c0_281] : memref<25x128x128xbf16, #tpu.memory_space<vmem>>, vector<1x128x128xbf16>
    %343 = vector.shape_cast %342 : vector<1x128x128xbf16> to vector<128x128xbf16>
    %cst_282 = arith.constant dense<0.000000e+00> : vector<92x128xf32>
    %344 = tpu.matmul %341, %343, %cst_282 {dimension_numbers = #tpu.dot_dimension_numbers<[1], [0], [0], [1], [0, 0, 1, 1], [], []>} : vector<92x128xbf16>, vector<128x128xbf16>, vector<92x128xf32> -> vector<92x128xf32>
    %345 = arith.addf %339, %344 : vector<92x128xf32>
    %c19_283 = arith.constant 19 : index
    %c0_284 = arith.constant 0 : index
    %346 = vector.load %arg15[%c19_283, %c0_284] : memref<128x128xf32, #tpu.memory_space<vmem>>, vector<92x128xf32>
    %347 = arith.truncf %346 : vector<92x128xf32> to vector<92x128xbf16>
    %c13_285 = arith.constant 13 : index
    %c0_286 = arith.constant 0 : index
    %c0_287 = arith.constant 0 : index
    %348 = vector.load %arg4[%c13_285, %c0_286, %c0_287] : memref<25x128x128xbf16, #tpu.memory_space<vmem>>, vector<1x128x128xbf16>
    %349 = vector.shape_cast %348 : vector<1x128x128xbf16> to vector<128x128xbf16>
    %cst_288 = arith.constant dense<0.000000e+00> : vector<92x128xf32>
    %350 = tpu.matmul %347, %349, %cst_288 {dimension_numbers = #tpu.dot_dimension_numbers<[1], [0], [0], [1], [0, 0, 1, 1], [], []>} : vector<92x128xbf16>, vector<128x128xbf16>, vector<92x128xf32> -> vector<92x128xf32>
    %351 = arith.addf %345, %350 : vector<92x128xf32>
    %c20_289 = arith.constant 20 : index
    %c0_290 = arith.constant 0 : index
    %352 = vector.load %arg15[%c20_289, %c0_290] : memref<128x128xf32, #tpu.memory_space<vmem>>, vector<92x128xf32>
    %353 = arith.truncf %352 : vector<92x128xf32> to vector<92x128xbf16>
    %c14_291 = arith.constant 14 : index
    %c0_292 = arith.constant 0 : index
    %c0_293 = arith.constant 0 : index
    %354 = vector.load %arg4[%c14_291, %c0_292, %c0_293] : memref<25x128x128xbf16, #tpu.memory_space<vmem>>, vector<1x128x128xbf16>
    %355 = vector.shape_cast %354 : vector<1x128x128xbf16> to vector<128x128xbf16>
    %cst_294 = arith.constant dense<0.000000e+00> : vector<92x128xf32>
    %356 = tpu.matmul %353, %355, %cst_294 {dimension_numbers = #tpu.dot_dimension_numbers<[1], [0], [0], [1], [0, 0, 1, 1], [], []>} : vector<92x128xbf16>, vector<128x128xbf16>, vector<92x128xf32> -> vector<92x128xf32>
    %357 = arith.addf %351, %356 : vector<92x128xf32>
    %c24_295 = arith.constant 24 : index
    %c0_296 = arith.constant 0 : index
    %358 = vector.load %arg15[%c24_295, %c0_296] : memref<128x128xf32, #tpu.memory_space<vmem>>, vector<92x128xf32>
    %359 = arith.truncf %358 : vector<92x128xf32> to vector<92x128xbf16>
    %c15_297 = arith.constant 15 : index
    %c0_298 = arith.constant 0 : index
    %c0_299 = arith.constant 0 : index
    %360 = vector.load %arg4[%c15_297, %c0_298, %c0_299] : memref<25x128x128xbf16, #tpu.memory_space<vmem>>, vector<1x128x128xbf16>
    %361 = vector.shape_cast %360 : vector<1x128x128xbf16> to vector<128x128xbf16>
    %cst_300 = arith.constant dense<0.000000e+00> : vector<92x128xf32>
    %362 = tpu.matmul %359, %361, %cst_300 {dimension_numbers = #tpu.dot_dimension_numbers<[1], [0], [0], [1], [0, 0, 1, 1], [], []>} : vector<92x128xbf16>, vector<128x128xbf16>, vector<92x128xf32> -> vector<92x128xf32>
    %363 = arith.addf %357, %362 : vector<92x128xf32>
    %c25_301 = arith.constant 25 : index
    %c0_302 = arith.constant 0 : index
    %364 = vector.load %arg15[%c25_301, %c0_302] : memref<128x128xf32, #tpu.memory_space<vmem>>, vector<92x128xf32>
    %365 = arith.truncf %364 : vector<92x128xf32> to vector<92x128xbf16>
    %c16_303 = arith.constant 16 : index
    %c0_304 = arith.constant 0 : index
    %c0_305 = arith.constant 0 : index
    %366 = vector.load %arg4[%c16_303, %c0_304, %c0_305] : memref<25x128x128xbf16, #tpu.memory_space<vmem>>, vector<1x128x128xbf16>
    %367 = vector.shape_cast %366 : vector<1x128x128xbf16> to vector<128x128xbf16>
    %cst_306 = arith.constant dense<0.000000e+00> : vector<92x128xf32>
    %368 = tpu.matmul %365, %367, %cst_306 {dimension_numbers = #tpu.dot_dimension_numbers<[1], [0], [0], [1], [0, 0, 1, 1], [], []>} : vector<92x128xbf16>, vector<128x128xbf16>, vector<92x128xf32> -> vector<92x128xf32>
    %369 = arith.addf %363, %368 : vector<92x128xf32>
    %c26_307 = arith.constant 26 : index
    %c0_308 = arith.constant 0 : index
    %370 = vector.load %arg15[%c26_307, %c0_308] : memref<128x128xf32, #tpu.memory_space<vmem>>, vector<92x128xf32>
    %371 = arith.truncf %370 : vector<92x128xf32> to vector<92x128xbf16>
    %c17_309 = arith.constant 17 : index
    %c0_310 = arith.constant 0 : index
    %c0_311 = arith.constant 0 : index
    %372 = vector.load %arg4[%c17_309, %c0_310, %c0_311] : memref<25x128x128xbf16, #tpu.memory_space<vmem>>, vector<1x128x128xbf16>
    %373 = vector.shape_cast %372 : vector<1x128x128xbf16> to vector<128x128xbf16>
    %cst_312 = arith.constant dense<0.000000e+00> : vector<92x128xf32>
    %374 = tpu.matmul %371, %373, %cst_312 {dimension_numbers = #tpu.dot_dimension_numbers<[1], [0], [0], [1], [0, 0, 1, 1], [], []>} : vector<92x128xbf16>, vector<128x128xbf16>, vector<92x128xf32> -> vector<92x128xf32>
    %375 = arith.addf %369, %374 : vector<92x128xf32>
    %c27_313 = arith.constant 27 : index
    %c0_314 = arith.constant 0 : index
    %376 = vector.load %arg15[%c27_313, %c0_314] : memref<128x128xf32, #tpu.memory_space<vmem>>, vector<92x128xf32>
    %377 = arith.truncf %376 : vector<92x128xf32> to vector<92x128xbf16>
    %c18_315 = arith.constant 18 : index
    %c0_316 = arith.constant 0 : index
    %c0_317 = arith.constant 0 : index
    %378 = vector.load %arg4[%c18_315, %c0_316, %c0_317] : memref<25x128x128xbf16, #tpu.memory_space<vmem>>, vector<1x128x128xbf16>
    %379 = vector.shape_cast %378 : vector<1x128x128xbf16> to vector<128x128xbf16>
    %cst_318 = arith.constant dense<0.000000e+00> : vector<92x128xf32>
    %380 = tpu.matmul %377, %379, %cst_318 {dimension_numbers = #tpu.dot_dimension_numbers<[1], [0], [0], [1], [0, 0, 1, 1], [], []>} : vector<92x128xbf16>, vector<128x128xbf16>, vector<92x128xf32> -> vector<92x128xf32>
    %381 = arith.addf %375, %380 : vector<92x128xf32>
    %c28_319 = arith.constant 28 : index
    %c0_320 = arith.constant 0 : index
    %382 = vector.load %arg15[%c28_319, %c0_320] : memref<128x128xf32, #tpu.memory_space<vmem>>, vector<92x128xf32>
    %383 = arith.truncf %382 : vector<92x128xf32> to vector<92x128xbf16>
    %c19_321 = arith.constant 19 : index
    %c0_322 = arith.constant 0 : index
    %c0_323 = arith.constant 0 : index
    %384 = vector.load %arg4[%c19_321, %c0_322, %c0_323] : memref<25x128x128xbf16, #tpu.memory_space<vmem>>, vector<1x128x128xbf16>
    %385 = vector.shape_cast %384 : vector<1x128x128xbf16> to vector<128x128xbf16>
    %cst_324 = arith.constant dense<0.000000e+00> : vector<92x128xf32>
    %386 = tpu.matmul %383, %385, %cst_324 {dimension_numbers = #tpu.dot_dimension_numbers<[1], [0], [0], [1], [0, 0, 1, 1], [], []>} : vector<92x128xbf16>, vector<128x128xbf16>, vector<92x128xf32> -> vector<92x128xf32>
    %387 = arith.addf %381, %386 : vector<92x128xf32>
    %c32_325 = arith.constant 32 : index
    %c0_326 = arith.constant 0 : index
    %388 = vector.load %arg15[%c32_325, %c0_326] : memref<128x128xf32, #tpu.memory_space<vmem>>, vector<92x128xf32>
    %389 = arith.truncf %388 : vector<92x128xf32> to vector<92x128xbf16>
    %c20_327 = arith.constant 20 : index
    %c0_328 = arith.constant 0 : index
    %c0_329 = arith.constant 0 : index
    %390 = vector.load %arg4[%c20_327, %c0_328, %c0_329] : memref<25x128x128xbf16, #tpu.memory_space<vmem>>, vector<1x128x128xbf16>
    %391 = vector.shape_cast %390 : vector<1x128x128xbf16> to vector<128x128xbf16>
    %cst_330 = arith.constant dense<0.000000e+00> : vector<92x128xf32>
    %392 = tpu.matmul %389, %391, %cst_330 {dimension_numbers = #tpu.dot_dimension_numbers<[1], [0], [0], [1], [0, 0, 1, 1], [], []>} : vector<92x128xbf16>, vector<128x128xbf16>, vector<92x128xf32> -> vector<92x128xf32>
    %393 = arith.addf %387, %392 : vector<92x128xf32>
    %c33_331 = arith.constant 33 : index
    %c0_332 = arith.constant 0 : index
    %394 = vector.load %arg15[%c33_331, %c0_332] : memref<128x128xf32, #tpu.memory_space<vmem>>, vector<92x128xf32>
    %395 = arith.truncf %394 : vector<92x128xf32> to vector<92x128xbf16>
    %c21_333 = arith.constant 21 : index
    %c0_334 = arith.constant 0 : index
    %c0_335 = arith.constant 0 : index
    %396 = vector.load %arg4[%c21_333, %c0_334, %c0_335] : memref<25x128x128xbf16, #tpu.memory_space<vmem>>, vector<1x128x128xbf16>
    %397 = vector.shape_cast %396 : vector<1x128x128xbf16> to vector<128x128xbf16>
    %cst_336 = arith.constant dense<0.000000e+00> : vector<92x128xf32>
    %398 = tpu.matmul %395, %397, %cst_336 {dimension_numbers = #tpu.dot_dimension_numbers<[1], [0], [0], [1], [0, 0, 1, 1], [], []>} : vector<92x128xbf16>, vector<128x128xbf16>, vector<92x128xf32> -> vector<92x128xf32>
    %399 = arith.addf %393, %398 : vector<92x128xf32>
    %c34_337 = arith.constant 34 : index
    %c0_338 = arith.constant 0 : index
    %400 = vector.load %arg15[%c34_337, %c0_338] : memref<128x128xf32, #tpu.memory_space<vmem>>, vector<92x128xf32>
    %401 = arith.truncf %400 : vector<92x128xf32> to vector<92x128xbf16>
    %c22_339 = arith.constant 22 : index
    %c0_340 = arith.constant 0 : index
    %c0_341 = arith.constant 0 : index
    %402 = vector.load %arg4[%c22_339, %c0_340, %c0_341] : memref<25x128x128xbf16, #tpu.memory_space<vmem>>, vector<1x128x128xbf16>
    %403 = vector.shape_cast %402 : vector<1x128x128xbf16> to vector<128x128xbf16>
    %cst_342 = arith.constant dense<0.000000e+00> : vector<92x128xf32>
    %404 = tpu.matmul %401, %403, %cst_342 {dimension_numbers = #tpu.dot_dimension_numbers<[1], [0], [0], [1], [0, 0, 1, 1], [], []>} : vector<92x128xbf16>, vector<128x128xbf16>, vector<92x128xf32> -> vector<92x128xf32>
    %405 = arith.addf %399, %404 : vector<92x128xf32>
    %c35_343 = arith.constant 35 : index
    %c0_344 = arith.constant 0 : index
    %406 = vector.load %arg15[%c35_343, %c0_344] : memref<128x128xf32, #tpu.memory_space<vmem>>, vector<92x128xf32>
    %407 = arith.truncf %406 : vector<92x128xf32> to vector<92x128xbf16>
    %c23_345 = arith.constant 23 : index
    %c0_346 = arith.constant 0 : index
    %c0_347 = arith.constant 0 : index
    %408 = vector.load %arg4[%c23_345, %c0_346, %c0_347] : memref<25x128x128xbf16, #tpu.memory_space<vmem>>, vector<1x128x128xbf16>
    %409 = vector.shape_cast %408 : vector<1x128x128xbf16> to vector<128x128xbf16>
    %cst_348 = arith.constant dense<0.000000e+00> : vector<92x128xf32>
    %410 = tpu.matmul %407, %409, %cst_348 {dimension_numbers = #tpu.dot_dimension_numbers<[1], [0], [0], [1], [0, 0, 1, 1], [], []>} : vector<92x128xbf16>, vector<128x128xbf16>, vector<92x128xf32> -> vector<92x128xf32>
    %411 = arith.addf %405, %410 : vector<92x128xf32>
    %c36_349 = arith.constant 36 : index
    %c0_350 = arith.constant 0 : index
    %412 = vector.load %arg15[%c36_349, %c0_350] : memref<128x128xf32, #tpu.memory_space<vmem>>, vector<92x128xf32>
    %413 = arith.truncf %412 : vector<92x128xf32> to vector<92x128xbf16>
    %c24_351 = arith.constant 24 : index
    %c0_352 = arith.constant 0 : index
    %c0_353 = arith.constant 0 : index
    %414 = vector.load %arg4[%c24_351, %c0_352, %c0_353] : memref<25x128x128xbf16, #tpu.memory_space<vmem>>, vector<1x128x128xbf16>
    %415 = vector.shape_cast %414 : vector<1x128x128xbf16> to vector<128x128xbf16>
    %cst_354 = arith.constant dense<0.000000e+00> : vector<92x128xf32>
    %416 = tpu.matmul %413, %415, %cst_354 {dimension_numbers = #tpu.dot_dimension_numbers<[1], [0], [0], [1], [0, 0, 1, 1], [], []>} : vector<92x128xbf16>, vector<128x128xbf16>, vector<92x128xf32> -> vector<92x128xf32>
    %417 = arith.addf %411, %416 : vector<92x128xf32>
    %c0_355 = arith.constant 0 : index
    %c0_356 = arith.constant 0 : index
    %418 = vector.load %arg5[%c0_355, %c0_356] : memref<1x128xf32, #tpu.memory_space<vmem>>, vector<1x128xf32>
    %419 = vector.broadcast %418 : vector<1x128xf32> to vector<92x128xf32>
    %420 = arith.addf %417, %419 : vector<92x128xf32>
    %cst_357 = arith.constant 0.000000e+00 : f32
    %421 = vector.broadcast %cst_357 : f32 to vector<92x128xf32>
    %422 = arith.maximumf %420, %421 : vector<92x128xf32>
    %c0_358 = arith.constant 0 : index
    %c0_359 = arith.constant 0 : index
    %423 = vector.load %arg20[%c0_358, %c0_359] : memref<92x128xf32, #tpu.memory_space<vmem>>, vector<92x128xf32>
    tpu.vector_store %arg20[%c0_358, %c0_359], %422 {strides = array<i32>} : memref<92x128xf32, #tpu.memory_space<vmem>>, vector<92x128xf32>,
    %cst_360 = arith.constant 0.000000e+00 : f32
    %424 = vector.broadcast %cst_360 : f32 to vector<32x128xf32>
    %c0_361 = arith.constant 0 : index
    %c0_362 = arith.constant 0 : index
    %425 = vector.load %arg16[%c0_361, %c0_362] : memref<32x128xf32, #tpu.memory_space<vmem>>, vector<32x128xf32>
    tpu.vector_store %arg16[%c0_361, %c0_362], %424 {strides = array<i32>} : memref<32x128xf32, #tpu.memory_space<vmem>>, vector<32x128xf32>,
    %c0_363 = arith.constant 0 : index
    %c0_364 = arith.constant 0 : index
    %426 = vector.load %arg20[%c0_363, %c0_364] : memref<92x128xf32, #tpu.memory_space<vmem>>, vector<1x128xf32>
    %c1_365 = arith.constant 1 : index
    %c0_366 = arith.constant 0 : index
    %427 = vector.load %arg20[%c1_365, %c0_366] : memref<92x128xf32, #tpu.memory_space<vmem>>, vector<1x128xf32>
    %428 = arith.maximumf %426, %427 : vector<1x128xf32>
    %c8_367 = arith.constant 8 : index
    %c0_368 = arith.constant 0 : index
    %429 = vector.load %arg20[%c8_367, %c0_368] : memref<92x128xf32, #tpu.memory_space<vmem>>, vector<1x128xf32>
    %c9_369 = arith.constant 9 : index
    %c0_370 = arith.constant 0 : index
    %430 = vector.load %arg20[%c9_369, %c0_370] : memref<92x128xf32, #tpu.memory_space<vmem>>, vector<1x128xf32>
    %431 = arith.maximumf %429, %430 : vector<1x128xf32>
    %432 = arith.maximumf %428, %431 : vector<1x128xf32>
    %c5_371 = arith.constant 5 : index
    %c0_372 = arith.constant 0 : index
    %433 = vector.load %arg16[%c5_371, %c0_372] : memref<32x128xf32, #tpu.memory_space<vmem>>, vector<1x128xf32>
    tpu.vector_store %arg16[%c5_371, %c0_372], %432 {strides = array<i32>} : memref<32x128xf32, #tpu.memory_space<vmem>>, vector<1x128xf32>,
    %c2_373 = arith.constant 2 : index
    %c0_374 = arith.constant 0 : index
    %434 = vector.load %arg20[%c2_373, %c0_374] : memref<92x128xf32, #tpu.memory_space<vmem>>, vector<1x128xf32>
    %c3_375 = arith.constant 3 : index
    %c0_376 = arith.constant 0 : index
    %435 = vector.load %arg20[%c3_375, %c0_376] : memref<92x128xf32, #tpu.memory_space<vmem>>, vector<1x128xf32>
    %436 = arith.maximumf %434, %435 : vector<1x128xf32>
    %c10_377 = arith.constant 10 : index
    %c0_378 = arith.constant 0 : index
    %437 = vector.load %arg20[%c10_377, %c0_378] : memref<92x128xf32, #tpu.memory_space<vmem>>, vector<1x128xf32>
    %c11_379 = arith.constant 11 : index
    %c0_380 = arith.constant 0 : index
    %438 = vector.load %arg20[%c11_379, %c0_380] : memref<92x128xf32, #tpu.memory_space<vmem>>, vector<1x128xf32>
    %439 = arith.maximumf %437, %438 : vector<1x128xf32>
    %440 = arith.maximumf %436, %439 : vector<1x128xf32>
    %c6_381 = arith.constant 6 : index
    %c0_382 = arith.constant 0 : index
    %441 = vector.load %arg16[%c6_381, %c0_382] : memref<32x128xf32, #tpu.memory_space<vmem>>, vector<1x128xf32>
    tpu.vector_store %arg16[%c6_381, %c0_382], %440 {strides = array<i32>} : memref<32x128xf32, #tpu.memory_space<vmem>>, vector<1x128xf32>,
    %c16_383 = arith.constant 16 : index
    %c0_384 = arith.constant 0 : index
    %442 = vector.load %arg20[%c16_383, %c0_384] : memref<92x128xf32, #tpu.memory_space<vmem>>, vector<1x128xf32>
    %c17_385 = arith.constant 17 : index
    %c0_386 = arith.constant 0 : index
    %443 = vector.load %arg20[%c17_385, %c0_386] : memref<92x128xf32, #tpu.memory_space<vmem>>, vector<1x128xf32>
    %444 = arith.maximumf %442, %443 : vector<1x128xf32>
    %c24_387 = arith.constant 24 : index
    %c0_388 = arith.constant 0 : index
    %445 = vector.load %arg20[%c24_387, %c0_388] : memref<92x128xf32, #tpu.memory_space<vmem>>, vector<1x128xf32>
    %c25_389 = arith.constant 25 : index
    %c0_390 = arith.constant 0 : index
    %446 = vector.load %arg20[%c25_389, %c0_390] : memref<92x128xf32, #tpu.memory_space<vmem>>, vector<1x128xf32>
    %447 = arith.maximumf %445, %446 : vector<1x128xf32>
    %448 = arith.maximumf %444, %447 : vector<1x128xf32>
    %c9_391 = arith.constant 9 : index
    %c0_392 = arith.constant 0 : index
    %449 = vector.load %arg16[%c9_391, %c0_392] : memref<32x128xf32, #tpu.memory_space<vmem>>, vector<1x128xf32>
    tpu.vector_store %arg16[%c9_391, %c0_392], %448 {strides = array<i32>} : memref<32x128xf32, #tpu.memory_space<vmem>>, vector<1x128xf32>,
    %c18_393 = arith.constant 18 : index
    %c0_394 = arith.constant 0 : index
    %450 = vector.load %arg20[%c18_393, %c0_394] : memref<92x128xf32, #tpu.memory_space<vmem>>, vector<1x128xf32>
    %c19_395 = arith.constant 19 : index
    %c0_396 = arith.constant 0 : index
    %451 = vector.load %arg20[%c19_395, %c0_396] : memref<92x128xf32, #tpu.memory_space<vmem>>, vector<1x128xf32>
    %452 = arith.maximumf %450, %451 : vector<1x128xf32>
    %c26_397 = arith.constant 26 : index
    %c0_398 = arith.constant 0 : index
    %453 = vector.load %arg20[%c26_397, %c0_398] : memref<92x128xf32, #tpu.memory_space<vmem>>, vector<1x128xf32>
    %c27_399 = arith.constant 27 : index
    %c0_400 = arith.constant 0 : index
    %454 = vector.load %arg20[%c27_399, %c0_400] : memref<92x128xf32, #tpu.memory_space<vmem>>, vector<1x128xf32>
    %455 = arith.maximumf %453, %454 : vector<1x128xf32>
    %456 = arith.maximumf %452, %455 : vector<1x128xf32>
    %c10_401 = arith.constant 10 : index
    %c0_402 = arith.constant 0 : index
    %457 = vector.load %arg16[%c10_401, %c0_402] : memref<32x128xf32, #tpu.memory_space<vmem>>, vector<1x128xf32>
    tpu.vector_store %arg16[%c10_401, %c0_402], %456 {strides = array<i32>} : memref<32x128xf32, #tpu.memory_space<vmem>>, vector<1x128xf32>,
    %c64_403 = arith.constant 64 : index
    %c0_404 = arith.constant 0 : index
    %458 = vector.load %arg20[%c64_403, %c0_404] : memref<92x128xf32, #tpu.memory_space<vmem>>, vector<1x128xf32>
    %c65_405 = arith.constant 65 : index
    %c0_406 = arith.constant 0 : index
    %459 = vector.load %arg20[%c65_405, %c0_406] : memref<92x128xf32, #tpu.memory_space<vmem>>, vector<1x128xf32>
    %460 = arith.maximumf %458, %459 : vector<1x128xf32>
    %c72_407 = arith.constant 72 : index
    %c0_408 = arith.constant 0 : index
    %461 = vector.load %arg20[%c72_407, %c0_408] : memref<92x128xf32, #tpu.memory_space<vmem>>, vector<1x128xf32>
    %c73_409 = arith.constant 73 : index
    %c0_410 = arith.constant 0 : index
    %462 = vector.load %arg20[%c73_409, %c0_410] : memref<92x128xf32, #tpu.memory_space<vmem>>, vector<1x128xf32>
    %463 = arith.maximumf %461, %462 : vector<1x128xf32>
    %464 = arith.maximumf %460, %463 : vector<1x128xf32>
    %c21_411 = arith.constant 21 : index
    %c0_412 = arith.constant 0 : index
    %465 = vector.load %arg16[%c21_411, %c0_412] : memref<32x128xf32, #tpu.memory_space<vmem>>, vector<1x128xf32>
    tpu.vector_store %arg16[%c21_411, %c0_412], %464 {strides = array<i32>} : memref<32x128xf32, #tpu.memory_space<vmem>>, vector<1x128xf32>,
    %c66_413 = arith.constant 66 : index
    %c0_414 = arith.constant 0 : index
    %466 = vector.load %arg20[%c66_413, %c0_414] : memref<92x128xf32, #tpu.memory_space<vmem>>, vector<1x128xf32>
    %c67_415 = arith.constant 67 : index
    %c0_416 = arith.constant 0 : index
    %467 = vector.load %arg20[%c67_415, %c0_416] : memref<92x128xf32, #tpu.memory_space<vmem>>, vector<1x128xf32>
    %468 = arith.maximumf %466, %467 : vector<1x128xf32>
    %c74_417 = arith.constant 74 : index
    %c0_418 = arith.constant 0 : index
    %469 = vector.load %arg20[%c74_417, %c0_418] : memref<92x128xf32, #tpu.memory_space<vmem>>, vector<1x128xf32>
    %c75_419 = arith.constant 75 : index
    %c0_420 = arith.constant 0 : index
    %470 = vector.load %arg20[%c75_419, %c0_420] : memref<92x128xf32, #tpu.memory_space<vmem>>, vector<1x128xf32>
    %471 = arith.maximumf %469, %470 : vector<1x128xf32>
    %472 = arith.maximumf %468, %471 : vector<1x128xf32>
    %c22_421 = arith.constant 22 : index
    %c0_422 = arith.constant 0 : index
    %473 = vector.load %arg16[%c22_421, %c0_422] : memref<32x128xf32, #tpu.memory_space<vmem>>, vector<1x128xf32>
    tpu.vector_store %arg16[%c22_421, %c0_422], %472 {strides = array<i32>} : memref<32x128xf32, #tpu.memory_space<vmem>>, vector<1x128xf32>,
    %c80_423 = arith.constant 80 : index
    %c0_424 = arith.constant 0 : index
    %474 = vector.load %arg20[%c80_423, %c0_424] : memref<92x128xf32, #tpu.memory_space<vmem>>, vector<1x128xf32>
    %c81_425 = arith.constant 81 : index
    %c0_426 = arith.constant 0 : index
    %475 = vector.load %arg20[%c81_425, %c0_426] : memref<92x128xf32, #tpu.memory_space<vmem>>, vector<1x128xf32>
    %476 = arith.maximumf %474, %475 : vector<1x128xf32>
    %c88_427 = arith.constant 88 : index
    %c0_428 = arith.constant 0 : index
    %477 = vector.load %arg20[%c88_427, %c0_428] : memref<92x128xf32, #tpu.memory_space<vmem>>, vector<1x128xf32>
    %c89_429 = arith.constant 89 : index
    %c0_430 = arith.constant 0 : index
    %478 = vector.load %arg20[%c89_429, %c0_430] : memref<92x128xf32, #tpu.memory_space<vmem>>, vector<1x128xf32>
    %479 = arith.maximumf %477, %478 : vector<1x128xf32>
    %480 = arith.maximumf %476, %479 : vector<1x128xf32>
    %c25_431 = arith.constant 25 : index
    %c0_432 = arith.constant 0 : index
    %481 = vector.load %arg16[%c25_431, %c0_432] : memref<32x128xf32, #tpu.memory_space<vmem>>, vector<1x128xf32>
    tpu.vector_store %arg16[%c25_431, %c0_432], %480 {strides = array<i32>} : memref<32x128xf32, #tpu.memory_space<vmem>>, vector<1x128xf32>,
    %c82_433 = arith.constant 82 : index
    %c0_434 = arith.constant 0 : index
    %482 = vector.load %arg20[%c82_433, %c0_434] : memref<92x128xf32, #tpu.memory_space<vmem>>, vector<1x128xf32>
    %c83_435 = arith.constant 83 : index
    %c0_436 = arith.constant 0 : index
    %483 = vector.load %arg20[%c83_435, %c0_436] : memref<92x128xf32, #tpu.memory_space<vmem>>, vector<1x128xf32>
    %484 = arith.maximumf %482, %483 : vector<1x128xf32>
    %c90_437 = arith.constant 90 : index
    %c0_438 = arith.constant 0 : index
    %485 = vector.load %arg20[%c90_437, %c0_438] : memref<92x128xf32, #tpu.memory_space<vmem>>, vector<1x128xf32>
    %c91_439 = arith.constant 91 : index
    %c0_440 = arith.constant 0 : index
    %486 = vector.load %arg20[%c91_439, %c0_440] : memref<92x128xf32, #tpu.memory_space<vmem>>, vector<1x128xf32>
    %487 = arith.maximumf %485, %486 : vector<1x128xf32>
    %488 = arith.maximumf %484, %487 : vector<1x128xf32>
    %c26_441 = arith.constant 26 : index
    %c0_442 = arith.constant 0 : index
    %489 = vector.load %arg16[%c26_441, %c0_442] : memref<32x128xf32, #tpu.memory_space<vmem>>, vector<1x128xf32>
    tpu.vector_store %arg16[%c26_441, %c0_442], %488 {strides = array<i32>} : memref<32x128xf32, #tpu.memory_space<vmem>>, vector<1x128xf32>,
    %cst_443 = arith.constant 0.000000e+00 : f32
    %490 = vector.broadcast %cst_443 : f32 to vector<22x256xf32>
    %c0_444 = arith.constant 0 : index
    %c0_445 = arith.constant 0 : index
    %491 = vector.load %arg16[%c0_444, %c0_445] : memref<32x128xf32, #tpu.memory_space<vmem>>, vector<22x128xf32>
    %492 = arith.truncf %491 : vector<22x128xf32> to vector<22x128xbf16>
    %c0_446 = arith.constant 0 : index
    %c0_447 = arith.constant 0 : index
    %c0_448 = arith.constant 0 : index
    %493 = vector.load %arg6[%c0_446, %c0_447, %c0_448] : memref<9x128x256xbf16, #tpu.memory_space<vmem>>, vector<1x128x256xbf16>
    %494 = vector.shape_cast %493 : vector<1x128x256xbf16> to vector<128x256xbf16>
    %cst_449 = arith.constant dense<0.000000e+00> : vector<22x256xf32>
    %495 = tpu.matmul %492, %494, %cst_449 {dimension_numbers = #tpu.dot_dimension_numbers<[1], [0], [0], [1], [0, 0, 1, 1], [], []>} : vector<22x128xbf16>, vector<128x256xbf16>, vector<22x256xf32> -> vector<22x256xf32>
    %496 = arith.addf %490, %495 : vector<22x256xf32>
    %c1_450 = arith.constant 1 : index
    %c0_451 = arith.constant 0 : index
    %497 = vector.load %arg16[%c1_450, %c0_451] : memref<32x128xf32, #tpu.memory_space<vmem>>, vector<22x128xf32>
    %498 = arith.truncf %497 : vector<22x128xf32> to vector<22x128xbf16>
    %c1_452 = arith.constant 1 : index
    %c0_453 = arith.constant 0 : index
    %c0_454 = arith.constant 0 : index
    %499 = vector.load %arg6[%c1_452, %c0_453, %c0_454] : memref<9x128x256xbf16, #tpu.memory_space<vmem>>, vector<1x128x256xbf16>
    %500 = vector.shape_cast %499 : vector<1x128x256xbf16> to vector<128x256xbf16>
    %cst_455 = arith.constant dense<0.000000e+00> : vector<22x256xf32>
    %501 = tpu.matmul %498, %500, %cst_455 {dimension_numbers = #tpu.dot_dimension_numbers<[1], [0], [0], [1], [0, 0, 1, 1], [], []>} : vector<22x128xbf16>, vector<128x256xbf16>, vector<22x256xf32> -> vector<22x256xf32>
    %502 = arith.addf %496, %501 : vector<22x256xf32>
    %c2_456 = arith.constant 2 : index
    %c0_457 = arith.constant 0 : index
    %503 = vector.load %arg16[%c2_456, %c0_457] : memref<32x128xf32, #tpu.memory_space<vmem>>, vector<22x128xf32>
    %504 = arith.truncf %503 : vector<22x128xf32> to vector<22x128xbf16>
    %c2_458 = arith.constant 2 : index
    %c0_459 = arith.constant 0 : index
    %c0_460 = arith.constant 0 : index
    %505 = vector.load %arg6[%c2_458, %c0_459, %c0_460] : memref<9x128x256xbf16, #tpu.memory_space<vmem>>, vector<1x128x256xbf16>
    %506 = vector.shape_cast %505 : vector<1x128x256xbf16> to vector<128x256xbf16>
    %cst_461 = arith.constant dense<0.000000e+00> : vector<22x256xf32>
    %507 = tpu.matmul %504, %506, %cst_461 {dimension_numbers = #tpu.dot_dimension_numbers<[1], [0], [0], [1], [0, 0, 1, 1], [], []>} : vector<22x128xbf16>, vector<128x256xbf16>, vector<22x256xf32> -> vector<22x256xf32>
    %508 = arith.addf %502, %507 : vector<22x256xf32>
    %c4_462 = arith.constant 4 : index
    %c0_463 = arith.constant 0 : index
    %509 = vector.load %arg16[%c4_462, %c0_463] : memref<32x128xf32, #tpu.memory_space<vmem>>, vector<22x128xf32>
    %510 = arith.truncf %509 : vector<22x128xf32> to vector<22x128xbf16>
    %c3_464 = arith.constant 3 : index
    %c0_465 = arith.constant 0 : index
    %c0_466 = arith.constant 0 : index
    %511 = vector.load %arg6[%c3_464, %c0_465, %c0_466] : memref<9x128x256xbf16, #tpu.memory_space<vmem>>, vector<1x128x256xbf16>
    %512 = vector.shape_cast %511 : vector<1x128x256xbf16> to vector<128x256xbf16>
    %cst_467 = arith.constant dense<0.000000e+00> : vector<22x256xf32>
    %513 = tpu.matmul %510, %512, %cst_467 {dimension_numbers = #tpu.dot_dimension_numbers<[1], [0], [0], [1], [0, 0, 1, 1], [], []>} : vector<22x128xbf16>, vector<128x256xbf16>, vector<22x256xf32> -> vector<22x256xf32>
    %514 = arith.addf %508, %513 : vector<22x256xf32>
    %c5_468 = arith.constant 5 : index
    %c0_469 = arith.constant 0 : index
    %515 = vector.load %arg16[%c5_468, %c0_469] : memref<32x128xf32, #tpu.memory_space<vmem>>, vector<22x128xf32>
    %516 = arith.truncf %515 : vector<22x128xf32> to vector<22x128xbf16>
    %c4_470 = arith.constant 4 : index
    %c0_471 = arith.constant 0 : index
    %c0_472 = arith.constant 0 : index
    %517 = vector.load %arg6[%c4_470, %c0_471, %c0_472] : memref<9x128x256xbf16, #tpu.memory_space<vmem>>, vector<1x128x256xbf16>
    %518 = vector.shape_cast %517 : vector<1x128x256xbf16> to vector<128x256xbf16>
    %cst_473 = arith.constant dense<0.000000e+00> : vector<22x256xf32>
    %519 = tpu.matmul %516, %518, %cst_473 {dimension_numbers = #tpu.dot_dimension_numbers<[1], [0], [0], [1], [0, 0, 1, 1], [], []>} : vector<22x128xbf16>, vector<128x256xbf16>, vector<22x256xf32> -> vector<22x256xf32>
    %520 = arith.addf %514, %519 : vector<22x256xf32>
    %c6_474 = arith.constant 6 : index
    %c0_475 = arith.constant 0 : index
    %521 = vector.load %arg16[%c6_474, %c0_475] : memref<32x128xf32, #tpu.memory_space<vmem>>, vector<22x128xf32>
    %522 = arith.truncf %521 : vector<22x128xf32> to vector<22x128xbf16>
    %c5_476 = arith.constant 5 : index
    %c0_477 = arith.constant 0 : index
    %c0_478 = arith.constant 0 : index
    %523 = vector.load %arg6[%c5_476, %c0_477, %c0_478] : memref<9x128x256xbf16, #tpu.memory_space<vmem>>, vector<1x128x256xbf16>
    %524 = vector.shape_cast %523 : vector<1x128x256xbf16> to vector<128x256xbf16>
    %cst_479 = arith.constant dense<0.000000e+00> : vector<22x256xf32>
    %525 = tpu.matmul %522, %524, %cst_479 {dimension_numbers = #tpu.dot_dimension_numbers<[1], [0], [0], [1], [0, 0, 1, 1], [], []>} : vector<22x128xbf16>, vector<128x256xbf16>, vector<22x256xf32> -> vector<22x256xf32>
    %526 = arith.addf %520, %525 : vector<22x256xf32>
    %c8_480 = arith.constant 8 : index
    %c0_481 = arith.constant 0 : index
    %527 = vector.load %arg16[%c8_480, %c0_481] : memref<32x128xf32, #tpu.memory_space<vmem>>, vector<22x128xf32>
    %528 = arith.truncf %527 : vector<22x128xf32> to vector<22x128xbf16>
    %c6_482 = arith.constant 6 : index
    %c0_483 = arith.constant 0 : index
    %c0_484 = arith.constant 0 : index
    %529 = vector.load %arg6[%c6_482, %c0_483, %c0_484] : memref<9x128x256xbf16, #tpu.memory_space<vmem>>, vector<1x128x256xbf16>
    %530 = vector.shape_cast %529 : vector<1x128x256xbf16> to vector<128x256xbf16>
    %cst_485 = arith.constant dense<0.000000e+00> : vector<22x256xf32>
    %531 = tpu.matmul %528, %530, %cst_485 {dimension_numbers = #tpu.dot_dimension_numbers<[1], [0], [0], [1], [0, 0, 1, 1], [], []>} : vector<22x128xbf16>, vector<128x256xbf16>, vector<22x256xf32> -> vector<22x256xf32>
    %532 = arith.addf %526, %531 : vector<22x256xf32>
    %c9_486 = arith.constant 9 : index
    %c0_487 = arith.constant 0 : index
    %533 = vector.load %arg16[%c9_486, %c0_487] : memref<32x128xf32, #tpu.memory_space<vmem>>, vector<22x128xf32>
    %534 = arith.truncf %533 : vector<22x128xf32> to vector<22x128xbf16>
    %c7_488 = arith.constant 7 : index
    %c0_489 = arith.constant 0 : index
    %c0_490 = arith.constant 0 : index
    %535 = vector.load %arg6[%c7_488, %c0_489, %c0_490] : memref<9x128x256xbf16, #tpu.memory_space<vmem>>, vector<1x128x256xbf16>
    %536 = vector.shape_cast %535 : vector<1x128x256xbf16> to vector<128x256xbf16>
    %cst_491 = arith.constant dense<0.000000e+00> : vector<22x256xf32>
    %537 = tpu.matmul %534, %536, %cst_491 {dimension_numbers = #tpu.dot_dimension_numbers<[1], [0], [0], [1], [0, 0, 1, 1], [], []>} : vector<22x128xbf16>, vector<128x256xbf16>, vector<22x256xf32> -> vector<22x256xf32>
    %538 = arith.addf %532, %537 : vector<22x256xf32>
    %c10_492 = arith.constant 10 : index
    %c0_493 = arith.constant 0 : index
    %539 = vector.load %arg16[%c10_492, %c0_493] : memref<32x128xf32, #tpu.memory_space<vmem>>, vector<22x128xf32>
    %540 = arith.truncf %539 : vector<22x128xf32> to vector<22x128xbf16>
    %c8_494 = arith.constant 8 : index
    %c0_495 = arith.constant 0 : index
    %c0_496 = arith.constant 0 : index
    %541 = vector.load %arg6[%c8_494, %c0_495, %c0_496] : memref<9x128x256xbf16, #tpu.memory_space<vmem>>, vector<1x128x256xbf16>
    %542 = vector.shape_cast %541 : vector<1x128x256xbf16> to vector<128x256xbf16>
    %cst_497 = arith.constant dense<0.000000e+00> : vector<22x256xf32>
    %543 = tpu.matmul %540, %542, %cst_497 {dimension_numbers = #tpu.dot_dimension_numbers<[1], [0], [0], [1], [0, 0, 1, 1], [], []>} : vector<22x128xbf16>, vector<128x256xbf16>, vector<22x256xf32> -> vector<22x256xf32>
    %544 = arith.addf %538, %543 : vector<22x256xf32>
    %c0_498 = arith.constant 0 : index
    %c0_499 = arith.constant 0 : index
    %545 = vector.load %arg7[%c0_498, %c0_499] : memref<1x256xf32, #tpu.memory_space<vmem>>, vector<1x256xf32>
    %546 = vector.broadcast %545 : vector<1x256xf32> to vector<22x256xf32>
    %547 = arith.addf %544, %546 : vector<22x256xf32>
    %cst_500 = arith.constant 0.000000e+00 : f32
    %548 = vector.broadcast %cst_500 : f32 to vector<22x256xf32>
    %549 = arith.maximumf %547, %548 : vector<22x256xf32>
    %c0_501 = arith.constant 0 : index
    %c0_502 = arith.constant 0 : index
    %550 = vector.load %arg21[%c0_501, %c0_502] : memref<22x256xf32, #tpu.memory_space<vmem>>, vector<22x256xf32>
    tpu.vector_store %arg21[%c0_501, %c0_502], %549 {strides = array<i32>} : memref<22x256xf32, #tpu.memory_space<vmem>>, vector<22x256xf32>,
    %cst_503 = arith.constant 0.000000e+00 : f32
    %551 = vector.broadcast %cst_503 : f32 to vector<32x256xf32>
    %c0_504 = arith.constant 0 : index
    %c0_505 = arith.constant 0 : index
    %552 = vector.load %arg17[%c0_504, %c0_505] : memref<32x256xf32, #tpu.memory_space<vmem>>, vector<32x256xf32>
    tpu.vector_store %arg17[%c0_504, %c0_505], %551 {strides = array<i32>} : memref<32x256xf32, #tpu.memory_space<vmem>>, vector<32x256xf32>,
    %c0_506 = arith.constant 0 : index
    %c0_507 = arith.constant 0 : index
    %553 = vector.load %arg21[%c0_506, %c0_507] : memref<22x256xf32, #tpu.memory_space<vmem>>, vector<2x256xf32>
    %c5_508 = arith.constant 5 : index
    %c0_509 = arith.constant 0 : index
    %554 = vector.load %arg17[%c5_508, %c0_509] : memref<32x256xf32, #tpu.memory_space<vmem>>, vector<2x256xf32>
    tpu.vector_store %arg17[%c5_508, %c0_509], %553 {strides = array<i32>} : memref<32x256xf32, #tpu.memory_space<vmem>>, vector<2x256xf32>,
    %c4_510 = arith.constant 4 : index
    %c0_511 = arith.constant 0 : index
    %555 = vector.load %arg21[%c4_510, %c0_511] : memref<22x256xf32, #tpu.memory_space<vmem>>, vector<2x256xf32>
    %c9_512 = arith.constant 9 : index
    %c0_513 = arith.constant 0 : index
    %556 = vector.load %arg17[%c9_512, %c0_513] : memref<32x256xf32, #tpu.memory_space<vmem>>, vector<2x256xf32>
    tpu.vector_store %arg17[%c9_512, %c0_513], %555 {strides = array<i32>} : memref<32x256xf32, #tpu.memory_space<vmem>>, vector<2x256xf32>,
    %c16_514 = arith.constant 16 : index
    %c0_515 = arith.constant 0 : index
    %557 = vector.load %arg21[%c16_514, %c0_515] : memref<22x256xf32, #tpu.memory_space<vmem>>, vector<2x256xf32>
    %c21_516 = arith.constant 21 : index
    %c0_517 = arith.constant 0 : index
    %558 = vector.load %arg17[%c21_516, %c0_517] : memref<32x256xf32, #tpu.memory_space<vmem>>, vector<2x256xf32>
    tpu.vector_store %arg17[%c21_516, %c0_517], %557 {strides = array<i32>} : memref<32x256xf32, #tpu.memory_space<vmem>>, vector<2x256xf32>,
    %c20_518 = arith.constant 20 : index
    %c0_519 = arith.constant 0 : index
    %559 = vector.load %arg21[%c20_518, %c0_519] : memref<22x256xf32, #tpu.memory_space<vmem>>, vector<2x256xf32>
    %c25_520 = arith.constant 25 : index
    %c0_521 = arith.constant 0 : index
    %560 = vector.load %arg17[%c25_520, %c0_521] : memref<32x256xf32, #tpu.memory_space<vmem>>, vector<2x256xf32>
    tpu.vector_store %arg17[%c25_520, %c0_521], %559 {strides = array<i32>} : memref<32x256xf32, #tpu.memory_space<vmem>>, vector<2x256xf32>,
    %cst_522 = arith.constant 0.000000e+00 : f32
    %561 = vector.broadcast %cst_522 : f32 to vector<22x128xf32>
    %c0_523 = arith.constant 0 : index
    %c0_524 = arith.constant 0 : index
    %562 = vector.load %arg17[%c0_523, %c0_524] : memref<32x256xf32, #tpu.memory_space<vmem>>, vector<22x256xf32>
    %563 = arith.truncf %562 : vector<22x256xf32> to vector<22x256xbf16>
    %c0_525 = arith.constant 0 : index
    %c0_526 = arith.constant 0 : index
    %c0_527 = arith.constant 0 : index
    %564 = vector.load %arg8[%c0_525, %c0_526, %c0_527] : memref<9x256x128xbf16, #tpu.memory_space<vmem>>, vector<1x256x128xbf16>
    %565 = vector.shape_cast %564 : vector<1x256x128xbf16> to vector<256x128xbf16>
    %cst_528 = arith.constant dense<0.000000e+00> : vector<22x128xf32>
    %566 = tpu.matmul %563, %565, %cst_528 {dimension_numbers = #tpu.dot_dimension_numbers<[1], [0], [0], [1], [0, 0, 1, 1], [], []>} : vector<22x256xbf16>, vector<256x128xbf16>, vector<22x128xf32> -> vector<22x128xf32>
    %567 = arith.addf %561, %566 : vector<22x128xf32>
    %c1_529 = arith.constant 1 : index
    %c0_530 = arith.constant 0 : index
    %568 = vector.load %arg17[%c1_529, %c0_530] : memref<32x256xf32, #tpu.memory_space<vmem>>, vector<22x256xf32>
    %569 = arith.truncf %568 : vector<22x256xf32> to vector<22x256xbf16>
    %c1_531 = arith.constant 1 : index
    %c0_532 = arith.constant 0 : index
    %c0_533 = arith.constant 0 : index
    %570 = vector.load %arg8[%c1_531, %c0_532, %c0_533] : memref<9x256x128xbf16, #tpu.memory_space<vmem>>, vector<1x256x128xbf16>
    %571 = vector.shape_cast %570 : vector<1x256x128xbf16> to vector<256x128xbf16>
    %cst_534 = arith.constant dense<0.000000e+00> : vector<22x128xf32>
    %572 = tpu.matmul %569, %571, %cst_534 {dimension_numbers = #tpu.dot_dimension_numbers<[1], [0], [0], [1], [0, 0, 1, 1], [], []>} : vector<22x256xbf16>, vector<256x128xbf16>, vector<22x128xf32> -> vector<22x128xf32>
    %573 = arith.addf %567, %572 : vector<22x128xf32>
    %c2_535 = arith.constant 2 : index
    %c0_536 = arith.constant 0 : index
    %574 = vector.load %arg17[%c2_535, %c0_536] : memref<32x256xf32, #tpu.memory_space<vmem>>, vector<22x256xf32>
    %575 = arith.truncf %574 : vector<22x256xf32> to vector<22x256xbf16>
    %c2_537 = arith.constant 2 : index
    %c0_538 = arith.constant 0 : index
    %c0_539 = arith.constant 0 : index
    %576 = vector.load %arg8[%c2_537, %c0_538, %c0_539] : memref<9x256x128xbf16, #tpu.memory_space<vmem>>, vector<1x256x128xbf16>
    %577 = vector.shape_cast %576 : vector<1x256x128xbf16> to vector<256x128xbf16>
    %cst_540 = arith.constant dense<0.000000e+00> : vector<22x128xf32>
    %578 = tpu.matmul %575, %577, %cst_540 {dimension_numbers = #tpu.dot_dimension_numbers<[1], [0], [0], [1], [0, 0, 1, 1], [], []>} : vector<22x256xbf16>, vector<256x128xbf16>, vector<22x128xf32> -> vector<22x128xf32>
    %579 = arith.addf %573, %578 : vector<22x128xf32>
    %c4_541 = arith.constant 4 : index
    %c0_542 = arith.constant 0 : index
    %580 = vector.load %arg17[%c4_541, %c0_542] : memref<32x256xf32, #tpu.memory_space<vmem>>, vector<22x256xf32>
    %581 = arith.truncf %580 : vector<22x256xf32> to vector<22x256xbf16>
    %c3_543 = arith.constant 3 : index
    %c0_544 = arith.constant 0 : index
    %c0_545 = arith.constant 0 : index
    %582 = vector.load %arg8[%c3_543, %c0_544, %c0_545] : memref<9x256x128xbf16, #tpu.memory_space<vmem>>, vector<1x256x128xbf16>
    %583 = vector.shape_cast %582 : vector<1x256x128xbf16> to vector<256x128xbf16>
    %cst_546 = arith.constant dense<0.000000e+00> : vector<22x128xf32>
    %584 = tpu.matmul %581, %583, %cst_546 {dimension_numbers = #tpu.dot_dimension_numbers<[1], [0], [0], [1], [0, 0, 1, 1], [], []>} : vector<22x256xbf16>, vector<256x128xbf16>, vector<22x128xf32> -> vector<22x128xf32>
    %585 = arith.addf %579, %584 : vector<22x128xf32>
    %c5_547 = arith.constant 5 : index
    %c0_548 = arith.constant 0 : index
    %586 = vector.load %arg17[%c5_547, %c0_548] : memref<32x256xf32, #tpu.memory_space<vmem>>, vector<22x256xf32>
    %587 = arith.truncf %586 : vector<22x256xf32> to vector<22x256xbf16>
    %c4_549 = arith.constant 4 : index
    %c0_550 = arith.constant 0 : index
    %c0_551 = arith.constant 0 : index
    %588 = vector.load %arg8[%c4_549, %c0_550, %c0_551] : memref<9x256x128xbf16, #tpu.memory_space<vmem>>, vector<1x256x128xbf16>
    %589 = vector.shape_cast %588 : vector<1x256x128xbf16> to vector<256x128xbf16>
    %cst_552 = arith.constant dense<0.000000e+00> : vector<22x128xf32>
    %590 = tpu.matmul %587, %589, %cst_552 {dimension_numbers = #tpu.dot_dimension_numbers<[1], [0], [0], [1], [0, 0, 1, 1], [], []>} : vector<22x256xbf16>, vector<256x128xbf16>, vector<22x128xf32> -> vector<22x128xf32>
    %591 = arith.addf %585, %590 : vector<22x128xf32>
    %c6_553 = arith.constant 6 : index
    %c0_554 = arith.constant 0 : index
    %592 = vector.load %arg17[%c6_553, %c0_554] : memref<32x256xf32, #tpu.memory_space<vmem>>, vector<22x256xf32>
    %593 = arith.truncf %592 : vector<22x256xf32> to vector<22x256xbf16>
    %c5_555 = arith.constant 5 : index
    %c0_556 = arith.constant 0 : index
    %c0_557 = arith.constant 0 : index
    %594 = vector.load %arg8[%c5_555, %c0_556, %c0_557] : memref<9x256x128xbf16, #tpu.memory_space<vmem>>, vector<1x256x128xbf16>
    %595 = vector.shape_cast %594 : vector<1x256x128xbf16> to vector<256x128xbf16>
    %cst_558 = arith.constant dense<0.000000e+00> : vector<22x128xf32>
    %596 = tpu.matmul %593, %595, %cst_558 {dimension_numbers = #tpu.dot_dimension_numbers<[1], [0], [0], [1], [0, 0, 1, 1], [], []>} : vector<22x256xbf16>, vector<256x128xbf16>, vector<22x128xf32> -> vector<22x128xf32>
    %597 = arith.addf %591, %596 : vector<22x128xf32>
    %c8_559 = arith.constant 8 : index
    %c0_560 = arith.constant 0 : index
    %598 = vector.load %arg17[%c8_559, %c0_560] : memref<32x256xf32, #tpu.memory_space<vmem>>, vector<22x256xf32>
    %599 = arith.truncf %598 : vector<22x256xf32> to vector<22x256xbf16>
    %c6_561 = arith.constant 6 : index
    %c0_562 = arith.constant 0 : index
    %c0_563 = arith.constant 0 : index
    %600 = vector.load %arg8[%c6_561, %c0_562, %c0_563] : memref<9x256x128xbf16, #tpu.memory_space<vmem>>, vector<1x256x128xbf16>
    %601 = vector.shape_cast %600 : vector<1x256x128xbf16> to vector<256x128xbf16>
    %cst_564 = arith.constant dense<0.000000e+00> : vector<22x128xf32>
    %602 = tpu.matmul %599, %601, %cst_564 {dimension_numbers = #tpu.dot_dimension_numbers<[1], [0], [0], [1], [0, 0, 1, 1], [], []>} : vector<22x256xbf16>, vector<256x128xbf16>, vector<22x128xf32> -> vector<22x128xf32>
    %603 = arith.addf %597, %602 : vector<22x128xf32>
    %c9_565 = arith.constant 9 : index
    %c0_566 = arith.constant 0 : index
    %604 = vector.load %arg17[%c9_565, %c0_566] : memref<32x256xf32, #tpu.memory_space<vmem>>, vector<22x256xf32>
    %605 = arith.truncf %604 : vector<22x256xf32> to vector<22x256xbf16>
    %c7_567 = arith.constant 7 : index
    %c0_568 = arith.constant 0 : index
    %c0_569 = arith.constant 0 : index
    %606 = vector.load %arg8[%c7_567, %c0_568, %c0_569] : memref<9x256x128xbf16, #tpu.memory_space<vmem>>, vector<1x256x128xbf16>
    %607 = vector.shape_cast %606 : vector<1x256x128xbf16> to vector<256x128xbf16>
    %cst_570 = arith.constant dense<0.000000e+00> : vector<22x128xf32>
    %608 = tpu.matmul %605, %607, %cst_570 {dimension_numbers = #tpu.dot_dimension_numbers<[1], [0], [0], [1], [0, 0, 1, 1], [], []>} : vector<22x256xbf16>, vector<256x128xbf16>, vector<22x128xf32> -> vector<22x128xf32>
    %609 = arith.addf %603, %608 : vector<22x128xf32>
    %c10_571 = arith.constant 10 : index
    %c0_572 = arith.constant 0 : index
    %610 = vector.load %arg17[%c10_571, %c0_572] : memref<32x256xf32, #tpu.memory_space<vmem>>, vector<22x256xf32>
    %611 = arith.truncf %610 : vector<22x256xf32> to vector<22x256xbf16>
    %c8_573 = arith.constant 8 : index
    %c0_574 = arith.constant 0 : index
    %c0_575 = arith.constant 0 : index
    %612 = vector.load %arg8[%c8_573, %c0_574, %c0_575] : memref<9x256x128xbf16, #tpu.memory_space<vmem>>, vector<1x256x128xbf16>
    %613 = vector.shape_cast %612 : vector<1x256x128xbf16> to vector<256x128xbf16>
    %cst_576 = arith.constant dense<0.000000e+00> : vector<22x128xf32>
    %614 = tpu.matmul %611, %613, %cst_576 {dimension_numbers = #tpu.dot_dimension_numbers<[1], [0], [0], [1], [0, 0, 1, 1], [], []>} : vector<22x256xbf16>, vector<256x128xbf16>, vector<22x128xf32> -> vector<22x128xf32>
    %615 = arith.addf %609, %614 : vector<22x128xf32>
    %c0_577 = arith.constant 0 : index
    %c0_578 = arith.constant 0 : index
    %616 = vector.load %arg9[%c0_577, %c0_578] : memref<1x128xf32, #tpu.memory_space<vmem>>, vector<1x128xf32>
    %617 = vector.broadcast %616 : vector<1x128xf32> to vector<22x128xf32>
    %618 = arith.addf %615, %617 : vector<22x128xf32>
    %cst_579 = arith.constant 0.000000e+00 : f32
    %619 = vector.broadcast %cst_579 : f32 to vector<22x128xf32>
    %620 = arith.maximumf %618, %619 : vector<22x128xf32>
    %c0_580 = arith.constant 0 : index
    %c0_581 = arith.constant 0 : index
    %621 = vector.load %arg22[%c0_580, %c0_581] : memref<22x128xf32, #tpu.memory_space<vmem>>, vector<22x128xf32>
    tpu.vector_store %arg22[%c0_580, %c0_581], %620 {strides = array<i32>} : memref<22x128xf32, #tpu.memory_space<vmem>>, vector<22x128xf32>,
    %cst_582 = arith.constant 0.000000e+00 : f32
    %622 = vector.broadcast %cst_582 : f32 to vector<32x128xf32>
    %c0_583 = arith.constant 0 : index
    %c0_584 = arith.constant 0 : index
    %623 = vector.load %arg18[%c0_583, %c0_584] : memref<32x128xf32, #tpu.memory_space<vmem>>, vector<32x128xf32>
    tpu.vector_store %arg18[%c0_583, %c0_584], %622 {strides = array<i32>} : memref<32x128xf32, #tpu.memory_space<vmem>>, vector<32x128xf32>,
    %c0_585 = arith.constant 0 : index
    %c0_586 = arith.constant 0 : index
    %624 = vector.load %arg22[%c0_585, %c0_586] : memref<22x128xf32, #tpu.memory_space<vmem>>, vector<2x128xf32>
    %c5_587 = arith.constant 5 : index
    %c0_588 = arith.constant 0 : index
    %625 = vector.load %arg18[%c5_587, %c0_588] : memref<32x128xf32, #tpu.memory_space<vmem>>, vector<2x128xf32>
    tpu.vector_store %arg18[%c5_587, %c0_588], %624 {strides = array<i32>} : memref<32x128xf32, #tpu.memory_space<vmem>>, vector<2x128xf32>,
    %c4_589 = arith.constant 4 : index
    %c0_590 = arith.constant 0 : index
    %626 = vector.load %arg22[%c4_589, %c0_590] : memref<22x128xf32, #tpu.memory_space<vmem>>, vector<2x128xf32>
    %c9_591 = arith.constant 9 : index
    %c0_592 = arith.constant 0 : index
    %627 = vector.load %arg18[%c9_591, %c0_592] : memref<32x128xf32, #tpu.memory_space<vmem>>, vector<2x128xf32>
    tpu.vector_store %arg18[%c9_591, %c0_592], %626 {strides = array<i32>} : memref<32x128xf32, #tpu.memory_space<vmem>>, vector<2x128xf32>,
    %c16_593 = arith.constant 16 : index
    %c0_594 = arith.constant 0 : index
    %628 = vector.load %arg22[%c16_593, %c0_594] : memref<22x128xf32, #tpu.memory_space<vmem>>, vector<2x128xf32>
    %c21_595 = arith.constant 21 : index
    %c0_596 = arith.constant 0 : index
    %629 = vector.load %arg18[%c21_595, %c0_596] : memref<32x128xf32, #tpu.memory_space<vmem>>, vector<2x128xf32>
    tpu.vector_store %arg18[%c21_595, %c0_596], %628 {strides = array<i32>} : memref<32x128xf32, #tpu.memory_space<vmem>>, vector<2x128xf32>,
    %c20_597 = arith.constant 20 : index
    %c0_598 = arith.constant 0 : index
    %630 = vector.load %arg22[%c20_597, %c0_598] : memref<22x128xf32, #tpu.memory_space<vmem>>, vector<2x128xf32>
    %c25_599 = arith.constant 25 : index
    %c0_600 = arith.constant 0 : index
    %631 = vector.load %arg18[%c25_599, %c0_600] : memref<32x128xf32, #tpu.memory_space<vmem>>, vector<2x128xf32>
    tpu.vector_store %arg18[%c25_599, %c0_600], %630 {strides = array<i32>} : memref<32x128xf32, #tpu.memory_space<vmem>>, vector<2x128xf32>,
    %cst_601 = arith.constant 0.000000e+00 : f32
    %632 = vector.broadcast %cst_601 : f32 to vector<22x128xf32>
    %c0_602 = arith.constant 0 : index
    %c0_603 = arith.constant 0 : index
    %633 = vector.load %arg18[%c0_602, %c0_603] : memref<32x128xf32, #tpu.memory_space<vmem>>, vector<22x128xf32>
    %634 = arith.truncf %633 : vector<22x128xf32> to vector<22x128xbf16>
    %c0_604 = arith.constant 0 : index
    %c0_605 = arith.constant 0 : index
    %c0_606 = arith.constant 0 : index
    %635 = vector.load %arg10[%c0_604, %c0_605, %c0_606] : memref<9x128x128xbf16, #tpu.memory_space<vmem>>, vector<1x128x128xbf16>
    %636 = vector.shape_cast %635 : vector<1x128x128xbf16> to vector<128x128xbf16>
    %cst_607 = arith.constant dense<0.000000e+00> : vector<22x128xf32>
    %637 = tpu.matmul %634, %636, %cst_607 {dimension_numbers = #tpu.dot_dimension_numbers<[1], [0], [0], [1], [0, 0, 1, 1], [], []>} : vector<22x128xbf16>, vector<128x128xbf16>, vector<22x128xf32> -> vector<22x128xf32>
    %638 = arith.addf %632, %637 : vector<22x128xf32>
    %c1_608 = arith.constant 1 : index
    %c0_609 = arith.constant 0 : index
    %639 = vector.load %arg18[%c1_608, %c0_609] : memref<32x128xf32, #tpu.memory_space<vmem>>, vector<22x128xf32>
    %640 = arith.truncf %639 : vector<22x128xf32> to vector<22x128xbf16>
    %c1_610 = arith.constant 1 : index
    %c0_611 = arith.constant 0 : index
    %c0_612 = arith.constant 0 : index
    %641 = vector.load %arg10[%c1_610, %c0_611, %c0_612] : memref<9x128x128xbf16, #tpu.memory_space<vmem>>, vector<1x128x128xbf16>
    %642 = vector.shape_cast %641 : vector<1x128x128xbf16> to vector<128x128xbf16>
    %cst_613 = arith.constant dense<0.000000e+00> : vector<22x128xf32>
    %643 = tpu.matmul %640, %642, %cst_613 {dimension_numbers = #tpu.dot_dimension_numbers<[1], [0], [0], [1], [0, 0, 1, 1], [], []>} : vector<22x128xbf16>, vector<128x128xbf16>, vector<22x128xf32> -> vector<22x128xf32>
    %644 = arith.addf %638, %643 : vector<22x128xf32>
    %c2_614 = arith.constant 2 : index
    %c0_615 = arith.constant 0 : index
    %645 = vector.load %arg18[%c2_614, %c0_615] : memref<32x128xf32, #tpu.memory_space<vmem>>, vector<22x128xf32>
    %646 = arith.truncf %645 : vector<22x128xf32> to vector<22x128xbf16>
    %c2_616 = arith.constant 2 : index
    %c0_617 = arith.constant 0 : index
    %c0_618 = arith.constant 0 : index
    %647 = vector.load %arg10[%c2_616, %c0_617, %c0_618] : memref<9x128x128xbf16, #tpu.memory_space<vmem>>, vector<1x128x128xbf16>
    %648 = vector.shape_cast %647 : vector<1x128x128xbf16> to vector<128x128xbf16>
    %cst_619 = arith.constant dense<0.000000e+00> : vector<22x128xf32>
    %649 = tpu.matmul %646, %648, %cst_619 {dimension_numbers = #tpu.dot_dimension_numbers<[1], [0], [0], [1], [0, 0, 1, 1], [], []>} : vector<22x128xbf16>, vector<128x128xbf16>, vector<22x128xf32> -> vector<22x128xf32>
    %650 = arith.addf %644, %649 : vector<22x128xf32>
    %c4_620 = arith.constant 4 : index
    %c0_621 = arith.constant 0 : index
    %651 = vector.load %arg18[%c4_620, %c0_621] : memref<32x128xf32, #tpu.memory_space<vmem>>, vector<22x128xf32>
    %652 = arith.truncf %651 : vector<22x128xf32> to vector<22x128xbf16>
    %c3_622 = arith.constant 3 : index
    %c0_623 = arith.constant 0 : index
    %c0_624 = arith.constant 0 : index
    %653 = vector.load %arg10[%c3_622, %c0_623, %c0_624] : memref<9x128x128xbf16, #tpu.memory_space<vmem>>, vector<1x128x128xbf16>
    %654 = vector.shape_cast %653 : vector<1x128x128xbf16> to vector<128x128xbf16>
    %cst_625 = arith.constant dense<0.000000e+00> : vector<22x128xf32>
    %655 = tpu.matmul %652, %654, %cst_625 {dimension_numbers = #tpu.dot_dimension_numbers<[1], [0], [0], [1], [0, 0, 1, 1], [], []>} : vector<22x128xbf16>, vector<128x128xbf16>, vector<22x128xf32> -> vector<22x128xf32>
    %656 = arith.addf %650, %655 : vector<22x128xf32>
    %c5_626 = arith.constant 5 : index
    %c0_627 = arith.constant 0 : index
    %657 = vector.load %arg18[%c5_626, %c0_627] : memref<32x128xf32, #tpu.memory_space<vmem>>, vector<22x128xf32>
    %658 = arith.truncf %657 : vector<22x128xf32> to vector<22x128xbf16>
    %c4_628 = arith.constant 4 : index
    %c0_629 = arith.constant 0 : index
    %c0_630 = arith.constant 0 : index
    %659 = vector.load %arg10[%c4_628, %c0_629, %c0_630] : memref<9x128x128xbf16, #tpu.memory_space<vmem>>, vector<1x128x128xbf16>
    %660 = vector.shape_cast %659 : vector<1x128x128xbf16> to vector<128x128xbf16>
    %cst_631 = arith.constant dense<0.000000e+00> : vector<22x128xf32>
    %661 = tpu.matmul %658, %660, %cst_631 {dimension_numbers = #tpu.dot_dimension_numbers<[1], [0], [0], [1], [0, 0, 1, 1], [], []>} : vector<22x128xbf16>, vector<128x128xbf16>, vector<22x128xf32> -> vector<22x128xf32>
    %662 = arith.addf %656, %661 : vector<22x128xf32>
    %c6_632 = arith.constant 6 : index
    %c0_633 = arith.constant 0 : index
    %663 = vector.load %arg18[%c6_632, %c0_633] : memref<32x128xf32, #tpu.memory_space<vmem>>, vector<22x128xf32>
    %664 = arith.truncf %663 : vector<22x128xf32> to vector<22x128xbf16>
    %c5_634 = arith.constant 5 : index
    %c0_635 = arith.constant 0 : index
    %c0_636 = arith.constant 0 : index
    %665 = vector.load %arg10[%c5_634, %c0_635, %c0_636] : memref<9x128x128xbf16, #tpu.memory_space<vmem>>, vector<1x128x128xbf16>
    %666 = vector.shape_cast %665 : vector<1x128x128xbf16> to vector<128x128xbf16>
    %cst_637 = arith.constant dense<0.000000e+00> : vector<22x128xf32>
    %667 = tpu.matmul %664, %666, %cst_637 {dimension_numbers = #tpu.dot_dimension_numbers<[1], [0], [0], [1], [0, 0, 1, 1], [], []>} : vector<22x128xbf16>, vector<128x128xbf16>, vector<22x128xf32> -> vector<22x128xf32>
    %668 = arith.addf %662, %667 : vector<22x128xf32>
    %c8_638 = arith.constant 8 : index
    %c0_639 = arith.constant 0 : index
    %669 = vector.load %arg18[%c8_638, %c0_639] : memref<32x128xf32, #tpu.memory_space<vmem>>, vector<22x128xf32>
    %670 = arith.truncf %669 : vector<22x128xf32> to vector<22x128xbf16>
    %c6_640 = arith.constant 6 : index
    %c0_641 = arith.constant 0 : index
    %c0_642 = arith.constant 0 : index
    %671 = vector.load %arg10[%c6_640, %c0_641, %c0_642] : memref<9x128x128xbf16, #tpu.memory_space<vmem>>, vector<1x128x128xbf16>
    %672 = vector.shape_cast %671 : vector<1x128x128xbf16> to vector<128x128xbf16>
    %cst_643 = arith.constant dense<0.000000e+00> : vector<22x128xf32>
    %673 = tpu.matmul %670, %672, %cst_643 {dimension_numbers = #tpu.dot_dimension_numbers<[1], [0], [0], [1], [0, 0, 1, 1], [], []>} : vector<22x128xbf16>, vector<128x128xbf16>, vector<22x128xf32> -> vector<22x128xf32>
    %674 = arith.addf %668, %673 : vector<22x128xf32>
    %c9_644 = arith.constant 9 : index
    %c0_645 = arith.constant 0 : index
    %675 = vector.load %arg18[%c9_644, %c0_645] : memref<32x128xf32, #tpu.memory_space<vmem>>, vector<22x128xf32>
    %676 = arith.truncf %675 : vector<22x128xf32> to vector<22x128xbf16>
    %c7_646 = arith.constant 7 : index
    %c0_647 = arith.constant 0 : index
    %c0_648 = arith.constant 0 : index
    %677 = vector.load %arg10[%c7_646, %c0_647, %c0_648] : memref<9x128x128xbf16, #tpu.memory_space<vmem>>, vector<1x128x128xbf16>
    %678 = vector.shape_cast %677 : vector<1x128x128xbf16> to vector<128x128xbf16>
    %cst_649 = arith.constant dense<0.000000e+00> : vector<22x128xf32>
    %679 = tpu.matmul %676, %678, %cst_649 {dimension_numbers = #tpu.dot_dimension_numbers<[1], [0], [0], [1], [0, 0, 1, 1], [], []>} : vector<22x128xbf16>, vector<128x128xbf16>, vector<22x128xf32> -> vector<22x128xf32>
    %680 = arith.addf %674, %679 : vector<22x128xf32>
    %c10_650 = arith.constant 10 : index
    %c0_651 = arith.constant 0 : index
    %681 = vector.load %arg18[%c10_650, %c0_651] : memref<32x128xf32, #tpu.memory_space<vmem>>, vector<22x128xf32>
    %682 = arith.truncf %681 : vector<22x128xf32> to vector<22x128xbf16>
    %c8_652 = arith.constant 8 : index
    %c0_653 = arith.constant 0 : index
    %c0_654 = arith.constant 0 : index
    %683 = vector.load %arg10[%c8_652, %c0_653, %c0_654] : memref<9x128x128xbf16, #tpu.memory_space<vmem>>, vector<1x128x128xbf16>
    %684 = vector.shape_cast %683 : vector<1x128x128xbf16> to vector<128x128xbf16>
    %cst_655 = arith.constant dense<0.000000e+00> : vector<22x128xf32>
    %685 = tpu.matmul %682, %684, %cst_655 {dimension_numbers = #tpu.dot_dimension_numbers<[1], [0], [0], [1], [0, 0, 1, 1], [], []>} : vector<22x128xbf16>, vector<128x128xbf16>, vector<22x128xf32> -> vector<22x128xf32>
    %686 = arith.addf %680, %685 : vector<22x128xf32>
    %c0_656 = arith.constant 0 : index
    %c0_657 = arith.constant 0 : index
    %687 = vector.load %arg11[%c0_656, %c0_657] : memref<1x128xf32, #tpu.memory_space<vmem>>, vector<1x128xf32>
    %688 = vector.broadcast %687 : vector<1x128xf32> to vector<22x128xf32>
    %689 = arith.addf %686, %688 : vector<22x128xf32>
    %cst_658 = arith.constant 0.000000e+00 : f32
    %690 = vector.broadcast %cst_658 : f32 to vector<22x128xf32>
    %691 = arith.maximumf %689, %690 : vector<22x128xf32>
    %c0_659 = arith.constant 0 : index
    %c0_660 = arith.constant 0 : index
    %692 = vector.load %arg23[%c0_659, %c0_660] : memref<22x128xf32, #tpu.memory_space<vmem>>, vector<22x128xf32>
    tpu.vector_store %arg23[%c0_659, %c0_660], %691 {strides = array<i32>} : memref<22x128xf32, #tpu.memory_space<vmem>>, vector<22x128xf32>,
    %cst_661 = arith.constant 0.000000e+00 : f32
    %693 = vector.broadcast %cst_661 : f32 to vector<8x128xf32>
    %c0_662 = arith.constant 0 : index
    %c0_663 = arith.constant 0 : index
    %694 = vector.load %arg24[%c0_662, %c0_663] : memref<8x128xf32, #tpu.memory_space<vmem>>, vector<8x128xf32>
    tpu.vector_store %arg24[%c0_662, %c0_663], %693 {strides = array<i32>} : memref<8x128xf32, #tpu.memory_space<vmem>>, vector<8x128xf32>,
    %c0_664 = arith.constant 0 : index
    %c0_665 = arith.constant 0 : index
    %695 = vector.load %arg23[%c0_664, %c0_665] : memref<22x128xf32, #tpu.memory_space<vmem>>, vector<1x128xf32>
    %c1_666 = arith.constant 1 : index
    %c0_667 = arith.constant 0 : index
    %696 = vector.load %arg23[%c1_666, %c0_667] : memref<22x128xf32, #tpu.memory_space<vmem>>, vector<1x128xf32>
    %697 = arith.maximumf %695, %696 : vector<1x128xf32>
    %c4_668 = arith.constant 4 : index
    %c0_669 = arith.constant 0 : index
    %698 = vector.load %arg23[%c4_668, %c0_669] : memref<22x128xf32, #tpu.memory_space<vmem>>, vector<1x128xf32>
    %c5_670 = arith.constant 5 : index
    %c0_671 = arith.constant 0 : index
    %699 = vector.load %arg23[%c5_670, %c0_671] : memref<22x128xf32, #tpu.memory_space<vmem>>, vector<1x128xf32>
    %700 = arith.maximumf %698, %699 : vector<1x128xf32>
    %701 = arith.maximumf %697, %700 : vector<1x128xf32>
    %cst_672 = arith.constant 1.000000e+00 : f32
    %702 = vector.broadcast %cst_672 : f32 to vector<1x128xf32>
    %703 = arith.mulf %701, %702 : vector<1x128xf32>
    %c0_673 = arith.constant 0 : index
    %c0_674 = arith.constant 0 : index
    %704 = vector.load %arg24[%c0_673, %c0_674] : memref<8x128xf32, #tpu.memory_space<vmem>>, vector<1x128xf32>
    tpu.vector_store %arg24[%c0_673, %c0_674], %703 {strides = array<i32>} : memref<8x128xf32, #tpu.memory_space<vmem>>, vector<1x128xf32>,
    %c16_675 = arith.constant 16 : index
    %c0_676 = arith.constant 0 : index
    %705 = vector.load %arg23[%c16_675, %c0_676] : memref<22x128xf32, #tpu.memory_space<vmem>>, vector<1x128xf32>
    %c17_677 = arith.constant 17 : index
    %c0_678 = arith.constant 0 : index
    %706 = vector.load %arg23[%c17_677, %c0_678] : memref<22x128xf32, #tpu.memory_space<vmem>>, vector<1x128xf32>
    %707 = arith.maximumf %705, %706 : vector<1x128xf32>
    %c20_679 = arith.constant 20 : index
    %c0_680 = arith.constant 0 : index
    %708 = vector.load %arg23[%c20_679, %c0_680] : memref<22x128xf32, #tpu.memory_space<vmem>>, vector<1x128xf32>
    %c21_681 = arith.constant 21 : index
    %c0_682 = arith.constant 0 : index
    %709 = vector.load %arg23[%c21_681, %c0_682] : memref<22x128xf32, #tpu.memory_space<vmem>>, vector<1x128xf32>
    %710 = arith.maximumf %708, %709 : vector<1x128xf32>
    %711 = arith.maximumf %707, %710 : vector<1x128xf32>
    %cst_683 = arith.constant 1.000000e+00 : f32
    %712 = vector.broadcast %cst_683 : f32 to vector<1x128xf32>
    %713 = arith.mulf %711, %712 : vector<1x128xf32>
    %c1_684 = arith.constant 1 : index
    %c0_685 = arith.constant 0 : index
    %714 = vector.load %arg24[%c1_684, %c0_685] : memref<8x128xf32, #tpu.memory_space<vmem>>, vector<1x128xf32>
    tpu.vector_store %arg24[%c1_684, %c0_685], %713 {strides = array<i32>} : memref<8x128xf32, #tpu.memory_space<vmem>>, vector<1x128xf32>,
    %c0_686 = arith.constant 0 : index
    %c0_687 = arith.constant 0 : index
    %715 = vector.load %arg24[%c0_686, %c0_687] : memref<8x128xf32, #tpu.memory_space<vmem>>, vector<8x128xf32>
    %716 = arith.truncf %715 : vector<8x128xf32> to vector<8x128xbf16>
    %c0_688 = arith.constant 0 : index
    %c0_689 = arith.constant 0 : index
    %717 = vector.load %arg12[%c0_688, %c0_689] : memref<128x128xbf16, #tpu.memory_space<vmem>>, vector<128x128xbf16>
    %cst_690 = arith.constant dense<0.000000e+00> : vector<8x128xf32>
    %718 = tpu.matmul %716, %717, %cst_690 {dimension_numbers = #tpu.dot_dimension_numbers<[1], [0], [0], [1], [0, 0, 1, 1], [], []>} : vector<8x128xbf16>, vector<128x128xbf16>, vector<8x128xf32> -> vector<8x128xf32>
    %c0_691 = arith.constant 0 : index
    %c0_692 = arith.constant 0 : index
    %719 = vector.load %arg13[%c0_691, %c0_692] : memref<1x128xf32, #tpu.memory_space<vmem>>, vector<1x128xf32>
    %720 = vector.broadcast %719 : vector<1x128xf32> to vector<8x128xf32>
    %721 = arith.addf %718, %720 : vector<8x128xf32>
    %c0_693 = arith.constant 0 : index
    %c0_694 = arith.constant 0 : index
    %722 = vector.load %arg14[%c0_693, %c0_694] : memref<8x128xf32, #tpu.memory_space<vmem>>, vector<8x128xf32>
    tpu.vector_store %arg14[%c0_693, %c0_694], %721 {strides = array<i32>} : memref<8x128xf32, #tpu.memory_space<vmem>>, vector<8x128xf32>,
    return
  }
  func.func @transform_0(%arg0: i32) -> (i32, i32) {
    %c0_i32 = arith.constant 0 : i32
    %c0_i32_0 = arith.constant 0 : i32
    %c0_i32_1 = arith.constant 0 : i32
    return %c0_i32, %c0_i32_0 : i32, i32
  }
  func.func @transform_1(%arg0: i32) -> (i32, i32) {
    %c0_i32 = arith.constant 0 : i32
    %c0_i32_0 = arith.constant 0 : i32
    %c0_i32_1 = arith.constant 0 : i32
    return %c0_i32, %c0_i32_0 : i32, i32
  }
  func.func @transform_2(%arg0: i32) -> (i32, i32) {
    %c0_i32 = arith.constant 0 : i32
    %c0_i32_0 = arith.constant 0 : i32
    %c0_i32_1 = arith.constant 0 : i32
    return %c0_i32, %c0_i32_0 : i32, i32
  }
  func.func @transform_3(%arg0: i32) -> (i32, i32, i32) {
    %c0_i32 = arith.constant 0 : i32
    %c0_i32_0 = arith.constant 0 : i32
    %c0_i32_1 = arith.constant 0 : i32
    %c0_i32_2 = arith.constant 0 : i32
    return %c0_i32, %c0_i32_0, %c0_i32_1 : i32, i32, i32
  }
  func.func @transform_4(%arg0: i32) -> (i32, i32) {
    %c0_i32 = arith.constant 0 : i32
    %c0_i32_0 = arith.constant 0 : i32
    %c0_i32_1 = arith.constant 0 : i32
    return %c0_i32, %c0_i32_0 : i32, i32
  }
  func.func @transform_5(%arg0: i32) -> (i32, i32, i32) {
    %c0_i32 = arith.constant 0 : i32
    %c0_i32_0 = arith.constant 0 : i32
    %c0_i32_1 = arith.constant 0 : i32
    %c0_i32_2 = arith.constant 0 : i32
    return %c0_i32, %c0_i32_0, %c0_i32_1 : i32, i32, i32
  }
  func.func @transform_6(%arg0: i32) -> (i32, i32) {
    %c0_i32 = arith.constant 0 : i32
    %c0_i32_0 = arith.constant 0 : i32
    %c0_i32_1 = arith.constant 0 : i32
    return %c0_i32, %c0_i32_0 : i32, i32
  }
  func.func @transform_7(%arg0: i32) -> (i32, i32, i32) {
    %c0_i32 = arith.constant 0 : i32
    %c0_i32_0 = arith.constant 0 : i32
    %c0_i32_1 = arith.constant 0 : i32
    %c0_i32_2 = arith.constant 0 : i32
    return %c0_i32, %c0_i32_0, %c0_i32_1 : i32, i32, i32
  }
  func.func @transform_8(%arg0: i32) -> (i32, i32) {
    %c0_i32 = arith.constant 0 : i32
    %c0_i32_0 = arith.constant 0 : i32
    %c0_i32_1 = arith.constant 0 : i32
    return %c0_i32, %c0_i32_0 : i32, i32
  }
  func.func @transform_9(%arg0: i32) -> (i32, i32, i32) {
    %c0_i32 = arith.constant 0 : i32
    %c0_i32_0 = arith.constant 0 : i32
    %c0_i32_1 = arith.constant 0 : i32
    %c0_i32_2 = arith.constant 0 : i32
    return %c0_i32, %c0_i32_0, %c0_i32_1 : i32, i32, i32
  }
  func.func @transform_10(%arg0: i32) -> (i32, i32) {
    %c0_i32 = arith.constant 0 : i32
    %c0_i32_0 = arith.constant 0 : i32
    %c0_i32_1 = arith.constant 0 : i32
    return %c0_i32, %c0_i32_0 : i32, i32
  }
  func.func @transform_11(%arg0: i32) -> (i32, i32) {
    %c0_i32 = arith.constant 0 : i32
    %c0_i32_0 = arith.constant 0 : i32
    %c0_i32_1 = arith.constant 0 : i32
    return %c0_i32, %c0_i32_0 : i32, i32
  }
  func.func @transform_12(%arg0: i32) -> (i32, i32) {
    %c0_i32 = arith.constant 0 : i32
    %c0_i32_0 = arith.constant 0 : i32
    %c0_i32_1 = arith.constant 0 : i32
    return %c0_i32, %c0_i32_0 : i32, i32
  }
  func.func @transform_13(%arg0: i32) -> (i32, i32) {
    %c0_i32 = arith.constant 0 : i32
    %c0_i32_0 = arith.constant 0 : i32
    %c0_i32_1 = arith.constant 0 : i32
    return %c0_i32, %c0_i32_0 : i32, i32
  }
}

</mosaic_0001>

<bundles_post_ra>
// kernel: pruned_alexnet_forward.1
= control target key start
LH: loop header
LB: loop body
LE: loop exit
PB: predicated region body
PF: predicated region fallthrough
CT: control target
= control target key end

     0   :  { %v14267_v51 = vmov 0.0   ;;  %vm6967_vm0 = vsmask.f32 7424  ;;  %vm7972_vm1 = vcmask 1044480   ;;  %vm7335_vm2 = vcmask 1046528   ;;  %s16907_s1 = inlined_call_operand.vmem [shape: bf16[384,128], index: 1, kind: input, shape index: {}]   ;;  %s16908_s0 = inlined_call_operand.vmem [shape: bf16[128,384], index: 0, kind: input, shape index: {}]   ;;  %s16909_s3 = inlined_call_operand.vmem [shape: bf16[25,128,128], index: 3, kind: input, shape index: {}]   ;;  %s16910_s2 = inlined_call_operand.vmem [shape: f32[1,128], index: 2, kind: input, shape index: {}]   ;;  %s16911_s5 = inlined_call_operand.vmem [shape: bf16[9,128,256], index: 5, kind: input, shape index: {}]   ;;  %s16912_s4 = inlined_call_operand.vmem [shape: f32[1,128], index: 4, kind: input, shape index: {}]   ;;  %s16913_s7 = inlined_call_operand.vmem [shape: bf16[9,256,128], index: 7, kind: input, shape index: {}]   ;;  %s16914_s6 = inlined_call_operand.vmem [shape: f32[1,256], index: 6, kind: input, shape index: {}]   ;;  %s16915_s9 = inlined_call_operand.vmem [shape: bf16[9,128,128], index: 9, kind: input, shape index: {}]   ;;  %s16916_s8 = inlined_call_operand.vmem [shape: f32[1,128], index: 8, kind: input, shape index: {}]   ;;  %s16917_s11 = inlined_call_operand.vmem [shape: bf16[128,128], index: 11, kind: input, shape index: {}]   ;;  %s16918_s10 = inlined_call_operand.vmem [shape: f32[1,128], index: 10, kind: input, shape index: {}]   ;;  %s16919_s12 = inlined_call_operand.vmem [shape: f32[1,128], index: 12, kind: input, shape index: {}]   ;;  %s16920_s13 = inlined_call_operand.vmem [shape: f32[8,128], index: 13, kind: output, shape index: {}]  }
   0x1   :  { %v13554_v0 = vld [vmem:[%s16907_s1 + $0x40] sm:$0xff]   ;;  %v13556_v2 = vld [vmem:[%s16907_s1 + $0x48] sm:$0xff]   ;;  %v13559_v5 = vld [vmem:[%s16907_s1 + $0x50] sm:$0xff]   ;;  %633 = vst [vmem:[#allocation2 + $0x18] sm:$0xff] %v14267_v51  ;;  %vm7542_vm3 = vcmask 1045504   ;;  %vm14269_vm5 = vmmov 0  }
   0x2   :  { %v13555_v1 = vld [vmem:[%s16907_s1] sm:$0xff]   ;;  %11518 = vmatprep.subr.bf16.mxu0 %v13554_v0  ;;  %v13558_v4 = vld [vmem:[%s16907_s1 + $0x8] sm:$0xff]   ;;  %v13561_v7 = vld [vmem:[%s16907_s1 + $0x10] sm:$0xff]   ;;  %630 = vst [vmem:[#allocation2] sm:$0xff] %v14267_v51  ;;  %vm7741_vm4 = vsmask.f32 5376 }
   0x3   :  { %11519 = vmatpush3.bf16.msra.mxu0 %v13555_v1  ;;  %v13557_v3 = vld [vmem:[%s16907_s1 + $0x80] sm:$0xff]   ;;  %v13560_v6 = vld [vmem:[%s16907_s1 + $0x88] sm:$0xff]   ;;  %v13562_v8 = vld [vmem:[%s16907_s1 + $0x58] sm:$0xff]   ;;  %631 = vst [vmem:[#allocation2 + $0x8] sm:$0xff] %v14267_v51 }
   0x4   :  { %11520 = vmatprep.subr.bf16.mxu0 %v13556_v2  ;;  %12299 = vmatprep.subr.bf16.mxu1 %v13557_v3  ;;  %v13563_v9 = vld [vmem:[%s16907_s1 + $0x90] sm:$0xff]   ;;  %v13564_v10 = vld [vmem:[%s16907_s1 + $0x18] sm:$0xff]   ;;  %v13565_v11 = vld [vmem:[%s16907_s1 + $0x60] sm:$0xff]   ;;  %632 = vst [vmem:[#allocation2 + $0x10] sm:$0xff] %v14267_v51 }
   0x5   :  { %12300 = vmatpush3.bf16.msra.mxu1 %v13557_v3  ;;  %v13566_v12 = vld [vmem:[%s16907_s1 + $0x98] sm:$0xff]   ;;  %v13567_v13 = vld [vmem:[%s16907_s1 + $0x20] sm:$0xff]   ;;  %v13568_v15 = vld [vmem:[%s16907_s1 + $0x68] sm:$0xff]   ;;  %634 = vst [vmem:[#allocation2 + $0x20] sm:$0xff] %v14267_v51 }
   0x6   :  { %12301 = vmatprep.subr.bf16.mxu1 %v13560_v6  ;;  %v13569_v14 = vld [vmem:[%s16907_s1 + $0xa0] sm:$0xff]   ;;  %v13570_v16 = vld [vmem:[%s16907_s1 + $0x28] sm:$0xff]   ;;  %v13571_v18 = vld [vmem:[%s16907_s1 + $0x70] sm:$0xff]   ;;  %635 = vst [vmem:[#allocation2 + $0x28] sm:$0xff] %v14267_v51 }
   0x7   :  { %11521 = vmatpush3.bf16.msra.mxu0 %v13558_v4  ;;  %v13572_v17 = vld [vmem:[%s16907_s1 + $0xa8] sm:$0xff]   ;;  %v13573_v19 = vld [vmem:[%s16907_s1 + $0x30] sm:$0xff]   ;;  %v13574_v20 = vld [vmem:[%s16907_s1 + $0x78] sm:$0xff]   ;;  %636 = vst [vmem:[#allocation2 + $0x30] sm:$0xff] %v14267_v51 }
   0x8   :  { %11522 = vmatprep.subr.bf16.mxu0 %v13559_v5  ;;  %v13575_v21 = vld [vmem:[%s16907_s1 + $0xb0] sm:$0xff]   ;;  %v13576_v23 = vld [vmem:[%s16907_s1 + $0x38] sm:$0xff]   ;;  %v13577_v26 = vld [vmem:[%s16908_s0] ss:$12 sps:$4 sm:$0xff]   ;;  %637 = vst [vmem:[#allocation2 + $0x38] sm:$0xff] %v14267_v51 }
   0x9   :  { %12302 = vmatpush3.bf16.msra.mxu1 %v13560_v6  ;;  %v13579_v22 = vld [vmem:[%s16908_s0 + $0x4] ss:$12 sps:$4 sm:$0xff]   ;;  %v13581_v24 = vld [vmem:[%s16908_s0 + $0x8] ss:$12 sps:$4 sm:$0xff]   ;;  %v13580_v25 = vld [vmem:[%s16907_s1 + $0xb8] sm:$0xff]   ;;  %638 = vst [vmem:[#allocation2 + $0x40] sm:$0xff] %v14267_v51 }
   0xa   :  { %12303 = vmatprep.subr.bf16.mxu1 %v13563_v9  ;;  %436 = vmatprep.mubr.bf16.mxu0 %v13579_v22  ;;  %v13583_v27 = vld [vmem:[%s16908_s0 + $0x1c] ss:$12 sps:$4 sm:$0xff]   ;;  %v13582_v28 = vld [vmem:[%s16908_s0 + $0x20] ss:$12 sps:$4 sm:$0xff]   ;;  %v13589_v29 = vld [vmem:[%s16908_s0 + $0x38] ss:$12 sps:$4 sm:$0xff]  }
   0xb   :  { %11523 = vmatpush3.bf16.msra.mxu0 %v13561_v7  ;;  %12315 = vmatprep.mubr.bf16.mxu1 %v13581_v24  ;;  %v13585_v30 = vld [vmem:[%s16908_s0 + $0x18] ss:$12 sps:$4 sm:$0xff]   ;;  %v13586_v31 = vld [vmem:[%s16908_s0 + $0x34] ss:$12 sps:$4 sm:$0xff]   ;;  %v13590_v32 = vld [vmem:[%s16908_s0 + $0x50] ss:$12 sps:$4 sm:$0xff]  }
   0xc   :  { %11524 = vmatprep.subr.bf16.mxu0 %v13562_v8  ;;  %v13597_v33 = vld [vmem:[%s16908_s0 + $0x68] ss:$12 sps:$4 sm:$0xff]   ;;  %v13588_v34 = vld [vmem:[%s16908_s0 + $0x30] ss:$12 sps:$4 sm:$0xff]   ;;  %v13591_v35 = vld [vmem:[%s16908_s0 + $0x4c] ss:$12 sps:$4 sm:$0xff]  }
   0xd   :  { %12304 = vmatpush3.bf16.msra.mxu1 %v13563_v9  ;;  %v13598_v36 = vld [vmem:[%s16908_s0 + $0x80] ss:$12 sps:$4 sm:$0xff]   ;;  %v13605_v37 = vld [vmem:[%s16908_s0 + $0x98] ss:$12 sps:$4 sm:$0xff]   ;;  %v13593_v38 = vld [vmem:[%s16908_s0 + $0x48] ss:$12 sps:$4 sm:$0xff]  }
   0xe   :  { %12305 = vmatprep.subr.bf16.mxu1 %v13566_v12  ;;  %v13594_v39 = vld [vmem:[%s16908_s0 + $0x64] ss:$12 sps:$4 sm:$0xff]   ;;  %v13596_v41 = vld [vmem:[%s16908_s0 + $0x60] ss:$12 sps:$4 sm:$0xff]   ;;  %v13599_v42 = vld [vmem:[%s16908_s0 + $0x7c] ss:$12 sps:$4 sm:$0xff]  }
   0xf   :  { %11525 = vmatpush3.bf16.msra.mxu0 %v13564_v10  ;;  %v13606_v40 = vld [vmem:[%s16908_s0 + $0xb0] ss:$12 sps:$4 sm:$0xff]   ;;  %v13601_v43 = vld [vmem:[%s16908_s0 + $0x78] ss:$12 sps:$4 sm:$0xff]   ;;  %v13602_v44 = vld [vmem:[%s16908_s0 + $0x94] ss:$12 sps:$4 sm:$0xff]  }
  0x10   :  { %11526 = vmatprep.subr.bf16.mxu0 %v13565_v11  ;;  %v13604_v45 = vld [vmem:[%s16908_s0 + $0x90] ss:$12 sps:$4 sm:$0xff]   ;;  %v13607_v46 = vld [vmem:[%s16908_s0 + $0xac] ss:$12 sps:$4 sm:$0xff]   ;;  %v13609_v47 = vld [vmem:[%s16908_s0 + $0xa8] ss:$12 sps:$4 sm:$0xff]  }
  0x11   :  { %12306 = vmatpush3.bf16.msra.mxu1 %v13566_v12  ;;  %v13610_v48 = vld [vmem:[%s16909_s3 + $0x40] sm:$0xff]   ;;  %v13611_v49 = vld [vmem:[%s16909_s3 + $0x48] sm:$0xff]   ;;  %v13612_v50 = vld [vmem:[%s16909_s3 + $0x50] sm:$0xff]   ;;  %639 = vst [vmem:[#allocation2 + $0x48] sm:$0xff] %v14267_v51 }
  0x12   :  { %12307 = vmatprep.subr.bf16.mxu1 %v13569_v14  ;;  %640 = vst [vmem:[#allocation2 + $0x50] sm:$0xff] %v14267_v51  ;;  %641 = vst [vmem:[#allocation2 + $0x58] sm:$0xff] %v14267_v51  ;;  %v13613_v52 = vld [vmem:[%s16909_s3 + $0x58] sm:$0xff]   ;;  %v13614_v53 = vld [vmem:[%s16909_s3 + $0x60] sm:$0xff]  }
  0x13   :  { %11527 = vmatpush3.bf16.msra.mxu0 %v13567_v13  ;;  %642 = vst [vmem:[#allocation2 + $0x60] sm:$0xff] %v14267_v51  ;;  %643 = vst [vmem:[#allocation2 + $0x68] sm:$0xff] %v14267_v51  ;;  %v13615_v54 = vld [vmem:[%s16909_s3 + $0x68] sm:$0xff]   ;;  %v13616_v55 = vld [vmem:[%s16909_s3 + $0x70] sm:$0xff]  }
  0x14   :  { %11528 = vmatprep.subr.bf16.mxu0 %v13568_v15  ;;  %644 = vst [vmem:[#allocation2 + $0x70] sm:$0xff] %v14267_v51  ;;  %645 = vst [vmem:[#allocation2 + $0x78] sm:$0xff] %v14267_v51  ;;  %v13617_v56 = vld [vmem:[%s16909_s3 + $0x78] sm:$0xff]   ;;  %v937_v57 = vld [vmem:[#allocation2 + $0x9] sm:$0xff] }
  0x15   :  { %12308 = vmatpush3.bf16.msra.mxu1 %v13569_v14  ;;  %5320 = vst [vmem:[#allocation3] sm:$0xff] %v14267_v51  ;;  %5321 = vst [vmem:[#allocation3 + $0x8] sm:$0xff] %v14267_v51  ;;  %v936_v58 = vld [vmem:[#allocation2 + $0x1] sm:$0xff]  ;;  %v14517_v61 = vld [vmem:[%s16910_s2] ss:$0 sm:$0xff] }
  0x16   :  { %12309 = vmatprep.subr.bf16.mxu1 %v13572_v17  ;;  %5322 = vst [vmem:[#allocation3 + $0x10] sm:$0xff] %v14267_v51  ;;  %5323 = vst [vmem:[#allocation3 + $0x18] sm:$0xff] %v14267_v51  ;;  %v948_v59 = vpack.c.bf16 %v937_v57, %v936_v58  ;;  %v14511_v60 = vld [vmem:[%s16909_s3] sm:$0xff]  }
  0x17   :  { %11529 = vmatpush3.bf16.msra.mxu0 %v13570_v16  ;;  %6836 = vst [vmem:[#allocation4] sm:$0xff] %v14267_v51  ;;  %6837 = vst [vmem:[#allocation4 + $0x8] sm:$0xff] %v14267_v51 }
  0x18   :  { %11530 = vmatprep.subr.bf16.mxu0 %v13571_v18  ;;  %6838 = vst [vmem:[#allocation4 + $0x10] sm:$0xff] %v14267_v51  ;;  %6839 = vst [vmem:[#allocation4 + $0x18] sm:$0xff] %v14267_v51 }
  0x19   :  { %12310 = vmatpush3.bf16.msra.mxu1 %v13572_v17  ;;  %6840 = vst [vmem:[#allocation4 + $0x20] sm:$0xff] %v14267_v51  ;;  %6841 = vst [vmem:[#allocation4 + $0x28] sm:$0xff] %v14267_v51 }
  0x1a   :  { %12311 = vmatprep.subr.bf16.mxu1 %v13575_v21  ;;  %6842 = vst [vmem:[#allocation4 + $0x30] sm:$0xff] %v14267_v51  ;;  %6843 = vst [vmem:[#allocation4 + $0x38] sm:$0xff] %v14267_v51 }
  0x1b   :  { %11531 = vmatpush3.bf16.msra.mxu0 %v13573_v19  ;;  %8756 = vst [vmem:[#allocation5] sm:$0xff] %v14267_v51  ;;  %8757 = vst [vmem:[#allocation5 + $0x8] sm:$0xff] %v14267_v51 }
  0x1c   :  { %11532 = vmatprep.subr.bf16.mxu0 %v13574_v20  ;;  %8758 = vst [vmem:[#allocation5 + $0x10] sm:$0xff] %v14267_v51  ;;  %8759 = vst [vmem:[#allocation5 + $0x18] sm:$0xff] %v14267_v51 }
  0x1d   :  { %12312 = vmatpush3.bf16.msra.mxu1 %v13575_v21  ;;  %9866 = vst [vmem:[#allocation11] sm:$0xff] %v14267_v51 }
  0x1e   :  { %12313 = vmatprep.subr.bf16.mxu1 %v13580_v25 }
  0x1f   :  { %11533 = vmatpush3.bf16.msra.mxu0 %v13576_v23 }
  0x21   :  { %12314 = vmatpush3.bf16.msra.mxu1 %v13580_v25 }
  0x22   :  { %437 = vmatmul.mubr.bf16.vlgmr.msra.gmra.mrb[0].mxu0 %v13577_v26  ;;  %12331 = vmatprep.subr.bf16.mxu1 %v13610_v48 }
  0x23   :  { %444 = vmatprep.mubr.bf16.mxu0 %v13583_v27 }
  0x24   :  { %12316 = vmatmul.mubr.bf16.vlgmr.msra.gmra.mrb[0].mxu1 %v13582_v28 }
  0x25   :  { %12319 = vmatprep.mubr.bf16.mxu1 %v13589_v29  ;;  %12332 = vmatpush3.bf16.msra.mxu1 %v13610_v48 }
  0x26   :  { %12333 = vmatprep.subr.bf16.mxu1 %v13611_v49 }
  0x29   :  { %12334 = vmatpush3.bf16.msra.mxu1 %v13611_v49 }
  0x2a   :  { %445 = vmatmul.mubr.bf16.gmra.mrb[4].mxu0 %v13585_v30  ;;  %12335 = vmatprep.subr.bf16.mxu1 %v13612_v50 }
  0x2b   :  { %452 = vmatprep.mubr.bf16.mxu0 %v13586_v31 }
  0x2c   :  { %12320 = vmatmul.mubr.bf16.gmra.mrb[4].mxu1 %v13590_v32 }
  0x2d   :  { %12323 = vmatprep.mubr.bf16.mxu1 %v13597_v33  ;;  %12336 = vmatpush3.bf16.msra.mxu1 %v13612_v50 }
  0x2e   :  { %12337 = vmatprep.subr.bf16.mxu1 %v13613_v52 }
  0x31   :  { %12338 = vmatpush3.bf16.msra.mxu1 %v13613_v52 }
  0x32   :  { %453 = vmatmul.mubr.bf16.gmra.mrb[8].mxu0 %v13588_v34  ;;  %12339 = vmatprep.subr.bf16.mxu1 %v13614_v53 }
  0x33   :  { %460 = vmatprep.mubr.bf16.mxu0 %v13591_v35 }
  0x34   :  { %12324 = vmatmul.mubr.bf16.gmra.mrb[8].mxu1 %v13598_v36 }
  0x35   :  { %12327 = vmatprep.mubr.bf16.mxu1 %v13605_v37  ;;  %12340 = vmatpush3.bf16.msra.mxu1 %v13614_v53 }
  0x36   :  { %12341 = vmatprep.subr.bf16.mxu1 %v13615_v54 }
  0x39   :  { %12342 = vmatpush3.bf16.msra.mxu1 %v13615_v54 }
  0x3a   :  { %461 = vmatmul.mubr.bf16.gmra.mrb[12].mxu0 %v13593_v38  ;;  %12343 = vmatprep.subr.bf16.mxu1 %v13616_v55 }
  0x3b   :  { %468 = vmatprep.mubr.bf16.mxu0 %v13594_v39 }
  0x3c   :  { %12328 = vmatmul.mubr.bf16.gmra.mrb[12].mxu1 %v13606_v40 }
  0x3d   :  { %12344 = vmatpush3.bf16.msra.mxu1 %v13616_v55  ;;  %12347 = vmatprep.mubr.bf16.mxu1 %v948_v59 }
  0x3e   :  { %12345 = vmatprep.subr.bf16.mxu1 %v13617_v56 }
  0x41   :  { %12346 = vmatpush3.bf16.msra.mxu1 %v13617_v56 }
  0x42   :  { %469 = vmatmul.mubr.bf16.gmra.mrb[16].mxu0 %v13596_v41  ;;  %12359 = vmatprep.subr.bf16.mxu1 %v14511_v60 }
  0x43   :  { %476 = vmatprep.mubr.bf16.mxu0 %v13599_v42 }
  0x4a   :  { %477 = vmatmul.mubr.bf16.gmra.mrb[20].mxu0 %v13601_v43 }
  0x4b   :  { %484 = vmatprep.mubr.bf16.mxu0 %v13602_v44 }
  0x52   :  { %485 = vmatmul.mubr.bf16.gmra.mrb[24].mxu0 %v13604_v45 }
  0x53   :  { %492 = vmatprep.mubr.bf16.mxu0 %v13607_v46 }
  0x5a   :  { %493 = vmatmul.mubr.bf16.gmra.mrb[28].mxu0 %v13609_v47 }
  0xf5   :  { %v11534_v62 = vpop.f32.mrb[0].mxu0 }
  0xf6   :  { %v11535_v63 = vpop.f32.mrb[1].mxu0 }
  0xf7   :  { %v11536_v0 = vadd.f32 %v11535_v63, %v11534_v62  ;;  %v11537_v1 = vpop.f32.mrb[2].mxu0  ;;  %v12317_v3 = vpop.f32.mrb[0].mxu1 }
  0xf8   :  { %v11538_v2 = vpop.f32.mrb[3].mxu0  ;;  %v535_v6 = vpop.f32.mrb[1].mxu1 }
  0xf9   :  { %v11539_v4 = vadd.f32 %v11538_v2, %v11537_v1  ;;  %v439_v5 = vadd.f32 %v11536_v0, %v14517_v61  ;;  %v12318_v7 = vpop.f32.mrb[2].mxu1 }
  0xfa   :  { %v538_v10 = vpop.f32.mrb[3].mxu1 }
  0xfb   :  { %v536_v8 = vadd.f32 %v535_v6, %v439_v5  ;;  %v442_v9 = vadd.f32 %v11539_v4, %v14517_v61 }
  0xfd   :  { %v598_v11 = vmax.f32 %v536_v8, 0.0  ;;  %v539_v12 = vadd.f32 %v538_v10, %v442_v9  ;;  %v11540_v13 = vpop.f32.mrb[4].mxu0 }
  0xfe   :  { %v11541_v14 = vpop.f32.mrb[5].mxu0 }
  0xff   :  { %614 = vst [vmem:[#allocation6] sm:$0xff] %v598_v11  ;;  %v599_v15 = vmax.f32 %v539_v12, 0.0  ;;  %v11542_v16 = vadd.f32 %v11541_v14, %v11540_v13  ;;  %v11543_v17 = vpop.f32.mrb[6].mxu0  ;;  %v14521_v19 = vpop.f32.mrb[4].mxu1 }
 0x100   :  { %v11544_v18 = vpop.f32.mrb[7].mxu0  ;;  %v551_v22 = vpop.f32.mrb[5].mxu1 }
 0x101   :  { %615 = vst [vmem:[#allocation6 + $0x8] sm:$0xff] %v599_v15  ;;  %v447_v20 = vadd.f32 %v11542_v16, %v14517_v61  ;;  %v11545_v21 = vadd.f32 %v11544_v18, %v11543_v17  ;;  %v14524_v23 = vpop.f32.mrb[6].mxu1 }
 0x102   :  { %v554_v26 = vpop.f32.mrb[7].mxu1 }
 0x103   :  { %v544_v24 = vadd.f32 %v12317_v3, %v447_v20  ;;  %v450_v25 = vadd.f32 %v11545_v21, %v14517_v61 }
 0x105   :  { %v600_v27 = vmax.f32 %v544_v24, 0.0  ;;  %v547_v28 = vadd.f32 %v12318_v7, %v450_v25  ;;  %v11546_v29 = vpop.f32.mrb[8].mxu0 }
 0x106   :  { %v646_v30 = vld [vmem:[#allocation6] sm:$0x1]  ;;  %v647_v31 = vld [vmem:[#allocation6 + $0x1] sm:$0x1]  ;;  %v654_v32 = vld [vmem:[#allocation6 + $0x2] sm:$0x1] }
 0x107   :  { %v655_v33 = vld [vmem:[#allocation6 + $0x3] sm:$0x1]  ;;  %v662_v34 = vld [vmem:[#allocation6 + $0x4] sm:$0x1]  ;;  %v663_v35 = vld [vmem:[#allocation6 + $0x5] sm:$0x1]  ;;  %v648_v42 = vmax.f32 %v646_v30, %v647_v31 }
 0x108   :  { %616 = vst [vmem:[#allocation6 + $0x10] sm:$0xff] %v600_v27  ;;  %v670_v36 = vld [vmem:[#allocation6 + $0x6] sm:$0x1]  ;;  %v671_v37 = vld [vmem:[#allocation6 + $0x7] sm:$0x1]  ;;  %v656_v43 = vmax.f32 %v654_v32, %v655_v33  ;;  %v664_v49 = vmax.f32 %v662_v34, %v663_v35  ;;  %v601_v53 = vmax.f32 %v547_v28, 0.0 }
 0x109   :  { %v649_v38 = vld [vmem:[#allocation6 + $0x8] sm:$0x1]  ;;  %v650_v39 = vld [vmem:[#allocation6 + $0x9] sm:$0x1]  ;;  %v657_v40 = vld [vmem:[#allocation6 + $0xa] sm:$0x1]  ;;  %v672_v50 = vmax.f32 %v670_v36, %v671_v37 }
 0x10a   :  { %v658_v41 = vld [vmem:[#allocation6 + $0xb] sm:$0x1]  ;;  %v651_v44 = vmax.f32 %v649_v38, %v650_v39  ;;  %v665_v46 = vld [vmem:[#allocation6 + $0xc] sm:$0x1]  ;;  %v666_v47 = vld [vmem:[#allocation6 + $0xd] sm:$0x1] }
 0x10b   :  { %v659_v45 = vmax.f32 %v657_v40, %v658_v41  ;;  %v673_v48 = vld [vmem:[#allocation6 + $0xe] sm:$0x1]  ;;  %v667_v51 = vmax.f32 %v665_v46, %v666_v47  ;;  %v674_v52 = vld [vmem:[#allocation6 + $0xf] sm:$0x1]  ;;  %v11547_v54 = vpop.f32.mrb[9].mxu0  ;;  %v14527_v55 = vpop.f32.mrb[8].mxu1 }
 0x10c   :  { %v652_v56 = vmax.f32 %v648_v42, %v651_v44  ;;  %v675_v58 = vmax.f32 %v673_v48, %v674_v52  ;;  %v11548_v59 = vadd.f32 %v11547_v54, %v11546_v29  ;;  %v11549_v62 = vpop.f32.mrb[10].mxu0  ;;  %v14529_v63 = vpop.f32.mrb[9].mxu1  ;;  %617 = vst [vmem:[#allocation6 + $0x18] sm:$0xff] %v601_v53 }
 0x10d   :  { %v660_v57 = vmax.f32 %v656_v43, %v659_v45  ;;  %v668_v0 = vmax.f32 %v664_v49, %v667_v51  ;;  %v11550_v1 = vpop.f32.mrb[11].mxu0  ;;  %v14531_v2 = vpop.f32.mrb[10].mxu1 }
 0x10e   :  { %v676_v3 = vmax.f32 %v672_v50, %v675_v58  ;;  %653 = vst [vmem:[#allocation2 + $0x12] sm:$0x1] %v652_v56  ;;  %v11551_v4 = vadd.f32 %v11550_v1, %v11549_v62  ;;  %v455_v5 = vadd.f32 %v11548_v59, %v14517_v61  ;;  %v11552_v14 = vpop.f32.mrb[12].mxu0  ;;  %v14535_v15 = vpop.f32.mrb[11].mxu1  ;;  %v14548_v62 = vld [vmem:[#allocation2 + $0xa] sm:$0xff] }
 0x10f   :  { %661 = vst [vmem:[#allocation2 + $0x13] sm:$0x1] %v660_v57  ;;  %669 = vst [vmem:[#allocation2 + $0x14] sm:$0x1] %v668_v0  ;;  %v678_v6 = vld [vmem:[#allocation6 + $0x10] sm:$0x1] }
 0x110   :  { %v679_v7 = vld [vmem:[#allocation6 + $0x11] sm:$0x1]  ;;  %v686_v8 = vld [vmem:[#allocation6 + $0x12] sm:$0x1]  ;;  %v687_v9 = vld [vmem:[#allocation6 + $0x13] sm:$0x1]  ;;  %v552_v12 = vadd.f32 %v551_v22, %v455_v5  ;;  %v458_v13 = vadd.f32 %v11551_v4, %v14517_v61 }
 0x111   :  { %v694_v10 = vld [vmem:[#allocation6 + $0x14] sm:$0x1]  ;;  %v695_v11 = vld [vmem:[#allocation6 + $0x15] sm:$0x1]  ;;  %677 = vst [vmem:[#allocation2 + $0x15] sm:$0x1] %v676_v3  ;;  %v680_v35 = vmax.f32 %v678_v6, %v679_v7  ;;  %v688_v36 = vmax.f32 %v686_v8, %v687_v9 }
 0x112   :  { %v11553_v16 = vpop.f32.mrb[13].mxu0  ;;  %v14537_v17 = vpop.f32.mrb[12].mxu1  ;;  %v702_v18 = vld [vmem:[#allocation6 + $0x16] sm:$0x1]  ;;  %v602_v20 = vmax.f32 %v552_v12, 0.0  ;;  %v555_v21 = vadd.f32 %v554_v26, %v458_v13  ;;  %v696_v37 = vmax.f32 %v694_v10, %v695_v11 }
 0x113   :  { %v11554_v24 = vadd.f32 %v11553_v16, %v11552_v14  ;;  %v11555_v25 = vpop.f32.mrb[14].mxu0  ;;  %v14539_v27 = vpop.f32.mrb[13].mxu1  ;;  %v703_v28 = vld [vmem:[#allocation6 + $0x17] sm:$0x1]  ;;  %v681_v22 = vld [vmem:[#allocation6 + $0x18] sm:$0x1] }
 0x114   :  { %v11556_v29 = vpop.f32.mrb[15].mxu0  ;;  %v14541_v30 = vpop.f32.mrb[14].mxu1  ;;  %v682_v31 = vld [vmem:[#allocation6 + $0x19] sm:$0x1]  ;;  %v689_v32 = vld [vmem:[#allocation6 + $0x1a] sm:$0x1]  ;;  %v704_v48 = vmax.f32 %v702_v18, %v703_v28 }
 0x115   :  { %618 = vst [vmem:[#allocation6 + $0x20] sm:$0xff] %v602_v20  ;;  %v463_v33 = vadd.f32 %v11554_v24, %v14517_v61  ;;  %v11557_v34 = vadd.f32 %v11556_v29, %v11555_v25  ;;  %v683_v38 = vmax.f32 %v681_v22, %v682_v31  ;;  %v690_v26 = vld [vmem:[#allocation6 + $0x1b] sm:$0x1]  ;;  %v697_v39 = vld [vmem:[#allocation6 + $0x1c] sm:$0x1]  ;;  %v603_v45 = vmax.f32 %v555_v21, 0.0 }
 0x116   :  { %v698_v40 = vld [vmem:[#allocation6 + $0x1d] sm:$0x1]  ;;  %v691_v41 = vmax.f32 %v689_v32, %v690_v26  ;;  %v705_v43 = vld [vmem:[#allocation6 + $0x1e] sm:$0x1]  ;;  %v706_v44 = vld [vmem:[#allocation6 + $0x1f] sm:$0x1] }
 0x117   :  { %v699_v42 = vmax.f32 %v697_v39, %v698_v40  ;;  %v560_v46 = vadd.f32 %v14521_v19, %v463_v33  ;;  %v11558_v47 = vpop.f32.mrb[16].mxu0  ;;  %v684_v49 = vmax.f32 %v680_v35, %v683_v38  ;;  %v707_v50 = vmax.f32 %v705_v43, %v706_v44  ;;  %v14546_v53 = vpop.f32.mrb[15].mxu1  ;;  %619 = vst [vmem:[#allocation6 + $0x28] sm:$0xff] %v603_v45 }
 0x118   :  { %v466_v51 = vadd.f32 %v11557_v34, %v14517_v61  ;;  %v11559_v52 = vpop.f32.mrb[17].mxu0  ;;  %v692_v54 = vmax.f32 %v688_v36, %v691_v41  ;;  %v14550_v0 = vld [vmem:[#allocation2 + $0x12] sm:$0xff] }
 0x119   :  { %v700_v56 = vmax.f32 %v696_v37, %v699_v42  ;;  %v604_v57 = vmax.f32 %v560_v46, 0.0  ;;  %v11560_v58 = vadd.f32 %v11559_v52, %v11558_v47  ;;  %v11561_v59 = vpop.f32.mrb[18].mxu0  ;;  %685 = vst [vmem:[#allocation2 + $0x1a] sm:$0x1] %v684_v49  ;;  %v708_v19 = vmax.f32 %v704_v48, %v707_v50  ;;  %v938_v45 = vld [vmem:[#allocation2 + $0x11] sm:$0xff] }
 0x11a   :  { %v563_v1 = vadd.f32 %v14524_v23, %v466_v51  ;;  %v11562_v3 = vpop.f32.mrb[19].mxu0  ;;  %693 = vst [vmem:[#allocation2 + $0x1b] sm:$0x1] %v692_v54  ;;  %v13619_v51 = vld [vmem:[%s16909_s3 + $0x8] sm:$0xff]  }
 0x11b   :  { %701 = vst [vmem:[#allocation2 + $0x1c] sm:$0x1] %v700_v56  ;;  %620 = vst [vmem:[#allocation6 + $0x30] sm:$0xff] %v604_v57  ;;  %v11563_v4 = vadd.f32 %v11562_v3, %v11561_v59  ;;  %v471_v5 = vadd.f32 %v11560_v58, %v14517_v61 }
 0x11c   :  { %709 = vst [vmem:[#allocation2 + $0x1d] sm:$0x1] %v708_v19  ;;  %v710_v6 = vld [vmem:[#allocation6 + $0x20] sm:$0x1]  ;;  %v711_v7 = vld [vmem:[#allocation6 + $0x21] sm:$0x1] }
 0x11d   :  { %v718_v9 = vld [vmem:[#allocation6 + $0x22] sm:$0x1]  ;;  %v719_v10 = vld [vmem:[#allocation6 + $0x23] sm:$0x1]  ;;  %v726_v11 = vld [vmem:[#allocation6 + $0x24] sm:$0x1]  ;;  %v568_v12 = vadd.f32 %v14529_v63, %v471_v5  ;;  %v474_v23 = vadd.f32 %v11563_v4, %v14517_v61  ;;  %v712_v32 = vmax.f32 %v710_v6, %v711_v7 }
 0x11e   :  { %v727_v13 = vld [vmem:[#allocation6 + $0x25] sm:$0x1]  ;;  %v734_v14 = vld [vmem:[#allocation6 + $0x26] sm:$0x1]  ;;  %v605_v16 = vmax.f32 %v563_v1, 0.0  ;;  %v11564_v18 = vpop.f32.mrb[20].mxu0  ;;  %v720_v33 = vmax.f32 %v718_v9, %v719_v10 }
 0x11f   :  { %v735_v20 = vld [vmem:[#allocation6 + $0x27] sm:$0x1]  ;;  %v606_v21 = vmax.f32 %v568_v12, 0.0  ;;  %v571_v24 = vadd.f32 %v14535_v15, %v474_v23  ;;  %v11565_v25 = vpop.f32.mrb[21].mxu0  ;;  %v713_v28 = vld [vmem:[#allocation6 + $0x28] sm:$0x1]  ;;  %v728_v37 = vmax.f32 %v726_v11, %v727_v13 }
 0x120   :  { %v714_v29 = vld [vmem:[#allocation6 + $0x29] sm:$0x1]  ;;  %v721_v22 = vld [vmem:[#allocation6 + $0x2a] sm:$0x1]  ;;  %621 = vst [vmem:[#allocation6 + $0x38] sm:$0xff] %v605_v16  ;;  %v11566_v31 = vadd.f32 %v11565_v25, %v11564_v18  ;;  %v736_v41 = vmax.f32 %v734_v14, %v735_v20  ;;  %v11567_v59 = vpop.f32.mrb[22].mxu0 }
 0x121   :  { %v715_v34 = vmax.f32 %v713_v28, %v714_v29  ;;  %v722_v63 = vld [vmem:[#allocation6 + $0x2b] sm:$0x1]  ;;  %v729_v35 = vld [vmem:[#allocation6 + $0x2c] sm:$0x1]  ;;  %v730_v36 = vld [vmem:[#allocation6 + $0x2d] sm:$0x1] }
 0x122   :  { %622 = vst [vmem:[#allocation6 + $0x40] sm:$0xff] %v606_v21  ;;  %v723_v38 = vmax.f32 %v721_v22, %v722_v63  ;;  %v731_v26 = vmax.f32 %v729_v35, %v730_v36  ;;  %v737_v39 = vld [vmem:[#allocation6 + $0x2e] sm:$0x1]  ;;  %v738_v40 = vld [vmem:[#allocation6 + $0x2f] sm:$0x1]  ;;  %v479_v15 = vadd.f32 %v11566_v31, %v14517_v61  ;;  %v607_v57 = vmax.f32 %v571_v24, 0.0 }
 0x123   :  { %v716_v42 = vmax.f32 %v712_v32, %v715_v34  ;;  %v739_v43 = vmax.f32 %v737_v39, %v738_v40  ;;  %v742_v44 = vld [vmem:[#allocation6 + $0x30] sm:$0x1]  ;;  %v743_v48 = vld [vmem:[#allocation6 + $0x31] sm:$0x1]  ;;  %v750_v49 = vld [vmem:[#allocation6 + $0x32] sm:$0x1] }
 0x124   :  { %v724_v46 = vmax.f32 %v720_v33, %v723_v38  ;;  %v732_v47 = vmax.f32 %v728_v37, %v731_v26  ;;  %v751_v50 = vld [vmem:[#allocation6 + $0x33] sm:$0x1]  ;;  %v758_v54 = vld [vmem:[#allocation6 + $0x34] sm:$0x1]  ;;  %v759_v56 = vld [vmem:[#allocation6 + $0x35] sm:$0x1]  ;;  %v576_v58 = vadd.f32 %v14527_v55, %v479_v15  ;;  %v744_v23 = vmax.f32 %v742_v44, %v743_v48 }
 0x125   :  { %v740_v52 = vmax.f32 %v736_v41, %v739_v43  ;;  %717 = vst [vmem:[#allocation2 + $0x22] sm:$0x1] %v716_v42  ;;  %v14564_v19 = vld [vmem:[#allocation2 + $0x19] sm:$0xff]  ;;  %v14566_v1 = vld [vmem:[#allocation2 + $0xb] sm:$0xff]  ;;  %v766_v3 = vld [vmem:[#allocation6 + $0x36] sm:$0x1]  ;;  %v752_v20 = vmax.f32 %v750_v49, %v751_v50  ;;  %v760_v22 = vmax.f32 %v758_v54, %v759_v56 }
 0x126   :  { %725 = vst [vmem:[#allocation2 + $0x23] sm:$0x1] %v724_v46  ;;  %733 = vst [vmem:[#allocation2 + $0x24] sm:$0x1] %v732_v47  ;;  %v767_v4 = vld [vmem:[#allocation6 + $0x37] sm:$0x1]  ;;  %v949_v5 = vpack.c.bf16 %v14564_v19, %v938_v45 }
 0x127   :  { %v11568_v6 = vpop.f32.mrb[23].mxu0  ;;  %v14569_v7 = vld [vmem:[#allocation2 + $0x13] sm:$0xff]  ;;  %741 = vst [vmem:[#allocation2 + $0x25] sm:$0x1] %v740_v52  ;;  %623 = vst [vmem:[#allocation6 + $0x48] sm:$0xff] %v607_v57  ;;  %v768_v31 = vmax.f32 %v766_v3, %v767_v4 }
 0x128   :  { %v745_v9 = vld [vmem:[#allocation6 + $0x38] sm:$0x1]  ;;  %v746_v10 = vld [vmem:[#allocation6 + $0x39] sm:$0x1]  ;;  %v753_v11 = vld [vmem:[#allocation6 + $0x3a] sm:$0x1]  ;;  %v11569_v55 = vadd.f32 %v11568_v6, %v11567_v59  ;;  %12348 = vmatmul.mubr.bf16.vlgmr.msra.gmra.mrb[16].mxu1 %v949_v5 }
 0x129   :  { %v747_v13 = vmax.f32 %v745_v9, %v746_v10  ;;  %v754_v14 = vld [vmem:[#allocation6 + $0x3b] sm:$0x1]  ;;  %v761_v16 = vld [vmem:[#allocation6 + $0x3c] sm:$0x1]  ;;  %v762_v18 = vld [vmem:[#allocation6 + $0x3d] sm:$0x1]  ;;  %12360 = vmatpush3.bf16.msra.mxu1 %v14511_v60 }
 0x12a   :  { %v755_v21 = vmax.f32 %v753_v11, %v754_v14  ;;  %v763_v24 = vmax.f32 %v761_v16, %v762_v18  ;;  %v769_v25 = vld [vmem:[#allocation6 + $0x3e] sm:$0x1]  ;;  %v770_v28 = vld [vmem:[#allocation6 + $0x3f] sm:$0x1]  ;;  %v482_v29 = vadd.f32 %v11569_v55, %v14517_v61  ;;  %v774_v33 = vld [vmem:[#allocation6 + $0x40] sm:$0x1]  ;;  %12361 = vmatprep.subr.bf16.mxu1 %v13619_v51 }
 0x12b   :  { %v771_v32 = vmax.f32 %v769_v25, %v770_v28  ;;  %v775_v34 = vld [vmem:[#allocation6 + $0x41] sm:$0x1]  ;;  %v13620_v63 = vld [vmem:[%s16909_s3 + $0x10] sm:$0xff]   ;;  %v748_v35 = vmax.f32 %v744_v23, %v747_v13  ;;  %v782_v36 = vld [vmem:[#allocation6 + $0x42] sm:$0x1]  ;;  %v608_v60 = vmax.f32 %v576_v58, 0.0 }
 0x12c   :  { %v783_v37 = vld [vmem:[#allocation6 + $0x43] sm:$0x1]  ;;  %v790_v38 = vld [vmem:[#allocation6 + $0x44] sm:$0x1]  ;;  %v579_v26 = vadd.f32 %v14531_v2, %v482_v29  ;;  %v756_v39 = vmax.f32 %v752_v20, %v755_v21  ;;  %v791_v40 = vld [vmem:[#allocation6 + $0x45] sm:$0x1]  ;;  %v764_v42 = vmax.f32 %v760_v22, %v763_v24  ;;  %v776_v57 = vmax.f32 %v774_v33, %v775_v34 }
 0x12d   :  { %v798_v15 = vld [vmem:[#allocation6 + $0x46] sm:$0x1]  ;;  %v11570_v41 = vpop.f32.mrb[24].mxu0  ;;  %749 = vst [vmem:[#allocation2 + $0x2a] sm:$0x1] %v748_v35  ;;  %v772_v43 = vmax.f32 %v768_v31, %v771_v32  ;;  %v14582_v44 = vld [vmem:[%s16909_s3 + $0x18] sm:$0xff]   ;;  %12362 = vmatpush3.bf16.msra.mxu1 %v13619_v51  ;;  %v784_v58 = vmax.f32 %v782_v36, %v783_v37  ;;  %v792_v5 = vmax.f32 %v790_v38, %v791_v40 }
 0x12e   :  { %v799_v45 = vld [vmem:[#allocation6 + $0x47] sm:$0x1]  ;;  %v609_v46 = vmax.f32 %v579_v26, 0.0  ;;  %v11571_v47 = vpop.f32.mrb[25].mxu0  ;;  %757 = vst [vmem:[#allocation2 + $0x2b] sm:$0x1] %v756_v39  ;;  %12363 = vmatprep.subr.bf16.mxu1 %v13620_v63 }
 0x12f   :  { %v14584_v48 = vld [vmem:[#allocation2 + $0xc] sm:$0xff]  ;;  %v14586_v2 = vld [vmem:[#allocation2 + $0x14] sm:$0xff]  ;;  %v777_v49 = vld [vmem:[#allocation6 + $0x48] sm:$0x1]  ;;  %624 = vst [vmem:[#allocation6 + $0x50] sm:$0xff] %v608_v60  ;;  %v11572_v54 = vadd.f32 %v11571_v47, %v11570_v41  ;;  %v11573_v55 = vpop.f32.mrb[26].mxu0  ;;  %v800_v16 = vmax.f32 %v798_v15, %v799_v45 }
 0x130   :  { %v778_v50 = vld [vmem:[#allocation6 + $0x49] sm:$0x1]  ;;  %v785_v52 = vld [vmem:[#allocation6 + $0x4a] sm:$0x1]  ;;  %765 = vst [vmem:[#allocation2 + $0x2c] sm:$0x1] %v764_v42 }
 0x131   :  { %773 = vst [vmem:[#allocation2 + $0x2d] sm:$0x1] %v772_v43  ;;  %v779_v59 = vmax.f32 %v777_v49, %v778_v50  ;;  %v786_v51 = vld [vmem:[#allocation6 + $0x4b] sm:$0x1]  ;;  %v793_v3 = vld [vmem:[#allocation6 + $0x4c] sm:$0x1]  ;;  %v487_v23 = vadd.f32 %v11572_v54, %v14517_v61  ;;  %12364 = vmatpush3.bf16.msra.mxu1 %v13620_v63 }
 0x132   :  { %v794_v4 = vld [vmem:[#allocation6 + $0x4d] sm:$0x1]  ;;  %625 = vst [vmem:[#allocation6 + $0x58] sm:$0xff] %v609_v46  ;;  %v787_v6 = vmax.f32 %v785_v52, %v786_v51  ;;  %v801_v10 = vld [vmem:[#allocation6 + $0x4e] sm:$0x1]  ;;  %v14591_v13 = vld [vmem:[#allocation2 + $0x21] sm:$0xff]  ;;  %12365 = vmatprep.subr.bf16.mxu1 %v14582_v44 }
 0x133   :  { %v795_v9 = vmax.f32 %v793_v3, %v794_v4  ;;  %v802_v11 = vld [vmem:[#allocation6 + $0x4f] sm:$0x1]  ;;  %v14596_v14 = vld [vmem:[%s16909_s3 + $0x20] sm:$0xff]   ;;  %v780_v18 = vmax.f32 %v776_v57, %v779_v59  ;;  %v11574_v21 = vpop.f32.mrb[27].mxu0  ;;  %v14598_v24 = vld [vmem:[#allocation2 + $0x18] sm:$0xff]  ;;  %v584_v33 = vadd.f32 %v14539_v27, %v487_v23 }
 0x134   :  { %v803_v20 = vmax.f32 %v801_v10, %v802_v11  ;;  %v14600_v25 = vld [vmem:[#allocation2 + $0x20] sm:$0xff]  ;;  %v788_v22 = vmax.f32 %v784_v58, %v787_v6  ;;  %v11575_v32 = vadd.f32 %v11574_v21, %v11573_v55  ;;  %v11576_v34 = vpop.f32.mrb[28].mxu0  ;;  %v14624_v60 = vld [vmem:[#allocation2 + $0x18] sm:$0xff]  ;;  %v13623_v47 = vld [vmem:[%s16909_s3 + $0x28] sm:$0xff]  }
 0x135   :  { %v14602_v28 = vld [vmem:[#allocation2 + $0x22] sm:$0xff]  ;;  %v796_v31 = vmax.f32 %v792_v5, %v795_v9  ;;  %v14608_v35 = vld [vmem:[#allocation2 + $0x1a] sm:$0xff]  ;;  %781 = vst [vmem:[#allocation2 + $0x52] sm:$0x1] %v780_v18  ;;  %v11577_v38 = vpop.f32.mrb[29].mxu0  ;;  %v610_v42 = vmax.f32 %v584_v33, 0.0  ;;  %12366 = vmatpush3.bf16.msra.mxu1 %v14582_v44 }
 0x136   :  { %v14610_v63 = vld [vmem:[#allocation2 + $0x1b] sm:$0xff]  ;;  %v804_v37 = vmax.f32 %v800_v16, %v803_v20  ;;  %v14618_v40 = vld [vmem:[#allocation2 + $0x23] sm:$0xff]  ;;  %789 = vst [vmem:[#allocation2 + $0x53] sm:$0x1] %v788_v22  ;;  %v490_v43 = vadd.f32 %v11575_v32, %v14517_v61  ;;  %v11578_v45 = vadd.f32 %v11577_v38, %v11576_v34  ;;  %v11579_v46 = vpop.f32.mrb[30].mxu0  ;;  %v14641_v51 = vld [vmem:[#allocation2 + $0x31] sm:$0xff]  ;;  %12367 = vmatprep.subr.bf16.mxu1 %v14596_v14 }
 0x137   :  { %v14612_v36 = vld [vmem:[#allocation2 + $0x1c] sm:$0xff]  ;;  %797 = vst [vmem:[#allocation2 + $0x54] sm:$0x1] %v796_v31  ;;  %v14632_v49 = vld [vmem:[#allocation2 + $0x24] sm:$0xff]  ;;  %v806_v57 = vld [vmem:[#allocation6 + $0x50] sm:$0x1] }
 0x138   :  { %v14614_v26 = vld [vmem:[#allocation2 + $0x39] sm:$0xff]  ;;  %v14616_v39 = vld [vmem:[#allocation2 + $0x41] sm:$0xff]  ;;  %805 = vst [vmem:[#allocation2 + $0x55] sm:$0x1] %v804_v37  ;;  %v807_v58 = vld [vmem:[#allocation6 + $0x51] sm:$0x1]  ;;  %v587_v10 = vadd.f32 %v14546_v53, %v490_v43  ;;  %v495_v11 = vadd.f32 %v11578_v45, %v14517_v61 }
 0x139   :  { %v14626_v41 = vld [vmem:[#allocation2 + $0x20] sm:$0xff]  ;;  %v814_v59 = vld [vmem:[#allocation6 + $0x52] sm:$0x1]  ;;  %v14643_v3 = vld [vmem:[#allocation2 + $0x49] sm:$0xff]  ;;  %626 = vst [vmem:[#allocation6 + $0x60] sm:$0xff] %v610_v42  ;;  %v808_v20 = vmax.f32 %v806_v57, %v807_v58  ;;  %v951_v53 = vpack.c.bf16 %v14614_v26, %v14641_v51  ;;  %12368 = vmatpush3.bf16.msra.mxu1 %v14596_v14  ;;  %v11580_v50 = vpop.f32.mrb[31].mxu0 }
 0x13a   :  { %v14636_v52 = vld [vmem:[#allocation2 + $0x19] sm:$0xff]  ;;  %v14638_v54 = vld [vmem:[#allocation2 + $0x21] sm:$0xff]  ;;  %v815_v5 = vld [vmem:[#allocation6 + $0x53] sm:$0x1]  ;;  %v592_v32 = vadd.f32 %v14537_v17, %v495_v11  ;;  %v952_v33 = vpack.c.bf16 %v14643_v3, %v14616_v39  ;;  %v611_v44 = vmax.f32 %v587_v10, 0.0  ;;  %12369 = vmatprep.subr.bf16.mxu1 %v13623_v47 }
 0x13b   :  { %v822_v6 = vld [vmem:[#allocation6 + $0x54] sm:$0x1]  ;;  %v823_v9 = vld [vmem:[#allocation6 + $0x55] sm:$0x1]  ;;  %v830_v55 = vld [vmem:[#allocation6 + $0x56] sm:$0x1]  ;;  %v816_v37 = vmax.f32 %v814_v59, %v815_v5  ;;  %v11581_v5 = vadd.f32 %v11580_v50, %v11579_v46 }
 0x13c   :  { %v831_v23 = vld [vmem:[#allocation6 + $0x57] sm:$0x1]  ;;  %v809_v16 = vld [vmem:[#allocation6 + $0x58] sm:$0x1]  ;;  %v810_v21 = vld [vmem:[#allocation6 + $0x59] sm:$0x1]  ;;  %v824_v38 = vmax.f32 %v822_v6, %v823_v9 }
 0x13d   :  { %v817_v22 = vld [vmem:[#allocation6 + $0x5a] sm:$0x1]  ;;  %v818_v31 = vld [vmem:[#allocation6 + $0x5b] sm:$0x1]  ;;  %v13624_v34 = vld [vmem:[%s16909_s3 + $0x30] sm:$0xff]   ;;  %v811_v42 = vmax.f32 %v809_v16, %v810_v21  ;;  %v832_v17 = vmax.f32 %v830_v55, %v831_v23  ;;  %v612_v4 = vmax.f32 %v592_v32, 0.0  ;;  %v498_v14 = vadd.f32 %v11581_v5, %v14517_v61  ;;  %12370 = vmatpush3.bf16.msra.mxu1 %v13623_v47 }
 0x13e   :  { %v819_v43 = vmax.f32 %v817_v22, %v818_v31  ;;  %v825_v45 = vld [vmem:[#allocation6 + $0x5c] sm:$0x1]  ;;  %v826_v57 = vld [vmem:[#allocation6 + $0x5d] sm:$0x1]  ;;  %v833_v58 = vld [vmem:[#allocation6 + $0x5e] sm:$0x1]  ;;  %12371 = vmatprep.subr.bf16.mxu1 %v13624_v34 }
 0x13f   :  { %v827_v11 = vmax.f32 %v825_v45, %v826_v57  ;;  %v834_v18 = vld [vmem:[#allocation6 + $0x5f] sm:$0x1]  ;;  %v14663_v56 = vld [vmem:[#allocation2 + $0x29] sm:$0xff]  ;;  %v812_v6 = vmax.f32 %v808_v20, %v811_v42  ;;  %627 = vst [vmem:[#allocation6 + $0x68] sm:$0xff] %v611_v44  ;;  %628 = vst [vmem:[#allocation6 + $0x70] sm:$0xff] %v612_v4  ;;  %v595_v21 = vadd.f32 %v14541_v30, %v498_v14 }
 0x140   :  { %v835_v12 = vmax.f32 %v833_v58, %v834_v18  ;;  %v950_v59 = vpack.c.bf16 %v14663_v56, %v14591_v13  ;;  %v820_v9 = vmax.f32 %v816_v37, %v819_v43  ;;  %v13625_v10 = vld [vmem:[%s16909_s3 + $0x38] sm:$0xff]   ;;  %v14671_v55 = vld [vmem:[#allocation2 + $0x4a] sm:$0xff]  ;;  %v838_v50 = vld [vmem:[#allocation6 + $0x60] sm:$0x1] }
 0x141   :  { %v828_v16 = vmax.f32 %v824_v38, %v827_v11  ;;  %813 = vst [vmem:[#allocation2 + $0x5a] sm:$0x1] %v812_v6  ;;  %v14673_v18 = vld [vmem:[#allocation2 + $0x33] sm:$0xff]  ;;  %v14679_v61 = vld [vmem:[#allocation2 + $0x2b] sm:$0xff]  ;;  %v839_v47 = vld [vmem:[#allocation6 + $0x61] sm:$0x1]  ;;  %12372 = vmatpush3.bf16.msra.mxu1 %v13624_v34 }
 0x142   :  { %12351 = vmatprep.mubr.bf16.mxu1 %v950_v59  ;;  %v836_v23 = vmax.f32 %v832_v17, %v835_v12  ;;  %v14675_v46 = vld [vmem:[#allocation2 + $0x34] sm:$0xff]  ;;  %821 = vst [vmem:[#allocation2 + $0x5b] sm:$0x1] %v820_v9  ;;  %v846_v44 = vld [vmem:[#allocation6 + $0x62] sm:$0x1]  ;;  %v14682_v31 = vld [vmem:[#allocation2 + $0x2c] sm:$0xff]  ;;  %v840_v42 = vmax.f32 %v838_v50, %v839_v47  ;;  %12373 = vmatprep.subr.bf16.mxu1 %v13625_v10 }
 0x143   :  { %12352 = vmatmul.mubr.bf16.gmra.mrb[20].mxu1 %v951_v53  ;;  %829 = vst [vmem:[#allocation2 + $0x5c] sm:$0x1] %v828_v16  ;;  %v14677_v4 = vld [vmem:[#allocation2 + $0x52] sm:$0xff]  ;;  %v847_v20 = vld [vmem:[#allocation6 + $0x63] sm:$0x1]  ;;  %v613_v37 = vmax.f32 %v595_v21, 0.0 }
 0x144   :  { %12355 = vmatprep.mubr.bf16.mxu1 %v952_v33  ;;  %837 = vst [vmem:[#allocation2 + $0x5d] sm:$0x1] %v836_v23  ;;  %v854_v12 = vld [vmem:[#allocation6 + $0x64] sm:$0x1]  ;;  %v855_v22 = vld [vmem:[#allocation6 + $0x65] sm:$0x1]  ;;  %v848_v45 = vmax.f32 %v846_v44, %v847_v20 }
 0x145   :  { %v862_v32 = vld [vmem:[#allocation6 + $0x66] sm:$0x1]  ;;  %v863_v53 = vld [vmem:[#allocation6 + $0x67] sm:$0x1]  ;;  %v856_v57 = vmax.f32 %v854_v12, %v855_v22  ;;  %629 = vst [vmem:[#allocation6 + $0x78] sm:$0xff] %v613_v37  ;;  %12374 = vmatpush3.bf16.msra.mxu1 %v13625_v10 }
 0x146   :  { %v14689_v43 = vld [vmem:[%s16909_s3 + $0x80] sm:$0xff]   ;;  %v841_v58 = vld [vmem:[#allocation6 + $0x68] sm:$0x1]  ;;  %v842_v34 = vld [vmem:[#allocation6 + $0x69] sm:$0x1]  ;;  %v864_v11 = vmax.f32 %v862_v32, %v863_v53 }
 0x147   :  { %v849_v17 = vld [vmem:[#allocation6 + $0x6a] sm:$0x1]  ;;  %v843_v59 = vmax.f32 %v841_v58, %v842_v34  ;;  %v850_v5 = vld [vmem:[#allocation6 + $0x6b] sm:$0x1]  ;;  %v857_v6 = vld [vmem:[#allocation6 + $0x6c] sm:$0x1]  ;;  %12387 = vmatprep.subr.bf16.mxu1 %v14689_v43 }
 0x148   :  { %v858_v9 = vld [vmem:[#allocation6 + $0x6d] sm:$0x1]  ;;  %v851_v16 = vmax.f32 %v849_v17, %v850_v5  ;;  %v865_v23 = vld [vmem:[#allocation6 + $0x6e] sm:$0x1]  ;;  %v866_v50 = vld [vmem:[#allocation6 + $0x6f] sm:$0x1] }
 0x149   :  { %v859_v14 = vmax.f32 %v857_v6, %v858_v9  ;;  %v844_v47 = vmax.f32 %v840_v42, %v843_v59  ;;  %v867_v21 = vmax.f32 %v865_v23, %v866_v50  ;;  %v870_v30 = vld [vmem:[#allocation6 + $0x70] sm:$0x1]  ;;  %v871_v33 = vld [vmem:[#allocation6 + $0x71] sm:$0x1]  ;;  %v878_v12 = vld [vmem:[#allocation6 + $0x72] sm:$0x1] }
 0x14a   :  { %v852_v44 = vmax.f32 %v848_v45, %v851_v16  ;;  %v879_v22 = vld [vmem:[#allocation6 + $0x73] sm:$0x1]  ;;  %v947_v37 = vld [vmem:[#allocation2 + $0x59] sm:$0xf]  ;;  %v14698_v58 = vld [vmem:[#allocation2] sm:$0xff]  ;;  %v872_v42 = vmax.f32 %v870_v30, %v871_v33 }
 0x14b   :  { %v860_v20 = vmax.f32 %v856_v57, %v859_v14  ;;  %v868_v32 = vmax.f32 %v864_v11, %v867_v21  ;;  %845 = vst [vmem:[#allocation2 + $0x62] sm:$0x1] %v844_v47  ;;  %v14696_v53 = vld [vmem:[#allocation2 + $0x51] sm:$0xff]  ;;  %v14702_v10 = vpack.c.bf16 %v14698_v58, %v14698_v58  ;;  %v880_v17 = vmax.f32 %v878_v12, %v879_v22  ;;  %v14718_v21 = vld [vmem:[#allocation2 + $0x28] sm:$0xff] }
 0x14c   :  { %853 = vst [vmem:[#allocation2 + $0x63] sm:$0x1] %v852_v44  ;;  %v953_v34 = vpack.c.bf16 %v947_v37, %v14696_v53  ;;  %v14705_v45 = vld [vmem:[#allocation2 + $0x4b] sm:$0xff]  ;;  %v14707_v57 = vld [vmem:[#allocation2 + $0x53] sm:$0xff]  ;;  %v882_v16 = vld [vmem:[#allocation6 + $0x7b] sm:$0x1]  ;;  %v916_v22 = vpack.c.bf16 %v14718_v21, %v14600_v25 }
 0x14d   :  { %861 = vst [vmem:[#allocation2 + $0x64] sm:$0x1] %v860_v20  ;;  %869 = vst [vmem:[#allocation2 + $0x65] sm:$0x1] %v868_v32  ;;  %v873_v11 = vld [vmem:[#allocation6 + $0x78] sm:$0x1] }
 0x14e   :  { %v874_v59 = vld [vmem:[#allocation6 + $0x79] sm:$0x1]  ;;  %v881_v5 = vld [vmem:[#allocation6 + $0x7a] sm:$0x1]  ;;  %12356 = vmatmul.mubr.bf16.gmra.mrb[24].mxu1 %v953_v34  ;;  %v14712_v30 = vld [vmem:[#allocation2 + $0x4c] sm:$0xff] }
 0x14f   :  { %v875_v9 = vmax.f32 %v873_v11, %v874_v59  ;;  %v883_v14 = vmax.f32 %v881_v5, %v882_v16  ;;  %12375 = vmatprep.mubr.bf16.mxu1 %v14702_v10  ;;  %v14714_v33 = vld [vmem:[#allocation2 + $0x54] sm:$0xff]  ;;  %v13627_v12 = vld [vmem:[%s16909_s3 + $0x88] sm:$0xff]   ;;  %v14749_v16 = vld [vmem:[#allocation2 + $0x1c] sm:$0xff] }
 0x150   :  { %v14720_v44 = vld [vmem:[#allocation2 + $0x10] sm:$0xff]  ;;  %v14729_v32 = vld [vmem:[#allocation2 + $0x1a] sm:$0xff]  ;;  %v14731_v37 = vld [vmem:[#allocation2 + $0x22] sm:$0xff]  ;;  %16929 = vst [vmem:[#allocation14_spill] sm:$0xff] %v14749_v16 }
 0x151   :  { %v876_v50 = vmax.f32 %v872_v42, %v875_v9  ;;  %v884_v47 = vmax.f32 %v880_v17, %v883_v14  ;;  %v915_v20 = vpack.c.bf16 %v14598_v24, %v14720_v44  ;;  %v13628_v34 = vld [vmem:[%s16909_s3 + $0x90] sm:$0xff]   ;;  %v14739_v17 = vld [vmem:[#allocation2 + $0x1b] sm:$0xff]  ;;  %v14741_v11 = vld [vmem:[#allocation2 + $0x23] sm:$0xff] }
 0x152   :  { %v14743_v59 = vld [vmem:[#allocation2 + $0x4b] sm:$0xff]  ;;  %v14745_v5 = vld [vmem:[#allocation2 + $0x53] sm:$0xff]  ;;  %v1229_v14 = vld [vmem:[#allocation2 + $0x2] sm:$0xff] }
 0x153   :  { %877 = vst [vmem:[#allocation2 + $0x6a] sm:$0x1] %v876_v50  ;;  %885 = vst [vmem:[#allocation2 + $0x6b] sm:$0x1] %v884_v47  ;;  %v14755_v50 = vld [vmem:[#allocation2 + $0x54] sm:$0xff]  ;;  %v13631_v9 = vld [vmem:[%s16909_s3 + $0xa8] sm:$0xff]  }
 0x154   :  { %16927 = vst [vmem:[#allocation12_spill] sm:$0xff] %v14743_v59  ;;  %16928 = vst [vmem:[#allocation13_spill] sm:$0xff] %v14745_v5  ;;  %v913_v47 = vld [vmem:[#allocation2 + $0x58] sm:$0xf]  ;;  %v14771_v42 = vld [vmem:[#allocation2 + $0x50] sm:$0xff] }
 0x155   :  { %16931 = vst [vmem:[#allocation16_spill] sm:$0xff] %v14755_v50  ;;  %v886_v23 = vld [vmem:[#allocation6 + $0x74] sm:$0x1]  ;;  %v887_v6 = vld [vmem:[#allocation6 + $0x75] sm:$0x1]  ;;  %v919_v8 = vpack.c.bf16 %v913_v47, %v14771_v42  ;;  %v13638_v16 = vld [vmem:[%s16909_s3 + $0xe0] sm:$0xff]  }
 0x156   :  { %12376 = vmatmul.mubr.bf16.vlgmr.msra.gmra.mrb[16].mxu1 %v915_v20  ;;  %v13629_v20 = vld [vmem:[%s16909_s3 + $0x98] sm:$0xff]   ;;  %v888_v29 = vmax.f32 %v886_v23, %v887_v6  ;;  %v13635_v6 = vld [vmem:[%s16909_s3 + $0xc8] sm:$0xff]   ;;  %v13636_v23 = vld [vmem:[%s16909_s3 + $0xd0] sm:$0xff]  }
 0x157   :  { %12388 = vmatpush3.bf16.msra.mxu1 %v14689_v43  ;;  %12379 = vmatprep.mubr.bf16.mxu1 %v916_v22  ;;  %v14751_v43 = vld [vmem:[#allocation2 + $0x24] sm:$0xff]  ;;  %v14762_v22 = vld [vmem:[#allocation2 + $0x4c] sm:$0xff]  ;;  %v889_v38 = vld [vmem:[#allocation6 + $0x7c] sm:$0x1] }
 0x158   :  { %12389 = vmatprep.subr.bf16.mxu1 %v13627_v12  ;;  %16930 = vst [vmem:[#allocation15_spill] sm:$0xff] %v14751_v43  ;;  %16932 = vst [vmem:[#allocation17_spill] sm:$0xff] %v14762_v22  ;;  %v890_v15 = vld [vmem:[#allocation6 + $0x7d] sm:$0x1]  ;;  %v13632_v22 = vld [vmem:[%s16909_s3 + $0xb0] sm:$0xff]  }
 0x159   :  { %v891_v27 = vmax.f32 %v889_v38, %v890_v15  ;;  %v14787_v15 = vld [vmem:[#allocation2 + $0x2a] sm:$0xff]  ;;  %v1242_v38 = vpack.c.bf16 %v14608_v35, %v14550_v0  ;;  %v894_v47 = vld [vmem:[#allocation6 + $0x76] sm:$0x1]  ;;  %v1240_v43 = vld [vmem:[#allocation2 + $0x5a] sm:$0xf] }
 0x15a   :  { %v1405_v59 = vld [vmem:[#allocation2 + $0x3] sm:$0xff]  ;;  %v1246_v5 = vpack.c.bf16 %v1240_v43, %v14677_v4  ;;  %v13641_v43 = vld [vmem:[%s16909_s3 + $0xf8] sm:$0xff]  }
 0x15b   :  { %12390 = vmatpush3.bf16.msra.mxu1 %v13627_v12  ;;  %v13630_v12 = vld [vmem:[%s16909_s3 + $0xa0] sm:$0xff]  }
 0x15c   :  { %12391 = vmatprep.subr.bf16.mxu1 %v13628_v34 }
 0x15e   :  { %12380 = vmatmul.mubr.bf16.gmra.mrb[20].mxu1 %v14702_v10 }
 0x15f   :  { %12392 = vmatpush3.bf16.msra.mxu1 %v13628_v34  ;;  %12383 = vmatprep.mubr.bf16.mxu1 %v14702_v10  ;;  %v1241_v34 = vpack.c.bf16 %v14548_v62, %v1229_v14  ;;  %v892_v14 = vmax.f32 %v888_v29, %v891_v27  ;;  %v1243_v29 = vpack.c.bf16 %v14787_v15, %v14602_v28  ;;  %v14796_v27 = vld [vmem:[#allocation2 + $0x3a] sm:$0xff] }
 0x160   :  { %12393 = vmatprep.subr.bf16.mxu1 %v13629_v20 }
 0x161   :  { %893 = vst [vmem:[#allocation2 + $0x6c] sm:$0x1] %v892_v14 }
 0x163   :  { %12394 = vmatpush3.bf16.msra.mxu1 %v13629_v20  ;;  %v13633_v20 = vld [vmem:[%s16909_s3 + $0xb8] sm:$0xff]  }
 0x164   :  { %12395 = vmatprep.subr.bf16.mxu1 %v13630_v12 }
 0x166   :  { %12384 = vmatmul.mubr.bf16.gmra.mrb[24].mxu1 %v919_v8  ;;  %v13634_v8 = vld [vmem:[%s16909_s3 + $0xc0] sm:$0xff]  }
 0x167   :  { %12396 = vmatpush3.bf16.msra.mxu1 %v13630_v12  ;;  %12403 = vmatprep.mubr.bf16.mxu1 %v1241_v34  ;;  %v895_v12 = vld [vmem:[#allocation6 + $0x77] sm:$0x1]  ;;  %v897_v34 = vld [vmem:[#allocation6 + $0x7e] sm:$0x1] }
 0x168   :  { %12397 = vmatprep.subr.bf16.mxu1 %v13631_v9 }
 0x16b   :  { %12398 = vmatpush3.bf16.msra.mxu1 %v13631_v9  ;;  %v14801_v9 = vld [vmem:[#allocation2 + $0x42] sm:$0xff] }
 0x16c   :  { %12399 = vmatprep.subr.bf16.mxu1 %v13632_v22 }
 0x16f   :  { %12400 = vmatpush3.bf16.msra.mxu1 %v13632_v22  ;;  %v14803_v22 = vld [vmem:[#allocation2 + $0x32] sm:$0xff] }
 0x170   :  { %12401 = vmatprep.subr.bf16.mxu1 %v13633_v20  ;;  %v1244_v14 = vpack.c.bf16 %v14796_v27, %v14803_v22 }
 0x173   :  { %12402 = vmatpush3.bf16.msra.mxu1 %v13633_v20  ;;  %v898_v20 = vld [vmem:[#allocation6 + $0x7f] sm:$0x1] }
 0x174   :  { %12415 = vmatprep.subr.bf16.mxu1 %v13634_v8  ;;  %v899_v50 = vmax.f32 %v897_v34, %v898_v20  ;;  %v14836_v34 = vld [vmem:[#allocation2 + $0x3b] sm:$0xff]  ;;  %v13644_v20 = vld [vmem:[%s16909_s3 + $0x110] sm:$0xff]  }
 0x176   :  { %12404 = vmatmul.mubr.bf16.vlgmr.msra.gmra.mrb[16].mxu1 %v1242_v38  ;;  %v13637_v38 = vld [vmem:[%s16909_s3 + $0xd8] sm:$0xff]  }
 0x177   :  { %12407 = vmatprep.mubr.bf16.mxu1 %v1243_v29  ;;  %12416 = vmatpush3.bf16.msra.mxu1 %v13634_v8  ;;  %v1245_v8 = vpack.c.bf16 %v14671_v55, %v14801_v9  ;;  %v896_v29 = vmax.f32 %v894_v47, %v895_v12  ;;  %v13639_v47 = vld [vmem:[%s16909_s3 + $0xe8] sm:$0xff]   ;;  %v1419_v12 = vpack.c.bf16 %v14679_v61, %v14618_v40 }
 0x178   :  { %12417 = vmatprep.subr.bf16.mxu1 %v13635_v6 }
 0x17b   :  { %12418 = vmatpush3.bf16.msra.mxu1 %v13635_v6  ;;  %v900_v6 = vmax.f32 %v896_v29, %v899_v50  ;;  %v13640_v50 = vld [vmem:[%s16909_s3 + $0xf0] sm:$0xff]  }
 0x17c   :  { %12419 = vmatprep.subr.bf16.mxu1 %v13636_v23 }
 0x17d   :  { %901 = vst [vmem:[#allocation2 + $0x6d] sm:$0x1] %v900_v6  ;;  %v13646_v6 = vld [vmem:[%s16909_s3 + $0x120] sm:$0xff]  }
 0x17e   :  { %12408 = vmatmul.mubr.bf16.gmra.mrb[20].mxu1 %v1244_v14  ;;  %v1420_v14 = vpack.c.bf16 %v14836_v34, %v14673_v18 }
 0x17f   :  { %12420 = vmatpush3.bf16.msra.mxu1 %v13636_v23  ;;  %12411 = vmatprep.mubr.bf16.mxu1 %v1245_v8  ;;  %v1417_v23 = vpack.c.bf16 %v14566_v1, %v1405_v59  ;;  %v13642_v59 = vld [vmem:[%s16909_s3 + $0x100] sm:$0xff]  }
 0x180   :  { %12421 = vmatprep.subr.bf16.mxu1 %v13637_v38  ;;  %v14843_v8 = vld [vmem:[#allocation2 + $0x43] sm:$0xff] }
 0x181   :  { %v1421_v29 = vpack.c.bf16 %v14705_v45, %v14843_v8 }
 0x183   :  { %12422 = vmatpush3.bf16.msra.mxu1 %v13637_v38  ;;  %v13645_v38 = vld [vmem:[%s16909_s3 + $0x118] sm:$0xff]  }
 0x184   :  { %12423 = vmatprep.subr.bf16.mxu1 %v13638_v16 }
 0x186   :  { %12412 = vmatmul.mubr.bf16.gmra.mrb[24].mxu1 %v1246_v5  ;;  %v1418_v5 = vpack.c.bf16 %v14610_v63, %v14569_v7 }
 0x187   :  { %12424 = vmatpush3.bf16.msra.mxu1 %v13638_v16  ;;  %12431 = vmatprep.mubr.bf16.mxu1 %v1417_v23  ;;  %v13643_v16 = vld [vmem:[%s16909_s3 + $0x108] sm:$0xff]  }
 0x188   :  { %12425 = vmatprep.subr.bf16.mxu1 %v13639_v47  ;;  %v1581_v23 = vld [vmem:[#allocation2 + $0x4] sm:$0xff] }
 0x18b   :  { %12426 = vmatpush3.bf16.msra.mxu1 %v13639_v47  ;;  %v1416_v47 = vld [vmem:[#allocation2 + $0x5b] sm:$0xf] }
 0x18c   :  { %12427 = vmatprep.subr.bf16.mxu1 %v13640_v50 }
 0x18f   :  { %12428 = vmatpush3.bf16.msra.mxu1 %v13640_v50  ;;  %v1422_v50 = vpack.c.bf16 %v1416_v47, %v14707_v57 }
 0x190   :  { %12429 = vmatprep.subr.bf16.mxu1 %v13641_v43 }
 0x193   :  { %12430 = vmatpush3.bf16.msra.mxu1 %v13641_v43  ;;  %v13647_v43 = vld [vmem:[%s16909_s3 + $0x128] sm:$0xff]  }
 0x194   :  { %12443 = vmatprep.subr.bf16.mxu1 %v13642_v59 }
 0x196   :  { %12432 = vmatmul.mubr.bf16.vlgmr.msra.gmra.mrb[16].mxu1 %v1418_v5  ;;  %v13648_v5 = vld [vmem:[%s16909_s3 + $0x130] sm:$0xff]  }
 0x197   :  { %12435 = vmatprep.mubr.bf16.mxu1 %v1419_v12  ;;  %12444 = vmatpush3.bf16.msra.mxu1 %v13642_v59  ;;  %v1593_v59 = vpack.c.bf16 %v14584_v48, %v1581_v23  ;;  %v13650_v12 = vld [vmem:[%s16909_s3 + $0x140] sm:$0xff]  }
 0x198   :  { %12445 = vmatprep.subr.bf16.mxu1 %v13643_v16  ;;  %v14881_v23 = vld [vmem:[#allocation2 + $0x44] sm:$0xff] }
 0x19b   :  { %12446 = vmatpush3.bf16.msra.mxu1 %v13643_v16  ;;  %v13649_v16 = vld [vmem:[%s16909_s3 + $0x138] sm:$0xff]  }
 0x19c   :  { %12447 = vmatprep.subr.bf16.mxu1 %v13644_v20 }
 0x19e   :  { %12436 = vmatmul.mubr.bf16.gmra.mrb[20].mxu1 %v1420_v14  ;;  %v13651_v14 = vld [vmem:[%s16909_s3 + $0x148] sm:$0xff]  }
 0x19f   :  { %12439 = vmatprep.mubr.bf16.mxu1 %v1421_v29  ;;  %12448 = vmatpush3.bf16.msra.mxu1 %v13644_v20  ;;  %v1594_v20 = vpack.c.bf16 %v14612_v36, %v14586_v2  ;;  %v14874_v29 = vld [vmem:[#allocation2 + $0x3c] sm:$0xff] }
 0x1a0   :  { %12449 = vmatprep.subr.bf16.mxu1 %v13645_v38  ;;  %v1596_v47 = vpack.c.bf16 %v14874_v29, %v14675_v46 }
 0x1a3   :  { %12450 = vmatpush3.bf16.msra.mxu1 %v13645_v38  ;;  %v1595_v38 = vpack.c.bf16 %v14682_v31, %v14632_v49 }
 0x1a4   :  { %12451 = vmatprep.subr.bf16.mxu1 %v13646_v6 }
 0x1a6   :  { %12440 = vmatmul.mubr.bf16.gmra.mrb[24].mxu1 %v1422_v50  ;;  %v13653_v50 = vld [vmem:[%s16909_s3 + $0x158] sm:$0xff]  }
 0x1a7   :  { %12452 = vmatpush3.bf16.msra.mxu1 %v13646_v6  ;;  %12459 = vmatprep.mubr.bf16.mxu1 %v1593_v59  ;;  %v13652_v6 = vld [vmem:[%s16909_s3 + $0x150] sm:$0xff]   ;;  %v13654_v59 = vld [vmem:[%s16909_s3 + $0x160] sm:$0xff]  }
 0x1a8   :  { %12453 = vmatprep.subr.bf16.mxu1 %v13647_v43 }
 0x1ab   :  { %12454 = vmatpush3.bf16.msra.mxu1 %v13647_v43  ;;  %v1597_v43 = vpack.c.bf16 %v14712_v30, %v14881_v23 }
 0x1ac   :  { %12455 = vmatprep.subr.bf16.mxu1 %v13648_v5 }
 0x1af   :  { %12456 = vmatpush3.bf16.msra.mxu1 %v13648_v5  ;;  %v1592_v5 = vld [vmem:[#allocation2 + $0x5c] sm:$0xf] }
 0x1b0   :  { %12457 = vmatprep.subr.bf16.mxu1 %v13649_v16 }
 0x1b3   :  { %12458 = vmatpush3.bf16.msra.mxu1 %v13649_v16  ;;  %v1598_v16 = vpack.c.bf16 %v1592_v5, %v14714_v33  ;;  %v14926_v5 = vld [vmem:[#allocation2 + $0x58] sm:$0xff] }
 0x1b4   :  { %12471 = vmatprep.subr.bf16.mxu1 %v13650_v12 }
 0x1b6   :  { %12460 = vmatmul.mubr.bf16.vlgmr.msra.gmra.mrb[16].mxu1 %v1594_v20  ;;  %v1769_v20 = vpack.c.bf16 %v14720_v44, %v14698_v58  ;;  %v13658_v44 = vld [vmem:[%s16909_s3 + $0x180] sm:$0xff]  }
 0x1b7   :  { %12463 = vmatprep.mubr.bf16.mxu1 %v1595_v38  ;;  %12472 = vmatpush3.bf16.msra.mxu1 %v13650_v12  ;;  %v13655_v12 = vld [vmem:[%s16909_s3 + $0x168] sm:$0xff]   ;;  %v13657_v38 = vld [vmem:[%s16909_s3 + $0x178] sm:$0xff]  }
 0x1b8   :  { %12473 = vmatprep.subr.bf16.mxu1 %v13651_v14 }
 0x1bb   :  { %12474 = vmatpush3.bf16.msra.mxu1 %v13651_v14  ;;  %v13656_v14 = vld [vmem:[%s16909_s3 + $0x170] sm:$0xff]  }
 0x1bc   :  { %12475 = vmatprep.subr.bf16.mxu1 %v13652_v6 }
 0x1be   :  { %12464 = vmatmul.mubr.bf16.gmra.mrb[20].mxu1 %v1596_v47  ;;  %v1771_v47 = vpack.c.bf16 %v14698_v58, %v14718_v21  ;;  %v1773_v21 = vpack.c.bf16 %v14771_v42, %v14698_v58  ;;  %v13663_v58 = vld [vmem:[%s16909_s3 + $0x1a8] sm:$0xff]  }
 0x1bf   :  { %12467 = vmatprep.mubr.bf16.mxu1 %v1597_v43  ;;  %12476 = vmatpush3.bf16.msra.mxu1 %v13652_v6  ;;  %v13659_v6 = vld [vmem:[%s16909_s3 + $0x188] sm:$0xff]   ;;  %v13660_v43 = vld [vmem:[%s16909_s3 + $0x190] sm:$0xff]  }
 0x1c0   :  { %12477 = vmatprep.subr.bf16.mxu1 %v13653_v50  ;;  %v14251_v42 = vld [vmem:[#allocation2 + $0x9] sm:$0xff] }
 0x1c3   :  { %12478 = vmatpush3.bf16.msra.mxu1 %v13653_v50  ;;  %v16933_v50 = vpack.c.bf16 %v14600_v25, %v14598_v24  ;;  %v13662_v24 = vld [vmem:[%s16909_s3 + $0x1a0] sm:$0xff]  }
 0x1c4   :  { %12479 = vmatprep.subr.bf16.mxu1 %v13654_v59  ;;  %v1768_v25 = vld [vmem:[#allocation2 + $0x60] sm:$0xf] }
 0x1c6   :  { %12468 = vmatmul.mubr.bf16.gmra.mrb[24].mxu1 %v1598_v16  ;;  %v1774_v16 = vpack.c.bf16 %v1768_v25, %v14926_v5  ;;  %v13674_v25 = vld [vmem:[%s16909_s3 + $0x200] sm:$0xff]  }
 0x1c7   :  { %12480 = vmatpush3.bf16.msra.mxu1 %v13654_v59  ;;  %12487 = vmatprep.mubr.bf16.mxu1 %v1769_v20  ;;  %v13661_v59 = vld [vmem:[%s16909_s3 + $0x198] sm:$0xff]  }
 0x1c8   :  { %12481 = vmatprep.subr.bf16.mxu1 %v13655_v12 }
 0x1cb   :  { %12482 = vmatpush3.bf16.msra.mxu1 %v13655_v12  ;;  %v14252_v12 = vld [vmem:[#allocation2 + $0x11] sm:$0xff] }
 0x1cc   :  { %12483 = vmatprep.subr.bf16.mxu1 %v13656_v14  ;;  %v1945_v20 = vpack.c.bf16 %v14252_v12, %v14251_v42  ;;  %v2124_v42 = vpack.c.bf16 %v14801_v9, %v14796_v27  ;;  %v15002_v27 = vld [vmem:[#allocation2 + $0x5a] sm:$0xff]  ;;  %v13679_v12 = vld [vmem:[%s16909_s3 + $0x228] sm:$0xff]  }
 0x1cf   :  { %12484 = vmatpush3.bf16.msra.mxu1 %v13656_v14  ;;  %v13664_v14 = vld [vmem:[%s16909_s3 + $0x1b0] sm:$0xff]  }
 0x1d0   :  { %12485 = vmatprep.subr.bf16.mxu1 %v13657_v38 }
 0x1d3   :  { %12486 = vmatpush3.bf16.msra.mxu1 %v13657_v38  ;;  %v13665_v38 = vld [vmem:[%s16909_s3 + $0x1b8] sm:$0xff]  }
 0x1d4   :  { %12499 = vmatprep.subr.bf16.mxu1 %v13658_v44 }
 0x1d6   :  { %12488 = vmatmul.mubr.bf16.vlgmr.msra.gmra.mrb[16].mxu1 %v16933_v50  ;;  %v16934_v50 = vpack.c.bf16 %v14591_v13, %v14564_v19  ;;  %v1949_v19 = vpack.c.bf16 %v14696_v53, %v14643_v3  ;;  %v13670_v13 = vld [vmem:[%s16909_s3 + $0x1e0] sm:$0xff]   ;;  %v16935_v3 = vpack.c.bf16 %v14550_v0, %v14548_v62  ;;  %v13672_v53 = vld [vmem:[%s16909_s3 + $0x1f0] sm:$0xff]   ;;  %v13675_v62 = vld [vmem:[%s16909_s3 + $0x208] sm:$0xff]   ;;  %v2123_v0 = vpack.c.bf16 %v14803_v22, %v14787_v15 }
 0x1d7   :  { %12491 = vmatprep.mubr.bf16.mxu1 %v1771_v47  ;;  %12500 = vmatpush3.bf16.msra.mxu1 %v13658_v44  ;;  %v13666_v44 = vld [vmem:[%s16909_s3 + $0x1c0] sm:$0xff]   ;;  %v1947_v47 = vpack.c.bf16 %v14641_v51, %v14663_v56  ;;  %v13669_v56 = vld [vmem:[%s16909_s3 + $0x1d8] sm:$0xff]  }
 0x1d8   :  { %12501 = vmatprep.subr.bf16.mxu1 %v13659_v6  ;;  %v1944_v51 = vld [vmem:[#allocation2 + $0x61] sm:$0xf]  ;;  %v13677_v15 = vld [vmem:[%s16909_s3 + $0x218] sm:$0xff]  }
 0x1d9   :  { %v2120_v22 = vld [vmem:[#allocation2 + $0x62] sm:$0xf] }
 0x1da   :  { %v2126_v9 = vpack.c.bf16 %v2120_v22, %v15002_v27 }
 0x1db   :  { %12502 = vmatpush3.bf16.msra.mxu1 %v13659_v6  ;;  %v13667_v6 = vld [vmem:[%s16909_s3 + $0x1c8] sm:$0xff]  }
 0x1dc   :  { %12503 = vmatprep.subr.bf16.mxu1 %v13660_v43 }
 0x1de   :  { %12492 = vmatmul.mubr.bf16.gmra.mrb[20].mxu1 %v14702_v10 }
 0x1df   :  { %12495 = vmatprep.mubr.bf16.mxu1 %v1773_v21  ;;  %12504 = vmatpush3.bf16.msra.mxu1 %v13660_v43  ;;  %v13668_v43 = vld [vmem:[%s16909_s3 + $0x1d0] sm:$0xff]   ;;  %v13671_v21 = vld [vmem:[%s16909_s3 + $0x1e8] sm:$0xff]  }
 0x1e0   :  { %12505 = vmatprep.subr.bf16.mxu1 %v13661_v59 }
 0x1e3   :  { %12506 = vmatpush3.bf16.msra.mxu1 %v13661_v59  ;;  %v1948_v59 = vpack.c.bf16 %v14616_v39, %v14614_v26  ;;  %v14962_v26 = vld [vmem:[#allocation2 + $0x59] sm:$0xff] }
 0x1e4   :  { %12507 = vmatprep.subr.bf16.mxu1 %v13662_v24  ;;  %v1950_v39 = vpack.c.bf16 %v1944_v51, %v14962_v26  ;;  %v13695_v51 = vld [vmem:[%s16909_s3 + $0x2a8] sm:$0xff]  }
 0x1e6   :  { %12496 = vmatmul.mubr.bf16.gmra.mrb[24].mxu1 %v1774_v16  ;;  %v16936_v16 = vpack.c.bf16 %v14602_v28, %v14608_v35  ;;  %v16937_v28 = vpack.c.bf16 %v14677_v4, %v14671_v55  ;;  %v13678_v35 = vld [vmem:[%s16909_s3 + $0x220] sm:$0xff]   ;;  %v16938_v55 = vpack.c.bf16 %v14569_v7, %v14566_v1  ;;  %v13680_v4 = vld [vmem:[%s16909_s3 + $0x230] sm:$0xff]   ;;  %v13683_v1 = vld [vmem:[%s16909_s3 + $0x248] sm:$0xff]   ;;  %v16939_v7 = vpack.c.bf16 %v14618_v40, %v14610_v63 }
 0x1e7   :  { %12508 = vmatpush3.bf16.msra.mxu1 %v13662_v24  ;;  %12515 = vmatprep.mubr.bf16.mxu1 %v1945_v20  ;;  %v13673_v24 = vld [vmem:[%s16909_s3 + $0x1f8] sm:$0xff]   ;;  %v16941_v40 = vpack.c.bf16 %v14707_v57, %v14705_v45  ;;  %v16942_v45 = vpack.c.bf16 %v14586_v2, %v14584_v48  ;;  %v13688_v57 = vld [vmem:[%s16909_s3 + $0x270] sm:$0xff]   ;;  %v13691_v48 = vld [vmem:[%s16909_s3 + $0x288] sm:$0xff]   ;;  %v16943_v2 = vpack.c.bf16 %v14632_v49, %v14612_v36 }
 0x1e8   :  { %12509 = vmatprep.subr.bf16.mxu1 %v13663_v58  ;;  %v13681_v20 = vld [vmem:[%s16909_s3 + $0x238] sm:$0xff]   ;;  %v16945_v49 = vpack.c.bf16 %v14714_v33, %v14712_v30 }
 0x1e9   :  { %v13685_v63 = vld [vmem:[%s16909_s3 + $0x258] sm:$0xff]  }
 0x1ea   :  { %v13693_v36 = vld [vmem:[%s16909_s3 + $0x298] sm:$0xff]  }
 0x1eb   :  { %12510 = vmatpush3.bf16.msra.mxu1 %v13663_v58  ;;  %v13676_v58 = vld [vmem:[%s16909_s3 + $0x210] sm:$0xff]   ;;  %v14253_v30 = vld [vmem:[#allocation2 + $0x18] sm:$0xff] }
 0x1ec   :  { %12511 = vmatprep.subr.bf16.mxu1 %v13664_v14 }
 0x1ef   :  { %12512 = vmatpush3.bf16.msra.mxu1 %v13664_v14  ;;  %v13682_v14 = vld [vmem:[%s16909_s3 + $0x240] sm:$0xff]  }
 0x1f0   :  { %12513 = vmatprep.subr.bf16.mxu1 %v13665_v38 }
 0x1f3   :  { %12514 = vmatpush3.bf16.msra.mxu1 %v13665_v38  ;;  %v16940_v38 = vpack.c.bf16 %v14673_v18, %v14679_v61  ;;  %v13686_v18 = vld [vmem:[%s16909_s3 + $0x260] sm:$0xff]  }
 0x1f4   :  { %12527 = vmatprep.subr.bf16.mxu1 %v13666_v44  ;;  %v15043_v61 = vld [vmem:[#allocation2 + $0x5b] sm:$0xff] }
 0x1f6   :  { %12516 = vmatmul.mubr.bf16.vlgmr.msra.gmra.mrb[16].mxu1 %v16934_v50  ;;  %v13689_v50 = vld [vmem:[%s16909_s3 + $0x278] sm:$0xff]  }
 0x1f7   :  { %12519 = vmatprep.mubr.bf16.mxu1 %v1947_v47  ;;  %12528 = vmatpush3.bf16.msra.mxu1 %v13666_v44  ;;  %v13684_v44 = vld [vmem:[%s16909_s3 + $0x250] sm:$0xff]   ;;  %v13687_v47 = vld [vmem:[%s16909_s3 + $0x268] sm:$0xff]  }
 0x1f8   :  { %12529 = vmatprep.subr.bf16.mxu1 %v13667_v6 }
 0x1fb   :  { %12530 = vmatpush3.bf16.msra.mxu1 %v13667_v6  ;;  %v2300_v6 = vpack.c.bf16 %v14843_v8, %v14836_v34  ;;  %v2296_v34 = vld [vmem:[#allocation2 + $0x63] sm:$0xf] }
 0x1fc   :  { %12531 = vmatprep.subr.bf16.mxu1 %v13668_v43  ;;  %v2302_v8 = vpack.c.bf16 %v2296_v34, %v15043_v61  ;;  %v13708_v34 = vld [vmem:[%s16909_s3 + $0x310] sm:$0xff]  }
 0x1fe   :  { %12520 = vmatmul.mubr.bf16.gmra.mrb[20].mxu1 %v1948_v59  ;;  %v16944_v59 = vpack.c.bf16 %v14675_v46, %v14682_v31  ;;  %v13694_v46 = vld [vmem:[%s16909_s3 + $0x2a0] sm:$0xff]  }
 0x1ff   :  { %12523 = vmatprep.mubr.bf16.mxu1 %v1949_v19  ;;  %12532 = vmatpush3.bf16.msra.mxu1 %v13668_v43  ;;  %v13690_v43 = vld [vmem:[%s16909_s3 + $0x280] sm:$0xff]   ;;  %v2476_v19 = vpack.c.bf16 %v14881_v23, %v14874_v29 }
 0x200   :  { %12533 = vmatprep.subr.bf16.mxu1 %v13669_v56  ;;  %v15084_v31 = vld [vmem:[#allocation2 + $0x5c] sm:$0xff]  ;;  %v2472_v29 = vld [vmem:[#allocation2 + $0x64] sm:$0xf] }
 0x201   :  { %v2478_v23 = vpack.c.bf16 %v2472_v29, %v15084_v31  ;;  %v15182_v29 = vld [vmem:[#allocation2 + $0x3a] sm:$0xff] }
 0x203   :  { %12534 = vmatpush3.bf16.msra.mxu1 %v13669_v56  ;;  %v13692_v56 = vld [vmem:[%s16909_s3 + $0x290] sm:$0xff]  }
 0x204   :  { %12535 = vmatprep.subr.bf16.mxu1 %v13670_v13 }
 0x206   :  { %12524 = vmatmul.mubr.bf16.gmra.mrb[24].mxu1 %v1950_v39  ;;  %v13696_v39 = vld [vmem:[%s16909_s3 + $0x2b0] sm:$0xff]  }
 0x207   :  { %12536 = vmatpush3.bf16.msra.mxu1 %v13670_v13  ;;  %12543 = vmatprep.mubr.bf16.mxu1 %v16935_v3  ;;  %v2637_v13 = vld [vmem:[#allocation2 + $0x10] sm:$0xff]  ;;  %v13698_v3 = vld [vmem:[%s16909_s3 + $0x2c0] sm:$0xff]  }
 0x208   :  { %12537 = vmatprep.subr.bf16.mxu1 %v13671_v21  ;;  %v2649_v33 = vpack.c.bf16 %v14253_v30, %v2637_v13  ;;  %v15186_v13 = vld [vmem:[#allocation2 + $0x32] sm:$0xff] }
 0x20b   :  { %12538 = vmatpush3.bf16.msra.mxu1 %v13671_v21  ;;  %v13697_v21 = vld [vmem:[%s16909_s3 + $0x2b8] sm:$0xff]  }
 0x20c   :  { %12539 = vmatprep.subr.bf16.mxu1 %v13672_v53 }
 0x20f   :  { %12540 = vmatpush3.bf16.msra.mxu1 %v13672_v53  ;;  %v15099_v53 = vld [vmem:[#allocation2 + $0x28] sm:$0xff] }
 0x210   :  { %12541 = vmatprep.subr.bf16.mxu1 %v13673_v24 }
 0x213   :  { %12542 = vmatpush3.bf16.msra.mxu1 %v13673_v24  ;;  %v14254_v24 = vld [vmem:[#allocation2 + $0x20] sm:$0xff] }
 0x214   :  { %12555 = vmatprep.subr.bf16.mxu1 %v13674_v25 }
 0x216   :  { %12544 = vmatmul.mubr.bf16.vlgmr.msra.gmra.mrb[16].mxu1 %v16936_v16  ;;  %v15109_v16 = vld [vmem:[#allocation2 + $0x50] sm:$0xff] }
 0x217   :  { %12547 = vmatprep.mubr.bf16.mxu1 %v2123_v0  ;;  %12556 = vmatpush3.bf16.msra.mxu1 %v13674_v25  ;;  %v2650_v25 = vpack.c.bf16 %v15099_v53, %v14254_v24  ;;  %v13700_v0 = vld [vmem:[%s16909_s3 + $0x2d0] sm:$0xff]  }
 0x218   :  { %12557 = vmatprep.subr.bf16.mxu1 %v13675_v62 }
 0x21b   :  { %12558 = vmatpush3.bf16.msra.mxu1 %v13675_v62  ;;  %v13699_v62 = vld [vmem:[%s16909_s3 + $0x2c8] sm:$0xff]  }
 0x21c   :  { %12559 = vmatprep.subr.bf16.mxu1 %v13676_v58 }
 0x21e   :  { %12548 = vmatmul.mubr.bf16.gmra.mrb[20].mxu1 %v2124_v42  ;;  %v2653_v42 = vpack.c.bf16 %v14926_v5, %v15109_v16  ;;  %v13703_v5 = vld [vmem:[%s16909_s3 + $0x2e8] sm:$0xff]  }
 0x21f   :  { %12551 = vmatprep.mubr.bf16.mxu1 %v16937_v28  ;;  %12560 = vmatpush3.bf16.msra.mxu1 %v13676_v58  ;;  %v13701_v58 = vld [vmem:[%s16909_s3 + $0x2d8] sm:$0xff]   ;;  %v2648_v28 = vld [vmem:[#allocation2 + $0x68] sm:$0xf] }
 0x220   :  { %12561 = vmatprep.subr.bf16.mxu1 %v13677_v15 }
 0x223   :  { %12562 = vmatpush3.bf16.msra.mxu1 %v13677_v15  ;;  %v13702_v15 = vld [vmem:[%s16909_s3 + $0x2e0] sm:$0xff]  }
 0x224   :  { %12563 = vmatprep.subr.bf16.mxu1 %v13678_v35 }
 0x226   :  { %12552 = vmatmul.mubr.bf16.gmra.mrb[24].mxu1 %v2126_v9  ;;  %v2813_v9 = vld [vmem:[#allocation2 + $0x11] sm:$0xff] }
 0x227   :  { %12564 = vmatpush3.bf16.msra.mxu1 %v13678_v35  ;;  %12571 = vmatprep.mubr.bf16.mxu1 %v16938_v55  ;;  %v15120_v35 = vld [vmem:[#allocation2 + $0x60] sm:$0xff] }
 0x228   :  { %12565 = vmatprep.subr.bf16.mxu1 %v13679_v12  ;;  %v2654_v22 = vpack.c.bf16 %v2648_v28, %v15120_v35 }
 0x22b   :  { %12566 = vmatpush3.bf16.msra.mxu1 %v13679_v12  ;;  %v14255_v12 = vld [vmem:[#allocation2 + $0x19] sm:$0xff] }
 0x22c   :  { %12567 = vmatprep.subr.bf16.mxu1 %v13680_v4  ;;  %v2825_v55 = vpack.c.bf16 %v14255_v12, %v2813_v9  ;;  %v14257_v9 = vld [vmem:[#allocation2 + $0x1b] sm:$0xff]  ;;  %v13720_v12 = vld [vmem:[%s16909_s3 + $0x370] sm:$0xff]  }
 0x22f   :  { %12568 = vmatpush3.bf16.msra.mxu1 %v13680_v4  ;;  %v13704_v4 = vld [vmem:[%s16909_s3 + $0x2f0] sm:$0xff]  }
 0x230   :  { %12569 = vmatprep.subr.bf16.mxu1 %v13681_v20 }
 0x233   :  { %12570 = vmatpush3.bf16.msra.mxu1 %v13681_v20  ;;  %v13705_v20 = vld [vmem:[%s16909_s3 + $0x2f8] sm:$0xff]  }
 0x234   :  { %12583 = vmatprep.subr.bf16.mxu1 %v13682_v14 }
 0x236   :  { %12572 = vmatmul.mubr.bf16.vlgmr.msra.gmra.mrb[16].mxu1 %v16939_v7  ;;  %v15137_v7 = vld [vmem:[#allocation2 + $0x29] sm:$0xff] }
 0x237   :  { %12575 = vmatprep.mubr.bf16.mxu1 %v16940_v38  ;;  %12584 = vmatpush3.bf16.msra.mxu1 %v13682_v14  ;;  %v13706_v14 = vld [vmem:[%s16909_s3 + $0x300] sm:$0xff]   ;;  %v15139_v38 = vld [vmem:[#allocation2 + $0x31] sm:$0xff] }
 0x238   :  { %12585 = vmatprep.subr.bf16.mxu1 %v13683_v1 }
 0x23b   :  { %12586 = vmatpush3.bf16.msra.mxu1 %v13683_v1  ;;  %v15135_v1 = vld [vmem:[#allocation2 + $0x39] sm:$0xff] }
 0x23c   :  { %12587 = vmatprep.subr.bf16.mxu1 %v13684_v44 }
 0x23e   :  { %12576 = vmatmul.mubr.bf16.gmra.mrb[20].mxu1 %v2300_v6  ;;  %v14256_v6 = vld [vmem:[#allocation2 + $0x21] sm:$0xff] }
 0x23f   :  { %12579 = vmatprep.mubr.bf16.mxu1 %v16941_v40  ;;  %12588 = vmatpush3.bf16.msra.mxu1 %v13684_v44  ;;  %v2827_v44 = vpack.c.bf16 %v15135_v1, %v15139_v38  ;;  %v13707_v40 = vld [vmem:[%s16909_s3 + $0x308] sm:$0xff]  }
 0x240   :  { %12589 = vmatprep.subr.bf16.mxu1 %v13685_v63 }
 0x243   :  { %12590 = vmatpush3.bf16.msra.mxu1 %v13685_v63  ;;  %v2826_v63 = vpack.c.bf16 %v15137_v7, %v14256_v6 }
 0x244   :  { %12591 = vmatprep.subr.bf16.mxu1 %v13686_v18 }
 0x246   :  { %12580 = vmatmul.mubr.bf16.gmra.mrb[24].mxu1 %v2302_v8  ;;  %v15152_v8 = vld [vmem:[#allocation2 + $0x49] sm:$0xff] }
 0x247   :  { %12592 = vmatpush3.bf16.msra.mxu1 %v13686_v18  ;;  %12599 = vmatprep.mubr.bf16.mxu1 %v16942_v45  ;;  %v15147_v18 = vld [vmem:[#allocation2 + $0x41] sm:$0xff]  ;;  %v15156_v45 = vld [vmem:[#allocation2 + $0x51] sm:$0xff] }
 0x248   :  { %12593 = vmatprep.subr.bf16.mxu1 %v13687_v47 }
 0x24b   :  { %12594 = vmatpush3.bf16.msra.mxu1 %v13687_v47  ;;  %v2828_v47 = vpack.c.bf16 %v15152_v8, %v15147_v18 }
 0x24c   :  { %12595 = vmatprep.subr.bf16.mxu1 %v13688_v57 }
 0x24f   :  { %12596 = vmatpush3.bf16.msra.mxu1 %v13688_v57  ;;  %v13709_v57 = vld [vmem:[%s16909_s3 + $0x318] sm:$0xff]  }
 0x250   :  { %12597 = vmatprep.subr.bf16.mxu1 %v13689_v50 }
 0x253   :  { %12598 = vmatpush3.bf16.msra.mxu1 %v13689_v50  ;;  %v2829_v50 = vpack.c.bf16 %v14962_v26, %v15156_v45  ;;  %v13711_v26 = vld [vmem:[%s16909_s3 + $0x328] sm:$0xff]  }
 0x254   :  { %12611 = vmatprep.subr.bf16.mxu1 %v13690_v43 }
 0x256   :  { %12600 = vmatmul.mubr.bf16.vlgmr.msra.gmra.mrb[16].mxu1 %v16943_v2  ;;  %v15166_v2 = vld [vmem:[#allocation2 + $0x61] sm:$0xff] }
 0x257   :  { %12603 = vmatprep.mubr.bf16.mxu1 %v16944_v59  ;;  %12612 = vmatpush3.bf16.msra.mxu1 %v13690_v43  ;;  %v13710_v43 = vld [vmem:[%s16909_s3 + $0x320] sm:$0xff]  }
 0x258   :  { %12613 = vmatprep.subr.bf16.mxu1 %v13691_v48 }
 0x25b   :  { %12614 = vmatpush3.bf16.msra.mxu1 %v13691_v48  ;;  %v2824_v48 = vld [vmem:[#allocation2 + $0x69] sm:$0xf] }
 0x25c   :  { %12615 = vmatprep.subr.bf16.mxu1 %v13692_v56  ;;  %v2830_v59 = vpack.c.bf16 %v2824_v48, %v15166_v2  ;;  %v13725_v48 = vld [vmem:[%s16909_s3 + $0x398] sm:$0xff]  }
 0x25e   :  { %12604 = vmatmul.mubr.bf16.gmra.mrb[20].mxu1 %v2476_v19 }
 0x25f   :  { %12607 = vmatprep.mubr.bf16.mxu1 %v16945_v49  ;;  %12616 = vmatpush3.bf16.msra.mxu1 %v13692_v56  ;;  %v2989_v56 = vld [vmem:[#allocation2 + $0x12] sm:$0xff] }
 0x260   :  { %12617 = vmatprep.subr.bf16.mxu1 %v13693_v36  ;;  %v3001_v19 = vpack.c.bf16 %v14729_v32, %v2989_v56  ;;  %v13713_v49 = vld [vmem:[%s16909_s3 + $0x338] sm:$0xff]  }
 0x263   :  { %12618 = vmatpush3.bf16.msra.mxu1 %v13693_v36  ;;  %v13712_v36 = vld [vmem:[%s16909_s3 + $0x330] sm:$0xff]  }
 0x264   :  { %12619 = vmatprep.subr.bf16.mxu1 %v13694_v46 }
 0x266   :  { %12608 = vmatmul.mubr.bf16.gmra.mrb[24].mxu1 %v2478_v23  ;;  %v15184_v23 = vld [vmem:[#allocation2 + $0x2a] sm:$0xff] }
 0x267   :  { %12620 = vmatpush3.bf16.msra.mxu1 %v13694_v46  ;;  %12627 = vmatprep.mubr.bf16.mxu1 %v2649_v33  ;;  %v13714_v46 = vld [vmem:[%s16909_s3 + $0x340] sm:$0xff]   ;;  %v3002_v30 = vpack.c.bf16 %v15184_v23, %v14731_v37  ;;  %v13715_v33 = vld [vmem:[%s16909_s3 + $0x348] sm:$0xff]  }
 0x268   :  { %12621 = vmatprep.subr.bf16.mxu1 %v13695_v51 }
 0x26b   :  { %12622 = vmatpush3.bf16.msra.mxu1 %v13695_v51  ;;  %v3003_v51 = vpack.c.bf16 %v15182_v29, %v15186_v13 }
 0x26c   :  { %12623 = vmatprep.subr.bf16.mxu1 %v13696_v39 }
 0x26f   :  { %12624 = vmatpush3.bf16.msra.mxu1 %v13696_v39  ;;  %v15195_v39 = vld [vmem:[#allocation2 + $0x42] sm:$0xff] }
 0x270   :  { %12625 = vmatprep.subr.bf16.mxu1 %v13697_v21 }
 0x273   :  { %12626 = vmatpush3.bf16.msra.mxu1 %v13697_v21  ;;  %v13716_v21 = vld [vmem:[%s16909_s3 + $0x350] sm:$0xff]  }
 0x274   :  { %12639 = vmatprep.subr.bf16.mxu1 %v13698_v3 }
 0x276   :  { %12628 = vmatmul.mubr.bf16.vlgmr.msra.gmra.mrb[16].mxu1 %v2650_v25  ;;  %v15204_v25 = vld [vmem:[#allocation2 + $0x52] sm:$0xff] }
 0x277   :  { %12640 = vmatpush3.bf16.msra.mxu1 %v13698_v3  ;;  %12631 = vmatprep.mubr.bf16.mxu1 %v14702_v10  ;;  %v15200_v3 = vld [vmem:[#allocation2 + $0x4a] sm:$0xff] }
 0x278   :  { %12641 = vmatprep.subr.bf16.mxu1 %v13699_v62  ;;  %v3004_v24 = vpack.c.bf16 %v15200_v3, %v15195_v39 }
 0x27b   :  { %12642 = vmatpush3.bf16.msra.mxu1 %v13699_v62  ;;  %v13717_v62 = vld [vmem:[%s16909_s3 + $0x358] sm:$0xff]  }
 0x27c   :  { %12643 = vmatprep.subr.bf16.mxu1 %v13700_v0 }
 0x27e   :  { %12632 = vmatmul.mubr.bf16.gmra.mrb[20].mxu1 %v14702_v10 }
 0x27f   :  { %12635 = vmatprep.mubr.bf16.mxu1 %v2653_v42  ;;  %12644 = vmatpush3.bf16.msra.mxu1 %v13700_v0  ;;  %v3005_v0 = vpack.c.bf16 %v15002_v27, %v15204_v25  ;;  %v3000_v42 = vld [vmem:[#allocation2 + $0x6a] sm:$0xf] }
 0x280   :  { %12645 = vmatprep.subr.bf16.mxu1 %v13701_v58  ;;  %v13719_v27 = vld [vmem:[%s16909_s3 + $0x368] sm:$0xff]  }
 0x283   :  { %12646 = vmatpush3.bf16.msra.mxu1 %v13701_v58  ;;  %v13718_v58 = vld [vmem:[%s16909_s3 + $0x360] sm:$0xff]  }
 0x284   :  { %12647 = vmatprep.subr.bf16.mxu1 %v13702_v15 }
 0x286   :  { %12636 = vmatmul.mubr.bf16.gmra.mrb[24].mxu1 %v2654_v22  ;;  %v3165_v22 = vld [vmem:[#allocation2 + $0x13] sm:$0xff] }
 0x287   :  { %12648 = vmatpush3.bf16.msra.mxu1 %v13702_v15  ;;  %12655 = vmatprep.mubr.bf16.mxu1 %v2825_v55  ;;  %v15214_v15 = vld [vmem:[#allocation2 + $0x62] sm:$0xff]  ;;  %v13721_v55 = vld [vmem:[%s16909_s3 + $0x378] sm:$0xff]  }
 0x288   :  { %12649 = vmatprep.subr.bf16.mxu1 %v13703_v5  ;;  %v3006_v28 = vpack.c.bf16 %v3000_v42, %v15214_v15 }
 0x28b   :  { %12650 = vmatpush3.bf16.msra.mxu1 %v13703_v5  ;;  %v3177_v5 = vpack.c.bf16 %v14257_v9, %v3165_v22  ;;  %v13732_v9 = vld [vmem:[%s16909_s3 + $0x3d0] sm:$0xff]  }
 0x28c   :  { %12651 = vmatprep.subr.bf16.mxu1 %v13704_v4 }
 0x28f   :  { %12652 = vmatpush3.bf16.msra.mxu1 %v13704_v4  ;;  %v13722_v4 = vld [vmem:[%s16909_s3 + $0x380] sm:$0xff]  }
 0x290   :  { %12653 = vmatprep.subr.bf16.mxu1 %v13705_v20 }
 0x293   :  { %12654 = vmatpush3.bf16.msra.mxu1 %v13705_v20  ;;  %v15229_v20 = vld [vmem:[#allocation2 + $0x3b] sm:$0xff] }
 0x294   :  { %12667 = vmatprep.subr.bf16.mxu1 %v13706_v14 }
 0x296   :  { %12656 = vmatmul.mubr.bf16.vlgmr.msra.gmra.mrb[16].mxu1 %v2826_v63  ;;  %v14258_v63 = vld [vmem:[#allocation2 + $0x23] sm:$0xff] }
 0x297   :  { %12668 = vmatpush3.bf16.msra.mxu1 %v13706_v14  ;;  %12659 = vmatprep.mubr.bf16.mxu1 %v2827_v44  ;;  %v15231_v14 = vld [vmem:[#allocation2 + $0x2b] sm:$0xff]  ;;  %v15233_v44 = vld [vmem:[#allocation2 + $0x33] sm:$0xff] }
 0x298   :  { %12669 = vmatprep.subr.bf16.mxu1 %v13707_v40  ;;  %v3179_v6 = vpack.c.bf16 %v15229_v20, %v15233_v44 }
 0x29b   :  { %12670 = vmatpush3.bf16.msra.mxu1 %v13707_v40  ;;  %v3178_v40 = vpack.c.bf16 %v15231_v14, %v14258_v63 }
 0x29c   :  { %12671 = vmatprep.subr.bf16.mxu1 %v13708_v34 }
 0x29e   :  { %12660 = vmatmul.mubr.bf16.gmra.mrb[20].mxu1 %v2828_v47  ;;  %v13724_v47 = vld [vmem:[%s16909_s3 + $0x390] sm:$0xff]  }
 0x29f   :  { %12663 = vmatprep.mubr.bf16.mxu1 %v2829_v50  ;;  %12672 = vmatpush3.bf16.msra.mxu1 %v13708_v34  ;;  %v13723_v34 = vld [vmem:[%s16909_s3 + $0x388] sm:$0xff]  }
 0x2a0   :  { %12673 = vmatprep.subr.bf16.mxu1 %v13709_v57  ;;  %v14259_v50 = vld [vmem:[#allocation2 + $0x4b] sm:$0xff] }
 0x2a3   :  { %12674 = vmatpush3.bf16.msra.mxu1 %v13709_v57  ;;  %v15244_v57 = vld [vmem:[#allocation2 + $0x43] sm:$0xff] }
 0x2a4   :  { %12675 = vmatprep.subr.bf16.mxu1 %v13710_v43 }
 0x2a6   :  { %12664 = vmatmul.mubr.bf16.gmra.mrb[24].mxu1 %v2830_v59  ;;  %v14260_v59 = vld [vmem:[#allocation2 + $0x53] sm:$0xff] }
 0x2a7   :  { %12676 = vmatpush3.bf16.msra.mxu1 %v13710_v43  ;;  %12683 = vmatprep.mubr.bf16.mxu1 %v3001_v19  ;;  %v3180_v43 = vpack.c.bf16 %v14259_v50, %v15244_v57  ;;  %v3181_v56 = vpack.c.bf16 %v15043_v61, %v14260_v59  ;;  %v3176_v19 = vld [vmem:[#allocation2 + $0x6b] sm:$0xf]  ;;  %v13737_v59 = vld [vmem:[%s16909_s3 + $0x3f8] sm:$0xff]  }
 0x2a8   :  { %12677 = vmatprep.subr.bf16.mxu1 %v13711_v26  ;;  %v13727_v61 = vld [vmem:[%s16909_s3 + $0x3a8] sm:$0xff]  }
 0x2ab   :  { %12678 = vmatpush3.bf16.msra.mxu1 %v13711_v26  ;;  %v13726_v26 = vld [vmem:[%s16909_s3 + $0x3a0] sm:$0xff]  }
 0x2ac   :  { %12679 = vmatprep.subr.bf16.mxu1 %v13712_v36 }
 0x2af   :  { %12680 = vmatpush3.bf16.msra.mxu1 %v13712_v36  ;;  %v15254_v36 = vld [vmem:[#allocation2 + $0x63] sm:$0xff] }
 0x2b0   :  { %12681 = vmatprep.subr.bf16.mxu1 %v13713_v49 }
 0x2b3   :  { %12682 = vmatpush3.bf16.msra.mxu1 %v13713_v49  ;;  %v3182_v49 = vpack.c.bf16 %v3176_v19, %v15254_v36  ;;  %v13740_v19 = vld [vmem:[%s16909_s3 + $0x410] sm:$0xff]  }
 0x2b4   :  { %12695 = vmatprep.subr.bf16.mxu1 %v13714_v46 }
 0x2b6   :  { %12684 = vmatmul.mubr.bf16.vlgmr.msra.gmra.mrb[16].mxu1 %v3002_v30 }
 0x2b7   :  { %12696 = vmatpush3.bf16.msra.mxu1 %v13714_v46  ;;  %12687 = vmatprep.mubr.bf16.mxu1 %v3003_v51  ;;  %v3341_v46 = vld [vmem:[#allocation2 + $0x14] sm:$0xff]  ;;  %v14261_v51 = vld [vmem:[#allocation2 + $0x1c] sm:$0xff] }
 0x2b8   :  { %12697 = vmatprep.subr.bf16.mxu1 %v13715_v33  ;;  %v3353_v30 = vpack.c.bf16 %v14261_v51, %v3341_v46  ;;  %v13741_v46 = vld [vmem:[%s16909_s3 + $0x418] sm:$0xff]   ;;  %v15335_v51 = vld [vmem:[#allocation2 + $0x68] sm:$0xff] }
 0x2bb   :  { %12698 = vmatpush3.bf16.msra.mxu1 %v13715_v33  ;;  %v13728_v33 = vld [vmem:[%s16909_s3 + $0x3b0] sm:$0xff]  }
 0x2bc   :  { %12699 = vmatprep.subr.bf16.mxu1 %v13716_v21 }
 0x2be   :  { %12688 = vmatmul.mubr.bf16.gmra.mrb[20].mxu1 %v3004_v24  ;;  %v13730_v24 = vld [vmem:[%s16909_s3 + $0x3c0] sm:$0xff]  }
 0x2bf   :  { %12691 = vmatprep.mubr.bf16.mxu1 %v3005_v0  ;;  %12700 = vmatpush3.bf16.msra.mxu1 %v13716_v21  ;;  %v13729_v21 = vld [vmem:[%s16909_s3 + $0x3b8] sm:$0xff]   ;;  %v15271_v0 = vld [vmem:[#allocation2 + $0x2c] sm:$0xff] }
 0x2c0   :  { %12701 = vmatprep.subr.bf16.mxu1 %v13717_v62 }
 0x2c3   :  { %12702 = vmatpush3.bf16.msra.mxu1 %v13717_v62  ;;  %v15269_v62 = vld [vmem:[#allocation2 + $0x3c] sm:$0xff] }
 0x2c4   :  { %12703 = vmatprep.subr.bf16.mxu1 %v13718_v58 }
 0x2c6   :  { %12692 = vmatmul.mubr.bf16.gmra.mrb[24].mxu1 %v3006_v28  ;;  %v14262_v28 = vld [vmem:[#allocation2 + $0x24] sm:$0xff] }
 0x2c7   :  { %12704 = vmatpush3.bf16.msra.mxu1 %v13718_v58  ;;  %12711 = vmatprep.mubr.bf16.mxu1 %v3177_v5  ;;  %v15273_v58 = vld [vmem:[#allocation2 + $0x34] sm:$0xff]  ;;  %v3354_v22 = vpack.c.bf16 %v15271_v0, %v14262_v28  ;;  %v15284_v5 = vld [vmem:[#allocation2 + $0x44] sm:$0xff] }
 0x2c8   :  { %12705 = vmatprep.subr.bf16.mxu1 %v13719_v27  ;;  %v3355_v42 = vpack.c.bf16 %v15269_v62, %v15273_v58  ;;  %v13747_v28 = vld [vmem:[%s16909_s3 + $0x448] sm:$0xff]  }
 0x2cb   :  { %12706 = vmatpush3.bf16.msra.mxu1 %v13719_v27  ;;  %v13731_v27 = vld [vmem:[%s16909_s3 + $0x3c8] sm:$0xff]  }
 0x2cc   :  { %12707 = vmatprep.subr.bf16.mxu1 %v13720_v12 }
 0x2cf   :  { %12708 = vmatpush3.bf16.msra.mxu1 %v13720_v12  ;;  %v14263_v12 = vld [vmem:[#allocation2 + $0x4c] sm:$0xff] }
 0x2d0   :  { %12709 = vmatprep.subr.bf16.mxu1 %v13721_v55 }
 0x2d3   :  { %12710 = vmatpush3.bf16.msra.mxu1 %v13721_v55  ;;  %v3356_v55 = vpack.c.bf16 %v14263_v12, %v15284_v5  ;;  %v13751_v12 = vld [vmem:[%s16909_s3 + $0x468] sm:$0xff]  }
 0x2d4   :  { %12723 = vmatprep.subr.bf16.mxu1 %v13722_v4 }
 0x2d6   :  { %12712 = vmatmul.mubr.bf16.vlgmr.msra.gmra.mrb[16].mxu1 %v3178_v40  ;;  %v13734_v40 = vld [vmem:[%s16909_s3 + $0x3e0] sm:$0xff]  }
 0x2d7   :  { %12724 = vmatpush3.bf16.msra.mxu1 %v13722_v4  ;;  %12715 = vmatprep.mubr.bf16.mxu1 %v3179_v6  ;;  %v13733_v4 = vld [vmem:[%s16909_s3 + $0x3d8] sm:$0xff]  }
 0x2d8   :  { %12725 = vmatprep.subr.bf16.mxu1 %v13723_v34  ;;  %v14264_v6 = vld [vmem:[#allocation2 + $0x54] sm:$0xff] }
 0x2d9   :  { %v3357_v63 = vpack.c.bf16 %v15084_v31, %v14264_v6  ;;  %v16946_v31 = vpack.c.bf16 %v14626_v41, %v14624_v60  ;;  %v15312_v60 = vld [vmem:[#allocation2] sm:$0xff] }
 0x2da   :  { %v3530_v41 = vpack.c.bf16 %v15312_v60, %v15099_v53  ;;  %v15325_v53 = vld [vmem:[#allocation2 + $0x58] sm:$0xff]  ;;  %v13754_v6 = vld [vmem:[%s16909_s3 + $0x480] sm:$0xff]  }
 0x2db   :  { %12726 = vmatpush3.bf16.msra.mxu1 %v13723_v34  ;;  %v3352_v34 = vld [vmem:[#allocation2 + $0x6c] sm:$0xf] }
 0x2dc   :  { %12727 = vmatprep.subr.bf16.mxu1 %v13724_v47 }
 0x2de   :  { %12716 = vmatmul.mubr.bf16.gmra.mrb[20].mxu1 %v3180_v43  ;;  %v13735_v43 = vld [vmem:[%s16909_s3 + $0x3e8] sm:$0xff]  }
 0x2df   :  { %12719 = vmatprep.mubr.bf16.mxu1 %v3181_v56  ;;  %12728 = vmatpush3.bf16.msra.mxu1 %v13724_v47  ;;  %v15294_v47 = vld [vmem:[#allocation2 + $0x64] sm:$0xff] }
 0x2e0   :  { %12729 = vmatprep.subr.bf16.mxu1 %v13725_v48  ;;  %v3358_v50 = vpack.c.bf16 %v3352_v34, %v15294_v47  ;;  %v13738_v56 = vld [vmem:[%s16909_s3 + $0x400] sm:$0xff]  }
 0x2e1   :  { %v13758_v34 = vld [vmem:[%s16909_s3 + $0x4a0] sm:$0xff]  }
 0x2e3   :  { %12730 = vmatpush3.bf16.msra.mxu1 %v13725_v48  ;;  %v13736_v48 = vld [vmem:[%s16909_s3 + $0x3f0] sm:$0xff]  }
 0x2e4   :  { %12731 = vmatprep.subr.bf16.mxu1 %v13726_v26 }
 0x2e6   :  { %12720 = vmatmul.mubr.bf16.gmra.mrb[24].mxu1 %v3182_v49  ;;  %v3532_v49 = vpack.c.bf16 %v15109_v16, %v15312_v60  ;;  %v3528_v16 = vld [vmem:[#allocation2 + $0x70] sm:$0xf] }
 0x2e7   :  { %12732 = vmatpush3.bf16.msra.mxu1 %v13726_v26  ;;  %12739 = vmatprep.mubr.bf16.mxu1 %v3353_v30  ;;  %v13739_v26 = vld [vmem:[%s16909_s3 + $0x408] sm:$0xff]   ;;  %v3534_v30 = vpack.c.bf16 %v3528_v16, %v15335_v51  ;;  %v16953_v16 = vld [vmem:[#allocation15_spill] sm:$0xff] }
 0x2e8   :  { %12733 = vmatprep.subr.bf16.mxu1 %v13727_v61 }
 0x2eb   :  { %12734 = vmatpush3.bf16.msra.mxu1 %v13727_v61  ;;  %v3533_v61 = vpack.c.bf16 %v15120_v35, %v15325_v53  ;;  %v16947_v35 = vpack.c.bf16 %v14638_v54, %v14636_v52  ;;  %v3707_v52 = vpack.c.bf16 %v15147_v18, %v15135_v1  ;;  %v3706_v54 = vpack.c.bf16 %v15139_v38, %v15137_v7  ;;  %v15365_v18 = vld [vmem:[#allocation2 + $0x59] sm:$0xff] }
 0x2ec   :  { %12735 = vmatprep.subr.bf16.mxu1 %v13728_v33  ;;  %v3708_v1 = vpack.c.bf16 %v15156_v45, %v15152_v8  ;;  %v13749_v7 = vld [vmem:[%s16909_s3 + $0x458] sm:$0xff]   ;;  %v3709_v38 = vpack.c.bf16 %v15166_v2, %v15365_v18  ;;  %v3704_v8 = vld [vmem:[#allocation2 + $0x71] sm:$0xf]  ;;  %v16948_v2 = vpack.c.bf16 %v14731_v37, %v14729_v32  ;;  %v3883_v32 = vpack.c.bf16 %v15195_v39, %v15182_v29 }
 0x2ed   :  { %v3882_v37 = vpack.c.bf16 %v15186_v13, %v15184_v23  ;;  %v3884_v29 = vpack.c.bf16 %v15204_v25, %v15200_v3  ;;  %v15405_v39 = vld [vmem:[#allocation2 + $0x5a] sm:$0xff]  ;;  %v3880_v3 = vld [vmem:[#allocation2 + $0x72] sm:$0xf] }
 0x2ee   :  { %v13757_v23 = vld [vmem:[%s16909_s3 + $0x498] sm:$0xff]   ;;  %v3885_v13 = vpack.c.bf16 %v15214_v15, %v15405_v39  ;;  %v16949_v15 = vpack.c.bf16 %v14741_v11, %v14739_v17  ;;  %v4059_v17 = vpack.c.bf16 %v15244_v57, %v15229_v20  ;;  %v4058_v11 = vpack.c.bf16 %v15233_v44, %v15231_v14  ;;  %v16950_v44 = vld [vmem:[#allocation13_spill] sm:$0xff]  ;;  %v16951_v57 = vld [vmem:[#allocation12_spill] sm:$0xff] }
 0x2ef   :  { %12736 = vmatpush3.bf16.msra.mxu1 %v13728_v33  ;;  %v13743_v33 = vld [vmem:[%s16909_s3 + $0x428] sm:$0xff]   ;;  %v13765_v20 = vld [vmem:[%s16909_s3 + $0x4d8] sm:$0xff]  }
 0x2f0   :  { %12737 = vmatprep.subr.bf16.mxu1 %v13729_v21 }
 0x2f3   :  { %12738 = vmatpush3.bf16.msra.mxu1 %v13729_v21  ;;  %v13744_v21 = vld [vmem:[%s16909_s3 + $0x430] sm:$0xff]  }
 0x2f4   :  { %12751 = vmatprep.subr.bf16.mxu1 %v13730_v24 }
 0x2f6   :  { %12740 = vmatmul.mubr.bf16.vlgmr.msra.gmra.mrb[16].mxu1 %v3354_v22  ;;  %v13748_v22 = vld [vmem:[%s16909_s3 + $0x450] sm:$0xff]  }
 0x2f7   :  { %12752 = vmatpush3.bf16.msra.mxu1 %v13730_v24  ;;  %12743 = vmatprep.mubr.bf16.mxu1 %v3355_v42  ;;  %v13745_v24 = vld [vmem:[%s16909_s3 + $0x438] sm:$0xff]   ;;  %v13746_v42 = vld [vmem:[%s16909_s3 + $0x440] sm:$0xff]  }
 0x2f8   :  { %12753 = vmatprep.subr.bf16.mxu1 %v13731_v27 }
 0x2fb   :  { %12754 = vmatpush3.bf16.msra.mxu1 %v13731_v27  ;;  %v13750_v27 = vld [vmem:[%s16909_s3 + $0x460] sm:$0xff]  }
 0x2fc   :  { %12755 = vmatprep.subr.bf16.mxu1 %v13732_v9 }
 0x2fe   :  { %12744 = vmatmul.mubr.bf16.gmra.mrb[20].mxu1 %v3356_v55  ;;  %v13752_v55 = vld [vmem:[%s16909_s3 + $0x470] sm:$0xff]  }
 0x2ff   :  { %12747 = vmatprep.mubr.bf16.mxu1 %v3357_v63  ;;  %12756 = vmatpush3.bf16.msra.mxu1 %v13732_v9  ;;  %v15375_v9 = vld [vmem:[#allocation2 + $0x69] sm:$0xff] }
 0x300   :  { %12757 = vmatprep.subr.bf16.mxu1 %v13733_v4  ;;  %v3710_v45 = vpack.c.bf16 %v3704_v8, %v15375_v9  ;;  %v13755_v63 = vld [vmem:[%s16909_s3 + $0x488] sm:$0xff]  }
 0x301   :  { %v4398_v8 = vld [vmem:[#allocation2 + $0x28] sm:$0xff] }
 0x303   :  { %12758 = vmatpush3.bf16.msra.mxu1 %v13733_v4  ;;  %v13753_v4 = vld [vmem:[%s16909_s3 + $0x478] sm:$0xff]  }
 0x304   :  { %12759 = vmatprep.subr.bf16.mxu1 %v13734_v40 }
 0x306   :  { %12748 = vmatmul.mubr.bf16.gmra.mrb[24].mxu1 %v3358_v50  ;;  %v15415_v50 = vld [vmem:[#allocation2 + $0x6a] sm:$0xff] }
 0x307   :  { %12760 = vmatpush3.bf16.msra.mxu1 %v13734_v40  ;;  %12767 = vmatprep.mubr.bf16.mxu1 %v16946_v31  ;;  %v13756_v40 = vld [vmem:[%s16909_s3 + $0x490] sm:$0xff]   ;;  %v3886_v25 = vpack.c.bf16 %v3880_v3, %v15415_v50  ;;  %v4408_v3 = vld [vmem:[#allocation2 + $0x78] sm:$0xf] }
 0x308   :  { %12761 = vmatprep.subr.bf16.mxu1 %v13735_v43  ;;  %v13760_v31 = vld [vmem:[%s16909_s3 + $0x4b0] sm:$0xff]  }
 0x30b   :  { %12762 = vmatpush3.bf16.msra.mxu1 %v13735_v43  ;;  %v13759_v43 = vld [vmem:[%s16909_s3 + $0x4a8] sm:$0xff]  }
 0x30c   :  { %12763 = vmatprep.subr.bf16.mxu1 %v13736_v48 }
 0x30f   :  { %12764 = vmatpush3.bf16.msra.mxu1 %v13736_v48  ;;  %v13761_v48 = vld [vmem:[%s16909_s3 + $0x4b8] sm:$0xff]  }
 0x310   :  { %12765 = vmatprep.subr.bf16.mxu1 %v13737_v59 }
 0x313   :  { %12766 = vmatpush3.bf16.msra.mxu1 %v13737_v59  ;;  %v13762_v59 = vld [vmem:[%s16909_s3 + $0x4c0] sm:$0xff]  }
 0x314   :  { %12779 = vmatprep.subr.bf16.mxu1 %v13738_v56 }
 0x316   :  { %12768 = vmatmul.mubr.bf16.vlgmr.msra.gmra.mrb[16].mxu1 %v3530_v41  ;;  %v13764_v41 = vld [vmem:[%s16909_s3 + $0x4d0] sm:$0xff]  }
 0x317   :  { %12780 = vmatpush3.bf16.msra.mxu1 %v13738_v56  ;;  %12771 = vmatprep.mubr.bf16.mxu1 %v14702_v10  ;;  %v13742_v10 = vld [vmem:[%s16909_s3 + $0x420] sm:$0xff]   ;;  %v13763_v56 = vld [vmem:[%s16909_s3 + $0x4c8] sm:$0xff]  }
 0x318   :  { %12781 = vmatprep.subr.bf16.mxu1 %v13739_v26 }
 0x31b   :  { %12782 = vmatpush3.bf16.msra.mxu1 %v13739_v26  ;;  %v15443_v26 = vld [vmem:[#allocation2 + $0x5b] sm:$0xff] }
 0x31c   :  { %12783 = vmatprep.subr.bf16.mxu1 %v13740_v19  ;;  %v4061_v14 = vpack.c.bf16 %v15254_v36, %v15443_v26  ;;  %v13767_v36 = vld [vmem:[%s16909_s3 + $0x4e8] sm:$0xff]  }
 0x31e   :  { %12772 = vmatmul.mubr.bf16.gmra.mrb[20].mxu1 %v3532_v49  ;;  %v13766_v49 = vld [vmem:[%s16909_s3 + $0x4e0] sm:$0xff]  }
 0x31f   :  { %12775 = vmatprep.mubr.bf16.mxu1 %v3533_v61  ;;  %12784 = vmatpush3.bf16.msra.mxu1 %v13740_v19  ;;  %v16952_v19 = vpack.c.bf16 %v16950_v44, %v16951_v57  ;;  %v4056_v61 = vld [vmem:[#allocation2 + $0x73] sm:$0xf]  ;;  %v13816_v44 = vld [vmem:[%s16911_s5 + $0xa0] ss:$8 sps:$4 sm:$0xff]  }
 0x320   :  { %12785 = vmatprep.subr.bf16.mxu1 %v13741_v46  ;;  %v13786_v57 = vld [vmem:[%s16909_s3 + $0x580] sm:$0xff]  }
 0x323   :  { %12786 = vmatpush3.bf16.msra.mxu1 %v13741_v46  ;;  %v15456_v46 = vld [vmem:[#allocation2 + $0x6b] sm:$0xff] }
 0x324   :  { %12787 = vmatprep.subr.bf16.mxu1 %v13742_v10 }
 0x326   :  { %12776 = vmatmul.mubr.bf16.gmra.mrb[24].mxu1 %v3534_v30  ;;  %v16954_v30 = vld [vmem:[#allocation14_spill] sm:$0xff] }
 0x327   :  { %12788 = vmatpush3.bf16.msra.mxu1 %v13742_v10  ;;  %12795 = vmatprep.mubr.bf16.mxu1 %v16947_v35  ;;  %v4062_v10 = vpack.c.bf16 %v4056_v61, %v15456_v46  ;;  %v13768_v35 = vld [vmem:[%s16909_s3 + $0x4f0] sm:$0xff]  }
 0x328   :  { %12789 = vmatprep.subr.bf16.mxu1 %v13743_v33  ;;  %v13821_v61 = vld [vmem:[%s16911_s5 + $0xb4] ss:$8 sps:$4 sm:$0xff]  }
 0x32b   :  { %12790 = vmatpush3.bf16.msra.mxu1 %v13743_v33  ;;  %v16955_v33 = vpack.c.bf16 %v16953_v16, %v16954_v30  ;;  %v13819_v16 = vld [vmem:[%s16911_s5 + $0xb0] ss:$8 sps:$4 sm:$0xff]  }
 0x32c   :  { %12791 = vmatprep.subr.bf16.mxu1 %v13744_v21 }
 0x32f   :  { %12792 = vmatpush3.bf16.msra.mxu1 %v13744_v21  ;;  %v13769_v21 = vld [vmem:[%s16909_s3 + $0x4f8] sm:$0xff]  }
 0x330   :  { %12793 = vmatprep.subr.bf16.mxu1 %v13745_v24 }
 0x333   :  { %12794 = vmatpush3.bf16.msra.mxu1 %v13745_v24  ;;  %v13770_v24 = vld [vmem:[%s16909_s3 + $0x500] sm:$0xff]  }
 0x334   :  { %12807 = vmatprep.subr.bf16.mxu1 %v13746_v42 }
 0x336   :  { %12796 = vmatmul.mubr.bf16.vlgmr.msra.gmra.mrb[16].mxu1 %v3706_v54  ;;  %v13771_v54 = vld [vmem:[%s16909_s3 + $0x508] sm:$0xff]  }
 0x337   :  { %12808 = vmatpush3.bf16.msra.mxu1 %v13746_v42  ;;  %12799 = vmatprep.mubr.bf16.mxu1 %v3707_v52  ;;  %v4235_v42 = vpack.c.bf16 %v15284_v5, %v15269_v62  ;;  %v4234_v52 = vpack.c.bf16 %v15273_v58, %v15271_v0  ;;  %v13773_v62 = vld [vmem:[%s16909_s3 + $0x518] sm:$0xff]   ;;  %v16956_v58 = vld [vmem:[#allocation16_spill] sm:$0xff]  ;;  %v16957_v5 = vld [vmem:[#allocation17_spill] sm:$0xff] }
 0x338   :  { %12809 = vmatprep.subr.bf16.mxu1 %v13747_v28 }
 0x33b   :  { %12810 = vmatpush3.bf16.msra.mxu1 %v13747_v28  ;;  %v13772_v28 = vld [vmem:[%s16909_s3 + $0x510] sm:$0xff]  }
 0x33c   :  { %12811 = vmatprep.subr.bf16.mxu1 %v13748_v22 }
 0x33e   :  { %12800 = vmatmul.mubr.bf16.gmra.mrb[20].mxu1 %v3708_v1  ;;  %v16958_v1 = vpack.c.bf16 %v16956_v58, %v16957_v5  ;;  %v13790_v58 = vld [vmem:[%s16909_s3 + $0x5a0] sm:$0xff]   ;;  %v4750_v5 = vld [vmem:[#allocation2 + $0x2a] sm:$0xff] }
 0x33f   :  { %12803 = vmatprep.mubr.bf16.mxu1 %v3709_v38  ;;  %12812 = vmatpush3.bf16.msra.mxu1 %v13748_v22  ;;  %v15484_v22 = vld [vmem:[#allocation2 + $0x5c] sm:$0xff]  ;;  %v15497_v38 = vld [vmem:[#allocation2 + $0x6c] sm:$0xff] }
 0x340   :  { %12813 = vmatprep.subr.bf16.mxu1 %v13749_v7  ;;  %v4237_v0 = vpack.c.bf16 %v15294_v47, %v15484_v22  ;;  %v4397_v47 = vld [vmem:[#allocation2 + $0x20] sm:$0xff] }
 0x343   :  { %12814 = vmatpush3.bf16.msra.mxu1 %v13749_v7  ;;  %v13774_v7 = vld [vmem:[%s16909_s3 + $0x520] sm:$0xff]  }
 0x344   :  { %12815 = vmatprep.subr.bf16.mxu1 %v13750_v27 }
 0x346   :  { %12804 = vmatmul.mubr.bf16.gmra.mrb[24].mxu1 %v3710_v45 }
 0x347   :  { %12816 = vmatpush3.bf16.msra.mxu1 %v13750_v27  ;;  %12823 = vmatprep.mubr.bf16.mxu1 %v16948_v2  ;;  %v4232_v27 = vld [vmem:[#allocation2 + $0x74] sm:$0xf]  ;;  %v4409_v2 = vpack.c.bf16 %v4398_v8, %v4397_v47  ;;  %v13793_v8 = vld [vmem:[%s16909_s3 + $0x5b8] sm:$0xff]  }
 0x348   :  { %12817 = vmatprep.subr.bf16.mxu1 %v13751_v12  ;;  %v4238_v45 = vpack.c.bf16 %v4232_v27, %v15497_v38  ;;  %v13792_v27 = vld [vmem:[%s16909_s3 + $0x5b0] sm:$0xff]   ;;  %v4752_v47 = vld [vmem:[#allocation2 + $0x3a] sm:$0xff] }
 0x34b   :  { %12818 = vmatpush3.bf16.msra.mxu1 %v13751_v12  ;;  %v13775_v12 = vld [vmem:[%s16909_s3 + $0x528] sm:$0xff]  }
 0x34c   :  { %12819 = vmatprep.subr.bf16.mxu1 %v13752_v55 }
 0x34f   :  { %12820 = vmatpush3.bf16.msra.mxu1 %v13752_v55  ;;  %v13776_v55 = vld [vmem:[%s16909_s3 + $0x530] sm:$0xff]  }
 0x350   :  { %12821 = vmatprep.subr.bf16.mxu1 %v13753_v4 }
 0x353   :  { %12822 = vmatpush3.bf16.msra.mxu1 %v13753_v4  ;;  %v13777_v4 = vld [vmem:[%s16909_s3 + $0x538] sm:$0xff]  }
 0x354   :  { %12835 = vmatprep.subr.bf16.mxu1 %v13754_v6 }
 0x356   :  { %12824 = vmatmul.mubr.bf16.vlgmr.msra.gmra.mrb[16].mxu1 %v3882_v37  ;;  %v13779_v37 = vld [vmem:[%s16909_s3 + $0x548] sm:$0xff]  }
 0x357   :  { %12836 = vmatpush3.bf16.msra.mxu1 %v13754_v6  ;;  %12827 = vmatprep.mubr.bf16.mxu1 %v3883_v32  ;;  %v13778_v6 = vld [vmem:[%s16909_s3 + $0x540] sm:$0xff]   ;;  %v4410_v32 = vpack.c.bf16 %v15312_v60, %v15312_v60 }
 0x358   :  { %12837 = vmatprep.subr.bf16.mxu1 %v13755_v63 }
 0x35b   :  { %12838 = vmatpush3.bf16.msra.mxu1 %v13755_v63  ;;  %v13780_v63 = vld [vmem:[%s16909_s3 + $0x550] sm:$0xff]  }
 0x35c   :  { %12839 = vmatprep.subr.bf16.mxu1 %v13756_v40 }
 0x35e   :  { %12828 = vmatmul.mubr.bf16.gmra.mrb[20].mxu1 %v3884_v29  ;;  %v4403_v29 = vld [vmem:[#allocation2 + $0x50] sm:$0xff] }
 0x35f   :  { %12831 = vmatprep.mubr.bf16.mxu1 %v3885_v13  ;;  %12840 = vmatpush3.bf16.msra.mxu1 %v13756_v40  ;;  %v4405_v40 = vld [vmem:[#allocation2 + $0x60] sm:$0xff]  ;;  %v13781_v13 = vld [vmem:[%s16909_s3 + $0x558] sm:$0xff]  }
 0x360   :  { %12841 = vmatprep.subr.bf16.mxu1 %v13757_v23 }
 0x363   :  { %12842 = vmatpush3.bf16.msra.mxu1 %v13757_v23  ;;  %v4412_v23 = vpack.c.bf16 %v15325_v53, %v4403_v29  ;;  %v4573_v53 = vld [vmem:[#allocation2 + $0x21] sm:$0xff] }
 0x364   :  { %12843 = vmatprep.subr.bf16.mxu1 %v13758_v34 }
 0x366   :  { %12832 = vmatmul.mubr.bf16.gmra.mrb[24].mxu1 %v3886_v25  ;;  %v13782_v25 = vld [vmem:[%s16909_s3 + $0x560] sm:$0xff]  }
 0x367   :  { %12844 = vmatpush3.bf16.msra.mxu1 %v13758_v34  ;;  %12851 = vmatprep.mubr.bf16.mxu1 %v16949_v15  ;;  %v4413_v34 = vpack.c.bf16 %v15335_v51, %v4405_v40  ;;  %v4574_v15 = vld [vmem:[#allocation2 + $0x29] sm:$0xff]  ;;  %v4755_v40 = vld [vmem:[#allocation2 + $0x52] sm:$0xff] }
 0x368   :  { %12845 = vmatprep.subr.bf16.mxu1 %v13759_v43  ;;  %v4585_v51 = vpack.c.bf16 %v4574_v15, %v4573_v53  ;;  %v4764_v29 = vpack.c.bf16 %v15405_v39, %v4755_v40  ;;  %v4925_v15 = vld [vmem:[#allocation2 + $0x23] sm:$0xff]  ;;  %v4926_v39 = vld [vmem:[#allocation2 + $0x2b] sm:$0xff] }
 0x369   :  { %v13799_v53 = vld [vmem:[%s16909_s3 + $0x5e8] sm:$0xff]  }
 0x36b   :  { %12846 = vmatpush3.bf16.msra.mxu1 %v13759_v43  ;;  %v4414_v43 = vpack.c.bf16 %v4408_v3, %v15312_v60  ;;  %v13810_v60 = vld [vmem:[%s16911_s5 + $0x80] ss:$8 sps:$4 sm:$0xff]   ;;  %v4760_v3 = vld [vmem:[#allocation2 + $0x7a] sm:$0xf] }
 0x36c   :  { %12847 = vmatprep.subr.bf16.mxu1 %v13760_v31 }
 0x36f   :  { %12848 = vmatpush3.bf16.msra.mxu1 %v13760_v31  ;;  %v13783_v31 = vld [vmem:[%s16909_s3 + $0x568] sm:$0xff]  }
 0x370   :  { %12849 = vmatprep.subr.bf16.mxu1 %v13761_v48 }
 0x373   :  { %12850 = vmatpush3.bf16.msra.mxu1 %v13761_v48  ;;  %v13784_v48 = vld [vmem:[%s16909_s3 + $0x570] sm:$0xff]  }
 0x374   :  { %12863 = vmatprep.subr.bf16.mxu1 %v13762_v59 }
 0x376   :  { %12852 = vmatmul.mubr.bf16.vlgmr.msra.gmra.mrb[16].mxu1 %v4058_v11  ;;  %v13785_v11 = vld [vmem:[%s16909_s3 + $0x578] sm:$0xff]  }
 0x377   :  { %12864 = vmatpush3.bf16.msra.mxu1 %v13762_v59  ;;  %12855 = vmatprep.mubr.bf16.mxu1 %v4059_v17  ;;  %v13812_v59 = vld [vmem:[%s16911_s5 + $0x84] ss:$8 sps:$4 sm:$0xff]   ;;  %v13815_v17 = vld [vmem:[%s16911_s5 + $0x94] ss:$8 sps:$4 sm:$0xff]  }
 0x378   :  { %12865 = vmatprep.subr.bf16.mxu1 %v13763_v56  ;;  %5511 = vmatprep.subr.bf16.mxu0 %v13812_v59  ;;  %v13802_v59 = vld [vmem:[%s16909_s3 + $0x600] sm:$0xff]  }
 0x379   :  { %5512 = vmatpush1.bf16.msra.mxu0 %v13810_v60  ;;  %v4928_v60 = vld [vmem:[#allocation2 + $0x3b] sm:$0xff] }
 0x37a   :  { %5513 = vmatprep.subr.bf16.mxu0 %v13815_v17 }
 0x37b   :  { %12866 = vmatpush3.bf16.msra.mxu1 %v13763_v56  ;;  %v13813_v56 = vld [vmem:[%s16911_s5 + $0x90] ss:$8 sps:$4 sm:$0xff]  }
 0x37c   :  { %12867 = vmatprep.subr.bf16.mxu1 %v13764_v41 }
 0x37d   :  { %5514 = vmatpush1.bf16.msra.mxu0 %v13813_v56  ;;  %v4930_v56 = vld [vmem:[#allocation2 + $0x4b] sm:$0xff] }
 0x37e   :  { %12856 = vmatmul.mubr.bf16.gmra.mrb[20].mxu1 %v16952_v19  ;;  %v4577_v19 = vld [vmem:[#allocation2 + $0x41] sm:$0xff] }
 0x37f   :  { %12859 = vmatprep.mubr.bf16.mxu1 %v4061_v14  ;;  %12868 = vmatpush3.bf16.msra.mxu1 %v13764_v41  ;;  %v13818_v41 = vld [vmem:[%s16911_s5 + $0xa4] ss:$8 sps:$4 sm:$0xff]   ;;  %v4576_v14 = vld [vmem:[#allocation2 + $0x39] sm:$0xff] }
 0x380   :  { %12869 = vmatprep.subr.bf16.mxu1 %v13765_v20  ;;  %5515 = vmatprep.subr.bf16.mxu0 %v13818_v41  ;;  %v13803_v41 = vld [vmem:[%s16909_s3 + $0x608] sm:$0xff]  }
 0x381   :  { %5516 = vmatpush1.bf16.msra.mxu0 %v13816_v44  ;;  %v4933_v44 = vld [vmem:[#allocation2 + $0x63] sm:$0xff] }
 0x382   :  { %5517 = vmatprep.subr.bf16.mxu0 %v13821_v61  ;;  %v4941_v61 = vpack.c.bf16 %v15456_v46, %v4933_v44 }
 0x383   :  { %12870 = vmatpush3.bf16.msra.mxu1 %v13765_v20  ;;  %v4575_v20 = vld [vmem:[#allocation2 + $0x31] sm:$0xff] }
 0x384   :  { %12871 = vmatprep.subr.bf16.mxu1 %v13766_v49 }
 0x385   :  { %5518 = vmatpush1.bf16.msra.mxu0 %v13819_v16  ;;  %v13806_v16 = vld [vmem:[%s16909_s3 + $0x620] sm:$0xff]  }
 0x386   :  { %12860 = vmatmul.mubr.bf16.gmra.mrb[24].mxu1 %v4062_v10  ;;  %v4586_v10 = vpack.c.bf16 %v4576_v14, %v4575_v20  ;;  %v13804_v14 = vld [vmem:[%s16909_s3 + $0x610] sm:$0xff]  }
 0x387   :  { %12872 = vmatpush3.bf16.msra.mxu1 %v13766_v49  ;;  %12879 = vmatprep.mubr.bf16.mxu1 %v16955_v33  ;;  %v4578_v49 = vld [vmem:[#allocation2 + $0x49] sm:$0xff] }
 0x388   :  { %12873 = vmatprep.subr.bf16.mxu1 %v13767_v36  ;;  %v4587_v30 = vpack.c.bf16 %v4578_v49, %v4577_v19  ;;  %v13824_v33 = vld [vmem:[%s16911_s5 + $0xc4] ss:$8 sps:$4 sm:$0xff]   ;;  %v13805_v49 = vld [vmem:[%s16909_s3 + $0x618] sm:$0xff]  }
 0x389   :  { %5519 = vmatprep.subr.bf16.mxu0 %v13824_v33  ;;  %v5101_v33 = vld [vmem:[#allocation2 + $0x24] sm:$0xff] }
 0x38b   :  { %12874 = vmatpush3.bf16.msra.mxu1 %v13767_v36  ;;  %v13787_v36 = vld [vmem:[%s16909_s3 + $0x588] sm:$0xff]  }
 0x38c   :  { %12875 = vmatprep.subr.bf16.mxu1 %v13768_v35 }
 0x38f   :  { %12876 = vmatpush3.bf16.msra.mxu1 %v13768_v35  ;;  %v13788_v35 = vld [vmem:[%s16909_s3 + $0x590] sm:$0xff]  }
 0x390   :  { %12877 = vmatprep.subr.bf16.mxu1 %v13769_v21 }
 0x393   :  { %12878 = vmatpush3.bf16.msra.mxu1 %v13769_v21  ;;  %v13822_v21 = vld [vmem:[%s16911_s5 + $0xc0] ss:$8 sps:$4 sm:$0xff]  }
 0x394   :  { %12891 = vmatprep.subr.bf16.mxu1 %v13770_v24  ;;  %5520 = vmatpush1.bf16.msra.mxu0 %v13822_v21  ;;  %v13808_v21 = vld [vmem:[%s16909_s3 + $0x630] sm:$0xff]  }
 0x396   :  { %12880 = vmatmul.mubr.bf16.vlgmr.msra.gmra.mrb[16].mxu1 %v4234_v52  ;;  %v13789_v52 = vld [vmem:[%s16909_s3 + $0x598] sm:$0xff]  }
 0x397   :  { %12892 = vmatpush3.bf16.msra.mxu1 %v13770_v24  ;;  %12883 = vmatprep.mubr.bf16.mxu1 %v4235_v42  ;;  %v4581_v24 = vld [vmem:[#allocation2 + $0x61] sm:$0xff]  ;;  %v4579_v42 = vld [vmem:[#allocation2 + $0x51] sm:$0xff] }
 0x398   :  { %12893 = vmatprep.subr.bf16.mxu1 %v13771_v54 }
 0x39b   :  { %12894 = vmatpush3.bf16.msra.mxu1 %v13771_v54  ;;  %v4588_v54 = vpack.c.bf16 %v15365_v18, %v4579_v42  ;;  %v13791_v18 = vld [vmem:[%s16909_s3 + $0x5a8] sm:$0xff]   ;;  %v5103_v42 = vld [vmem:[#allocation2 + $0x34] sm:$0xff] }
 0x39c   :  { %12895 = vmatprep.subr.bf16.mxu1 %v13772_v28 }
 0x39e   :  { %12884 = vmatmul.mubr.bf16.gmra.mrb[20].mxu1 %v16958_v1 }
 0x39f   :  { %12887 = vmatprep.mubr.bf16.mxu1 %v4237_v0  ;;  %12896 = vmatpush3.bf16.msra.mxu1 %v13772_v28  ;;  %v4589_v28 = vpack.c.bf16 %v15375_v9, %v4581_v24  ;;  %v4584_v0 = vld [vmem:[#allocation2 + $0x79] sm:$0xf] }
 0x3a0   :  { %12897 = vmatprep.subr.bf16.mxu1 %v13773_v62  ;;  %v13809_v24 = vld [vmem:[%s16909_s3 + $0x638] sm:$0xff]  }
 0x3a3   :  { %12898 = vmatpush3.bf16.msra.mxu1 %v13773_v62  ;;  %v4583_v62 = vld [vmem:[#allocation2 + $0x71] sm:$0xff] }
 0x3a4   :  { %12899 = vmatprep.subr.bf16.mxu1 %v13774_v7  ;;  %v4590_v1 = vpack.c.bf16 %v4584_v0, %v4583_v62  ;;  %v5106_v62 = vld [vmem:[#allocation2 + $0x4c] sm:$0xff] }
 0x3a6   :  { %12888 = vmatmul.mubr.bf16.gmra.mrb[24].mxu1 %v4238_v45  ;;  %v4751_v45 = vld [vmem:[#allocation2 + $0x32] sm:$0xff] }
 0x3a7   :  { %12900 = vmatpush3.bf16.msra.mxu1 %v13774_v7  ;;  %12907 = vmatprep.mubr.bf16.mxu1 %v4409_v2  ;;  %v4749_v7 = vld [vmem:[#allocation2 + $0x22] sm:$0xff] }
 0x3a8   :  { %12901 = vmatprep.subr.bf16.mxu1 %v13775_v12  ;;  %v4761_v9 = vpack.c.bf16 %v4750_v5, %v4749_v7  ;;  %v4753_v2 = vld [vmem:[#allocation2 + $0x42] sm:$0xff]  ;;  %v5107_v5 = vld [vmem:[#allocation2 + $0x54] sm:$0xff] }
 0x3ab   :  { %12902 = vmatpush3.bf16.msra.mxu1 %v13775_v12  ;;  %v13794_v12 = vld [vmem:[%s16909_s3 + $0x5c0] sm:$0xff]  }
 0x3ac   :  { %12903 = vmatprep.subr.bf16.mxu1 %v13776_v55 }
 0x3af   :  { %12904 = vmatpush3.bf16.msra.mxu1 %v13776_v55  ;;  %v4754_v55 = vld [vmem:[#allocation2 + $0x4a] sm:$0xff] }
 0x3b0   :  { %12905 = vmatprep.subr.bf16.mxu1 %v13777_v4 }
 0x3b3   :  { %12906 = vmatpush3.bf16.msra.mxu1 %v13777_v4  ;;  %v4762_v4 = vpack.c.bf16 %v4752_v47, %v4751_v45  ;;  %v13827_v45 = vld [vmem:[%s16911_s5 + $0xd4] ss:$8 sps:$4 sm:$0xff]   ;;  %v13831_v47 = vld [vmem:[%s16911_s5 + $0xf0] ss:$8 sps:$4 sm:$0xff]  }
 0x3b4   :  { %12919 = vmatprep.subr.bf16.mxu1 %v13778_v6  ;;  %5521 = vmatprep.subr.bf16.mxu0 %v13827_v45 }
 0x3b6   :  { %12908 = vmatmul.mubr.bf16.vlgmr.msra.gmra.mrb[16].mxu1 %v4410_v32 }
 0x3b7   :  { %12920 = vmatpush3.bf16.msra.mxu1 %v13778_v6  ;;  %12911 = vmatprep.mubr.bf16.mxu1 %v4410_v32  ;;  %v13795_v6 = vld [vmem:[%s16909_s3 + $0x5c8] sm:$0xff]   ;;  %v4763_v32 = vpack.c.bf16 %v4754_v55, %v4753_v2  ;;  %v14268_v2 = vmov 0  }
 0x3b8   :  { %12921 = vmatprep.subr.bf16.mxu1 %v13779_v37  ;;  %5543 = vmatprep.mubr.bf16.mxu0 %v14268_v2  ;;  %v13836_v55 = vld [vmem:[%s16911_s5 + $0x4] ss:$8 sps:$4 sm:$0xff]  }
 0x3bb   :  { %12922 = vmatpush3.bf16.msra.mxu1 %v13779_v37  ;;  %v13796_v37 = vld [vmem:[%s16909_s3 + $0x5d0] sm:$0xff]  }
 0x3bc   :  { %12923 = vmatprep.subr.bf16.mxu1 %v13780_v63 }
 0x3be   :  { %12912 = vmatmul.mubr.bf16.gmra.mrb[20].mxu1 %v4412_v23  ;;  %v13797_v23 = vld [vmem:[%s16909_s3 + $0x5d8] sm:$0xff]  }
 0x3bf   :  { %12915 = vmatprep.mubr.bf16.mxu1 %v4413_v34  ;;  %12924 = vmatpush3.bf16.msra.mxu1 %v13780_v63  ;;  %v4757_v63 = vld [vmem:[#allocation2 + $0x62] sm:$0xff]  ;;  %v4759_v34 = vld [vmem:[#allocation2 + $0x72] sm:$0xff] }
 0x3c0   :  { %12925 = vmatprep.subr.bf16.mxu1 %v13781_v13 }
 0x3c3   :  { %12926 = vmatpush3.bf16.msra.mxu1 %v13781_v13  ;;  %v4765_v13 = vpack.c.bf16 %v15415_v50, %v4757_v63  ;;  %v4937_v50 = vpack.c.bf16 %v4926_v39, %v4925_v15 }
 0x3c4   :  { %12927 = vmatprep.subr.bf16.mxu1 %v13782_v25 }
 0x3c6   :  { %12916 = vmatmul.mubr.bf16.gmra.mrb[24].mxu1 %v4414_v43  ;;  %v4766_v43 = vpack.c.bf16 %v4760_v3, %v4759_v34 }
 0x3c7   :  { %12928 = vmatpush3.bf16.msra.mxu1 %v13782_v25  ;;  %12935 = vmatprep.mubr.bf16.mxu1 %v4585_v51  ;;  %v13798_v25 = vld [vmem:[%s16909_s3 + $0x5e0] sm:$0xff]   ;;  %v13801_v51 = vld [vmem:[%s16909_s3 + $0x5f8] sm:$0xff]  }
 0x3c8   :  { %12929 = vmatprep.subr.bf16.mxu1 %v13783_v31 }
 0x3cb   :  { %12930 = vmatpush3.bf16.msra.mxu1 %v13783_v31  ;;  %v13800_v31 = vld [vmem:[%s16909_s3 + $0x5f0] sm:$0xff]  }
 0x3cc   :  { %12931 = vmatprep.subr.bf16.mxu1 %v13784_v48 }
 0x3cf   :  { %12932 = vmatpush3.bf16.msra.mxu1 %v13784_v48  ;;  %v4927_v48 = vld [vmem:[#allocation2 + $0x33] sm:$0xff] }
 0x3d0   :  { %12933 = vmatprep.subr.bf16.mxu1 %v13785_v11  ;;  %v4938_v17 = vpack.c.bf16 %v4928_v60, %v4927_v48 }
 0x3d3   :  { %12934 = vmatpush3.bf16.msra.mxu1 %v13785_v11  ;;  %v4929_v11 = vld [vmem:[#allocation2 + $0x43] sm:$0xff] }
 0x3d4   :  { %12947 = vmatprep.subr.bf16.mxu1 %v13786_v57  ;;  %v4939_v20 = vpack.c.bf16 %v4930_v56, %v4929_v11 }
 0x3d6   :  { %12936 = vmatmul.mubr.bf16.vlgmr.msra.gmra.mrb[16].mxu1 %v4586_v10  ;;  %v4935_v10 = vld [vmem:[#allocation2 + $0x73] sm:$0xff] }
 0x3d7   :  { %12948 = vmatpush3.bf16.msra.mxu1 %v13786_v57  ;;  %12939 = vmatprep.mubr.bf16.mxu1 %v4587_v30  ;;  %v4931_v57 = vld [vmem:[#allocation2 + $0x53] sm:$0xff] }
 0x3d8   :  { %12949 = vmatprep.subr.bf16.mxu1 %v13787_v36  ;;  %v4940_v19 = vpack.c.bf16 %v15443_v26, %v4931_v57  ;;  %v5102_v26 = vld [vmem:[#allocation2 + $0x2c] sm:$0xff] }
 0x3d9   :  { %v5113_v46 = vpack.c.bf16 %v5102_v26, %v5101_v33 }
 0x3db   :  { %12950 = vmatpush3.bf16.msra.mxu1 %v13787_v36  ;;  %v4936_v36 = vld [vmem:[#allocation2 + $0x7b] sm:$0xf] }
 0x3dc   :  { %12951 = vmatprep.subr.bf16.mxu1 %v13788_v35  ;;  %v4942_v30 = vpack.c.bf16 %v4936_v36, %v4935_v10 }
 0x3de   :  { %12940 = vmatmul.mubr.bf16.gmra.mrb[20].mxu1 %v4588_v54 }
 0x3df   :  { %12943 = vmatprep.mubr.bf16.mxu1 %v4589_v28  ;;  %12952 = vmatpush3.bf16.msra.mxu1 %v13788_v35  ;;  %v13807_v35 = vld [vmem:[%s16909_s3 + $0x628] sm:$0xff]  }
 0x3e0   :  { %12953 = vmatprep.subr.bf16.mxu1 %v13789_v52  ;;  %v5105_v28 = vld [vmem:[#allocation2 + $0x44] sm:$0xff] }
 0x3e1   :  { %v5115_v0 = vpack.c.bf16 %v5106_v62, %v5105_v28 }
 0x3e3   :  { %12954 = vmatpush3.bf16.msra.mxu1 %v13789_v52  ;;  %v5104_v52 = vld [vmem:[#allocation2 + $0x3c] sm:$0xff] }
 0x3e4   :  { %12955 = vmatprep.subr.bf16.mxu1 %v13790_v58  ;;  %v5114_v54 = vpack.c.bf16 %v5104_v52, %v5103_v42 }
 0x3e6   :  { %12944 = vmatmul.mubr.bf16.gmra.mrb[24].mxu1 %v4590_v1  ;;  %v5116_v1 = vpack.c.bf16 %v15484_v22, %v5107_v5  ;;  %v13830_v22 = vld [vmem:[%s16911_s5 + $0xe4] ss:$8 sps:$4 sm:$0xff]  }
 0x3e7   :  { %12956 = vmatpush3.bf16.msra.mxu1 %v13790_v58  ;;  %12963 = vmatprep.mubr.bf16.mxu1 %v4761_v9  ;;  %v5109_v58 = vld [vmem:[#allocation2 + $0x64] sm:$0xff]  ;;  %v5112_v9 = vld [vmem:[#allocation2 + $0x7c] sm:$0xf] }
 0x3e8   :  { %12957 = vmatprep.subr.bf16.mxu1 %v13791_v18  ;;  %v5117_v7 = vpack.c.bf16 %v15497_v38, %v5109_v58  ;;  %v13828_v38 = vld [vmem:[%s16911_s5 + $0xe0] ss:$8 sps:$4 sm:$0xff]  }
 0x3eb   :  { %12958 = vmatpush3.bf16.msra.mxu1 %v13791_v18  ;;  %v5111_v18 = vld [vmem:[#allocation2 + $0x74] sm:$0xff] }
 0x3ec   :  { %12959 = vmatprep.subr.bf16.mxu1 %v13792_v27 }
 0x3ef   :  { %12960 = vmatpush3.bf16.msra.mxu1 %v13792_v27  ;;  %v5118_v27 = vpack.c.bf16 %v5112_v9, %v5111_v18 }
 0x3f0   :  { %12961 = vmatprep.subr.bf16.mxu1 %v13793_v8 }
 0x3f3   :  { %12962 = vmatpush3.bf16.msra.mxu1 %v13793_v8  ;;  %v13825_v8 = vld [vmem:[%s16911_s5 + $0xd0] ss:$8 sps:$4 sm:$0xff]  }
 0x3f4   :  { %12975 = vmatprep.subr.bf16.mxu1 %v13794_v12  ;;  %5522 = vmatpush1.bf16.msra.mxu0 %v13825_v8 }
 0x3f5   :  { %5523 = vmatprep.subr.bf16.mxu0 %v13830_v22 }
 0x3f6   :  { %12964 = vmatmul.mubr.bf16.vlgmr.msra.gmra.mrb[16].mxu1 %v4762_v4  ;;  %v10634_v4 = vld [vmem:[%s16912_s4] ss:$0 sm:$0xff] }
 0x3f7   :  { %12976 = vmatpush3.bf16.msra.mxu1 %v13794_v12  ;;  %12967 = vmatprep.mubr.bf16.mxu1 %v4763_v32  ;;  %v13833_v12 = vld [vmem:[%s16911_s5 + $0xf4] ss:$8 sps:$4 sm:$0xff]  }
 0x3f8   :  { %12977 = vmatprep.subr.bf16.mxu1 %v13795_v6  ;;  %5524 = vmatpush1.bf16.msra.mxu0 %v13828_v38 }
 0x3f9   :  { %5525 = vmatprep.subr.bf16.mxu0 %v13833_v12 }
 0x3fb   :  { %12978 = vmatpush3.bf16.msra.mxu1 %v13795_v6 }
 0x3fc   :  { %12979 = vmatprep.subr.bf16.mxu1 %v13796_v37  ;;  %5526 = vmatpush1.bf16.msra.mxu0 %v13831_v47 }
 0x3fd   :  { %5642 = vmatprep.subr.bf16.mxu0 %v13836_v55 }
 0x3fe   :  { %12968 = vmatmul.mubr.bf16.gmra.mrb[20].mxu1 %v4764_v29 }
 0x3ff   :  { %12971 = vmatprep.mubr.bf16.mxu1 %v4765_v13  ;;  %12980 = vmatpush3.bf16.msra.mxu1 %v13796_v37 }
 0x400   :  { %12981 = vmatprep.subr.bf16.mxu1 %v13797_v23 }
 0x403   :  { %12982 = vmatpush3.bf16.msra.mxu1 %v13797_v23 }
 0x404   :  { %12983 = vmatprep.subr.bf16.mxu1 %v13798_v25 }
 0x406   :  { %12972 = vmatmul.mubr.bf16.gmra.mrb[24].mxu1 %v4766_v43 }
 0x407   :  { %12984 = vmatpush3.bf16.msra.mxu1 %v13798_v25  ;;  %12991 = vmatprep.mubr.bf16.mxu1 %v4937_v50 }
 0x408   :  { %12985 = vmatprep.subr.bf16.mxu1 %v13799_v53 }
 0x40b   :  { %12986 = vmatpush3.bf16.msra.mxu1 %v13799_v53 }
 0x40c   :  { %12987 = vmatprep.subr.bf16.mxu1 %v13800_v31 }
 0x40f   :  { %12988 = vmatpush3.bf16.msra.mxu1 %v13800_v31 }
 0x410   :  { %12989 = vmatprep.subr.bf16.mxu1 %v13801_v51 }
 0x413   :  { %12990 = vmatpush3.bf16.msra.mxu1 %v13801_v51 }
 0x414   :  { %13003 = vmatprep.subr.bf16.mxu1 %v13802_v59 }
 0x416   :  { %12992 = vmatmul.mubr.bf16.vlgmr.msra.gmra.mrb[16].mxu1 %v4938_v17 }
 0x417   :  { %12995 = vmatprep.mubr.bf16.mxu1 %v4939_v20  ;;  %13004 = vmatpush3.bf16.msra.mxu1 %v13802_v59 }
 0x418   :  { %13005 = vmatprep.subr.bf16.mxu1 %v13803_v41 }
 0x41b   :  { %13006 = vmatpush3.bf16.msra.mxu1 %v13803_v41 }
 0x41c   :  { %13007 = vmatprep.subr.bf16.mxu1 %v13804_v14 }
 0x41e   :  { %12996 = vmatmul.mubr.bf16.gmra.mrb[20].mxu1 %v4940_v19 }
 0x41f   :  { %12999 = vmatprep.mubr.bf16.mxu1 %v4941_v61  ;;  %13008 = vmatpush3.bf16.msra.mxu1 %v13804_v14 }
 0x420   :  { %13009 = vmatprep.subr.bf16.mxu1 %v13805_v49 }
 0x423   :  { %13010 = vmatpush3.bf16.msra.mxu1 %v13805_v49 }
 0x424   :  { %13011 = vmatprep.subr.bf16.mxu1 %v13806_v16 }
 0x426   :  { %13000 = vmatmul.mubr.bf16.gmra.mrb[24].mxu1 %v4942_v30 }
 0x427   :  { %13012 = vmatpush3.bf16.msra.mxu1 %v13806_v16  ;;  %13019 = vmatprep.mubr.bf16.mxu1 %v5113_v46 }
 0x428   :  { %13013 = vmatprep.subr.bf16.mxu1 %v13807_v35 }
 0x42b   :  { %13014 = vmatpush3.bf16.msra.mxu1 %v13807_v35 }
 0x42c   :  { %13015 = vmatprep.subr.bf16.mxu1 %v13808_v21 }
 0x42f   :  { %13016 = vmatpush3.bf16.msra.mxu1 %v13808_v21 }
 0x430   :  { %13017 = vmatprep.subr.bf16.mxu1 %v13809_v24 }
 0x433   :  { %13018 = vmatpush3.bf16.msra.mxu1 %v13809_v24 }
 0x436   :  { %13020 = vmatmul.mubr.bf16.vlgmr.msra.gmra.mrb[16].mxu1 %v5114_v54 }
 0x437   :  { %13023 = vmatprep.mubr.bf16.mxu1 %v5115_v0 }
 0x43e   :  { %13024 = vmatmul.mubr.bf16.gmra.mrb[20].mxu1 %v5116_v1 }
 0x43f   :  { %13027 = vmatprep.mubr.bf16.mxu1 %v5117_v7 }
 0x446   :  { %13028 = vmatmul.mubr.bf16.gmra.mrb[24].mxu1 %v5118_v27 }
 0x509   :  { %v13021_v6 = vpop.f32.mrb[16].mxu1 }
 0x50a   :  { %v5286_v32 = vadd.f32 %v13021_v6, %v10634_v4  ;;  %v5218_v37 = vpop.f32.mrb[17].mxu1 }
 0x50b   :  { %v5284_v63 = vadd.f32 %v10634_v4, %v5218_v37  ;;  %v13022_v40 = vpop.f32.mrb[18].mxu1 }
 0x50c   :  { %v5298_v29 = vmax.f32 %v5286_v32, 0.0  ;;  %v5287_v23 = vadd.f32 %v13022_v40, %v10634_v4  ;;  %v5221_v13 = vpop.f32.mrb[19].mxu1 }
 0x50d   :  { %v5296_v34 = vmax.f32 %v5284_v63, 0.0  ;;  %v5285_v3 = vadd.f32 %v10634_v4, %v5221_v13 }
 0x50e   :  { %5310 = vst [vmem:[#allocation7 + $0x10] sm:$0xff] %v5298_v29  ;;  %v5299_v25 = vmax.f32 %v5287_v23, 0.0 }
 0x50f   :  { %5308 = vst [vmem:[#allocation7] sm:$0xff] %v5296_v34  ;;  %v5297_v43 = vmax.f32 %v5285_v3, 0.0 }
 0x510   :  { %5311 = vst [vmem:[#allocation7 + $0x18] sm:$0xff] %v5299_v25 }
 0x511   :  { %5309 = vst [vmem:[#allocation7 + $0x8] sm:$0xff] %v5297_v43  ;;  %v13025_v15 = vpop.f32.mrb[20].mxu1 }
 0x512   :  { %v5234_v39 = vpop.f32.mrb[21].mxu1 }
 0x513   :  { %v13026_v53 = vpop.f32.mrb[22].mxu1 }
 0x514   :  { %v5237_v50 = vpop.f32.mrb[23].mxu1 }
 0x515   :  { %v5340_v31 = vld [vmem:[#allocation7 + $0x10] sm:$0x1]  ;;  %v5341_v51 = vld [vmem:[#allocation7 + $0x11] sm:$0x1]  ;;  %v5348_v48 = vld [vmem:[#allocation7 + $0x12] sm:$0x1] }
 0x516   :  { %v5349_v60 = vld [vmem:[#allocation7 + $0x13] sm:$0x1]  ;;  %v5324_v59 = vld [vmem:[#allocation7] sm:$0x1]  ;;  %v5325_v17 = vld [vmem:[#allocation7 + $0x1] sm:$0x1]  ;;  %v5342_v20 = vmax.f32 %v5340_v31, %v5341_v51 }
 0x517   :  { %v5332_v11 = vld [vmem:[#allocation7 + $0x2] sm:$0x1]  ;;  %v5333_v56 = vld [vmem:[#allocation7 + $0x3] sm:$0x1]  ;;  %v5343_v41 = vld [vmem:[#allocation7 + $0x18] sm:$0x1]  ;;  %v5350_v14 = vmax.f32 %v5348_v48, %v5349_v60  ;;  %v5326_v49 = vmax.f32 %v5324_v59, %v5325_v17 }
 0x518   :  { %v5344_v44 = vld [vmem:[#allocation7 + $0x19] sm:$0x1]  ;;  %v5351_v57 = vld [vmem:[#allocation7 + $0x1a] sm:$0x1]  ;;  %v5352_v19 = vld [vmem:[#allocation7 + $0x1b] sm:$0x1]  ;;  %v5334_v61 = vmax.f32 %v5332_v11, %v5333_v56 }
 0x519   :  { %v5345_v10 = vmax.f32 %v5343_v41, %v5344_v44  ;;  %v5353_v36 = vmax.f32 %v5351_v57, %v5352_v19  ;;  %v5327_v16 = vld [vmem:[#allocation7 + $0x8] sm:$0x1]  ;;  %v5328_v30 = vld [vmem:[#allocation7 + $0x9] sm:$0x1]  ;;  %v5335_v33 = vld [vmem:[#allocation7 + $0xa] sm:$0x1] }
 0x51a   :  { %v5329_v26 = vmax.f32 %v5327_v16, %v5328_v30  ;;  %v5336_v35 = vld [vmem:[#allocation7 + $0xb] sm:$0x1]  ;;  %v13029_v46 = vpop.f32.mrb[24].mxu1  ;;  %v13839_v56 = vld [vmem:[%s16911_s5 + $0x14] ss:$8 sps:$4 sm:$0xff]  }
 0x51b   :  { %v5346_v21 = vmax.f32 %v5342_v20, %v5345_v10  ;;  %v5354_v24 = vmax.f32 %v5350_v14, %v5353_v36  ;;  %v5337_v42 = vmax.f32 %v5335_v33, %v5336_v35  ;;  %v5294_v52 = vadd.f32 %v13029_v46, %v10634_v4  ;;  %v5250_v54 = vpop.f32.mrb[25].mxu1  ;;  %v13834_v51 = vld [vmem:[%s16911_s5] ss:$8 sps:$4 sm:$0xff]   ;;  %v13837_v14 = vld [vmem:[%s16911_s5 + $0x10] ss:$8 sps:$4 sm:$0xff]  }
 0x51c   :  { %v5330_v28 = vmax.f32 %v5326_v49, %v5329_v26  ;;  %v5292_v62 = vadd.f32 %v10634_v4, %v5250_v54  ;;  %v13030_v0 = vpop.f32.mrb[26].mxu1  ;;  %v13842_v44 = vld [vmem:[%s16911_s5 + $0x24] ss:$8 sps:$4 sm:$0xff]   ;;  %v13840_v57 = vld [vmem:[%s16911_s5 + $0x20] ss:$8 sps:$4 sm:$0xff]  }
 0x51d   :  { %5347 = vst [vmem:[#allocation3 + $0x9] sm:$0x1] %v5346_v21  ;;  %5355 = vst [vmem:[#allocation3 + $0xa] sm:$0x1] %v5354_v24  ;;  %v5338_v58 = vmax.f32 %v5334_v61, %v5337_v42  ;;  %v5306_v5 = vmax.f32 %v5294_v52, 0.0  ;;  %v5295_v1 = vadd.f32 %v13030_v0, %v10634_v4  ;;  %v5253_v7 = vpop.f32.mrb[27].mxu1 }
 0x51e   :  { %5331 = vst [vmem:[#allocation3 + $0x5] sm:$0x1] %v5330_v28  ;;  %v5304_v18 = vmax.f32 %v5292_v62, 0.0  ;;  %v5293_v9 = vadd.f32 %v10634_v4, %v5253_v7  ;;  %v13845_v19 = vld [vmem:[%s16911_s5 + $0x34] ss:$8 sps:$4 sm:$0xff]  }
 0x51f   :  { %5339 = vst [vmem:[#allocation3 + $0x6] sm:$0x1] %v5338_v58  ;;  %5318 = vst [vmem:[#allocation7 + $0x50] sm:$0xff] %v5306_v5  ;;  %v5307_v27 = vmax.f32 %v5295_v1, 0.0  ;;  %v13843_v49 = vld [vmem:[%s16911_s5 + $0x30] ss:$8 sps:$4 sm:$0xff]  }
 0x520   :  { %5316 = vst [vmem:[#allocation7 + $0x40] sm:$0xff] %v5304_v18  ;;  %v5305_v8 = vmax.f32 %v5293_v9, 0.0  ;;  %v13848_v10 = vld [vmem:[%s16911_s5 + $0x44] ss:$8 sps:$4 sm:$0xff]   ;;  %v13846_v16 = vld [vmem:[%s16911_s5 + $0x40] ss:$8 sps:$4 sm:$0xff]  }
 0x521   :  { %5319 = vst [vmem:[#allocation7 + $0x58] sm:$0xf] %v5307_v27  ;;  %v13851_v30 = vld [vmem:[%s16911_s5 + $0x54] ss:$8 sps:$4 sm:$0xff]   ;;  %v13849_v33 = vld [vmem:[%s16911_s5 + $0x50] ss:$8 sps:$4 sm:$0xff]  }
 0x522   :  { %5317 = vst [vmem:[#allocation7 + $0x48] sm:$0xff] %v5305_v8  ;;  %v13854_v26 = vld [vmem:[%s16911_s5 + $0x64] ss:$8 sps:$4 sm:$0xff]   ;;  %v13852_v35 = vld [vmem:[%s16911_s5 + $0x60] ss:$8 sps:$4 sm:$0xff]  }
 0x523   :  { %v13857_v46 = vld [vmem:[%s16911_s5 + $0x74] ss:$8 sps:$4 sm:$0xff]   ;;  %v13855_v21 = vld [vmem:[%s16911_s5 + $0x70] ss:$8 sps:$4 sm:$0xff]   ;;  %v13860_v24 = vld [vmem:[%s16911_s5 + $0x104] ss:$8 sps:$4 sm:$0xff]  }
 0x524   :  { %v15673_v6 = vld [vmem:[#allocation3 + $0x9] sm:$0xff]  ;;  %v13863_v62 = vld [vmem:[%s16911_s5 + $0x114] ss:$8 sps:$4 sm:$0xff]  }
 0x525   :  { %v15726_v52 = vld [vmem:[#allocation3 + $0x8] sm:$0xff]  ;;  %v13861_v0 = vld [vmem:[%s16911_s5 + $0x110] ss:$8 sps:$4 sm:$0xff]   ;;  %v13869_v18 = vld [vmem:[%s16911_s5 + $0x134] ss:$8 sps:$4 sm:$0xff]  }
 0x526   :  { %v5372_v45 = vld [vmem:[#allocation7 + $0x50] sm:$0x1]  ;;  %v5373_v22 = vld [vmem:[#allocation7 + $0x51] sm:$0x1]  ;;  %v5380_v38 = vld [vmem:[#allocation7 + $0x52] sm:$0x1] }
 0x527   :  { %v5381_v47 = vld [vmem:[#allocation7 + $0x53] sm:$0x1]  ;;  %v5356_v12 = vld [vmem:[#allocation7 + $0x40] sm:$0x1]  ;;  %v5357_v55 = vld [vmem:[#allocation7 + $0x41] sm:$0x1]  ;;  %v5374_v23 = vmax.f32 %v5372_v45, %v5373_v22 }
 0x528   :  { %v5364_v32 = vld [vmem:[#allocation7 + $0x42] sm:$0x1]  ;;  %v5365_v37 = vld [vmem:[#allocation7 + $0x43] sm:$0x1]  ;;  %v5375_v63 = vld [vmem:[#allocation7 + $0x58] sm:$0x1]  ;;  %v5382_v13 = vmax.f32 %v5380_v38, %v5381_v47  ;;  %v5358_v39 = vmax.f32 %v5356_v12, %v5357_v55 }
 0x529   :  { %v5376_v40 = vld [vmem:[#allocation7 + $0x59] sm:$0x1]  ;;  %v5383_v4 = vld [vmem:[#allocation7 + $0x5a] sm:$0x1]  ;;  %v5384_v29 = vld [vmem:[#allocation7 + $0x5b] sm:$0x1]  ;;  %v5366_v53 = vmax.f32 %v5364_v32, %v5365_v37 }
 0x52a   :  { %v5377_v34 = vmax.f32 %v5375_v63, %v5376_v40  ;;  %v5385_v3 = vmax.f32 %v5383_v4, %v5384_v29  ;;  %v5359_v25 = vld [vmem:[#allocation7 + $0x48] sm:$0x1]  ;;  %v5360_v43 = vld [vmem:[#allocation7 + $0x49] sm:$0x1]  ;;  %v5367_v15 = vld [vmem:[#allocation7 + $0x4a] sm:$0x1] }
 0x52b   :  { %v5361_v50 = vmax.f32 %v5359_v25, %v5360_v43  ;;  %v5368_v31 = vld [vmem:[#allocation7 + $0x4b] sm:$0x1]  ;;  %v5409_v48 = vld [vmem:[#allocation3 + $0x1] sm:$0xff]  ;;  %v13867_v9 = vld [vmem:[%s16911_s5 + $0x130] ss:$8 sps:$4 sm:$0xff]  }
 0x52c   :  { %v5378_v60 = vmax.f32 %v5374_v23, %v5377_v34  ;;  %v5386_v59 = vmax.f32 %v5382_v13, %v5385_v3  ;;  %v5369_v17 = vmax.f32 %v5367_v15, %v5368_v31  ;;  %v5412_v11 = vpack.c.bf16 %v15673_v6, %v5409_v48  ;;  %v5388_v42 = vld [vmem:[#allocation3] sm:$0xff]  ;;  %v13875_v45 = vld [vmem:[%s16911_s5 + $0x154] ss:$8 sps:$4 sm:$0xff]   ;;  %v13873_v22 = vld [vmem:[%s16911_s5 + $0x150] ss:$8 sps:$4 sm:$0xff]  }
 0x52d   :  { %v5362_v41 = vmax.f32 %v5358_v39, %v5361_v50  ;;  %v13858_v54 = vld [vmem:[%s16911_s5 + $0x100] ss:$8 sps:$4 sm:$0xff]   ;;  %v5391_v28 = vpack.c.bf16 %v15726_v52, %v5388_v42  ;;  %v13866_v58 = vld [vmem:[%s16911_s5 + $0x124] ss:$8 sps:$4 sm:$0xff]   ;;  %v13881_v12 = vld [vmem:[%s16911_s5 + $0x174] ss:$8 sps:$4 sm:$0xff]  }
 0x52e   :  { %5379 = vst [vmem:[#allocation3 + $0x19] sm:$0x1] %v5378_v60  ;;  %5387 = vst [vmem:[#allocation3 + $0x1a] sm:$0x1] %v5386_v59  ;;  %v5370_v20 = vmax.f32 %v5366_v53, %v5369_v17  ;;  %5544 = vmatmul.mubr.bf16.vlgmr.msra.gmra.mrb[32].mxu0 %v5412_v11  ;;  %v13864_v1 = vld [vmem:[%s16911_s5 + $0x120] ss:$8 sps:$4 sm:$0xff]  }
 0x52f   :  { %5363 = vst [vmem:[#allocation3 + $0x15] sm:$0x1] %v5362_v41  ;;  %5643 = vmatpush1.bf16.msra.mxu0 %v13834_v51  ;;  %5553 = vmatprep.mubr.bf16.mxu0 %v14268_v2  ;;  %v13872_v27 = vld [vmem:[%s16911_s5 + $0x144] ss:$8 sps:$4 sm:$0xff]   ;;  %v13870_v8 = vld [vmem:[%s16911_s5 + $0x140] ss:$8 sps:$4 sm:$0xff]  }
 0x530   :  { %5371 = vst [vmem:[#allocation3 + $0x16] sm:$0x1] %v5370_v20  ;;  %5644 = vmatprep.subr.bf16.mxu0 %v13839_v56  ;;  %v13878_v38 = vld [vmem:[%s16911_s5 + $0x164] ss:$8 sps:$4 sm:$0xff]   ;;  %v13876_v47 = vld [vmem:[%s16911_s5 + $0x160] ss:$8 sps:$4 sm:$0xff]  }
 0x531   :  { %v13879_v55 = vld [vmem:[%s16911_s5 + $0x170] ss:$8 sps:$4 sm:$0xff]   ;;  %v13884_v32 = vld [vmem:[%s16911_s5 + $0x184] ss:$8 sps:$4 sm:$0xff]   ;;  %v13882_v40 = vld [vmem:[%s16911_s5 + $0x180] ss:$8 sps:$4 sm:$0xff]  }
 0x532   :  { %v5693_v37 = vld [vmem:[#allocation3 + $0x2] sm:$0xff]  ;;  %v15779_v63 = vld [vmem:[#allocation3 + $0xa] sm:$0xff]  ;;  %v13887_v29 = vld [vmem:[%s16911_s5 + $0x194] ss:$8 sps:$4 sm:$0xff]  }
 0x533   :  { %5645 = vmatpush1.bf16.msra.mxu0 %v13837_v14  ;;  %v5696_v4 = vpack.c.bf16 %v15779_v63, %v5693_v37  ;;  %v13885_v23 = vld [vmem:[%s16911_s5 + $0x190] ss:$8 sps:$4 sm:$0xff]   ;;  %v13890_v13 = vld [vmem:[%s16911_s5 + $0x1a4] ss:$8 sps:$4 sm:$0xff]   ;;  %v13888_v3 = vld [vmem:[%s16911_s5 + $0x1a0] ss:$8 sps:$4 sm:$0xff]  }
 0x534   :  { %5646 = vmatprep.subr.bf16.mxu0 %v13842_v44  ;;  %v13893_v43 = vld [vmem:[%s16911_s5 + $0x1b4] ss:$8 sps:$4 sm:$0xff]   ;;  %v13891_v15 = vld [vmem:[%s16911_s5 + $0x1b0] ss:$8 sps:$4 sm:$0xff]   ;;  %v13896_v39 = vld [vmem:[%s16911_s5 + $0x1c4] ss:$8 sps:$4 sm:$0xff]  }
 0x535   :  { %v13894_v53 = vld [vmem:[%s16911_s5 + $0x1c0] ss:$8 sps:$4 sm:$0xff]   ;;  %v13899_v50 = vld [vmem:[%s16911_s5 + $0x1d4] ss:$8 sps:$4 sm:$0xff]   ;;  %v13897_v31 = vld [vmem:[%s16911_s5 + $0x1d0] ss:$8 sps:$4 sm:$0xff]  }
 0x536   :  { %v5390_v5 = vld [vmem:[#allocation3 + $0x10] sm:$0x3f]  ;;  %v13902_v51 = vld [vmem:[%s16911_s5 + $0x1e4] ss:$8 sps:$4 sm:$0xff]   ;;  %v13900_v48 = vld [vmem:[%s16911_s5 + $0x1e0] ss:$8 sps:$4 sm:$0xff]  }
 0x537   :  { %5647 = vmatpush1.bf16.msra.mxu0 %v13840_v57  ;;  %v5411_v61 = vld [vmem:[#allocation3 + $0x11] sm:$0x3f]  ;;  %v5392_v7 = vpack.c.bf16 %v5390_v5, %v5390_v5  ;;  %v13908_v17 = vld [vmem:[%s16911_s5 + $0x204] ss:$8 sps:$4 sm:$0xff]   ;;  %v13906_v41 = vld [vmem:[%s16911_s5 + $0x200] ss:$8 sps:$4 sm:$0xff]  }
 0x538   :  { %5648 = vmatprep.subr.bf16.mxu0 %v13845_v19  ;;  %v5413_v36 = vpack.c.bf16 %v5411_v61, %v5411_v61  ;;  %v5695_v34 = vld [vmem:[#allocation3 + $0x12] sm:$0x3f]  ;;  %v5852_v11 = vld [vmem:[#allocation3 + $0x4] sm:$0xff] }
 0x539   :  { %v5697_v25 = vpack.c.bf16 %v5695_v34, %v5695_v34  ;;  %v13905_v60 = vld [vmem:[%s16911_s5 + $0x1f4] ss:$8 sps:$4 sm:$0xff]   ;;  %v13903_v59 = vld [vmem:[%s16911_s5 + $0x1f0] ss:$8 sps:$4 sm:$0xff]   ;;  %v13914_v57 = vld [vmem:[%s16911_s5 + $0x224] ss:$8 sps:$4 sm:$0xff]  }
 0x53a   :  { %5554 = vmatmul.mubr.bf16.gmra.mrb[36].mxu0 %v5413_v36  ;;  %v5853_v56 = vld [vmem:[#allocation3 + $0xc] sm:$0xff]  ;;  %v13911_v14 = vld [vmem:[%s16911_s5 + $0x214] ss:$8 sps:$4 sm:$0xff]  }
 0x53b   :  { %5649 = vmatpush1.bf16.msra.mxu0 %v13843_v49  ;;  %5674 = vmatprep.mubr.bf16.mxu0 %v14268_v2  ;;  %v5855_v20 = vpack.c.bf16 %v5853_v56, %v5852_v11  ;;  %v13909_v44 = vld [vmem:[%s16911_s5 + $0x210] ss:$8 sps:$4 sm:$0xff]   ;;  %v13912_v49 = vld [vmem:[%s16911_s5 + $0x220] ss:$8 sps:$4 sm:$0xff]   ;;  %v13932_v42 = vld [vmem:[%s16911_s5 + $0x284] ss:$8 sps:$4 sm:$0xff]  }
 0x53c   :  { %5650 = vmatprep.subr.bf16.mxu0 %v13848_v10  ;;  %v5854_v19 = vld [vmem:[#allocation3 + $0x14] sm:$0x3f] }
 0x53d   :  { %v5856_v61 = vpack.c.bf16 %v5854_v19, %v5854_v19  ;;  %v13917_v10 = vld [vmem:[%s16911_s5 + $0x234] ss:$8 sps:$4 sm:$0xff]   ;;  %v13915_v36 = vld [vmem:[%s16911_s5 + $0x230] ss:$8 sps:$4 sm:$0xff]  }
 0x53e   :  { %v13933_v5 = vld [vmem:[%s16911_s5 + $0x290] ss:$8 sps:$4 sm:$0xff]   ;;  %v13959_v34 = vld [vmem:[%s16911_s5 + $0x314] ss:$8 sps:$4 sm:$0xff]  }
 0x53f   :  { %5651 = vmatpush1.bf16.msra.mxu0 %v13846_v16  ;;  %v13920_v16 = vld [vmem:[%s16911_s5 + $0x244] ss:$8 sps:$4 sm:$0xff]   ;;  %v13951_v37 = vld [vmem:[%s16911_s5 + $0x2f0] ss:$8 sps:$4 sm:$0xff]   ;;  %v13977_v11 = vld [vmem:[%s16911_s5 + $0x374] ss:$8 sps:$4 sm:$0xff]  }
 0x540   :  { %5652 = vmatprep.subr.bf16.mxu0 %v13851_v30  ;;  %v13918_v30 = vld [vmem:[%s16911_s5 + $0x240] ss:$8 sps:$4 sm:$0xff]   ;;  %v13975_v56 = vld [vmem:[%s16911_s5 + $0x370] ss:$8 sps:$4 sm:$0xff]  }
 0x541   :  { %v13981_v19 = vld [vmem:[%s16911_s5 + $0x390] ss:$8 sps:$4 sm:$0xff]  }
 0x543   :  { %5653 = vmatpush1.bf16.msra.mxu0 %v13849_v33  ;;  %v13923_v33 = vld [vmem:[%s16911_s5 + $0x254] ss:$8 sps:$4 sm:$0xff]  }
 0x544   :  { %5654 = vmatprep.subr.bf16.mxu0 %v13854_v26  ;;  %v13921_v26 = vld [vmem:[%s16911_s5 + $0x250] ss:$8 sps:$4 sm:$0xff]  }
 0x547   :  { %5655 = vmatpush1.bf16.msra.mxu0 %v13852_v35  ;;  %v13926_v35 = vld [vmem:[%s16911_s5 + $0x264] ss:$8 sps:$4 sm:$0xff]  }
 0x548   :  { %5656 = vmatprep.subr.bf16.mxu0 %v13857_v46  ;;  %v13924_v46 = vld [vmem:[%s16911_s5 + $0x260] ss:$8 sps:$4 sm:$0xff]  }
 0x54b   :  { %5657 = vmatpush1.bf16.msra.mxu0 %v13855_v21  ;;  %v13929_v21 = vld [vmem:[%s16911_s5 + $0x274] ss:$8 sps:$4 sm:$0xff]  }
 0x54c   :  { %5795 = vmatprep.subr.bf16.mxu0 %v13860_v24  ;;  %v13927_v24 = vld [vmem:[%s16911_s5 + $0x270] ss:$8 sps:$4 sm:$0xff]  }
 0x54e   :  { %5675 = vmatmul.mubr.bf16.vlgmr.msra.gmra.mrb[32].mxu0 %v5391_v28  ;;  %v6012_v28 = vld [vmem:[#allocation3 + $0xd] sm:$0xff] }
 0x54f   :  { %5796 = vmatpush1.bf16.msra.mxu0 %v13858_v54  ;;  %5684 = vmatprep.mubr.bf16.mxu0 %v14268_v2  ;;  %v6011_v54 = vld [vmem:[#allocation3 + $0x5] sm:$0xff] }
 0x550   :  { %5797 = vmatprep.subr.bf16.mxu0 %v13863_v62  ;;  %v13930_v62 = vld [vmem:[%s16911_s5 + $0x280] ss:$8 sps:$4 sm:$0xff]  }
 0x553   :  { %5798 = vmatpush1.bf16.msra.mxu0 %v13861_v0  ;;  %v6014_v0 = vpack.c.bf16 %v6012_v28, %v6011_v54  ;;  %v14004_v54 = vld [vmem:[%s16911_s5 + $0x404] ss:$8 sps:$4 sm:$0xff]   ;;  %v6489_v28 = vld [vmem:[#allocation3 + $0x11] sm:$0xff] }
 0x554   :  { %5799 = vmatprep.subr.bf16.mxu0 %v13866_v58  ;;  %v13935_v58 = vld [vmem:[%s16911_s5 + $0x294] ss:$8 sps:$4 sm:$0xff]  }
 0x556   :  { %5685 = vmatmul.mubr.bf16.gmra.mrb[40].mxu0 %v5392_v7  ;;  %v6013_v7 = vld [vmem:[#allocation3 + $0x15] sm:$0x3f] }
 0x557   :  { %5800 = vmatpush1.bf16.msra.mxu0 %v13864_v1  ;;  %5827 = vmatprep.mubr.bf16.mxu0 %v14268_v2  ;;  %v13938_v1 = vld [vmem:[%s16911_s5 + $0x2a4] ss:$8 sps:$4 sm:$0xff]  }
 0x558   :  { %5801 = vmatprep.subr.bf16.mxu0 %v13869_v18  ;;  %v13936_v18 = vld [vmem:[%s16911_s5 + $0x2a0] ss:$8 sps:$4 sm:$0xff]  }
 0x55b   :  { %5802 = vmatpush1.bf16.msra.mxu0 %v13867_v9  ;;  %v6015_v9 = vpack.c.bf16 %v6013_v7, %v6013_v7  ;;  %v14005_v7 = vld [vmem:[%s16911_s5 + $0x410] ss:$8 sps:$4 sm:$0xff]  }
 0x55c   :  { %5803 = vmatprep.subr.bf16.mxu0 %v13872_v27  ;;  %v13941_v27 = vld [vmem:[%s16911_s5 + $0x2b4] ss:$8 sps:$4 sm:$0xff]  }
 0x55f   :  { %5804 = vmatpush1.bf16.msra.mxu0 %v13870_v8  ;;  %v13939_v8 = vld [vmem:[%s16911_s5 + $0x2b0] ss:$8 sps:$4 sm:$0xff]  }
 0x560   :  { %5805 = vmatprep.subr.bf16.mxu0 %v13875_v45  ;;  %v13944_v45 = vld [vmem:[%s16911_s5 + $0x2c4] ss:$8 sps:$4 sm:$0xff]  }
 0x563   :  { %5806 = vmatpush1.bf16.msra.mxu0 %v13873_v22  ;;  %v13942_v22 = vld [vmem:[%s16911_s5 + $0x2c0] ss:$8 sps:$4 sm:$0xff]  }
 0x564   :  { %5807 = vmatprep.subr.bf16.mxu0 %v13878_v38  ;;  %v13947_v38 = vld [vmem:[%s16911_s5 + $0x2d4] ss:$8 sps:$4 sm:$0xff]  }
 0x567   :  { %5808 = vmatpush1.bf16.msra.mxu0 %v13876_v47  ;;  %v13945_v47 = vld [vmem:[%s16911_s5 + $0x2d0] ss:$8 sps:$4 sm:$0xff]  }
 0x568   :  { %5809 = vmatprep.subr.bf16.mxu0 %v13881_v12  ;;  %v13950_v12 = vld [vmem:[%s16911_s5 + $0x2e4] ss:$8 sps:$4 sm:$0xff]  }
 0x56b   :  { %5810 = vmatpush1.bf16.msra.mxu0 %v13879_v55  ;;  %v13948_v55 = vld [vmem:[%s16911_s5 + $0x2e0] ss:$8 sps:$4 sm:$0xff]  }
 0x56c   :  { %5954 = vmatprep.subr.bf16.mxu0 %v13884_v32  ;;  %v13953_v32 = vld [vmem:[%s16911_s5 + $0x2f4] ss:$8 sps:$4 sm:$0xff]  }
 0x56e   :  { %5828 = vmatmul.mubr.bf16.vlgmr.msra.gmra.mrb[32].mxu0 %v5696_v4  ;;  %v6171_v4 = vld [vmem:[#allocation3 + $0xe] sm:$0xff] }
 0x56f   :  { %5955 = vmatpush1.bf16.msra.mxu0 %v13882_v40  ;;  %5837 = vmatprep.mubr.bf16.mxu0 %v14268_v2  ;;  %v13956_v40 = vld [vmem:[%s16911_s5 + $0x304] ss:$8 sps:$4 sm:$0xff]  }
 0x570   :  { %5956 = vmatprep.subr.bf16.mxu0 %v13887_v29  ;;  %v6170_v29 = vld [vmem:[#allocation3 + $0x6] sm:$0xff] }
 0x573   :  { %5957 = vmatpush1.bf16.msra.mxu0 %v13885_v23  ;;  %v13954_v23 = vld [vmem:[%s16911_s5 + $0x300] ss:$8 sps:$4 sm:$0xff]  }
 0x574   :  { %5958 = vmatprep.subr.bf16.mxu0 %v13890_v13  ;;  %v6173_v13 = vpack.c.bf16 %v6171_v4, %v6170_v29  ;;  %v14025_v4 = vld [vmem:[%s16911_s5 + $0x474] ss:$8 sps:$4 sm:$0xff]   ;;  %v14023_v29 = vld [vmem:[%s16911_s5 + $0x470] ss:$8 sps:$4 sm:$0xff]  }
 0x576   :  { %5838 = vmatmul.mubr.bf16.gmra.mrb[44].mxu0 %v5697_v25  ;;  %v13962_v25 = vld [vmem:[%s16911_s5 + $0x324] ss:$8 sps:$4 sm:$0xff]  }
 0x577   :  { %5959 = vmatpush1.bf16.msra.mxu0 %v13888_v3  ;;  %5986 = vmatprep.mubr.bf16.mxu0 %v14268_v2  ;;  %v13957_v3 = vld [vmem:[%s16911_s5 + $0x310] ss:$8 sps:$4 sm:$0xff]  }
 0x578   :  { %5960 = vmatprep.subr.bf16.mxu0 %v13893_v43  ;;  %v6172_v43 = vld [vmem:[#allocation3 + $0x16] sm:$0x3f] }
 0x57b   :  { %5961 = vmatpush1.bf16.msra.mxu0 %v13891_v15  ;;  %v13960_v15 = vld [vmem:[%s16911_s5 + $0x320] ss:$8 sps:$4 sm:$0xff]  }
 0x57c   :  { %5962 = vmatprep.subr.bf16.mxu0 %v13896_v39  ;;  %v6174_v39 = vpack.c.bf16 %v6172_v43, %v6172_v43 }
 0x57f   :  { %5963 = vmatpush1.bf16.msra.mxu0 %v13894_v53  ;;  %v13965_v53 = vld [vmem:[%s16911_s5 + $0x334] ss:$8 sps:$4 sm:$0xff]  }
 0x580   :  { %5964 = vmatprep.subr.bf16.mxu0 %v13899_v50  ;;  %v13963_v50 = vld [vmem:[%s16911_s5 + $0x330] ss:$8 sps:$4 sm:$0xff]  }
 0x583   :  { %5965 = vmatpush1.bf16.msra.mxu0 %v13897_v31  ;;  %v13968_v31 = vld [vmem:[%s16911_s5 + $0x344] ss:$8 sps:$4 sm:$0xff]  }
 0x584   :  { %5966 = vmatprep.subr.bf16.mxu0 %v13902_v51  ;;  %v13966_v51 = vld [vmem:[%s16911_s5 + $0x340] ss:$8 sps:$4 sm:$0xff]  }
 0x587   :  { %5967 = vmatpush1.bf16.msra.mxu0 %v13900_v48  ;;  %v13971_v48 = vld [vmem:[%s16911_s5 + $0x354] ss:$8 sps:$4 sm:$0xff]  }
 0x588   :  { %5968 = vmatprep.subr.bf16.mxu0 %v13905_v60  ;;  %v13969_v60 = vld [vmem:[%s16911_s5 + $0x350] ss:$8 sps:$4 sm:$0xff]  }
 0x58b   :  { %5969 = vmatpush1.bf16.msra.mxu0 %v13903_v59  ;;  %v13974_v59 = vld [vmem:[%s16911_s5 + $0x364] ss:$8 sps:$4 sm:$0xff]  }
 0x58c   :  { %6113 = vmatprep.subr.bf16.mxu0 %v13908_v17  ;;  %v13972_v17 = vld [vmem:[%s16911_s5 + $0x360] ss:$8 sps:$4 sm:$0xff]  }
 0x58e   :  { %5987 = vmatmul.mubr.bf16.vlgmr.msra.gmra.mrb[32].mxu0 %v5855_v20  ;;  %v6330_v20 = vld [vmem:[#allocation3 + $0x10] sm:$0xff] }
 0x58f   :  { %6114 = vmatpush1.bf16.msra.mxu0 %v13906_v41  ;;  %5996 = vmatprep.mubr.bf16.mxu0 %v14268_v2  ;;  %v13980_v41 = vld [vmem:[%s16911_s5 + $0x384] ss:$8 sps:$4 sm:$0xff]  }
 0x590   :  { %6115 = vmatprep.subr.bf16.mxu0 %v13911_v14  ;;  %v13978_v14 = vld [vmem:[%s16911_s5 + $0x380] ss:$8 sps:$4 sm:$0xff]  }
 0x593   :  { %6116 = vmatpush1.bf16.msra.mxu0 %v13909_v44  ;;  %v6332_v44 = vpack.c.bf16 %v6330_v20, %v15726_v52  ;;  %v13984_v52 = vld [vmem:[%s16911_s5 + $0x3a0] ss:$8 sps:$4 sm:$0xff]  }
 0x594   :  { %6117 = vmatprep.subr.bf16.mxu0 %v13914_v57  ;;  %v13983_v57 = vld [vmem:[%s16911_s5 + $0x394] ss:$8 sps:$4 sm:$0xff]  }
 0x596   :  { %5997 = vmatmul.mubr.bf16.gmra.mrb[48].mxu0 %v5856_v61  ;;  %v6331_v61 = vld [vmem:[#allocation3 + $0x18] sm:$0x3f] }
 0x597   :  { %6118 = vmatpush1.bf16.msra.mxu0 %v13912_v49  ;;  %6145 = vmatprep.mubr.bf16.mxu0 %v14268_v2  ;;  %v13986_v49 = vld [vmem:[%s16911_s5 + $0x3a4] ss:$8 sps:$4 sm:$0xff]  }
 0x598   :  { %6119 = vmatprep.subr.bf16.mxu0 %v13917_v10  ;;  %v6333_v10 = vpack.c.bf16 %v6331_v61, %v6331_v61 }
 0x59b   :  { %6120 = vmatpush1.bf16.msra.mxu0 %v13915_v36  ;;  %v13989_v36 = vld [vmem:[%s16911_s5 + $0x3b4] ss:$8 sps:$4 sm:$0xff]  }
 0x59c   :  { %6121 = vmatprep.subr.bf16.mxu0 %v13920_v16  ;;  %v13987_v16 = vld [vmem:[%s16911_s5 + $0x3b0] ss:$8 sps:$4 sm:$0xff]  }
 0x59f   :  { %6122 = vmatpush1.bf16.msra.mxu0 %v13918_v30  ;;  %v13992_v30 = vld [vmem:[%s16911_s5 + $0x3c4] ss:$8 sps:$4 sm:$0xff]  }
 0x5a0   :  { %6123 = vmatprep.subr.bf16.mxu0 %v13923_v33  ;;  %v13990_v33 = vld [vmem:[%s16911_s5 + $0x3c0] ss:$8 sps:$4 sm:$0xff]  }
 0x5a3   :  { %6124 = vmatpush1.bf16.msra.mxu0 %v13921_v26  ;;  %v13995_v26 = vld [vmem:[%s16911_s5 + $0x3d4] ss:$8 sps:$4 sm:$0xff]  }
 0x5a4   :  { %6125 = vmatprep.subr.bf16.mxu0 %v13926_v35  ;;  %v13993_v35 = vld [vmem:[%s16911_s5 + $0x3d0] ss:$8 sps:$4 sm:$0xff]  }
 0x5a7   :  { %6126 = vmatpush1.bf16.msra.mxu0 %v13924_v46  ;;  %v13998_v46 = vld [vmem:[%s16911_s5 + $0x3e4] ss:$8 sps:$4 sm:$0xff]  }
 0x5a8   :  { %6127 = vmatprep.subr.bf16.mxu0 %v13929_v21  ;;  %v13996_v21 = vld [vmem:[%s16911_s5 + $0x3e0] ss:$8 sps:$4 sm:$0xff]  }
 0x5ab   :  { %6128 = vmatpush1.bf16.msra.mxu0 %v13927_v24  ;;  %v14001_v24 = vld [vmem:[%s16911_s5 + $0x3f4] ss:$8 sps:$4 sm:$0xff]  }
 0x5ac   :  { %6272 = vmatprep.subr.bf16.mxu0 %v13932_v42  ;;  %v13999_v42 = vld [vmem:[%s16911_s5 + $0x3f0] ss:$8 sps:$4 sm:$0xff]  }
 0x5ae   :  { %6146 = vmatmul.mubr.bf16.vlgmr.msra.gmra.mrb[32].mxu0 %v6014_v0  ;;  %v6491_v0 = vpack.c.bf16 %v6489_v28, %v15673_v6  ;;  %v14010_v6 = vld [vmem:[%s16911_s5 + $0x424] ss:$8 sps:$4 sm:$0xff]  }
 0x5af   :  { %6273 = vmatpush1.bf16.msra.mxu0 %v13930_v62  ;;  %6155 = vmatprep.mubr.bf16.mxu0 %v14268_v2  ;;  %v14002_v62 = vld [vmem:[%s16911_s5 + $0x400] ss:$8 sps:$4 sm:$0xff]  }
 0x5b0   :  { %6274 = vmatprep.subr.bf16.mxu0 %v13935_v58  ;;  %v14007_v58 = vld [vmem:[%s16911_s5 + $0x414] ss:$8 sps:$4 sm:$0xff]  }
 0x5b3   :  { %6275 = vmatpush1.bf16.msra.mxu0 %v13933_v5 }
 0x5b4   :  { %6276 = vmatprep.subr.bf16.mxu0 %v13938_v1 }
 0x5b6   :  { %6156 = vmatmul.mubr.bf16.gmra.mrb[52].mxu0 %v6015_v9 }
 0x5b7   :  { %6277 = vmatpush1.bf16.msra.mxu0 %v13936_v18  ;;  %6304 = vmatprep.mubr.bf16.mxu0 %v14268_v2 }
 0x5b8   :  { %6278 = vmatprep.subr.bf16.mxu0 %v13941_v27  ;;  %v6490_v27 = vld [vmem:[#allocation3 + $0x19] sm:$0x3f] }
 0x5bb   :  { %6279 = vmatpush1.bf16.msra.mxu0 %v13939_v8  ;;  %v14008_v8 = vld [vmem:[%s16911_s5 + $0x420] ss:$8 sps:$4 sm:$0xff]  }
 0x5bc   :  { %6280 = vmatprep.subr.bf16.mxu0 %v13944_v45  ;;  %v6492_v45 = vpack.c.bf16 %v6490_v27, %v6490_v27 }
 0x5bf   :  { %6281 = vmatpush1.bf16.msra.mxu0 %v13942_v22  ;;  %v14013_v22 = vld [vmem:[%s16911_s5 + $0x434] ss:$8 sps:$4 sm:$0xff]  }
 0x5c0   :  { %6282 = vmatprep.subr.bf16.mxu0 %v13947_v38  ;;  %v14011_v38 = vld [vmem:[%s16911_s5 + $0x430] ss:$8 sps:$4 sm:$0xff]  }
 0x5c3   :  { %6283 = vmatpush1.bf16.msra.mxu0 %v13945_v47  ;;  %v14016_v47 = vld [vmem:[%s16911_s5 + $0x444] ss:$8 sps:$4 sm:$0xff]  }
 0x5c4   :  { %6284 = vmatprep.subr.bf16.mxu0 %v13950_v12  ;;  %v14014_v12 = vld [vmem:[%s16911_s5 + $0x440] ss:$8 sps:$4 sm:$0xff]  }
 0x5c7   :  { %6285 = vmatpush1.bf16.msra.mxu0 %v13948_v55  ;;  %v14019_v55 = vld [vmem:[%s16911_s5 + $0x454] ss:$8 sps:$4 sm:$0xff]  }
 0x5c8   :  { %6286 = vmatprep.subr.bf16.mxu0 %v13953_v32  ;;  %v14017_v32 = vld [vmem:[%s16911_s5 + $0x450] ss:$8 sps:$4 sm:$0xff]  }
 0x5cb   :  { %6287 = vmatpush1.bf16.msra.mxu0 %v13951_v37  ;;  %v14022_v37 = vld [vmem:[%s16911_s5 + $0x464] ss:$8 sps:$4 sm:$0xff]  }
 0x5cc   :  { %6431 = vmatprep.subr.bf16.mxu0 %v13956_v40  ;;  %v14020_v40 = vld [vmem:[%s16911_s5 + $0x460] ss:$8 sps:$4 sm:$0xff]  }
 0x5ce   :  { %6305 = vmatmul.mubr.bf16.vlgmr.msra.gmra.mrb[32].mxu0 %v6173_v13  ;;  %v6648_v13 = vld [vmem:[#allocation3 + $0x12] sm:$0xff] }
 0x5cf   :  { %6432 = vmatpush1.bf16.msra.mxu0 %v13954_v23  ;;  %6314 = vmatprep.mubr.bf16.mxu0 %v14268_v2 }
 0x5d0   :  { %6433 = vmatprep.subr.bf16.mxu0 %v13959_v34 }
 0x5d3   :  { %6434 = vmatpush1.bf16.msra.mxu0 %v13957_v3 }
 0x5d4   :  { %6435 = vmatprep.subr.bf16.mxu0 %v13962_v25 }
 0x5d6   :  { %6315 = vmatmul.mubr.bf16.gmra.mrb[56].mxu0 %v6174_v39  ;;  %v6650_v39 = vpack.c.bf16 %v6648_v13, %v15779_v63  ;;  %v6806_v13 = vld [vmem:[%s16914_s6] sm:$0x3] }
 0x5d7   :  { %6436 = vmatpush1.bf16.msra.mxu0 %v13960_v15  ;;  %6463 = vmatprep.mubr.bf16.mxu0 %v14268_v2 }
 0x5d8   :  { %6437 = vmatprep.subr.bf16.mxu0 %v13965_v53  ;;  %v6649_v53 = vld [vmem:[#allocation3 + $0x1a] sm:$0x3f] }
 0x5db   :  { %6438 = vmatpush1.bf16.msra.mxu0 %v13963_v50  ;;  %v6651_v50 = vpack.c.bf16 %v6649_v53, %v6649_v53 }
 0x5dc   :  { %6439 = vmatprep.subr.bf16.mxu0 %v13968_v31 }
 0x5df   :  { %6440 = vmatpush1.bf16.msra.mxu0 %v13966_v51 }
 0x5e0   :  { %6441 = vmatprep.subr.bf16.mxu0 %v13971_v48 }
 0x5e3   :  { %6442 = vmatpush1.bf16.msra.mxu0 %v13969_v60 }
 0x5e4   :  { %6443 = vmatprep.subr.bf16.mxu0 %v13974_v59 }
 0x5e7   :  { %6444 = vmatpush1.bf16.msra.mxu0 %v13972_v17 }
 0x5e8   :  { %6445 = vmatprep.subr.bf16.mxu0 %v13977_v11 }
 0x5eb   :  { %6446 = vmatpush1.bf16.msra.mxu0 %v13975_v56 }
 0x5ec   :  { %6590 = vmatprep.subr.bf16.mxu0 %v13980_v41 }
 0x5ee   :  { %6464 = vmatmul.mubr.bf16.vlgmr.msra.gmra.mrb[32].mxu0 %v6332_v44 }
 0x5ef   :  { %6591 = vmatpush1.bf16.msra.mxu0 %v13978_v14  ;;  %6473 = vmatprep.mubr.bf16.mxu0 %v14268_v2 }
 0x5f0   :  { %6592 = vmatprep.subr.bf16.mxu0 %v13983_v57 }
 0x5f3   :  { %6593 = vmatpush1.bf16.msra.mxu0 %v13981_v19 }
 0x5f4   :  { %6594 = vmatprep.subr.bf16.mxu0 %v13986_v49 }
 0x5f6   :  { %6474 = vmatmul.mubr.bf16.gmra.mrb[60].mxu0 %v6333_v10  ;;  %v14027_v10 = vld [vmem:[%s16913_s7 + $0x80] sm:$0xff]  }
 0x5f7   :  { %6595 = vmatpush1.bf16.msra.mxu0 %v13984_v52  ;;  %6622 = vmatprep.mubr.bf16.mxu0 %v14268_v2  ;;  %v14026_v52 = vld [vmem:[%s16913_s7 + $0xc0] sm:$0xff]  }
 0x5f8   :  { %6596 = vmatprep.subr.bf16.mxu0 %v13989_v36  ;;  %v14028_v36 = vld [vmem:[%s16913_s7 + $0xc8] sm:$0xff]  }
 0x5fb   :  { %6597 = vmatpush1.bf16.msra.mxu0 %v13987_v16  ;;  %v14029_v16 = vld [vmem:[%s16913_s7 + $0x88] sm:$0xff]  }
 0x5fc   :  { %6598 = vmatprep.subr.bf16.mxu0 %v13992_v30  ;;  %v14030_v30 = vld [vmem:[%s16913_s7 + $0xd0] sm:$0xff]  }
 0x5ff   :  { %6599 = vmatpush1.bf16.msra.mxu0 %v13990_v33  ;;  %v14031_v33 = vld [vmem:[%s16913_s7 + $0x90] sm:$0xff]  }
 0x600   :  { %6600 = vmatprep.subr.bf16.mxu0 %v13995_v26  ;;  %v14032_v26 = vld [vmem:[%s16913_s7 + $0xd8] sm:$0xff]  }
 0x603   :  { %6601 = vmatpush1.bf16.msra.mxu0 %v13993_v35  ;;  %v14033_v35 = vld [vmem:[%s16913_s7 + $0x98] sm:$0xff]  }
 0x604   :  { %6602 = vmatprep.subr.bf16.mxu0 %v13998_v46 }
 0x607   :  { %6603 = vmatpush1.bf16.msra.mxu0 %v13996_v21  ;;  %v14034_v21 = vld [vmem:[%s16913_s7 + $0xe0] sm:$0xff]  }
 0x608   :  { %6604 = vmatprep.subr.bf16.mxu0 %v14001_v24 }
 0x60b   :  { %6605 = vmatpush1.bf16.msra.mxu0 %v13999_v42 }
 0x60c   :  { %6749 = vmatprep.subr.bf16.mxu0 %v14004_v54 }
 0x60d   :  { %v5555_v5 = vpop.f32.mrb[36].mxu0 }
 0x60e   :  { %6623 = vmatmul.mubr.bf16.vlgmr.msra.gmra.mrb[32].mxu0 %v6491_v0  ;;  %v5557_v1 = vpop.f32.mrb[37].mxu0  ;;  %v14035_v0 = vld [vmem:[%s16913_s7 + $0xa0] sm:$0xff]  }
 0x60f   :  { %6750 = vmatpush1.bf16.msra.mxu0 %v14002_v62  ;;  %v5559_v18 = vpop.f32.mrb[38].mxu0  ;;  %6632 = vmatprep.mubr.bf16.mxu0 %v14268_v2 }
 0x610   :  { %6751 = vmatprep.subr.bf16.mxu0 %v14007_v58  ;;  %v5560_v9 = vpop.f32.mrb[39].mxu0  ;;  %v14036_v58 = vld [vmem:[%s16913_s7 + $0xe8] sm:$0xff]   ;;  %v14040_v18 = vld [vmem:[%s16913_s7 + $0xf8] sm:$0xff]  }
 0x611   :  { %v14041_v9 = vld [vmem:[%s16913_s7 + $0xb8] sm:$0xff]  }
 0x613   :  { %6752 = vmatpush1.bf16.msra.mxu0 %v14005_v7  ;;  %v14039_v7 = vld [vmem:[%s16913_s7 + $0xb0] sm:$0xff]  }
 0x614   :  { %6753 = vmatprep.subr.bf16.mxu0 %v14010_v6  ;;  %v14042_v6 = vld [vmem:[%s16913_s7 + $0x40] sm:$0xff]  }
 0x616   :  { %6633 = vmatmul.mubr.bf16.gmra.mrb[64].mxu0 %v6492_v45 }
 0x617   :  { %6754 = vmatpush1.bf16.msra.mxu0 %v14008_v8  ;;  %6781 = vmatprep.mubr.bf16.mxu0 %v14268_v2 }
 0x618   :  { %6755 = vmatprep.subr.bf16.mxu0 %v14013_v22 }
 0x61b   :  { %6756 = vmatpush1.bf16.msra.mxu0 %v14011_v38 }
 0x61c   :  { %6757 = vmatprep.subr.bf16.mxu0 %v14016_v47 }
 0x61f   :  { %6758 = vmatpush1.bf16.msra.mxu0 %v14014_v12 }
 0x620   :  { %6759 = vmatprep.subr.bf16.mxu0 %v14019_v55 }
 0x623   :  { %6760 = vmatpush1.bf16.msra.mxu0 %v14017_v32 }
 0x624   :  { %6761 = vmatprep.subr.bf16.mxu0 %v14022_v37 }
 0x627   :  { %6762 = vmatpush1.bf16.msra.mxu0 %v14020_v40 }
 0x628   :  { %6763 = vmatprep.subr.bf16.mxu0 %v14025_v4 }
 0x629   :  { %v5686_v23 = vpop.f32.mrb[40].mxu0 }
 0x62a   :  { %v5687_v34 = vadd.f32 %v5686_v23, %v5555_v5  ;;  %v5688_v3 = vpop.f32.mrb[41].mxu0  ;;  %v14037_v5 = vld [vmem:[%s16913_s7 + $0xa8] sm:$0xff]  }
 0x62b   :  { %v5689_v25 = vadd.f32 %v5688_v3, %v5557_v1  ;;  %v5690_v43 = vpop.f32.mrb[42].mxu0  ;;  %6764 = vmatpush1.bf16.msra.mxu0 %v14023_v29  ;;  %v14038_v1 = vld [vmem:[%s16913_s7 + $0xf0] sm:$0xff]   ;;  %v6808_v29 = vlaneseq }
 0x62c   :  { %v5691_v15 = vpop.f32.mrb[43].mxu0  ;;  %11948 = vmatprep.subr.bf16.mxu0 %v14026_v52 }
 0x62d   :  { %v6809_v23 = vshrl.u32 %v6808_v29, 7 }
 0x62e   :  { %6782 = vmatmul.mubr.bf16.vlgmr.msra.gmra.mrb[32].mxu0 %v6650_v39 }
 0x62f   :  { %6791 = vmatprep.mubr.bf16.mxu0 %v14268_v2  ;;  %11949 = vmatpush3.bf16.msra.mxu0 %v14027_v10  ;;  %v6814_v3 = vsub.s32 1, %v6809_v23 }
 0x630   :  { %11950 = vmatprep.subr.bf16.mxu0 %v14028_v36 }
 0x631   :  { %v6815_v43 = vrot.slane %v6806_v13, %v6814_v3 }
 0x633   :  { %11951 = vmatpush3.bf16.msra.mxu0 %v14029_v16 }
 0x634   :  { %11952 = vmatprep.subr.bf16.mxu0 %v14030_v30 }
 0x636   :  { %6792 = vmatmul.mubr.bf16.gmra.mrb[68].mxu0 %v6651_v50 }
 0x637   :  { %11953 = vmatpush3.bf16.msra.mxu0 %v14031_v33 }
 0x638   :  { %11954 = vmatprep.subr.bf16.mxu0 %v14032_v26 }
 0x63b   :  { %11955 = vmatpush3.bf16.msra.mxu0 %v14033_v35 }
 0x63c   :  { %11956 = vmatprep.subr.bf16.mxu0 %v14034_v21 }
 0x63f   :  { %11957 = vmatpush3.bf16.msra.mxu0 %v14035_v0 }
 0x640   :  { %11958 = vmatprep.subr.bf16.mxu0 %v14036_v58 }
 0x643   :  { %11959 = vmatpush3.bf16.msra.mxu0 %v14037_v5 }
 0x644   :  { %11960 = vmatprep.subr.bf16.mxu0 %v14038_v1 }
 0x647   :  { %11961 = vmatpush3.bf16.msra.mxu0 %v14039_v7 }
 0x648   :  { %11962 = vmatprep.subr.bf16.mxu0 %v14040_v18 }
 0x649   :  { %v5839_v31 = vpop.f32.mrb[44].mxu0 }
 0x64a   :  { %v5850_v51 = vadd.f32 %v5839_v31, %v5687_v34  ;;  %v5841_v48 = vpop.f32.mrb[45].mxu0  ;;  %v6810_v34 = vsub.s32 0, %v6809_v23 }
 0x64b   :  { %v5851_v60 = vadd.f32 %v5841_v48, %v5689_v25  ;;  %v5843_v59 = vpop.f32.mrb[46].mxu0  ;;  %11963 = vmatpush3.bf16.msra.mxu0 %v14041_v9 }
 0x64c   :  { %v5844_v17 = vpop.f32.mrb[47].mxu0  ;;  %11976 = vmatprep.subr.bf16.mxu0 %v14042_v6  ;;  %v6811_v25 = vrot.slane %v6806_v13, %v6810_v34  ;;  %v14043_v34 = vld [vmem:[%s16913_s7] sm:$0xff]  }
 0x669   :  { %v5998_v11 = vpop.f32.mrb[48].mxu0 }
 0x66a   :  { %v6009_v56 = vadd.f32 %v5998_v11, %v5850_v51  ;;  %v6000_v41 = vpop.f32.mrb[49].mxu0 }
 0x66b   :  { %v6010_v20 = vadd.f32 %v6000_v41, %v5851_v60  ;;  %v6002_v14 = vpop.f32.mrb[50].mxu0 }
 0x66c   :  { %v6003_v44 = vpop.f32.mrb[51].mxu0 }
 0x689   :  { %v6157_v57 = vpop.f32.mrb[52].mxu0 }
 0x68a   :  { %v6168_v63 = vadd.f32 %v6157_v57, %v6009_v56  ;;  %v6159_v19 = vpop.f32.mrb[53].mxu0 }
 0x68b   :  { %v6169_v49 = vadd.f32 %v6159_v19, %v6010_v20  ;;  %v6161_v2 = vpop.f32.mrb[54].mxu0 }
 0x68c   :  { %v6162_v61 = vpop.f32.mrb[55].mxu0 }
 0x6a9   :  { %v6316_v46 = vpop.f32.mrb[56].mxu0 }
 0x6aa   :  { %v6327_v24 = vadd.f32 %v6316_v46, %v6168_v63  ;;  %v6318_v42 = vpop.f32.mrb[57].mxu0 }
 0x6ab   :  { %v6328_v54 = vadd.f32 %v6318_v42, %v6169_v49  ;;  %v6320_v28 = vpop.f32.mrb[58].mxu0 }
 0x6ac   :  { %v6321_v62 = vpop.f32.mrb[59].mxu0 }
 0x6c9   :  { %v6475_v27 = vpop.f32.mrb[60].mxu0 }
 0x6ca   :  { %v6486_v8 = vadd.f32 %v6475_v27, %v6327_v24  ;;  %v6477_v45 = vpop.f32.mrb[61].mxu0 }
 0x6cb   :  { %v6487_v22 = vadd.f32 %v6477_v45, %v6328_v54  ;;  %v6479_v38 = vpop.f32.mrb[62].mxu0 }
 0x6cc   :  { %v6480_v47 = vpop.f32.mrb[63].mxu0 }
 0x6e9   :  { %v6634_v12 = vpop.f32.mrb[64].mxu0 }
 0x6ea   :  { %v6645_v55 = vadd.f32 %v6634_v12, %v6486_v8  ;;  %v6636_v32 = vpop.f32.mrb[65].mxu0 }
 0x6eb   :  { %v6646_v37 = vadd.f32 %v6636_v32, %v6487_v22  ;;  %v6638_v40 = vpop.f32.mrb[66].mxu0 }
 0x6ec   :  { %v6639_v4 = vpop.f32.mrb[67].mxu0 }
 0x701   :  { %v6783_v15 = vpop.f32.mrb[32].mxu0 }
 0x702   :  { %v6818_v39 = vadd.f32 %v6811_v25, %v6783_v15  ;;  %v6785_v53 = vpop.f32.mrb[33].mxu0 }
 0x703   :  { %v6819_v50 = vadd.f32 %v6815_v43, %v6785_v53  ;;  %v6787_v31 = vpop.f32.mrb[34].mxu0 }
 0x704   :  { %v6824_v51 = vmax.f32 %v6818_v39, 0.0  ;;  %v6789_v48 = vpop.f32.mrb[35].mxu0 }
 0x705   :  { %v6825_v60 = vmax.f32 %v6819_v50, 0.0  ;;  %v14045_v48 = vld [vmem:[%s16913_s7 + $0x8] sm:$0xff]  }
 0x706   :  { %6830 = vst [vmem:[#allocation8] sm:$0xff] %v6824_v51 }
 0x707   :  { %6831 = vst [vmem:[#allocation8 + $0x8] sm:$0xff] %v6825_v60  ;;  %v14046_v60 = vld [vmem:[%s16913_s7 + $0x50] sm:$0xff]  }
 0x709   :  { %v6793_v59 = vpop.f32.mrb[68].mxu0 }
 0x70a   :  { %v6804_v17 = vadd.f32 %v6793_v59, %v6645_v55  ;;  %v6795_v11 = vpop.f32.mrb[69].mxu0 }
 0x70b   :  { %v6805_v56 = vadd.f32 %v6795_v11, %v6646_v37  ;;  %v6797_v41 = vpop.f32.mrb[70].mxu0 }
 0x70c   :  { %v6822_v20 = vadd.f32 %v6811_v25, %v6804_v17  ;;  %v6798_v14 = vpop.f32.mrb[71].mxu0 }
 0x70d   :  { %v6844_v44 = vld [vmem:[#allocation8] sm:$0x3]  ;;  %v6854_v57 = vld [vmem:[#allocation8] sm:$0x30]  ;;  %v6823_v63 = vadd.f32 %v6815_v43, %v6805_v56  ;;  %v14044_v43 = vld [vmem:[%s16913_s7 + $0x48] sm:$0xff]  }
 0x70e   :  { %v6848_v19 = vrot.slane %v6844_v44, 3  ;;  %v6858_v49 = vrot.slane %v6854_v57, 3  ;;  %v6845_v2 = vld [vmem:[#allocation8 + $0x8] sm:$0x3]  ;;  %v6855_v61 = vld [vmem:[#allocation8 + $0x8] sm:$0x30] }
 0x70f   :  { %v6849_v52 = vrot.slane %v6845_v2, 3  ;;  %v6859_v10 = vrot.slane %v6855_v61, 3  ;;  %v6828_v36 = vmax.f32 %v6822_v20, 0.0  ;;  %v6829_v16 = vmax.f32 %v6823_v63, 0.0  ;;  %v14047_v44 = vld [vmem:[%s16913_s7 + $0x10] sm:$0xff]   ;;  %v14048_v61 = vld [vmem:[%s16913_s7 + $0x58] sm:$0xff]  }
 0x710   :  { %6852 = vst [vmem:[#allocation4] sm:$0x60] %v6848_v19  ;;  %6862 = vst [vmem:[#allocation4 + $0x10] sm:$0x6] %v6858_v49 }
 0x711   :  { %6853 = vst [vmem:[#allocation4 + $0x8] sm:$0x60] %v6849_v52  ;;  %6863 = vst [vmem:[#allocation4 + $0x18] sm:$0x6] %v6859_v10 }
 0x712   :  { %6834 = vst [vmem:[#allocation8 + $0x20] sm:$0x3f] %v6828_v36  ;;  %6835 = vst [vmem:[#allocation8 + $0x28] sm:$0x3f] %v6829_v16 }
 0x717   :  { %v16137_v30 = vld [vmem:[#allocation4 + $0x10] sm:$0xff]  ;;  %v6926_v33 = vld [vmem:[#allocation4] sm:$0xfe] }
 0x718   :  { %v16139_v28 = vld [vmem:[#allocation4 + $0x18] sm:$0xff]  ;;  %v6927_v0 = vld [vmem:[#allocation4 + $0x8] sm:$0xfe]  ;;  %v6930_v5 = vpack.c.bf16 %v16137_v30, %v6926_v33  ;;  %v7927_v39 = vld [vmem:[#allocation4] sm:$0xc0] }
 0x719   :  { %v6864_v26 = vld [vmem:[#allocation8 + $0x20] sm:$0x3]  ;;  %v6874_v35 = vld [vmem:[#allocation8 + $0x20] sm:$0x30]  ;;  %v6865_v46 = vld [vmem:[#allocation8 + $0x28] sm:$0x3]  ;;  %v6931_v58 = vpack.c.bf16 %v16139_v28, %v6927_v0  ;;  %v7931_v11 = vpack.c.bf16 %v16137_v30, %v7927_v39 }
 0x71a   :  { %v6868_v21 = vrot.slane %v6864_v26, 3  ;;  %v6878_v24 = vrot.slane %v6874_v35, 3  ;;  %v6869_v42 = vrot.slane %v6865_v46, 3  ;;  %v6875_v54 = vld [vmem:[#allocation8 + $0x28] sm:$0x30]  ;;  %v6971_v7 = vshll.u32 %v6930_v5, 16 }
 0x71b   :  { %v6879_v62 = vrot.slane %v6875_v54, 3  ;;  %v6983_v1 = vshll.u32 %v6931_v58, 16  ;;  %v6981_v47 = vshrl.u32 %v6931_v58, 16  ;;  %v6969_v32 = vshrl.u32 %v6930_v5, 16  ;;  %v7928_v23 = vld [vmem:[#allocation4 + $0x8] sm:$0xc0] }
 0x71c   :  { %6872 = vst [vmem:[#allocation4 + $0x20] sm:$0x60] %v6868_v21  ;;  %6882 = vst [vmem:[#allocation4 + $0x30] sm:$0x6] %v6878_v24  ;;  %v6973_v22 = vrot.slane %v6971_v7, 1  ;;  %v7932_v50 = vpack.c.bf16 %v16139_v28, %v7928_v23  ;;  %v6885_v59 = vld [vmem:[#allocation4 + $0x8] sm:$0xff] }
 0x71d   :  { %6873 = vst [vmem:[#allocation4 + $0x28] sm:$0x60] %v6869_v42  ;;  %6883 = vst [vmem:[#allocation4 + $0x38] sm:$0x6] %v6879_v62  ;;  %v6985_v27 = vrot.slane %v6983_v1, 1  ;;  %v6891_v36 = vpack.c.bf16 %v16139_v28, %v6885_v59  ;;  %v7973_v33 = vrot.slane %v7931_v11, 3 }
 0x71e   :  { %v6974_v13 = vor.u32 %v6973_v22, %v6969_v32  ;;  %v7976_v57 = vrot.slane %v7932_v50, 3  ;;  %v8317_v49 = vld [vmem:[#allocation4 + $0x18] sm:$0xfe]  ;;  %v8316_v2 = vld [vmem:[#allocation4 + $0x10] sm:$0xfe]  ;;  %v14058_v11 = vld [vmem:[%s16913_s7 + $0x140] sm:$0xff]  }
 0x71f   :  { %v6986_v37 = vor.u32 %v6985_v27, %v6981_v47  ;;  %v8539_v10 = vld [vmem:[#allocation4 + $0x18] sm:$0xfc]  ;;  %v8538_v32 = vld [vmem:[#allocation4 + $0x10] sm:$0xfc] }
 0x720   :  { %v14049_v7 = vld [vmem:[%s16913_s7 + $0x18] sm:$0xff]  }
 0x721   :  { %v14056_v59 = vld [vmem:[%s16913_s7 + $0x78] sm:$0xff]  }
 0x723   :  { %v6928_v9 = vld [vmem:[#allocation4 + $0x20] sm:$0x7f]  ;;  %v7929_v51 = vld [vmem:[#allocation4 + $0x30] sm:$0xf] }
 0x724   :  { %v6929_v18 = vld [vmem:[#allocation4 + $0x28] sm:$0x7f]  ;;  %v6932_v8 = vpack.c.bf16 %v6928_v9, %v6928_v9  ;;  %v7930_v15 = vld [vmem:[#allocation4 + $0x38] sm:$0xf]  ;;  %v16156_v31 = vld [vmem:[#allocation4 + $0x20] sm:$0xff] }
 0x725   :  { %v6933_v6 = vpack.c.bf16 %v6929_v18, %v6929_v18  ;;  %v16143_v45 = vld [vmem:[#allocation4 + $0x28] sm:$0xff]  ;;  %v8319_v41 = vld [vmem:[#allocation4 + $0x38] sm:$0x7f]  ;;  %v8318_v20 = vld [vmem:[#allocation4 + $0x30] sm:$0x7f]  ;;  %v7933_v19 = vpack.c.bf16 %v7929_v51, %v16156_v31  ;;  %v8132_v52 = vpack.c.bf16 %v16156_v31, %v16137_v30  ;;  %v8320_v24 = vpack.c.bf16 %v16156_v31, %v8316_v2 }
 0x726   :  { %v8133_v38 = vpack.c.bf16 %v16143_v45, %v16139_v28  ;;  %v6976_v55 = vshll.u32 %v6932_v8, 16  ;;  %v7934_v17 = vpack.c.bf16 %v7930_v15, %v16143_v45  ;;  %v6992_v56 = vshrl.u32 %v6932_v8, 16  ;;  %v8541_v14 = vld [vmem:[#allocation4 + $0x38] sm:$0xff]  ;;  %v8540_v1 = vld [vmem:[#allocation4 + $0x30] sm:$0xff]  ;;  %v14053_v51 = vld [vmem:[%s16913_s7 + $0x28] sm:$0xff]  }
 0x727   :  { %v6988_v12 = vshll.u32 %v6933_v6, 16  ;;  %v6995_v29 = vshrl.u32 %v6933_v6, 16  ;;  %v16182_v26 = vrot.slane %v7933_v19, 3  ;;  %v8321_v46 = vpack.c.bf16 %v16143_v45, %v8317_v49  ;;  %v14050_v6 = vld [vmem:[%s16913_s7 + $0x60] sm:$0xff]   ;;  %v7291_v19 = vld [vmem:[#allocation4 + $0x8] sm:$0xfc] }
 0x728   :  { %v6978_v4 = vrot.slane %v6976_v55, 1  ;;  %v16169_v63 = vrot.slane %v7934_v17, 3  ;;  %v16185_v21 = vpack.c.bf16 %v8319_v41, %v8319_v41  ;;  %v16192_v54 = vpack.c.bf16 %v8318_v20, %v8318_v20  ;;  %v14057_v17 = vld [vmem:[%s16913_s7 + $0x38] sm:$0xff]   ;;  %v6889_v41 = vld [vmem:[#allocation4 + $0x28] sm:$0x3f]  ;;  %v14059_v20 = vld [vmem:[%s16913_s7 + $0x100] sm:$0xff]  }
 0x729   :  { %v6990_v40 = vrot.slane %v6988_v12, 1  ;;  %v16190_v42 = vsel %vm7972_vm1, %v7973_v33, %v16182_v26  ;;  %v8543_v62 = vpack.c.bf16 %v16143_v45, %v8539_v10  ;;  %v8545_v0 = vpack.c.bf16 %v8541_v14, %v8541_v14  ;;  %v14061_v2 = vld [vmem:[%s16913_s7 + $0x108] sm:$0xff]  }
 0x72a   :  { %v6979_v53 = vsel %vm6967_vm0, %v6974_v13, %v6978_v4  ;;  %v16180_v16 = vsel %vm7972_vm1, %v7976_v57, %v16169_v63  ;;  %v6994_v35 = vor.u32 %v6992_v56, %v6978_v4  ;;  %v8372_v58 = vshll.u32 %v8321_v46, 16  ;;  %v14051_v13 = vld [vmem:[%s16913_s7 + $0x20] sm:$0xff]  }
 0x72b   :  { %v6991_v3 = vsel %vm6967_vm0, %v6986_v37, %v6990_v40  ;;  %v6997_v25 = vor.u32 %v6995_v29, %v6990_v40  ;;  %v8377_v5 = vshll.u32 %v16185_v21, 16  ;;  %v8360_v18 = vshll.u32 %v8320_v24, 16  ;;  %v6884_v56 = vld [vmem:[#allocation4] sm:$0xff] }
 0x72c   :  { %7130 = vmatprep.mubr.bf16.mxu0 %v6991_v3  ;;  %v8365_v9 = vshll.u32 %v16192_v54, 16  ;;  %v8370_v27 = vshrl.u32 %v8321_v46, 16  ;;  %v8374_v8 = vrot.slane %v8372_v58, 1  ;;  %v8586_v22 = vrot.slane %v8543_v62, 1  ;;  %v14064_v62 = vld [vmem:[%s16913_s7 + $0x158] sm:$0xff]  }
 0x72d   :  { %7131 = vmatmul.mubr.bf16.vlgmr.msra.gmra.mrb[72].mxu0 %v6979_v53  ;;  %v16203_v47 = vrot.slane %v8545_v0, 1  ;;  %v8358_v12 = vshrl.u32 %v8320_v24, 16  ;;  %v8362_v55 = vrot.slane %v8360_v18, 1  ;;  %v8544_v37 = vpack.c.bf16 %v8540_v1, %v8540_v1  ;;  %v14065_v58 = vld [vmem:[%s16913_s7 + $0x118] sm:$0xff]   ;;  %v14067_v1 = vld [vmem:[%s16913_s7 + $0x120] sm:$0xff]   ;;  %v14069_v18 = vld [vmem:[%s16913_s7 + $0x128] sm:$0xff]  }
 0x72e   :  { %11977 = vmatpush3.bf16.msra.mxu0 %v14043_v34  ;;  %7138 = vmatprep.mubr.bf16.mxu0 %v6997_v25  ;;  %v8375_v40 = vor.u32 %v8374_v8, %v8370_v27  ;;  %v16205_v4 = vrot.slane %v8377_v5, 1  ;;  %v8542_v23 = vpack.c.bf16 %v16156_v31, %v8538_v32  ;;  %v16215_v3 = vrot.slane %v8365_v9, 1  ;;  %v14066_v5 = vld [vmem:[%s16913_s7 + $0x160] sm:$0xff]   ;;  %v14070_v9 = vld [vmem:[%s16913_s7 + $0x170] sm:$0xff]   ;;  %v14072_v27 = vld [vmem:[%s16913_s7 + $0x178] sm:$0xff]  }
 0x72f   :  { %11978 = vmatprep.subr.bf16.mxu0 %v14044_v43  ;;  %v16209_v29 = vsel %vm7335_vm2, %v8586_v22, %v16203_v47  ;;  %v8363_v34 = vor.u32 %v8362_v55, %v8358_v12  ;;  %v16217_v25 = vrot.slane %v8544_v37, 1  ;;  %v14052_v43 = vld [vmem:[%s16913_s7 + $0x68] sm:$0xff]   ;;  %v6890_v14 = vpack.c.bf16 %v16137_v30, %v6884_v56  ;;  %v7290_v8 = vld [vmem:[#allocation4] sm:$0xfc]  ;;  %v14073_v12 = vld [vmem:[%s16913_s7 + $0x138] sm:$0xff]  }
 0x730   :  { %v16224_v15 = vsel %vm6967_vm0, %v8375_v40, %v16205_v4  ;;  %v8583_v39 = vrot.slane %v8542_v23, 1  ;;  %v6893_v57 = vpack.c.bf16 %v6889_v41, %v6889_v41  ;;  %v7297_v49 = vpack.c.bf16 %v16143_v45, %v16143_v45  ;;  %v14074_v32 = vld [vmem:[%s16913_s7 + $0x1c0] sm:$0xff]   ;;  %v14080_v41 = vld [vmem:[%s16913_s7 + $0x1d8] sm:$0xff]  }
 0x731   :  { %v16228_v53 = vsel %vm6967_vm0, %v8363_v34, %v16215_v3  ;;  %v7295_v10 = vpack.c.bf16 %v16139_v28, %v7291_v19  ;;  %v7296_v22 = vpack.c.bf16 %v16156_v31, %v16156_v31  ;;  %v7294_v55 = vpack.c.bf16 %v16137_v30, %v7290_v8  ;;  %v14075_v23 = vld [vmem:[%s16913_s7 + $0x180] sm:$0xff]   ;;  %v14076_v34 = vld [vmem:[%s16913_s7 + $0x1c8] sm:$0xff]  }
 0x732   :  { %11979 = vmatpush3.bf16.msra.mxu0 %v14045_v48  ;;  %v16232_v50 = vsel %vm7335_vm2, %v8583_v39, %v16217_v25  ;;  %v14054_v48 = vld [vmem:[%s16913_s7 + $0x70] sm:$0xff]   ;;  %v7340_v33 = vrot.slane %v7297_v49, 1  ;;  %v7494_v39 = vld [vmem:[#allocation4 + $0x8] sm:$0xf0] }
 0x733   :  { %11980 = vmatprep.subr.bf16.mxu0 %v14046_v60  ;;  %v14055_v60 = vld [vmem:[%s16913_s7 + $0x30] sm:$0xff]   ;;  %v7339_v24 = vrot.slane %v7295_v10, 1  ;;  %v7337_v37 = vrot.slane %v7296_v22, 1  ;;  %v7336_v40 = vrot.slane %v7294_v55, 1  ;;  %v14084_v19 = vld [vmem:[%s16913_s7 + $0x1e8] sm:$0xff]  }
 0x734   :  { %v14085_v49 = vld [vmem:[%s16913_s7 + $0x1a8] sm:$0xff]   ;;  %v14087_v10 = vld [vmem:[%s16913_s7 + $0x1b0] sm:$0xff]  }
 0x735   :  { %7139 = vmatmul.mubr.bf16.gmra.mrb[76].mxu0 %v6994_v35  ;;  %v14063_v35 = vld [vmem:[%s16913_s7 + $0x110] sm:$0xff]   ;;  %v7341_v0 = vsel %vm7335_vm2, %v7339_v24, %v7340_v33  ;;  %v7701_v24 = vld [vmem:[#allocation4 + $0x8] sm:$0xe0] }
 0x736   :  { %11981 = vmatpush3.bf16.msra.mxu0 %v14047_v44  ;;  %7274 = vmatprep.mubr.bf16.mxu0 %v6891_v36  ;;  %v14060_v44 = vld [vmem:[%s16913_s7 + $0x148] sm:$0xff]   ;;  %v6888_v36 = vld [vmem:[#allocation4 + $0x20] sm:$0x3f] }
 0x737   :  { %11982 = vmatprep.subr.bf16.mxu0 %v14048_v61  ;;  %v14062_v61 = vld [vmem:[%s16913_s7 + $0x150] sm:$0xff]   ;;  %v6892_v46 = vpack.c.bf16 %v6888_v36, %v6888_v36  ;;  %v7703_v36 = vld [vmem:[#allocation4 + $0x38] sm:$0x7]  ;;  %v14092_v8 = vld [vmem:[%s16913_s7 + $0x248] sm:$0xff]  }
 0x73a   :  { %11983 = vmatpush3.bf16.msra.mxu0 %v14049_v7  ;;  %v14068_v7 = vld [vmem:[%s16913_s7 + $0x168] sm:$0xff]  }
 0x73b   :  { %11984 = vmatprep.subr.bf16.mxu0 %v14050_v6  ;;  %v14071_v6 = vld [vmem:[%s16913_s7 + $0x130] sm:$0xff]  }
 0x73e   :  { %11985 = vmatpush3.bf16.msra.mxu0 %v14051_v13  ;;  %v7500_v13 = vld [vmem:[#allocation4 + $0x38] sm:$0x3] }
 0x73f   :  { %11986 = vmatprep.subr.bf16.mxu0 %v14052_v43  ;;  %v7338_v43 = vsel %vm7335_vm2, %v7336_v40, %v7337_v37  ;;  %v14093_v40 = vld [vmem:[%s16913_s7 + $0x208] sm:$0xff]  }
 0x742   :  { %11987 = vmatpush3.bf16.msra.mxu0 %v14053_v51  ;;  %v7504_v51 = vpack.c.bf16 %v7500_v13, %v16143_v45 }
 0x743   :  { %11988 = vmatprep.subr.bf16.mxu0 %v14054_v48  ;;  %v14077_v48 = vld [vmem:[%s16913_s7 + $0x188] sm:$0xff]  }
 0x746   :  { %11989 = vmatpush3.bf16.msra.mxu0 %v14055_v60  ;;  %v14078_v60 = vld [vmem:[%s16913_s7 + $0x1d0] sm:$0xff]  }
 0x747   :  { %11990 = vmatprep.subr.bf16.mxu0 %v14056_v59  ;;  %v7502_v59 = vpack.c.bf16 %v16139_v28, %v7494_v39  ;;  %v14095_v39 = vld [vmem:[%s16913_s7 + $0x210] sm:$0xff]  }
 0x749   :  { %v7546_v56 = vrot.slane %v7502_v59, 2  ;;  %v14097_v59 = vld [vmem:[%s16913_s7 + $0x218] sm:$0xff]  }
 0x74a   :  { %11991 = vmatpush3.bf16.msra.mxu0 %v14057_v17  ;;  %v7547_v17 = vrot.slane %v7504_v51, 2 }
 0x74b   :  { %12004 = vmatprep.subr.bf16.mxu0 %v14058_v11  ;;  %v14079_v11 = vld [vmem:[%s16913_s7 + $0x190] sm:$0xff]  }
 0x74d   :  { %7275 = vmatmul.mubr.bf16.vlgmr.msra.gmra.mrb[80].mxu0 %v6890_v14  ;;  %v14081_v14 = vld [vmem:[%s16913_s7 + $0x198] sm:$0xff]  }
 0x74e   :  { %7282 = vmatprep.mubr.bf16.mxu0 %v6893_v57  ;;  %12005 = vmatpush3.bf16.msra.mxu0 %v14059_v20  ;;  %v7548_v20 = vsel %vm7542_vm3, %v7546_v56, %v7547_v17  ;;  %v14083_v57 = vld [vmem:[%s16913_s7 + $0x1a0] sm:$0xff]  }
 0x74f   :  { %12006 = vmatprep.subr.bf16.mxu0 %v14060_v44  ;;  %v14082_v44 = vld [vmem:[%s16913_s7 + $0x1e0] sm:$0xff]  }
 0x750   :  { %v14099_v56 = vld [vmem:[%s16913_s7 + $0x220] sm:$0xff]  }
 0x752   :  { %12007 = vmatpush3.bf16.msra.mxu0 %v14061_v2  ;;  %v14086_v2 = vld [vmem:[%s16913_s7 + $0x1f0] sm:$0xff]  }
 0x753   :  { %12008 = vmatprep.subr.bf16.mxu0 %v14062_v61  ;;  %v7499_v61 = vld [vmem:[#allocation4 + $0x30] sm:$0x3] }
 0x755   :  { %7283 = vmatmul.mubr.bf16.gmra.mrb[84].mxu0 %v6892_v46  ;;  %v7503_v46 = vpack.c.bf16 %v7499_v61, %v16156_v31  ;;  %v14103_v61 = vld [vmem:[%s16913_s7 + $0x230] sm:$0xff]  }
 0x756   :  { %12009 = vmatpush3.bf16.msra.mxu0 %v14063_v35  ;;  %7474 = vmatprep.mubr.bf16.mxu0 %v7341_v0  ;;  %v7493_v35 = vld [vmem:[#allocation4] sm:$0xf0]  ;;  %v14089_v0 = vld [vmem:[%s16913_s7 + $0x1b8] sm:$0xff]  }
 0x757   :  { %12010 = vmatprep.subr.bf16.mxu0 %v14064_v62  ;;  %v7707_v62 = vpack.c.bf16 %v7703_v36, %v16143_v45  ;;  %v14133_v45 = vld [vmem:[%s16913_s7 + $0x328] sm:$0xff]  }
 0x75a   :  { %12011 = vmatpush3.bf16.msra.mxu0 %v14065_v58  ;;  %v7501_v58 = vpack.c.bf16 %v16137_v30, %v7493_v35 }
 0x75b   :  { %12012 = vmatprep.subr.bf16.mxu0 %v14066_v5  ;;  %v14090_v5 = vld [vmem:[%s16913_s7 + $0x240] sm:$0xff]  }
 0x75e   :  { %12013 = vmatpush3.bf16.msra.mxu0 %v14067_v1  ;;  %v7705_v1 = vpack.c.bf16 %v16139_v28, %v7701_v24  ;;  %v14105_v24 = vld [vmem:[%s16913_s7 + $0x238] sm:$0xff]   ;;  %v14132_v28 = vld [vmem:[%s16913_s7 + $0x368] sm:$0xff]  }
 0x75f   :  { %12014 = vmatprep.subr.bf16.mxu0 %v14068_v7  ;;  %v7544_v7 = vrot.slane %v7503_v46, 2 }
 0x760   :  { %v7760_v22 = vshrl.u32 %v7705_v1, 16 }
 0x762   :  { %12015 = vmatpush3.bf16.msra.mxu0 %v14069_v18  ;;  %v7768_v18 = vshrl.u32 %v7707_v62, 16  ;;  %v7762_v13 = vrot.slane %v7760_v22, 2  ;;  %v14112_v22 = vld [vmem:[%s16913_s7 + $0x2d8] sm:$0xff]  }
 0x763   :  { %12016 = vmatprep.subr.bf16.mxu0 %v14070_v9  ;;  %v7771_v9 = vshll.u32 %v7707_v62, 16 }
 0x766   :  { %12017 = vmatpush3.bf16.msra.mxu0 %v14071_v6  ;;  %v7543_v6 = vrot.slane %v7501_v58, 2  ;;  %v14106_v58 = vld [vmem:[%s16913_s7 + $0x2c0] sm:$0xff]  }
 0x767   :  { %12018 = vmatprep.subr.bf16.mxu0 %v14072_v27  ;;  %v14091_v27 = vld [vmem:[%s16913_s7 + $0x200] sm:$0xff]  }
 0x768   :  { %v7545_v55 = vsel %vm7542_vm3, %v7543_v6, %v7544_v7  ;;  %v14109_v6 = vld [vmem:[%s16913_s7 + $0x288] sm:$0xff]  }
 0x76a   :  { %12019 = vmatpush3.bf16.msra.mxu0 %v14073_v12  ;;  %v7763_v12 = vshll.u32 %v7705_v1, 16 }
 0x76b   :  { %12032 = vmatprep.subr.bf16.mxu0 %v14074_v32  ;;  %v7770_v32 = vrot.slane %v7768_v18, 2  ;;  %v14108_v18 = vld [vmem:[%s16913_s7 + $0x2c8] sm:$0xff]  }
 0x76d   :  { %7475 = vmatmul.mubr.bf16.vlgmr.msra.gmra.mrb[88].mxu0 %v7338_v43 }
 0x76e   :  { %7482 = vmatprep.mubr.bf16.mxu0 %v7340_v33  ;;  %12033 = vmatpush3.bf16.msra.mxu0 %v14075_v23  ;;  %v14088_v33 = vld [vmem:[%s16913_s7 + $0x1f8] sm:$0xff]   ;;  %v14094_v23 = vld [vmem:[%s16913_s7 + $0x250] sm:$0xff]  }
 0x76f   :  { %12034 = vmatprep.subr.bf16.mxu0 %v14076_v34  ;;  %v7765_v34 = vrot.slane %v7763_v12, 3  ;;  %v14113_v12 = vld [vmem:[%s16913_s7 + $0x298] sm:$0xff]  }
 0x771   :  { %v7766_v51 = vor.u32 %v7765_v34, %v7762_v13  ;;  %v14120_v13 = vld [vmem:[%s16913_s7 + $0x2f8] sm:$0xff]  }
 0x772   :  { %12035 = vmatpush3.bf16.msra.mxu0 %v14077_v48  ;;  %v14096_v48 = vld [vmem:[%s16913_s7 + $0x258] sm:$0xff]  }
 0x773   :  { %12036 = vmatprep.subr.bf16.mxu0 %v14078_v60  ;;  %v14121_v34 = vld [vmem:[%s16913_s7 + $0x2b8] sm:$0xff]  }
 0x775   :  { %7483 = vmatmul.mubr.bf16.gmra.mrb[92].mxu0 %v7337_v37  ;;  %v7773_v37 = vrot.slane %v7771_v9, 3 }
 0x776   :  { %12037 = vmatpush3.bf16.msra.mxu0 %v14079_v11  ;;  %7681 = vmatprep.mubr.bf16.mxu0 %v7548_v20  ;;  %v7702_v11 = vld [vmem:[#allocation4 + $0x30] sm:$0x7]  ;;  %v7700_v20 = vld [vmem:[#allocation4] sm:$0xe0] }
 0x777   :  { %12038 = vmatprep.subr.bf16.mxu0 %v14080_v41  ;;  %v7774_v43 = vor.u32 %v7773_v37, %v7770_v32  ;;  %v14100_v41 = vld [vmem:[%s16913_s7 + $0x268] sm:$0xff]   ;;  %v14115_v32 = vld [vmem:[%s16913_s7 + $0x2a0] sm:$0xff]  }
 0x778   :  { %v14116_v37 = vld [vmem:[%s16913_s7 + $0x2e8] sm:$0xff]  }
 0x779   :  { %v7775_v60 = vsel %vm7741_vm4, %v7766_v51, %v7774_v43  ;;  %v14124_v51 = vld [vmem:[%s16913_s7 + $0x348] sm:$0xff]  }
 0x77a   :  { %12039 = vmatpush3.bf16.msra.mxu0 %v14081_v14  ;;  %v7706_v14 = vpack.c.bf16 %v7702_v11, %v16156_v31  ;;  %v14131_v11 = vld [vmem:[%s16913_s7 + $0x320] sm:$0xff]   ;;  %v14145_v31 = vld [vmem:[%s16913_s7 + $0x398] sm:$0xff]  }
 0x77b   :  { %12040 = vmatprep.subr.bf16.mxu0 %v14082_v44  ;;  %v14101_v44 = vld [vmem:[%s16913_s7 + $0x228] sm:$0xff]  }
 0x77e   :  { %12041 = vmatpush3.bf16.msra.mxu0 %v14083_v57  ;;  %v7704_v57 = vpack.c.bf16 %v16137_v30, %v7700_v20  ;;  %v14138_v20 = vld [vmem:[%s16913_s7 + $0x3c0] sm:$0xff]   ;;  %v14144_v30 = vld [vmem:[%s16913_s7 + $0x3d8] sm:$0xff]  }
 0x77f   :  { %12042 = vmatprep.subr.bf16.mxu0 %v14084_v19  ;;  %v14102_v19 = vld [vmem:[%s16913_s7 + $0x270] sm:$0xff]  }
 0x780   :  { %v7746_v36 = vshll.u32 %v7704_v57, 16 }
 0x782   :  { %12043 = vmatpush3.bf16.msra.mxu0 %v14085_v49  ;;  %v7751_v49 = vshrl.u32 %v7706_v14, 16 }
 0x783   :  { %12044 = vmatprep.subr.bf16.mxu0 %v14086_v2  ;;  %v7754_v2 = vshll.u32 %v7706_v14, 16  ;;  %v8131_v14 = vld [vmem:[#allocation4 + $0x38] sm:$0x3f] }
 0x784   :  { %v7753_v35 = vrot.slane %v7751_v49, 2  ;;  %v14141_v49 = vld [vmem:[%s16913_s7 + $0x388] sm:$0xff]  }
 0x785   :  { %v7756_v46 = vrot.slane %v7754_v2, 3  ;;  %v14142_v2 = vld [vmem:[%s16913_s7 + $0x3d0] sm:$0xff]  }
 0x786   :  { %12045 = vmatpush3.bf16.msra.mxu0 %v14087_v10  ;;  %v7743_v10 = vshrl.u32 %v7704_v57, 16  ;;  %v14140_v57 = vld [vmem:[%s16913_s7 + $0x3c8] sm:$0xff]  }
 0x787   :  { %12046 = vmatprep.subr.bf16.mxu0 %v14088_v33  ;;  %v14104_v33 = vld [vmem:[%s16913_s7 + $0x278] sm:$0xff]  }
 0x788   :  { %v7745_v62 = vrot.slane %v7743_v10, 2  ;;  %v14143_v10 = vld [vmem:[%s16913_s7 + $0x390] sm:$0xff]  }
 0x78a   :  { %12047 = vmatpush3.bf16.msra.mxu0 %v14089_v0  ;;  %v7748_v0 = vrot.slane %v7746_v36, 3 }
 0x78b   :  { %12060 = vmatprep.subr.bf16.mxu0 %v14090_v5  ;;  %v7757_v5 = vor.u32 %v7756_v46, %v7753_v35  ;;  %v14148_v35 = vld [vmem:[%s16913_s7 + $0x3e8] sm:$0xff]   ;;  %v14150_v46 = vld [vmem:[%s16913_s7 + $0x3f0] sm:$0xff]  }
 0x78c   :  { %v7749_v1 = vor.u32 %v7748_v0, %v7745_v62 }
 0x78d   :  { %7682 = vmatmul.mubr.bf16.vlgmr.msra.gmra.mrb[96].mxu0 %v7545_v55  ;;  %v14114_v55 = vld [vmem:[%s16913_s7 + $0x2e0] sm:$0xff]  }
 0x78e   :  { %7689 = vmatprep.mubr.bf16.mxu0 %v7547_v17  ;;  %12061 = vmatpush3.bf16.msra.mxu0 %v14091_v27  ;;  %v14098_v17 = vld [vmem:[%s16913_s7 + $0x260] sm:$0xff]   ;;  %v7758_v9 = vsel %vm7741_vm4, %v7749_v1, %v7757_v5  ;;  %v14110_v27 = vld [vmem:[%s16913_s7 + $0x2d0] sm:$0xff]  }
 0x78f   :  { %12062 = vmatprep.subr.bf16.mxu0 %v14092_v8  ;;  %v14111_v8 = vld [vmem:[%s16913_s7 + $0x290] sm:$0xff]  }
 0x792   :  { %12063 = vmatpush3.bf16.msra.mxu0 %v14093_v40  ;;  %v14118_v40 = vld [vmem:[%s16913_s7 + $0x2f0] sm:$0xff]  }
 0x793   :  { %12064 = vmatprep.subr.bf16.mxu0 %v14094_v23  ;;  %v14119_v23 = vld [vmem:[%s16913_s7 + $0x2b0] sm:$0xff]  }
 0x795   :  { %7690 = vmatmul.mubr.bf16.gmra.mrb[100].mxu0 %v7544_v7  ;;  %v14107_v7 = vld [vmem:[%s16913_s7 + $0x280] sm:$0xff]  }
 0x796   :  { %12065 = vmatpush3.bf16.msra.mxu0 %v14095_v39  ;;  %7908 = vmatprep.mubr.bf16.mxu0 %v7775_v60  ;;  %v14123_v39 = vld [vmem:[%s16913_s7 + $0x300] sm:$0xff]   ;;  %v14126_v60 = vld [vmem:[%s16913_s7 + $0x350] sm:$0xff]  }
 0x797   :  { %12066 = vmatprep.subr.bf16.mxu0 %v14096_v48  ;;  %v14125_v48 = vld [vmem:[%s16913_s7 + $0x308] sm:$0xff]  }
 0x79a   :  { %12067 = vmatpush3.bf16.msra.mxu0 %v14097_v59  ;;  %v14127_v59 = vld [vmem:[%s16913_s7 + $0x310] sm:$0xff]  }
 0x79b   :  { %12068 = vmatprep.subr.bf16.mxu0 %v14098_v17  ;;  %v14130_v17 = vld [vmem:[%s16913_s7 + $0x360] sm:$0xff]  }
 0x79e   :  { %12069 = vmatpush3.bf16.msra.mxu0 %v14099_v56  ;;  %v14136_v56 = vld [vmem:[%s16913_s7 + $0x378] sm:$0xff]  }
 0x79f   :  { %12070 = vmatprep.subr.bf16.mxu0 %v14100_v41  ;;  %v14137_v41 = vld [vmem:[%s16913_s7 + $0x338] sm:$0xff]  }
 0x7a2   :  { %12071 = vmatpush3.bf16.msra.mxu0 %v14101_v44  ;;  %v14139_v44 = vld [vmem:[%s16913_s7 + $0x380] sm:$0xff]  }
 0x7a3   :  { %12072 = vmatprep.subr.bf16.mxu0 %v14102_v19  ;;  %v8135_v19 = vpack.c.bf16 %v8131_v14, %v8131_v14 }
 0x7a6   :  { %12073 = vmatpush3.bf16.msra.mxu0 %v14103_v61  ;;  %v8130_v61 = vld [vmem:[#allocation4 + $0x30] sm:$0x3f] }
 0x7a7   :  { %12074 = vmatprep.subr.bf16.mxu0 %v14104_v33  ;;  %v8134_v36 = vpack.c.bf16 %v8130_v61, %v8130_v61  ;;  %v14147_v33 = vld [vmem:[%s16913_s7 + $0x3a0] sm:$0xff]  }
 0x7aa   :  { %12075 = vmatpush3.bf16.msra.mxu0 %v14105_v24 }
 0x7ab   :  { %12088 = vmatprep.subr.bf16.mxu0 %v14106_v58 }
 0x7ad   :  { %7909 = vmatmul.mubr.bf16.vlgmr.msra.gmra.mrb[104].mxu0 %v7758_v9  ;;  %v14154_v9 = vld [vmem:[%s16913_s7 + $0x440] sm:$0xff]  }
 0x7ae   :  { %7916 = vmatprep.mubr.bf16.mxu0 %v7774_v43  ;;  %12089 = vmatpush3.bf16.msra.mxu0 %v14107_v7  ;;  %v14122_v43 = vld [vmem:[%s16913_s7 + $0x340] sm:$0xff]   ;;  %v14152_v7 = vld [vmem:[%s16913_s7 + $0x3f8] sm:$0xff]  }
 0x7af   :  { %12090 = vmatprep.subr.bf16.mxu0 %v14108_v18  ;;  %v14153_v18 = vld [vmem:[%s16913_s7 + $0x3b8] sm:$0xff]  }
 0x7b2   :  { %12091 = vmatpush3.bf16.msra.mxu0 %v14109_v6 }
 0x7b3   :  { %12092 = vmatprep.subr.bf16.mxu0 %v14110_v27 }
 0x7b5   :  { %7917 = vmatmul.mubr.bf16.gmra.mrb[108].mxu0 %v7757_v5  ;;  %v14151_v5 = vld [vmem:[%s16913_s7 + $0x3b0] sm:$0xff]  }
 0x7b6   :  { %12093 = vmatpush3.bf16.msra.mxu0 %v14111_v8  ;;  %8111 = vmatprep.mubr.bf16.mxu0 %v16180_v16  ;;  %v14117_v16 = vld [vmem:[%s16913_s7 + $0x2a8] sm:$0xff]  }
 0x7b7   :  { %12094 = vmatprep.subr.bf16.mxu0 %v14112_v22 }
 0x7ba   :  { %12095 = vmatpush3.bf16.msra.mxu0 %v14113_v12  ;;  %v8384_v12 = vshrl.u32 %v16185_v21, 16  ;;  %v14157_v21 = vld [vmem:[%s16913_s7 + $0x408] sm:$0xff]  }
 0x7bb   :  { %12096 = vmatprep.subr.bf16.mxu0 %v14114_v55  ;;  %v14155_v55 = vld [vmem:[%s16913_s7 + $0x400] sm:$0xff]  }
 0x7be   :  { %12097 = vmatpush3.bf16.msra.mxu0 %v14115_v32 }
 0x7bf   :  { %12098 = vmatprep.subr.bf16.mxu0 %v14116_v37  ;;  %v14156_v37 = vld [vmem:[%s16913_s7 + $0x448] sm:$0xff]  }
 0x7c2   :  { %12099 = vmatpush3.bf16.msra.mxu0 %v14117_v16  ;;  %v8386_v16 = vor.u32 %v8384_v12, %v16205_v4  ;;  %v14159_v4 = vld [vmem:[%s16913_s7 + $0x410] sm:$0xff]  }
 0x7c3   :  { %12100 = vmatprep.subr.bf16.mxu0 %v14118_v40  ;;  %v14158_v40 = vld [vmem:[%s16913_s7 + $0x450] sm:$0xff]  }
 0x7c6   :  { %12101 = vmatpush3.bf16.msra.mxu0 %v14119_v23  ;;  %v8381_v23 = vshrl.u32 %v16192_v54, 16  ;;  %v14161_v54 = vld [vmem:[%s16913_s7 + $0x418] sm:$0xff]  }
 0x7c7   :  { %12102 = vmatprep.subr.bf16.mxu0 %v14120_v13  ;;  %v14160_v13 = vld [vmem:[%s16913_s7 + $0x458] sm:$0xff]  }
 0x7ca   :  { %12103 = vmatpush3.bf16.msra.mxu0 %v14121_v34  ;;  %v14162_v34 = vld [vmem:[%s16913_s7 + $0x460] sm:$0xff]  }
 0x7cb   :  { %12116 = vmatprep.subr.bf16.mxu0 %v14122_v43  ;;  %v14164_v43 = vld [vmem:[%s16913_s7 + $0x468] sm:$0xff]  }
 0x7cd   :  { %8112 = vmatmul.mubr.bf16.vlgmr.msra.gmra.mrb[112].mxu0 %v16190_v42  ;;  %v14129_v42 = vld [vmem:[%s16913_s7 + $0x318] sm:$0xff]  }
 0x7ce   :  { %8119 = vmatprep.mubr.bf16.mxu0 %v16169_v63  ;;  %12117 = vmatpush3.bf16.msra.mxu0 %v14123_v39  ;;  %v14128_v63 = vld [vmem:[%s16913_s7 + $0x358] sm:$0xff]   ;;  %v14166_v39 = vld [vmem:[%s16913_s7 + $0x470] sm:$0xff]  }
 0x7cf   :  { %12118 = vmatprep.subr.bf16.mxu0 %v14124_v51 }
 0x7d2   :  { %12119 = vmatpush3.bf16.msra.mxu0 %v14125_v48 }
 0x7d3   :  { %12120 = vmatprep.subr.bf16.mxu0 %v14126_v60 }
 0x7d5   :  { %8120 = vmatmul.mubr.bf16.gmra.mrb[116].mxu0 %v16182_v26  ;;  %v14135_v26 = vld [vmem:[%s16913_s7 + $0x330] sm:$0xff]  }
 0x7d6   :  { %12121 = vmatpush3.bf16.msra.mxu0 %v14127_v59  ;;  %8297 = vmatprep.mubr.bf16.mxu0 %v8133_v38  ;;  %v14134_v38 = vld [vmem:[%s16913_s7 + $0x370] sm:$0xff]  }
 0x7d7   :  { %12122 = vmatprep.subr.bf16.mxu0 %v14128_v63  ;;  %v14167_v63 = vld [vmem:[%s16913_s7 + $0x430] sm:$0xff]  }
 0x7da   :  { %12123 = vmatpush3.bf16.msra.mxu0 %v14129_v42 }
 0x7db   :  { %12124 = vmatprep.subr.bf16.mxu0 %v14130_v17  ;;  %v14168_v17 = vld [vmem:[%s16913_s7 + $0x478] sm:$0xff]  }
 0x7de   :  { %12125 = vmatpush3.bf16.msra.mxu0 %v14131_v11 }
 0x7df   :  { %12126 = vmatprep.subr.bf16.mxu0 %v14132_v28  ;;  %v14169_v28 = vld [vmem:[%s16913_s7 + $0x438] sm:$0xff]  }
 0x7e2   :  { %12127 = vmatpush3.bf16.msra.mxu0 %v14133_v45 }
 0x7e3   :  { %12128 = vmatprep.subr.bf16.mxu0 %v14134_v38 }
 0x7e6   :  { %12129 = vmatpush3.bf16.msra.mxu0 %v14135_v26 }
 0x7e7   :  { %12130 = vmatprep.subr.bf16.mxu0 %v14136_v56 }
 0x7ea   :  { %12131 = vmatpush3.bf16.msra.mxu0 %v14137_v41 }
 0x7eb   :  { %12144 = vmatprep.subr.bf16.mxu0 %v14138_v20 }
 0x7ed   :  { %8298 = vmatmul.mubr.bf16.vlgmr.msra.gmra.mrb[120].mxu0 %v8132_v52  ;;  %v14146_v52 = vld [vmem:[%s16913_s7 + $0x3e0] sm:$0xff]  }
 0x7ee   :  { %8305 = vmatprep.mubr.bf16.mxu0 %v8135_v19  ;;  %12145 = vmatpush3.bf16.msra.mxu0 %v14139_v44 }
 0x7ef   :  { %12146 = vmatprep.subr.bf16.mxu0 %v14140_v57 }
 0x7f2   :  { %12147 = vmatpush3.bf16.msra.mxu0 %v14141_v49 }
 0x7f3   :  { %12148 = vmatprep.subr.bf16.mxu0 %v14142_v2 }
 0x7f5   :  { %8306 = vmatmul.mubr.bf16.gmra.mrb[124].mxu0 %v8134_v36 }
 0x7f6   :  { %12149 = vmatpush3.bf16.msra.mxu0 %v14143_v10  ;;  %8519 = vmatprep.mubr.bf16.mxu0 %v16224_v15  ;;  %v14149_v15 = vld [vmem:[%s16913_s7 + $0x3a8] sm:$0xff]  }
 0x7f7   :  { %12150 = vmatprep.subr.bf16.mxu0 %v14144_v30 }
 0x7fa   :  { %12151 = vmatpush3.bf16.msra.mxu0 %v14145_v31 }
 0x7fb   :  { %12152 = vmatprep.subr.bf16.mxu0 %v14146_v52 }
 0x7fe   :  { %12153 = vmatpush3.bf16.msra.mxu0 %v14147_v33 }
 0x7ff   :  { %12154 = vmatprep.subr.bf16.mxu0 %v14148_v35 }
 0x800   :  { %v11964_v24 = vpop.f32.mrb[72].mxu0 }
 0x801   :  { %v11965_v62 = vpop.f32.mrb[73].mxu0 }
 0x802   :  { %v11966_v0 = vadd.f32 %v11965_v62, %v11964_v24  ;;  %12155 = vmatpush3.bf16.msra.mxu0 %v14149_v15  ;;  %v11967_v58 = vpop.f32.mrb[74].mxu0 }
 0x803   :  { %v11968_v1 = vpop.f32.mrb[75].mxu0  ;;  %12156 = vmatprep.subr.bf16.mxu0 %v14150_v46 }
 0x806   :  { %12157 = vmatpush3.bf16.msra.mxu0 %v14151_v5 }
 0x807   :  { %12158 = vmatprep.subr.bf16.mxu0 %v14152_v7 }
 0x808   :  { %v11970_v6 = vpop.f32.mrb[76].mxu0 }
 0x809   :  { %v11971_v27 = vpop.f32.mrb[77].mxu0 }
 0x80a   :  { %v11972_v8 = vadd.f32 %v11971_v27, %v11970_v6  ;;  %12159 = vmatpush3.bf16.msra.mxu0 %v14153_v18  ;;  %v11973_v22 = vpop.f32.mrb[78].mxu0 }
 0x80b   :  { %v11974_v32 = vpop.f32.mrb[79].mxu0  ;;  %12172 = vmatprep.subr.bf16.mxu0 %v14154_v9 }
 0x80d   :  { %8520 = vmatmul.mubr.bf16.vlgmr.msra.gmra.mrb[128].mxu0 %v16228_v53  ;;  %v8383_v53 = vor.u32 %v8381_v23, %v16215_v3  ;;  %v14163_v3 = vld [vmem:[%s16913_s7 + $0x420] sm:$0xff]   ;;  %v14173_v23 = vld [vmem:[%s16915_s9 + $0x1c8] sm:$0xff]  }
 0x80e   :  { %8527 = vmatprep.mubr.bf16.mxu0 %v8386_v16  ;;  %12173 = vmatpush3.bf16.msra.mxu0 %v14155_v55  ;;  %v14170_v16 = vld [vmem:[%s16915_s9 + $0x40] sm:$0xff]  }
 0x80f   :  { %12174 = vmatprep.subr.bf16.mxu0 %v14156_v37 }
 0x812   :  { %12175 = vmatpush3.bf16.msra.mxu0 %v14157_v21  ;;  %v14171_v21 = vld [vmem:[%s16915_s9 + $0x1c0] sm:$0xff]  }
 0x813   :  { %12176 = vmatprep.subr.bf16.mxu0 %v14158_v40  ;;  %v14172_v40 = vld [vmem:[%s16915_s9 + $0x48] sm:$0xff]   ;;  %13171 = vmatprep.subr.bf16.mxu1 %v14171_v21 }
 0x814   :  { %13172 = vmatpush3.bf16.msra.mxu1 %v14171_v21 }
 0x815   :  { %8528 = vmatmul.mubr.bf16.gmra.mrb[132].mxu0 %v8383_v53  ;;  %v14175_v53 = vld [vmem:[%s16915_s9 + $0x1d0] sm:$0xff]   ;;  %13173 = vmatprep.subr.bf16.mxu1 %v14173_v23 }
 0x816   :  { %12177 = vmatpush3.bf16.msra.mxu0 %v14159_v4  ;;  %8721 = vmatprep.mubr.bf16.mxu0 %v16209_v29  ;;  %v14165_v29 = vld [vmem:[%s16913_s7 + $0x428] sm:$0xff]   ;;  %v14174_v4 = vld [vmem:[%s16915_s9 + $0x50] sm:$0xff]  }
 0x817   :  { %12178 = vmatprep.subr.bf16.mxu0 %v14160_v13  ;;  %v14176_v13 = vld [vmem:[%s16915_s9 + $0x58] sm:$0xff]  }
 0x818   :  { %13174 = vmatpush3.bf16.msra.mxu1 %v14173_v23 }
 0x819   :  { %13175 = vmatprep.subr.bf16.mxu1 %v14175_v53 }
 0x81a   :  { %12179 = vmatpush3.bf16.msra.mxu0 %v14161_v54  ;;  %v14177_v54 = vld [vmem:[%s16915_s9 + $0x1d8] sm:$0xff]  }
 0x81b   :  { %12180 = vmatprep.subr.bf16.mxu0 %v14162_v34  ;;  %v14178_v34 = vld [vmem:[%s16915_s9 + $0x60] sm:$0xff]  }
 0x81c   :  { %13176 = vmatpush3.bf16.msra.mxu1 %v14175_v53 }
 0x81d   :  { %13177 = vmatprep.subr.bf16.mxu1 %v14177_v54 }
 0x81e   :  { %12181 = vmatpush3.bf16.msra.mxu0 %v14163_v3 }
 0x81f   :  { %12182 = vmatprep.subr.bf16.mxu0 %v14164_v43 }
 0x820   :  { %v11992_v51 = vpop.f32.mrb[80].mxu0  ;;  %13178 = vmatpush3.bf16.msra.mxu1 %v14177_v54 }
 0x821   :  { %v11993_v48 = vpop.f32.mrb[81].mxu0 }
 0x822   :  { %v11994_v60 = vadd.f32 %v11993_v48, %v11992_v51  ;;  %v11995_v59 = vpop.f32.mrb[82].mxu0  ;;  %12183 = vmatpush3.bf16.msra.mxu0 %v14165_v29  ;;  %v14179_v51 = vld [vmem:[%s16915_s9 + $0x1e0] sm:$0xff]  }
 0x823   :  { %v11996_v42 = vpop.f32.mrb[83].mxu0  ;;  %12184 = vmatprep.subr.bf16.mxu0 %v14166_v39  ;;  %13179 = vmatprep.subr.bf16.mxu1 %v14179_v51 }
 0x824   :  { %v7277_v11 = vadd.f32 %v11994_v60, %v11966_v0  ;;  %v14180_v60 = vld [vmem:[%s16915_s9 + $0x68] sm:$0xff]   ;;  %v14182_v42 = vld [vmem:[%s16915_s9 + $0x70] sm:$0xff]   ;;  %13180 = vmatpush3.bf16.msra.mxu1 %v14179_v51 }
 0x826   :  { %12185 = vmatpush3.bf16.msra.mxu0 %v14167_v63  ;;  %v14181_v63 = vld [vmem:[%s16915_s9 + $0x1e8] sm:$0xff]  }
 0x827   :  { %12186 = vmatprep.subr.bf16.mxu0 %v14168_v17  ;;  %13181 = vmatprep.subr.bf16.mxu1 %v14181_v63 }
 0x828   :  { %v11998_v45 = vpop.f32.mrb[84].mxu0  ;;  %13182 = vmatpush3.bf16.msra.mxu1 %v14181_v63 }
 0x829   :  { %v11999_v38 = vpop.f32.mrb[85].mxu0 }
 0x82a   :  { %v12000_v26 = vadd.f32 %v11999_v38, %v11998_v45  ;;  %v12001_v56 = vpop.f32.mrb[86].mxu0  ;;  %12187 = vmatpush3.bf16.msra.mxu0 %v14169_v28  ;;  %v14183_v38 = vld [vmem:[%s16915_s9 + $0x1f0] sm:$0xff]  }
 0x82b   :  { %v12002_v41 = vpop.f32.mrb[87].mxu0  ;;  %13031 = vmatprep.subr.bf16.mxu0 %v14170_v16  ;;  %v14184_v56 = vld [vmem:[%s16915_s9 + $0x78] sm:$0xff]   ;;  %13183 = vmatprep.subr.bf16.mxu1 %v14183_v38 }
 0x82c   :  { %v7285_v20 = vadd.f32 %v12000_v26, %v11972_v8  ;;  %13184 = vmatpush3.bf16.msra.mxu1 %v14183_v38 }
 0x82d   :  { %8722 = vmatmul.mubr.bf16.vlgmr.msra.gmra.mrb[136].mxu0 %v16232_v50 }
 0x82e   :  { %8729 = vmatprep.mubr.bf16.mxu0 %v16203_v47  ;;  %13032 = vmatpush3.bf16.msra.mxu0 %v14170_v16 }
 0x82f   :  { %13033 = vmatprep.subr.bf16.mxu0 %v14172_v40 }
 0x832   :  { %13034 = vmatpush3.bf16.msra.mxu0 %v14172_v40 }
 0x833   :  { %13035 = vmatprep.subr.bf16.mxu0 %v14174_v4 }
 0x835   :  { %8730 = vmatmul.mubr.bf16.gmra.mrb[140].mxu0 %v16217_v25 }
 0x836   :  { %13036 = vmatpush3.bf16.msra.mxu0 %v14174_v4 }
 0x837   :  { %13037 = vmatprep.subr.bf16.mxu0 %v14176_v13 }
 0x83a   :  { %13038 = vmatpush3.bf16.msra.mxu0 %v14176_v13 }
 0x83b   :  { %13039 = vmatprep.subr.bf16.mxu0 %v14178_v34 }
 0x83e   :  { %13040 = vmatpush3.bf16.msra.mxu0 %v14178_v34 }
 0x83f   :  { %13041 = vmatprep.subr.bf16.mxu0 %v14180_v60 }
 0x840   :  { %v12020_v14 = vpop.f32.mrb[88].mxu0 }
 0x841   :  { %v12021_v44 = vpop.f32.mrb[89].mxu0 }
 0x842   :  { %v12022_v57 = vadd.f32 %v12021_v44, %v12020_v14  ;;  %v12023_v19 = vpop.f32.mrb[90].mxu0  ;;  %13042 = vmatpush3.bf16.msra.mxu0 %v14180_v60  ;;  %v16677_v14 = vld [vmem:[%s16915_s9] sm:$0xff]  }
 0x843   :  { %v12024_v49 = vpop.f32.mrb[91].mxu0  ;;  %13043 = vmatprep.subr.bf16.mxu0 %v14182_v42  ;;  %v16680_v44 = vld [vmem:[#allocation2] sm:$0xff] }
 0x844   :  { %v7490_v2 = vadd.f32 %v12022_v57, %v7277_v11 }
 0x846   :  { %13044 = vmatpush3.bf16.msra.mxu0 %v14182_v42 }
 0x847   :  { %13045 = vmatprep.subr.bf16.mxu0 %v14184_v56 }
 0x848   :  { %v12026_v61 = vpop.f32.mrb[92].mxu0 }
 0x849   :  { %v12027_v10 = vpop.f32.mrb[93].mxu0 }
 0x84a   :  { %v12028_v36 = vadd.f32 %v12027_v10, %v12026_v61  ;;  %v12029_v30 = vpop.f32.mrb[94].mxu0  ;;  %13046 = vmatpush3.bf16.msra.mxu0 %v14184_v56  ;;  %v14189_v56 = vld [vmem:[%s16915_s9 + $0x18] sm:$0xff]  }
 0x84b   :  { %v12030_v31 = vpop.f32.mrb[95].mxu0  ;;  %13051 = vmatprep.subr.bf16.mxu0 %v16677_v14 }
 0x84c   :  { %v7492_v52 = vadd.f32 %v12028_v36, %v7285_v20  ;;  %v14185_v20 = vld [vmem:[%s16915_s9 + $0x1f8] sm:$0xff]  }
 0x84d   :  { %13185 = vmatprep.subr.bf16.mxu1 %v14185_v20 }
 0x84e   :  { %13186 = vmatpush3.bf16.msra.mxu1 %v14185_v20  ;;  %v14191_v20 = vld [vmem:[%s16915_s9 + $0x28] sm:$0xff]  }
 0x84f   :  { %13211 = vmatprep.subr.bf16.mxu1 %v16680_v44 }
 0x860   :  { %v12048_v33 = vpop.f32.mrb[96].mxu0 }
 0x861   :  { %v12049_v35 = vpop.f32.mrb[97].mxu0 }
 0x862   :  { %v12050_v15 = vadd.f32 %v12049_v35, %v12048_v33  ;;  %v12051_v50 = vpop.f32.mrb[98].mxu0 }
 0x863   :  { %v12052_v46 = vpop.f32.mrb[99].mxu0 }
 0x864   :  { %v7697_v47 = vadd.f32 %v12050_v15, %v7490_v2 }
 0x868   :  { %v12054_v24 = vpop.f32.mrb[100].mxu0 }
 0x869   :  { %v12055_v25 = vpop.f32.mrb[101].mxu0 }
 0x86a   :  { %v12056_v62 = vadd.f32 %v12055_v25, %v12054_v24  ;;  %v12057_v0 = vpop.f32.mrb[102].mxu0 }
 0x86b   :  { %v12058_v58 = vpop.f32.mrb[103].mxu0 }
 0x86c   :  { %v7699_v5 = vadd.f32 %v12056_v62, %v7492_v52 }
 0x880   :  { %v12076_v1 = vpop.f32.mrb[104].mxu0 }
 0x881   :  { %v12077_v7 = vpop.f32.mrb[105].mxu0 }
 0x882   :  { %v12078_v18 = vadd.f32 %v12077_v7, %v12076_v1  ;;  %v12079_v9 = vpop.f32.mrb[106].mxu0 }
 0x883   :  { %v12080_v6 = vpop.f32.mrb[107].mxu0 }
 0x884   :  { %v7924_v27 = vadd.f32 %v12078_v18, %v7697_v47 }
 0x888   :  { %v12082_v8 = vpop.f32.mrb[108].mxu0 }
 0x889   :  { %v12083_v22 = vpop.f32.mrb[109].mxu0 }
 0x88a   :  { %v12084_v12 = vadd.f32 %v12083_v22, %v12082_v8  ;;  %v12085_v55 = vpop.f32.mrb[110].mxu0  ;;  %v11307_v8 = vld [vmem:[%s16916_s8] ss:$0 sm:$0xff] }
 0x88b   :  { %v12086_v32 = vpop.f32.mrb[111].mxu0 }
 0x88c   :  { %v7926_v37 = vadd.f32 %v12084_v12, %v7699_v5 }
 0x8a0   :  { %v12104_v3 = vpop.f32.mrb[112].mxu0 }
 0x8a1   :  { %v12105_v43 = vpop.f32.mrb[113].mxu0 }
 0x8a2   :  { %v12106_v29 = vadd.f32 %v12105_v43, %v12104_v3  ;;  %v12107_v39 = vpop.f32.mrb[114].mxu0 }
 0x8a3   :  { %v12108_v48 = vpop.f32.mrb[115].mxu0 }
 0x8a4   :  { %v8127_v59 = vadd.f32 %v12106_v29, %v7924_v27 }
 0x8a8   :  { %v12110_v17 = vpop.f32.mrb[116].mxu0 }
 0x8a9   :  { %v12111_v11 = vpop.f32.mrb[117].mxu0 }
 0x8aa   :  { %v12112_v28 = vadd.f32 %v12111_v11, %v12110_v17  ;;  %v12113_v45 = vpop.f32.mrb[118].mxu0 }
 0x8ab   :  { %v12114_v26 = vpop.f32.mrb[119].mxu0  ;;  %v14187_v45 = vld [vmem:[%s16915_s9 + $0x8] sm:$0xff]  }
 0x8ac   :  { %v8129_v41 = vadd.f32 %v12112_v28, %v7926_v37  ;;  %v14188_v26 = vld [vmem:[%s16915_s9 + $0x10] sm:$0xff]  }
 0x8c0   :  { %v12132_v57 = vpop.f32.mrb[120].mxu0 }
 0x8c1   :  { %v12133_v19 = vpop.f32.mrb[121].mxu0 }
 0x8c2   :  { %v12134_v49 = vadd.f32 %v12133_v19, %v12132_v57  ;;  %v12135_v2 = vpop.f32.mrb[122].mxu0  ;;  %v14193_v57 = vld [vmem:[%s16915_s9 + $0x38] sm:$0xff]   ;;  %v14194_v19 = vld [vmem:[%s16915_s9 + $0x80] sm:$0xff]  }
 0x8c3   :  { %v12136_v61 = vpop.f32.mrb[123].mxu0 }
 0x8c4   :  { %v8313_v10 = vadd.f32 %v12134_v49, %v8127_v59 }
 0x8c8   :  { %v12138_v36 = vpop.f32.mrb[124].mxu0 }
 0x8c9   :  { %v12139_v30 = vpop.f32.mrb[125].mxu0 }
 0x8ca   :  { %v12140_v31 = vadd.f32 %v12139_v30, %v12138_v36  ;;  %v12141_v52 = vpop.f32.mrb[126].mxu0  ;;  %v14195_v36 = vld [vmem:[%s16915_s9 + $0x88] sm:$0xff]  }
 0x8cb   :  { %v12142_v33 = vpop.f32.mrb[127].mxu0  ;;  %v14197_v52 = vld [vmem:[%s16915_s9 + $0x98] sm:$0xff]  }
 0x8cc   :  { %v8315_v35 = vadd.f32 %v12140_v31, %v8129_v41  ;;  %v14190_v41 = vld [vmem:[%s16915_s9 + $0x20] sm:$0xff]   ;;  %v14196_v31 = vld [vmem:[%s16915_s9 + $0x90] sm:$0xff]  }
 0x8cd   :  { %v14198_v33 = vld [vmem:[%s16915_s9 + $0xa0] sm:$0xff]  }
 0x8e0   :  { %v12160_v15 = vpop.f32.mrb[128].mxu0 }
 0x8e1   :  { %v12161_v50 = vpop.f32.mrb[129].mxu0 }
 0x8e2   :  { %v12162_v46 = vadd.f32 %v12161_v50, %v12160_v15  ;;  %v12163_v47 = vpop.f32.mrb[130].mxu0  ;;  %v14200_v15 = vld [vmem:[%s16915_s9 + $0xb0] sm:$0xff]   ;;  %v14201_v50 = vld [vmem:[%s16915_s9 + $0xb8] sm:$0xff]  }
 0x8e3   :  { %v12164_v24 = vpop.f32.mrb[131].mxu0 }
 0x8e4   :  { %v8535_v25 = vadd.f32 %v12162_v46, %v8313_v10  ;;  %v14202_v46 = vld [vmem:[%s16915_s9 + $0xc0] sm:$0xff]  }
 0x8e8   :  { %v12166_v62 = vpop.f32.mrb[132].mxu0 }
 0x8e9   :  { %v12167_v0 = vpop.f32.mrb[133].mxu0 }
 0x8ea   :  { %v12168_v58 = vadd.f32 %v12167_v0, %v12166_v62  ;;  %v12169_v5 = vpop.f32.mrb[134].mxu0  ;;  %v14203_v0 = vld [vmem:[%s16915_s9 + $0xc8] sm:$0xff]  }
 0x8eb   :  { %v12170_v1 = vpop.f32.mrb[135].mxu0  ;;  %v14204_v5 = vld [vmem:[%s16915_s9 + $0xd0] sm:$0xff]  }
 0x8ec   :  { %v8537_v7 = vadd.f32 %v12168_v58, %v8315_v35  ;;  %v14199_v35 = vld [vmem:[%s16915_s9 + $0xa8] sm:$0xff]   ;;  %v14205_v1 = vld [vmem:[%s16915_s9 + $0xd8] sm:$0xff]  }
 0x900   :  { %v12188_v18 = vpop.f32.mrb[136].mxu0 }
 0x901   :  { %v12189_v9 = vpop.f32.mrb[137].mxu0 }
 0x902   :  { %v12190_v6 = vadd.f32 %v12189_v9, %v12188_v18  ;;  %v12191_v27 = vpop.f32.mrb[138].mxu0  ;;  %v14207_v18 = vld [vmem:[%s16915_s9 + $0xe8] sm:$0xff]   ;;  %v14208_v9 = vld [vmem:[%s16915_s9 + $0xf0] sm:$0xff]  }
 0x903   :  { %v12192_v22 = vpop.f32.mrb[139].mxu0  ;;  %v14210_v27 = vld [vmem:[%s16915_s9 + $0x100] sm:$0xff]  }
 0x904   :  { %v8737_v12 = vadd.f32 %v12190_v6, %v8535_v25  ;;  %v9125_v25 = vld [vmem:[#allocation5 + $0xc] sm:$0xff]  ;;  %v14209_v6 = vld [vmem:[%s16915_s9 + $0xf8] sm:$0xff]  }
 0x906   :  { %v8747_v55 = vadd.f32 %v11307_v8, %v8737_v12  ;;  %v9246_v12 = vld [vmem:[#allocation5 + $0xd] sm:$0xff] }
 0x908   :  { %v8750_v32 = vmax.f32 %v8747_v55, 0.0  ;;  %v12194_v37 = vpop.f32.mrb[140].mxu0 }
 0x909   :  { %v12195_v16 = vpop.f32.mrb[141].mxu0 }
 0x90a   :  { %8753 = vst [vmem:[#allocation9] sm:$0xff] %v8750_v32  ;;  %v12196_v21 = vadd.f32 %v12195_v16, %v12194_v37  ;;  %v12197_v40 = vpop.f32.mrb[142].mxu0  ;;  %v14211_v32 = vld [vmem:[%s16915_s9 + $0x108] sm:$0xff]   ;;  %v14212_v16 = vld [vmem:[%s16915_s9 + $0x110] sm:$0xff]  }
 0x90b   :  { %v12198_v23 = vpop.f32.mrb[143].mxu0  ;;  %v14214_v40 = vld [vmem:[%s16915_s9 + $0x120] sm:$0xff]  }
 0x90c   :  { %v8739_v4 = vadd.f32 %v12196_v21, %v8537_v7  ;;  %v14206_v7 = vld [vmem:[%s16915_s9 + $0xe0] sm:$0xff]   ;;  %v14213_v21 = vld [vmem:[%s16915_s9 + $0x118] sm:$0xff]   ;;  %v14215_v23 = vld [vmem:[%s16915_s9 + $0x128] sm:$0xff]  }
 0x90e   :  { %v8749_v53 = vadd.f32 %v11307_v8, %v8739_v4  ;;  %v14216_v4 = vld [vmem:[%s16915_s9 + $0x130] sm:$0xff]  }
 0x910   :  { %v8752_v13 = vmax.f32 %v8749_v53, 0.0  ;;  %v14217_v53 = vld [vmem:[%s16915_s9 + $0x138] sm:$0xff]  }
 0x911   :  { %v8760_v54 = vld [vmem:[#allocation9] sm:$0x3]  ;;  %v8762_v34 = vld [vmem:[#allocation9 + $0x4] sm:$0x3] }
 0x912   :  { %8761 = vst [vmem:[#allocation5 + $0x5] sm:$0x3] %v8760_v54  ;;  %8763 = vst [vmem:[#allocation5 + $0x9] sm:$0x3] %v8762_v34 }
 0x913   :  { %8755 = vst [vmem:[#allocation9 + $0x10] sm:$0x3f] %v8752_v13  ;;  %v14218_v13 = vld [vmem:[%s16915_s9 + $0x140] sm:$0xff]  }
 0x919   :  { %v8789_v29 = vld [vmem:[#allocation5 + $0x1] sm:$0xff]  ;;  %v8790_v39 = vld [vmem:[#allocation5 + $0x9] sm:$0xff] }
 0x91a   :  { %v8764_v3 = vld [vmem:[#allocation9 + $0x10] sm:$0x3]  ;;  %v8766_v43 = vld [vmem:[#allocation9 + $0x14] sm:$0x3]  ;;  %v8792_v51 = vpack.c.bf16 %v8790_v39, %v8789_v29  ;;  %v16686_v60 = vld [vmem:[#allocation5 + $0x8] sm:$0xff] }
 0x91b   :  { %8765 = vst [vmem:[#allocation5 + $0x15] sm:$0x3] %v8764_v3  ;;  %8767 = vst [vmem:[#allocation5 + $0x19] sm:$0x3] %v8766_v43  ;;  %v8768_v48 = vld [vmem:[#allocation5] sm:$0xff]  ;;  %v16714_v61 = vld [vmem:[#allocation5 + $0xa] sm:$0xff] }
 0x91c   :  { %13047 = vmatprep.mubr.bf16.mxu0 %v8792_v51  ;;  %v8771_v38 = vpack.c.bf16 %v16686_v60, %v8768_v48  ;;  %v9003_v2 = vld [vmem:[#allocation5 + $0x2] sm:$0xff]  ;;  %v14220_v51 = vld [vmem:[%s16915_s9 + $0x150] sm:$0xff]   ;;  %v14221_v48 = vld [vmem:[%s16915_s9 + $0x158] sm:$0xff]  }
 0x91d   :  { %v9006_v30 = vpack.c.bf16 %v16714_v61, %v9003_v2  ;;  %v9124_v24 = vld [vmem:[#allocation5 + $0x4] sm:$0xff] }
 0x91e   :  { %v9127_v58 = vpack.c.bf16 %v9125_v25, %v9124_v24  ;;  %v9245_v22 = vld [vmem:[#allocation5 + $0x5] sm:$0xff] }
 0x91f   :  { %v9248_v37 = vpack.c.bf16 %v9246_v12, %v9245_v22  ;;  %v9366_v43 = vld [vmem:[#allocation5 + $0x6] sm:$0xff] }
 0x920   :  { %v14219_v29 = vld [vmem:[%s16915_s9 + $0x148] sm:$0xff]  }
 0x922   :  { %v8791_v59 = vld [vmem:[#allocation5 + $0x11] sm:$0x3f]  ;;  %v9610_v42 = vld [vmem:[#allocation5 + $0x19] sm:$0x3f] }
 0x923   :  { %v9609_v63 = vld [vmem:[#allocation5 + $0x11] sm:$0xff]  ;;  %v8793_v17 = vpack.c.bf16 %v8791_v59, %v8791_v59  ;;  %v9612_v28 = vpack.c.bf16 %v9610_v42, %v9610_v42  ;;  %v14222_v59 = vld [vmem:[%s16915_s9 + $0x160] sm:$0xff]  }
 0x924   :  { %v9611_v11 = vpack.c.bf16 %v9609_v63, %v8790_v39  ;;  %v8770_v49 = vld [vmem:[#allocation5 + $0x10] sm:$0x3f]  ;;  %v14223_v63 = vld [vmem:[%s16915_s9 + $0x168] sm:$0xff]   ;;  %v9489_v2 = vld [vmem:[#allocation5 + $0x18] sm:$0x3f] }
 0x925   :  { %13048 = vmatmul.mubr.bf16.vlgmr.msra.gmra.mrb[144].mxu0 %v8793_v17  ;;  %v8772_v10 = vpack.c.bf16 %v8770_v49, %v8770_v49  ;;  %v9005_v47 = vld [vmem:[#allocation5 + $0x12] sm:$0x3f]  ;;  %v14225_v17 = vld [vmem:[%s16915_s9 + $0x178] sm:$0xff]   ;;  %v14234_v49 = vld [vmem:[%s16915_s9 + $0x200] sm:$0xff]  }
 0x926   :  { %13187 = vmatprep.mubr.bf16.mxu1 %v9611_v11  ;;  %13052 = vmatpush3.bf16.msra.mxu0 %v16677_v14  ;;  %v14192_v14 = vld [vmem:[%s16915_s9 + $0x30] sm:$0xff]   ;;  %v9007_v62 = vpack.c.bf16 %v9005_v47, %v9005_v47  ;;  %v14226_v11 = vld [vmem:[%s16915_s9 + $0x180] sm:$0xff]  }
 0x927   :  { %13067 = vmatprep.mubr.bf16.mxu0 %v8771_v38  ;;  %13188 = vmatmul.mubr.bf16.vlgmr.msra.gmra.mrb[28].mxu1 %v9612_v28  ;;  %v9126_v8 = vld [vmem:[#allocation5 + $0x14] sm:$0x3f] }
 0x928   :  { %13053 = vmatprep.subr.bf16.mxu0 %v14187_v45  ;;  %v9128_v55 = vpack.c.bf16 %v9126_v8, %v9126_v8  ;;  %v9247_v54 = vld [vmem:[#allocation5 + $0x15] sm:$0x3f]  ;;  %13227 = vmatprep.mubr.msk.bf16.mxu1 %vm14269_vm5, %v16680_v44 }
 0x929   :  { %v9367_v34 = vld [vmem:[#allocation5 + $0xe] sm:$0xff]  ;;  %v9249_v3 = vpack.c.bf16 %v9247_v54, %v9247_v54  ;;  %v9368_v28 = vld [vmem:[#allocation5 + $0x16] sm:$0x3f] }
 0x92a   :  { %13054 = vmatpush3.bf16.msra.mxu0 %v14187_v45  ;;  %v9369_v39 = vpack.c.bf16 %v9367_v34, %v9366_v43  ;;  %v14224_v42 = vld [vmem:[%s16915_s9 + $0x170] sm:$0xff]   ;;  %v9370_v38 = vpack.c.bf16 %v9368_v28, %v9368_v28 }
 0x92b   :  { %13055 = vmatprep.subr.bf16.mxu0 %v14188_v26  ;;  %v9488_v45 = vld [vmem:[#allocation5 + $0x10] sm:$0xff] }
 0x92c   :  { %v14244_v43 = vld [vmem:[%s16917_s11 + $0x10] sm:$0xff]  }
 0x92d   :  { %v14248_v28 = vld [vmem:[%s16917_s11 + $0x30] sm:$0xff]  }
 0x92e   :  { %13056 = vmatpush3.bf16.msra.mxu0 %v14188_v26  ;;  %v14227_v26 = vld [vmem:[%s16915_s9 + $0x188] sm:$0xff]  }
 0x92f   :  { %13057 = vmatprep.subr.bf16.mxu0 %v14189_v56 }
 0x932   :  { %13058 = vmatpush3.bf16.msra.mxu0 %v14189_v56  ;;  %v9490_v56 = vpack.c.bf16 %v9488_v45, %v16686_v60  ;;  %v14230_v60 = vld [vmem:[%s16915_s9 + $0x1a0] sm:$0xff]   ;;  %v14249_v45 = vld [vmem:[%s16917_s11 + $0x38] sm:$0xff]  }
 0x933   :  { %13059 = vmatprep.subr.bf16.mxu0 %v14190_v41 }
 0x936   :  { %13060 = vmatpush3.bf16.msra.mxu0 %v14190_v41  ;;  %v14228_v41 = vld [vmem:[%s16915_s9 + $0x190] sm:$0xff]  }
 0x937   :  { %13061 = vmatprep.subr.bf16.mxu0 %v14191_v20 }
 0x93a   :  { %13062 = vmatpush3.bf16.msra.mxu0 %v14191_v20  ;;  %v14229_v20 = vld [vmem:[%s16915_s9 + $0x198] sm:$0xff]  }
 0x93b   :  { %13063 = vmatprep.subr.bf16.mxu0 %v14192_v14 }
 0x93e   :  { %13064 = vmatpush3.bf16.msra.mxu0 %v14192_v14  ;;  %v14231_v14 = vld [vmem:[%s16915_s9 + $0x1a8] sm:$0xff]  }
 0x93f   :  { %13065 = vmatprep.subr.bf16.mxu0 %v14193_v57 }
 0x942   :  { %13066 = vmatpush3.bf16.msra.mxu0 %v14193_v57  ;;  %v14232_v57 = vld [vmem:[%s16915_s9 + $0x1b0] sm:$0xff]  }
 0x943   :  { %13071 = vmatprep.subr.bf16.mxu0 %v14194_v19 }
 0x945   :  { %13068 = vmatmul.mubr.bf16.vlgmr.msra.gmra.mrb[148].mxu0 %v8772_v10  ;;  %v9730_v10 = vld [vmem:[#allocation5 + $0x12] sm:$0xff] }
 0x946   :  { %13072 = vmatpush3.bf16.msra.mxu0 %v14194_v19  ;;  %13087 = vmatprep.mubr.bf16.mxu0 %v9006_v30  ;;  %v14233_v19 = vld [vmem:[%s16915_s9 + $0x1b8] sm:$0xff]   ;;  %v14235_v30 = vld [vmem:[%s16915_s9 + $0x208] sm:$0xff]  }
 0x947   :  { %13073 = vmatprep.subr.bf16.mxu0 %v14195_v36 }
 0x94a   :  { %13074 = vmatpush3.bf16.msra.mxu0 %v14195_v36  ;;  %v9491_v36 = vpack.c.bf16 %v9489_v2, %v9489_v2 }
 0x94b   :  { %13075 = vmatprep.subr.bf16.mxu0 %v14196_v31 }
 0x94e   :  { %13076 = vmatpush3.bf16.msra.mxu0 %v14196_v31  ;;  %v9732_v31 = vpack.c.bf16 %v9730_v10, %v16714_v61  ;;  %v14238_v61 = vld [vmem:[%s16915_s9 + $0x220] sm:$0xff]  }
 0x94f   :  { %13077 = vmatprep.subr.bf16.mxu0 %v14197_v52 }
 0x952   :  { %13078 = vmatpush3.bf16.msra.mxu0 %v14197_v52  ;;  %v14236_v52 = vld [vmem:[%s16915_s9 + $0x210] sm:$0xff]  }
 0x953   :  { %13079 = vmatprep.subr.bf16.mxu0 %v14198_v33 }
 0x956   :  { %13080 = vmatpush3.bf16.msra.mxu0 %v14198_v33  ;;  %v14237_v33 = vld [vmem:[%s16915_s9 + $0x218] sm:$0xff]  }
 0x957   :  { %13081 = vmatprep.subr.bf16.mxu0 %v14199_v35 }
 0x95a   :  { %13082 = vmatpush3.bf16.msra.mxu0 %v14199_v35  ;;  %v14239_v35 = vld [vmem:[%s16915_s9 + $0x228] sm:$0xff]  }
 0x95b   :  { %13083 = vmatprep.subr.bf16.mxu0 %v14200_v15 }
 0x95e   :  { %13084 = vmatpush3.bf16.msra.mxu0 %v14200_v15  ;;  %v14240_v15 = vld [vmem:[%s16915_s9 + $0x230] sm:$0xff]  }
 0x95f   :  { %13085 = vmatprep.subr.bf16.mxu0 %v14201_v50 }
 0x962   :  { %13086 = vmatpush3.bf16.msra.mxu0 %v14201_v50 }
 0x963   :  { %13091 = vmatprep.subr.bf16.mxu0 %v14202_v46 }
 0x965   :  { %13088 = vmatmul.mubr.bf16.vlgmr.msra.gmra.mrb[152].mxu0 %v9007_v62 }
 0x966   :  { %13092 = vmatpush3.bf16.msra.mxu0 %v14202_v46  ;;  %13107 = vmatprep.mubr.bf16.mxu0 %v9127_v58 }
 0x967   :  { %13093 = vmatprep.subr.bf16.mxu0 %v14203_v0 }
 0x96a   :  { %13094 = vmatpush3.bf16.msra.mxu0 %v14203_v0  ;;  %v14241_v0 = vld [vmem:[%s16915_s9 + $0x238] sm:$0xff]  }
 0x96b   :  { %13095 = vmatprep.subr.bf16.mxu0 %v14204_v5 }
 0x96e   :  { %13096 = vmatpush3.bf16.msra.mxu0 %v14204_v5 }
 0x96f   :  { %13097 = vmatprep.subr.bf16.mxu0 %v14205_v1 }
 0x972   :  { %13098 = vmatpush3.bf16.msra.mxu0 %v14205_v1  ;;  %v9731_v1 = vld [vmem:[#allocation5 + $0x1a] sm:$0x3f] }
 0x973   :  { %13099 = vmatprep.subr.bf16.mxu0 %v14206_v7 }
 0x976   :  { %13100 = vmatpush3.bf16.msra.mxu0 %v14206_v7  ;;  %v9733_v7 = vpack.c.bf16 %v9731_v1, %v9731_v1 }
 0x977   :  { %13101 = vmatprep.subr.bf16.mxu0 %v14207_v18 }
 0x97a   :  { %13102 = vmatpush3.bf16.msra.mxu0 %v14207_v18 }
 0x97b   :  { %13103 = vmatprep.subr.bf16.mxu0 %v14208_v9 }
 0x97e   :  { %13104 = vmatpush3.bf16.msra.mxu0 %v14208_v9 }
 0x97f   :  { %13105 = vmatprep.subr.bf16.mxu0 %v14209_v6 }
 0x982   :  { %13106 = vmatpush3.bf16.msra.mxu0 %v14209_v6 }
 0x983   :  { %13111 = vmatprep.subr.bf16.mxu0 %v14210_v27 }
 0x985   :  { %13108 = vmatmul.mubr.bf16.vlgmr.msra.gmra.mrb[156].mxu0 %v9128_v55 }
 0x986   :  { %13112 = vmatpush3.bf16.msra.mxu0 %v14210_v27  ;;  %13127 = vmatprep.mubr.bf16.mxu0 %v9248_v37 }
 0x987   :  { %13113 = vmatprep.subr.bf16.mxu0 %v14211_v32 }
 0x98a   :  { %13114 = vmatpush3.bf16.msra.mxu0 %v14211_v32 }
 0x98b   :  { %13115 = vmatprep.subr.bf16.mxu0 %v14212_v16 }
 0x98e   :  { %13116 = vmatpush3.bf16.msra.mxu0 %v14212_v16 }
 0x98f   :  { %13117 = vmatprep.subr.bf16.mxu0 %v14213_v21 }
 0x992   :  { %13118 = vmatpush3.bf16.msra.mxu0 %v14213_v21 }
 0x993   :  { %13119 = vmatprep.subr.bf16.mxu0 %v14214_v40 }
 0x996   :  { %13120 = vmatpush3.bf16.msra.mxu0 %v14214_v40  ;;  %v14242_v40 = vld [vmem:[%s16917_s11] sm:$0xff]  }
 0x997   :  { %13121 = vmatprep.subr.bf16.mxu0 %v14215_v23  ;;  %13212 = vmatpush3.bf16.msra.mxu1 %v14242_v40 }
 0x998   :  { %13213 = vmatprep.subr.bf16.mxu1 %v16680_v44 }
 0x99a   :  { %13122 = vmatpush3.bf16.msra.mxu0 %v14215_v23 }
 0x99b   :  { %13123 = vmatprep.subr.bf16.mxu0 %v14216_v4 }
 0x99e   :  { %13124 = vmatpush3.bf16.msra.mxu0 %v14216_v4 }
 0x99f   :  { %13125 = vmatprep.subr.bf16.mxu0 %v14217_v53 }
 0x9a2   :  { %13126 = vmatpush3.bf16.msra.mxu0 %v14217_v53 }
 0x9a3   :  { %13131 = vmatprep.subr.bf16.mxu0 %v14218_v13 }
 0x9a5   :  { %13128 = vmatmul.mubr.bf16.vlgmr.msra.gmra.mrb[160].mxu0 %v9249_v3  ;;  %v14243_v3 = vld [vmem:[%s16917_s11 + $0x8] sm:$0xff]  }
 0x9a6   :  { %13132 = vmatpush3.bf16.msra.mxu0 %v14218_v13  ;;  %13147 = vmatprep.mubr.bf16.mxu0 %v9369_v39  ;;  %v14246_v39 = vld [vmem:[%s16917_s11 + $0x20] sm:$0xff]  }
 0x9a7   :  { %13133 = vmatprep.subr.bf16.mxu0 %v14219_v29  ;;  %13214 = vmatpush3.bf16.msra.mxu1 %v14243_v3 }
 0x9a8   :  { %13215 = vmatprep.subr.bf16.mxu1 %v16680_v44 }
 0x9aa   :  { %13134 = vmatpush3.bf16.msra.mxu0 %v14219_v29  ;;  %v14245_v29 = vld [vmem:[%s16917_s11 + $0x18] sm:$0xff]  }
 0x9ab   :  { %13135 = vmatprep.subr.bf16.mxu0 %v14220_v51  ;;  %13216 = vmatpush3.bf16.msra.mxu1 %v14244_v43 }
 0x9ac   :  { %13217 = vmatprep.subr.bf16.mxu1 %v16680_v44 }
 0x9ae   :  { %13136 = vmatpush3.bf16.msra.mxu0 %v14220_v51 }
 0x9af   :  { %13137 = vmatprep.subr.bf16.mxu0 %v14221_v48  ;;  %13218 = vmatpush3.bf16.msra.mxu1 %v14245_v29 }
 0x9b0   :  { %13219 = vmatprep.subr.bf16.mxu1 %v16680_v44 }
 0x9b2   :  { %13138 = vmatpush3.bf16.msra.mxu0 %v14221_v48 }
 0x9b3   :  { %13139 = vmatprep.subr.bf16.mxu0 %v14222_v59  ;;  %13220 = vmatpush3.bf16.msra.mxu1 %v14246_v39 }
 0x9b4   :  { %13221 = vmatprep.subr.bf16.mxu1 %v16680_v44 }
 0x9b6   :  { %13140 = vmatpush3.bf16.msra.mxu0 %v14222_v59 }
 0x9b7   :  { %13141 = vmatprep.subr.bf16.mxu0 %v14223_v63 }
 0x9ba   :  { %13142 = vmatpush3.bf16.msra.mxu0 %v14223_v63 }
 0x9bb   :  { %13143 = vmatprep.subr.bf16.mxu0 %v14224_v42 }
 0x9be   :  { %13144 = vmatpush3.bf16.msra.mxu0 %v14224_v42 }
 0x9bf   :  { %13145 = vmatprep.subr.bf16.mxu0 %v14225_v17 }
 0x9c2   :  { %13146 = vmatpush3.bf16.msra.mxu0 %v14225_v17 }
 0x9c3   :  { %13151 = vmatprep.subr.bf16.mxu0 %v14226_v11 }
 0x9c5   :  { %13148 = vmatmul.mubr.bf16.vlgmr.msra.gmra.mrb[164].mxu0 %v9370_v38 }
 0x9c6   :  { %13152 = vmatpush3.bf16.msra.mxu0 %v14226_v11  ;;  %13167 = vmatprep.mubr.bf16.mxu0 %v9490_v56  ;;  %v14247_v11 = vld [vmem:[%s16917_s11 + $0x28] sm:$0xff]  }
 0x9c7   :  { %13153 = vmatprep.subr.bf16.mxu0 %v14227_v26  ;;  %13222 = vmatpush3.bf16.msra.mxu1 %v14247_v11 }
 0x9c8   :  { %13223 = vmatprep.subr.bf16.mxu1 %v16680_v44 }
 0x9ca   :  { %13154 = vmatpush3.bf16.msra.mxu0 %v14227_v26 }
 0x9cb   :  { %13155 = vmatprep.subr.bf16.mxu0 %v14228_v41  ;;  %13224 = vmatpush3.bf16.msra.mxu1 %v14248_v28 }
 0x9cc   :  { %13225 = vmatprep.subr.bf16.mxu1 %v16680_v44  ;;  %v11508_v44 = vld [vmem:[%s16918_s10] ss:$0 sm:$0xff] }
 0x9ce   :  { %13156 = vmatpush3.bf16.msra.mxu0 %v14228_v41 }
 0x9cf   :  { %13157 = vmatprep.subr.bf16.mxu0 %v14229_v20  ;;  %13226 = vmatpush3.bf16.msra.mxu1 %v14249_v45 }
 0x9d2   :  { %13158 = vmatpush3.bf16.msra.mxu0 %v14229_v20 }
 0x9d3   :  { %13159 = vmatprep.subr.bf16.mxu0 %v14230_v60 }
 0x9d6   :  { %13160 = vmatpush3.bf16.msra.mxu0 %v14230_v60 }
 0x9d7   :  { %13161 = vmatprep.subr.bf16.mxu0 %v14231_v14 }
 0x9da   :  { %13162 = vmatpush3.bf16.msra.mxu0 %v14231_v14 }
 0x9db   :  { %13163 = vmatprep.subr.bf16.mxu0 %v14232_v57 }
 0x9de   :  { %13164 = vmatpush3.bf16.msra.mxu0 %v14232_v57 }
 0x9df   :  { %13165 = vmatprep.subr.bf16.mxu0 %v14233_v19 }
 0x9e2   :  { %13166 = vmatpush3.bf16.msra.mxu0 %v14233_v19 }
 0x9e3   :  { %13191 = vmatprep.subr.bf16.mxu0 %v14234_v49 }
 0x9e5   :  { %13168 = vmatmul.mubr.bf16.vlgmr.msra.gmra.mrb[168].mxu0 %v9491_v36 }
 0x9e6   :  { %13192 = vmatpush3.bf16.msra.mxu0 %v14234_v49  ;;  %13207 = vmatprep.mubr.bf16.mxu0 %v9732_v31 }
 0x9e7   :  { %13193 = vmatprep.subr.bf16.mxu0 %v14235_v30 }
 0x9ea   :  { %13194 = vmatpush3.bf16.msra.mxu0 %v14235_v30 }
 0x9eb   :  { %13195 = vmatprep.subr.bf16.mxu0 %v14236_v52 }
 0x9ee   :  { %13196 = vmatpush3.bf16.msra.mxu0 %v14236_v52 }
 0x9ef   :  { %13197 = vmatprep.subr.bf16.mxu0 %v14237_v33 }
 0x9f2   :  { %13198 = vmatpush3.bf16.msra.mxu0 %v14237_v33 }
 0x9f3   :  { %13199 = vmatprep.subr.bf16.mxu0 %v14238_v61 }
 0x9f6   :  { %13200 = vmatpush3.bf16.msra.mxu0 %v14238_v61 }
 0x9f7   :  { %13201 = vmatprep.subr.bf16.mxu0 %v14239_v35 }
 0x9f8   :  { %v13049_v50 = vpop.f32.mrb[144].mxu0 }
 0x9f9   :  { %v8893_v46 = vpop.f32.mrb[145].mxu0 }
 0x9fa   :  { %v16857_v47 = vpop.f32.mrb[28].mxu1  ;;  %13202 = vmatpush3.bf16.msra.mxu0 %v14239_v35  ;;  %v13050_v24 = vpop.f32.mrb[146].mxu0 }
 0x9fb   :  { %v16859_v25 = vpop.f32.mrb[29].mxu1  ;;  %v8896_v62 = vpop.f32.mrb[147].mxu0  ;;  %13203 = vmatprep.subr.bf16.mxu0 %v14240_v15 }
 0x9fc   :  { %v13190_v58 = vpop.f32.mrb[30].mxu1 }
 0x9fd   :  { %v9715_v5 = vpop.f32.mrb[31].mxu1 }
 0x9fe   :  { %13204 = vmatpush3.bf16.msra.mxu0 %v14240_v15 }
 0x9ff   :  { %13205 = vmatprep.subr.bf16.mxu0 %v14241_v0 }
 0xa02   :  { %13206 = vmatpush3.bf16.msra.mxu0 %v14241_v0 }
 0xa05   :  { %13208 = vmatmul.mubr.bf16.vlgmr.msra.gmra.mrb[172].mxu0 %v9733_v7 }
 0xa18   :  { %v13069_v18 = vpop.f32.mrb[148].mxu0 }
 0xa19   :  { %v8998_v9 = vadd.f32 %v13069_v18, %v13049_v50  ;;  %v8989_v6 = vpop.f32.mrb[149].mxu0 }
 0xa1a   :  { %v8990_v27 = vadd.f32 %v8989_v6, %v8893_v46  ;;  %v13070_v8 = vpop.f32.mrb[150].mxu0 }
 0xa1b   :  { %v8992_v22 = vpop.f32.mrb[151].mxu0 }
 0xa38   :  { %v13089_v12 = vpop.f32.mrb[152].mxu0 }
 0xa39   :  { %v9123_v55 = vadd.f32 %v13089_v12, %v8998_v9  ;;  %v9107_v32 = vpop.f32.mrb[153].mxu0 }
 0xa3a   :  { %v9121_v37 = vadd.f32 %v9107_v32, %v8990_v27  ;;  %v13090_v16 = vpop.f32.mrb[154].mxu0 }
 0xa3b   :  { %v9110_v21 = vpop.f32.mrb[155].mxu0 }
 0xa58   :  { %v13109_v23 = vpop.f32.mrb[156].mxu0 }
 0xa59   :  { %v9244_v4 = vadd.f32 %v13109_v23, %v9123_v55  ;;  %v9228_v53 = vpop.f32.mrb[157].mxu0 }
 0xa5a   :  { %v9242_v13 = vadd.f32 %v9228_v53, %v9121_v37  ;;  %v13110_v54 = vpop.f32.mrb[158].mxu0  ;;  %v11509_v37 = vld [vmem:[%s16919_s12] ss:$0 sm:$0xff] }
 0xa5b   :  { %v9231_v34 = vpop.f32.mrb[159].mxu0 }
 0xa78   :  { %v13129_v51 = vpop.f32.mrb[160].mxu0 }
 0xa79   :  { %v9365_v48 = vadd.f32 %v13129_v51, %v9244_v4  ;;  %v9349_v59 = vpop.f32.mrb[161].mxu0 }
 0xa7a   :  { %v9363_v63 = vadd.f32 %v9349_v59, %v9242_v13  ;;  %v13130_v42 = vpop.f32.mrb[162].mxu0 }
 0xa7b   :  { %v9352_v17 = vpop.f32.mrb[163].mxu0 }
 0xa98   :  { %v13149_v38 = vpop.f32.mrb[164].mxu0 }
 0xa99   :  { %v9486_v26 = vadd.f32 %v13149_v38, %v9365_v48  ;;  %v9470_v56 = vpop.f32.mrb[165].mxu0 }
 0xa9a   :  { %v9484_v41 = vadd.f32 %v9470_v56, %v9363_v63  ;;  %v13150_v20 = vpop.f32.mrb[166].mxu0 }
 0xa9b   :  { %v9473_v60 = vpop.f32.mrb[167].mxu0 }
 0xab8   :  { %v13169_v14 = vpop.f32.mrb[168].mxu0 }
 0xab9   :  { %v9607_v57 = vadd.f32 %v13169_v14, %v9486_v26  ;;  %v9591_v19 = vpop.f32.mrb[169].mxu0 }
 0xaba   :  { %v9605_v49 = vadd.f32 %v9591_v19, %v9484_v41  ;;  %v13170_v2 = vpop.f32.mrb[170].mxu0 }
 0xabb   :  { %v9594_v10 = vpop.f32.mrb[171].mxu0  ;;  %v9728_v36 = vadd.f32 %v16857_v47, %v9607_v57 }
 0xabc   :  { %v9726_v30 = vadd.f32 %v16859_v25, %v9605_v49 }
 0xad8   :  { %v13209_v31 = vpop.f32.mrb[172].mxu0 }
 0xad9   :  { %v9849_v52 = vadd.f32 %v13209_v31, %v9728_v36  ;;  %v9833_v33 = vpop.f32.mrb[173].mxu0 }
 0xada   :  { %v9847_v61 = vadd.f32 %v9833_v33, %v9726_v30  ;;  %v13210_v35 = vpop.f32.mrb[174].mxu0 }
 0xadb   :  { %v9859_v15 = vadd.f32 %v11508_v44, %v9849_v52  ;;  %v9836_v50 = vpop.f32.mrb[175].mxu0 }
 0xadc   :  { %v9857_v46 = vadd.f32 %v11508_v44, %v9847_v61 }
 0xadd   :  { %v9862_v24 = vmax.f32 %v9859_v15, 0.0 }
 0xade   :  { %v9860_v62 = vmax.f32 %v9857_v46, 0.0 }
 0xadf   :  { %9865 = vst [vmem:[#allocation10 + $0x10] sm:$0x3f] %v9862_v24 }
 0xae0   :  { %9863 = vst [vmem:[#allocation10] sm:$0xff] %v9860_v62 }
 0xae6   :  { %v9875_v0 = vld [vmem:[#allocation10 + $0x10] sm:$0x1]  ;;  %v9876_v47 = vld [vmem:[#allocation10 + $0x11] sm:$0x1]  ;;  %v9878_v58 = vld [vmem:[#allocation10 + $0x14] sm:$0x1] }
 0xae7   :  { %v9877_v25 = vmax.f32 %v9875_v0, %v9876_v47  ;;  %v9879_v5 = vld [vmem:[#allocation10 + $0x15] sm:$0x1]  ;;  %v9867_v1 = vld [vmem:[#allocation10] sm:$0x1]  ;;  %v9868_v7 = vld [vmem:[#allocation10 + $0x1] sm:$0x1] }
 0xae8   :  { %v9880_v18 = vmax.f32 %v9878_v58, %v9879_v5  ;;  %v9869_v9 = vmax.f32 %v9867_v1, %v9868_v7  ;;  %v9870_v6 = vld [vmem:[#allocation10 + $0x4] sm:$0x1]  ;;  %v9871_v27 = vld [vmem:[#allocation10 + $0x5] sm:$0x1] }
 0xae9   :  { %v9872_v8 = vmax.f32 %v9870_v6, %v9871_v27 }
 0xaea   :  { %v9881_v22 = vmax.f32 %v9877_v25, %v9880_v18 }
 0xaeb   :  { %v9873_v12 = vmax.f32 %v9869_v9, %v9872_v8 }
 0xaec   :  { %9882 = vst [vmem:[#allocation11 + $0x1] sm:$0x1] %v9881_v22 }
 0xaed   :  { %9874 = vst [vmem:[#allocation11] sm:$0x1] %v9873_v12 }
 0xaf4   :  { %v9883_v55 = vld [vmem:[#allocation11] sm:$0xff] }
 0xaf5   :  { %v9884_v32 = vpack.c.bf16 %v9883_v55, %v9883_v55 }
 0xaf7   :  { %13228 = vmatmul.mubr.bf16.vlgmr.msra.gmra.mrb[32].mxu1 %v9884_v32 }
 0xbca   :  { %v9990_v16 = vpop.f32.mrb[32].mxu1 }
 0xbcb   :  { %v9991_v21 = vadd.f32 %v11509_v37, %v9990_v16  ;;  %v13229_v40 = vpop.f32.mrb[33].mxu1 }
 0xbcc   :  { %v9993_v23 = vpop.f32.mrb[34].mxu1 }
 0xbcd   :  { %9996 = vst [vmem:[%s16920_s13] sm:$0xff] %v9991_v21  ;;  %v13230_v4 = vpop.f32.mrb[35].mxu1 }

</bundles_post_ra>
